<compile_context>
chip_gen: v6e
topology: v6e:2x2x1
jax: 0.10.0
libtpu: 0.0.40
codegen_flags: <defaults>
</compile_context>

<pallas_src>
import math

import numpy as np
import jax
import jax.numpy as jnp
from jax.experimental import pallas as pl
from jax.experimental.pallas import tpu as pltpu

EPS = 1e-5
DW = 3  # GhostModule cheap-operation (depthwise) kernel size


# ----------------------------------------------------------------------------
# Fused Pallas kernel
# ----------------------------------------------------------------------------

def _make_kernel(*, Cin, H, W, hidden, oup, K, stride, use_se, has_sc,
                 c1a, c1b, c2a, c2b, Ho, Wo):
    """Build the fused GhostBottleneck kernel for one static configuration."""
    f32 = jnp.float32
    inv_hw = 1.0 / float(Ho * Wo)

    def dw_taps(pad_ref, wv, nh, nw, nc, ksz, strd):
        # pad_ref: zero-padded VMEM scratch; wv: (ksz*ksz, 1, nc) folded weights.
        acc = jnp.zeros((nh, nw, nc), f32)
        if strd == 1:
            src = pad_ref[...]
            for dy in range(ksz):
                for dx in range(ksz):
                    acc = acc + src[dy:dy + nh, dx:dx + nw, :] * wv[dy * ksz + dx]
        else:
            # stride-2: touch only the needed input pixels (strided reads).
            for dy in range(ksz):
                for dx in range(ksz):
                    acc = acc + (pad_ref[pl.ds(dy, nh, strd),
                                         pl.ds(dx, nw, strd), :]
                                 * wv[dy * ksz + dx])
        return acc

    def kernel(*refs):
        it = iter(refs)
        x_ref = next(it)
        eye_ref = next(it)
        g1w, g1b, g1dw, g1db = next(it), next(it), next(it), next(it)
        if stride == 2:
            midw, midb = next(it), next(it)
        if use_se:
            sw1, sb1, sw2, sb2 = next(it), next(it), next(it), next(it)
        g2w, g2b, g2dw, g2db = next(it), next(it), next(it), next(it)
        if has_sc:
            scdw, scdb, scpw, scpb = next(it), next(it), next(it), next(it)
        out_ref = next(it)
        pad1 = next(it)
        if stride == 2:
            pma = next(it)
            pmb = next(it) if c1b > 0 else None
        pad2 = next(it)
        pads = next(it) if has_sc else None

        x = x_ref[0].astype(f32)                     # (H, W, Cin)
        x2d = x.reshape(H * W, Cin)

        # ---------- GhostModule 1: primary 1x1 + cheap depthwise (ReLU) --------
        ha2d = jnp.maximum(
            jnp.dot(x2d, g1w[...], preferred_element_type=f32) + g1b[...], 0.0)
        ha3 = ha2d.reshape(H, W, c1a)

        if c1b > 0:
            pad1[...] = jnp.zeros_like(pad1)
            pad1[1:H + 1, 1:W + 1, :] = ha3
            hb3 = jnp.maximum(
                dw_taps(pad1, g1dw[...], H, W, c1a, DW, 1) + g1db[...], 0.0)

        # ---------- optional stride-2 depthwise (K x K, folded BN) -------------
        if stride == 2:
            pm = K // 2
            midw_v = midw[...]
            midb_v = midb[...]
            pma[...] = jnp.zeros_like(pma)
            pma[pm:pm + H, pm:pm + W, :] = ha3
            ha2d = (dw_taps(pma, midw_v[:, :, 0:c1a], Ho, Wo, c1a, K, 2)
                    + midb_v[:, 0:c1a]).reshape(Ho * Wo, c1a)
            if c1b > 0:
                pmb[...] = jnp.zeros_like(pmb)
                pmb[pm:pm + H, pm:pm + W, :] = hb3[:, :, 0:c1b]
                hb2d = (dw_taps(pmb, midw_v[:, :, c1a:hidden], Ho, Wo, c1b, K, 2)
                        + midb_v[:, c1a:hidden]).reshape(Ho * Wo, c1b)
        else:
            if c1b > 0:
                hb2d = hb3[:, :, 0:c1b].reshape(Ho * Wo, c1b)

        # ---------- optional Squeeze-Excite (folded: scaling in registers) -----
        if use_se:
            sw1_v = sw1[...]
            m_a = jnp.sum(ha2d, axis=0, keepdims=True) * inv_hw          # (1, c1a)
            t = jnp.dot(m_a, sw1_v[0:c1a, :], preferred_element_type=f32)
            if c1b > 0:
                m_b = jnp.sum(hb2d, axis=0, keepdims=True) * inv_hw      # (1, c1b)
                t = t + jnp.dot(m_b, sw1_v[c1a:hidden, :],
                                preferred_element_type=f32)
            t = jnp.maximum(t + sb1[...], 0.0)
            s = jnp.dot(t, sw2[...], preferred_element_type=f32) + sb2[...]
            s = jnp.clip(s, 0.0, 1.0)                                    # (1, hidden)
            ha2d = ha2d * s[:, 0:c1a]
            if c1b > 0:
                hb2d = hb2d * s[:, c1a:hidden]

        # ---------- GhostModule 2 (no ReLU) -------------------------------------
        g2w_v = g2w[...]
        za2d = jnp.dot(ha2d, g2w_v[0:c1a, :], preferred_element_type=f32) + g2b[...]
        if c1b > 0:
            za2d = za2d + jnp.dot(hb2d, g2w_v[c1a:hidden, :],
                                  preferred_element_type=f32)            # (HWo, c2a)
        if c2b > 0:
            za3 = za2d.reshape(Ho, Wo, c2a)
            pad2[...] = jnp.zeros_like(pad2)
            pad2[1:Ho + 1, 1:Wo + 1, :] = za3
            zb2d = (dw_taps(pad2, g2dw[...], Ho, Wo, c2a, DW, 1)
                    + g2db[...]).reshape(Ho * Wo, c2a)

        # ---------- shortcut -----------------------------------------------------
        if has_sc:
            ps = K // 2
            pads[...] = jnp.zeros_like(pads)
            pads[ps:ps + H, ps:ps + W, :] = x
            scd2d = (dw_taps(pads, scdw[...], Ho, Wo, Cin, K, stride)
                     + scdb[...]).reshape(Ho * Wo, Cin)
            sc2d = jnp.dot(scd2d, scpw[...], preferred_element_type=f32) + scpb[...]
        else:
            sc2d = x2d                    # identity shortcut (stride==1, Cin==oup)

        # ---------- residual add + channel-group placement ----------------------
        # Rows of the identity act as selection matrices: the two ghost channel
        # groups are placed into their channel ranges with tiny matmuls, so the
        # output block is written with one dense store (no concat, no partial
        # lane stores).
        eye = eye_ref[...]                                               # (oup, oup)
        out2d = jnp.dot(za2d + sc2d[:, 0:c2a], eye[0:c2a, :],
                        preferred_element_type=f32)                      # (HWo, oup)
        if c2b > 0:
            out2d = out2d + jnp.dot(zb2d[:, 0:c2b] + sc2d[:, c2a:oup],
                                    eye[c2a:oup, :],
                                    preferred_element_type=f32)
        out_ref[0] = out2d.reshape(Ho, Wo, oup).astype(out_ref.dtype)

    return kernel


# ----------------------------------------------------------------------------
# Wrapper: parameter folding, specs, grid
# ----------------------------------------------------------------------------

def ghost_bottleneck_fwd(x_nchw, params):
    """GhostBottleneck forward. Input/output in NCHW (PyTorch layout)."""
    B, Cin, H, W = x_nchw.shape
    f32 = jnp.float32
    hidden = params['ghost1']['oup']
    oup = params['oup']
    stride = params['stride']
    use_se = params['use_se']
    K = params['ksize']
    has_sc = not (stride == 1 and Cin == oup)

    c1a = math.ceil(hidden / 2)
    c1b = hidden - c1a
    c2a = math.ceil(oup / 2)
    c2b = oup - c2a
    if stride == 2:
        p = K // 2
        Ho = (H + 2 * p - K) // 2 + 1
        Wo = (W + 2 * p - K) // 2 + 1
    else:
        Ho, Wo = H, W

    # Fold BN scale into the conv weights (inference mode); only bias remains.
    def fold_pw(w, s, b, cout):
        return w * s[None, :], b.reshape(1, cout)

    def fold_dw(w, s, b, c, k):
        return (w * s[None, None, :]).reshape(k * k, 1, c), b.reshape(1, c)

    g1 = params['ghost1']
    g1w, g1b = fold_pw(g1['pw_w'], g1['pw_s'], g1['pw_b'], c1a)
    g1dw, g1db = fold_dw(g1['dw_w'], g1['dw_s'], g1['dw_b'], c1a, DW)
    g2 = params['ghost2']
    g2w, g2b = fold_pw(g2['pw_w'], g2['pw_s'], g2['pw_b'], c2a)
    g2dw, g2db = fold_dw(g2['dw_w'], g2['dw_s'], g2['dw_b'], c2a, DW)

    eye = jnp.eye(oup, dtype=f32)

    x_nhwc = jnp.transpose(x_nchw, (0, 2, 3, 1))
    inputs = [x_nhwc, eye, g1w, g1b, g1dw, g1db]
    if stride == 2:
        mw, ms, mb = params['mid_dw']
        midw, midb = fold_dw(mw, ms, mb, hidden, K)
        inputs += [midw, midb]
    if use_se:
        w1, b1, w2, b2 = params['se']
        inputs += [w1, b1.reshape(1, -1), w2, b2.reshape(1, hidden)]
    inputs += [g2w, g2b, g2dw, g2db]
    if has_sc:
        dw_w, dw_s, dw_b, pw_w, pw_s, pw_b = params['shortcut']
        scdw, scdb = fold_dw(dw_w, dw_s, dw_b, Cin, K)
        scpw, scpb = fold_pw(pw_w, pw_s, pw_b, oup)
        inputs += [scdw, scdb, scpw, scpb]

    def _rep(arr):  # whole (tiny) array resident in VMEM every grid step
        shp = tuple(arr.shape)
        return pl.BlockSpec(shp, lambda b: (0,) * len(shp))

    in_specs = [pl.BlockSpec((1, H, W, Cin), lambda b: (b, 0, 0, 0))]
    in_specs += [_rep(a) for a in inputs[1:]]

    scratch = [pltpu.VMEM((H + 2, W + 2, c1a), f32)]          # ghost1 dw halo
    if stride == 2:
        pm = K // 2
        scratch.append(pltpu.VMEM((H + 2 * pm, W + 2 * pm, c1a), f32))
        if c1b > 0:
            scratch.append(pltpu.VMEM((H + 2 * pm, W + 2 * pm, c1b), f32))
    scratch.append(pltpu.VMEM((Ho + 2, Wo + 2, c2a), f32))    # ghost2 dw halo
    if has_sc:
        ps = K // 2
        scratch.append(pltpu.VMEM((H + 2 * ps, W + 2 * ps, Cin), f32))

    kernel = _make_kernel(Cin=Cin, H=H, W=W, hidden=hidden, oup=oup, K=K,
                          stride=stride, use_se=use_se, has_sc=has_sc,
                          c1a=c1a, c1b=c1b, c2a=c2a, c2b=c2b, Ho=Ho, Wo=Wo)

    out_nhwc = pl.pallas_call(
        kernel,
        out_shape=jax.ShapeDtypeStruct((B, Ho, Wo, oup), x_nchw.dtype),
        grid=(B,),
        in_specs=in_specs,
        out_specs=pl.BlockSpec((1, Ho, Wo, oup), lambda b: (b, 0, 0, 0)),
        scratch_shapes=scratch,
        compiler_params=pltpu.CompilerParams(
            dimension_semantics=("parallel",)),
    )(*inputs)
    return jnp.transpose(out_nhwc, (0, 3, 1, 2))


# ----------------------------------------------------------------------------
# Deterministic synthetic parameters (eval-mode BN folded to scale/bias)
# ----------------------------------------------------------------------------

def _fold_bn(gamma, beta, mean, var):
    scale = gamma / jnp.sqrt(var + EPS)
    bias = beta - mean * scale
    return scale, bias


def _init_bn(key, c):
    k1, k2, k3, k4 = jax.random.split(key, 4)
    gamma = jax.random.uniform(k1, (c,), jnp.float32, 0.5, 1.5)
    beta = jax.random.normal(k2, (c,), jnp.float32) * 0.1
    mean = jax.random.normal(k3, (c,), jnp.float32) * 0.1
    var = jax.random.uniform(k4, (c,), jnp.float32, 0.5, 1.5)
    return _fold_bn(gamma, beta, mean, var)


def init_ghost_module(key, inp, oup, ratio=2, dw_size=3):
    assert ratio == 2  # as used by GhostBottleneck (new_channels == init_channels)
    init_c = math.ceil(oup / ratio)
    k = jax.random.split(key, 4)
    pw_w = jax.random.normal(k[0], (inp, init_c), jnp.float32) / math.sqrt(inp)
    pw_s, pw_b = _init_bn(k[1], init_c)
    dw_w = jax.random.normal(k[2], (dw_size, dw_size, init_c), jnp.float32) / dw_size
    dw_s, dw_b = _init_bn(k[3], init_c)
    return dict(pw_w=pw_w, pw_s=pw_s, pw_b=pw_b,
                dw_w=dw_w, dw_s=dw_s, dw_b=dw_b, oup=oup)


def init_ghost_bottleneck(key, inp, hidden_dim, oup, kernel_size, stride, use_se):
    assert stride in (1, 2)
    keys = jax.random.split(key, 12)
    params = dict(inp=inp, oup=oup, stride=stride, use_se=use_se, ksize=kernel_size)
    params['ghost1'] = init_ghost_module(keys[0], inp, hidden_dim)
    if stride == 2:
        dw_w = jax.random.normal(keys[1], (kernel_size, kernel_size, hidden_dim),
                                 jnp.float32) / kernel_size
        dw_s, dw_b = _init_bn(keys[2], hidden_dim)
        params['mid_dw'] = (dw_w, dw_s, dw_b)
    if use_se:
        cr = hidden_dim // 4
        w1 = jax.random.normal(keys[3], (hidden_dim, cr), jnp.float32) / math.sqrt(hidden_dim)
        b1 = jax.random.normal(keys[4], (cr,), jnp.float32) * 0.1
        w2 = jax.random.normal(keys[5], (cr, hidden_dim), jnp.float32) / math.sqrt(max(cr, 1))
        b2 = jax.random.normal(keys[6], (hidden_dim,), jnp.float32) * 0.1
        params['se'] = (w1, b1, w2, b2)
    params['ghost2'] = init_ghost_module(keys[7], hidden_dim, oup)
    if not (stride == 1 and inp == oup):
        dw_w = jax.random.normal(keys[8], (kernel_size, kernel_size, inp),
                                 jnp.float32) / kernel_size
        dw_s, dw_b = _init_bn(keys[9], inp)
        pw_w = jax.random.normal(keys[10], (inp, oup), jnp.float32) / math.sqrt(inp)
        pw_s, pw_b = _init_bn(keys[11], oup)
        params['shortcut'] = (dw_w, dw_s, dw_b, pw_w, pw_s, pw_b)
    return params


# ----------------------------------------------------------------------------
# Pure-JAX reference (for correctness check)
# ----------------------------------------------------------------------------

def _ref_pointwise(x, w, s, b, relu):
    y = jnp.einsum('bhwc,cd->bhwd', x, w) * s + b
    return jnp.maximum(y, 0.0) if relu else y


def _ref_depthwise(x, w_kkc, s, b, relu, stride=1):
    C = x.shape[-1]
    K = w_kkc.shape[0]
    p = K // 2
    rhs = w_kkc.reshape(K, K, 1, C)
    y = jax.lax.conv_general_dilated(
        x, rhs, window_strides=(stride, stride), padding=((p, p), (p, p)),
        dimension_numbers=('NHWC', 'HWIO', 'NHWC'), feature_group_count=C)
    y = y * s + b
    return jnp.maximum(y, 0.0) if relu else y


def _ref_se(x, w1, b1, w2, b2):
    y = jnp.mean(x, axis=(1, 2))
    h = jnp.maximum(y @ w1 + b1, 0.0)
    s = jnp.clip(h @ w2 + b2, 0.0, 1.0)
    return x * s[:, None, None, :]


def _ref_ghost_module(x, p, relu):
    x1 = _ref_pointwise(x, p['pw_w'], p['pw_s'], p['pw_b'], relu)
    x2 = _ref_depthwise(x1, p['dw_w'], p['dw_s'], p['dw_b'], relu)
    return jnp.concatenate([x1, x2], axis=-1)[..., :p['oup']]


def ghost_bottleneck_ref(x_nchw, params):
    x = jnp.transpose(x_nchw, (0, 2, 3, 1))
    y = _ref_ghost_module(x, params['ghost1'], True)
    if params['stride'] == 2:
        dw_w, dw_s, dw_b = params['mid_dw']
        y = _ref_depthwise(y, dw_w, dw_s, dw_b, False, stride=2)
    if params['use_se']:
        y = _ref_se(y, *params['se'])
    y = _ref_ghost_module(y, params['ghost2'], False)
    if params['stride'] == 1 and params['inp'] == params['oup']:
        sc = x
    else:
        dw_w, dw_s, dw_b, pw_w, pw_s, pw_b = params['shortcut']
        sc = _ref_depthwise(x, dw_w, dw_s, dw_b, False, stride=params['stride'])
        sc = _ref_pointwise(sc, pw_w, pw_s, pw_b, False)
    return jnp.transpose(y + sc, (0, 3, 1, 2))


# ----------------------------------------------------------------------------
# Demo
# ----------------------------------------------------------------------------

if __name__ == "__main__":
    key = jax.random.PRNGKey(0)
    kx, kp, kp2 = jax.random.split(key, 3)

    # GhostBottleneck(inp=4, hidden_dim=8, oup=4, kernel_size=3, stride=1, use_se=True)
    B, INP, H, W = 2, 4, 16, 16
    x = jax.random.normal(kx, (B, INP, H, W), jnp.float32)   # NCHW like PyTorch

    params = init_ghost_bottleneck(kp, INP, 8, 4, 3, 1, True)
    out = jax.block_until_ready(ghost_bottleneck_fwd(x, params))
    assert out.shape == (B, 4, H, W), out.shape
    ref = jax.block_until_ready(ghost_bottleneck_ref(x, params))
    np.testing.assert_allclose(np.asarray(out), np.asarray(ref), atol=1e-4, rtol=1e-4)

    # Second config: non-identity shortcut (inp != oup), no SE, stride 1.
    params2 = init_ghost_bottleneck(kp2, INP, 8, 6, 3, 1, False)
    out2 = jax.block_until_ready(ghost_bottleneck_fwd(x, params2))
    assert out2.shape == (B, 6, H, W), out2.shape
    ref2 = jax.block_until_ready(ghost_bottleneck_ref(x, params2))
    np.testing.assert_allclose(np.asarray(out2), np.asarray(ref2), atol=1e-4, rtol=1e-4)

    print("KERNEL_OK")
</pallas_src>

<mosaic_0001>
module attributes {stable_mosaic.version = 11 : i64} {
  func.func @kernel(%arg0: i32, %arg1: memref<1x16x16x4xf32, #tpu.memory_space<vmem>>, %arg2: memref<4x4xf32, #tpu.memory_space<vmem>>, %arg3: memref<4x4xf32, #tpu.memory_space<vmem>>, %arg4: memref<1x4xf32, #tpu.memory_space<vmem>>, %arg5: memref<9x1x4xf32, #tpu.memory_space<vmem>>, %arg6: memref<1x4xf32, #tpu.memory_space<vmem>>, %arg7: memref<8x2xf32, #tpu.memory_space<vmem>>, %arg8: memref<1x2xf32, #tpu.memory_space<vmem>>, %arg9: memref<2x8xf32, #tpu.memory_space<vmem>>, %arg10: memref<1x8xf32, #tpu.memory_space<vmem>>, %arg11: memref<8x2xf32, #tpu.memory_space<vmem>>, %arg12: memref<1x2xf32, #tpu.memory_space<vmem>>, %arg13: memref<9x1x2xf32, #tpu.memory_space<vmem>>, %arg14: memref<1x2xf32, #tpu.memory_space<vmem>>, %arg15: memref<1x16x16x4xf32, #tpu.memory_space<vmem>>, %arg16: memref<18x18x4xf32, #tpu.memory_space<vmem>>, %arg17: memref<18x18x2xf32, #tpu.memory_space<vmem>>) attributes {dimension_semantics = [#tpu.dimension_semantics<parallel>], iteration_bounds = array<i64: 2>, scalar_prefetch = 0 : i64, scratch_operands = 2 : i64, tpu.core_type = #tpu.core_type<tc>, window_params = [{transform_indices = @transform_0, window_bounds = array<i64: 1, 16, 16, 4>}, {pipeline_mode = #tpu.pipeline_mode<synchronous>, transform_indices = @transform_1, window_bounds = array<i64: 4, 4>}, {pipeline_mode = #tpu.pipeline_mode<synchronous>, transform_indices = @transform_2, window_bounds = array<i64: 4, 4>}, {pipeline_mode = #tpu.pipeline_mode<synchronous>, transform_indices = @transform_3, window_bounds = array<i64: 1, 4>}, {pipeline_mode = #tpu.pipeline_mode<synchronous>, transform_indices = @transform_4, window_bounds = array<i64: 9, 1, 4>}, {pipeline_mode = #tpu.pipeline_mode<synchronous>, transform_indices = @transform_5, window_bounds = array<i64: 1, 4>}, {pipeline_mode = #tpu.pipeline_mode<synchronous>, transform_indices = @transform_6, window_bounds = array<i64: 8, 2>}, {pipeline_mode = #tpu.pipeline_mode<synchronous>, transform_indices = @transform_7, window_bounds = array<i64: 1, 2>}, {pipeline_mode = #tpu.pipeline_mode<synchronous>, transform_indices = @transform_8, window_bounds = array<i64: 2, 8>}, {pipeline_mode = #tpu.pipeline_mode<synchronous>, transform_indices = @transform_9, window_bounds = array<i64: 1, 8>}, {pipeline_mode = #tpu.pipeline_mode<synchronous>, transform_indices = @transform_10, window_bounds = array<i64: 8, 2>}, {pipeline_mode = #tpu.pipeline_mode<synchronous>, transform_indices = @transform_11, window_bounds = array<i64: 1, 2>}, {pipeline_mode = #tpu.pipeline_mode<synchronous>, transform_indices = @transform_12, window_bounds = array<i64: 9, 1, 2>}, {pipeline_mode = #tpu.pipeline_mode<synchronous>, transform_indices = @transform_13, window_bounds = array<i64: 1, 2>}, {transform_indices = @transform_14, window_bounds = array<i64: 1, 16, 16, 4>}]} {
    %c0 = arith.constant 0 : index
    %c0_0 = arith.constant 0 : index
    %c0_1 = arith.constant 0 : index
    %c0_2 = arith.constant 0 : index
    %0 = vector.load %arg1[%c0, %c0_0, %c0_1, %c0_2] : memref<1x16x16x4xf32, #tpu.memory_space<vmem>>, vector<1x16x16x4xf32>
    %1 = vector.shape_cast %0 : vector<1x16x16x4xf32> to vector<16x16x4xf32>
    %2 = vector.shape_cast %1 : vector<16x16x4xf32> to vector<256x4xf32>
    %c0_3 = arith.constant 0 : index
    %c0_4 = arith.constant 0 : index
    %3 = vector.load %arg3[%c0_3, %c0_4] : memref<4x4xf32, #tpu.memory_space<vmem>>, vector<4x4xf32>
    %cst = arith.constant dense<0.000000e+00> : vector<256x4xf32>
    %4 = tpu.matmul %2, %3, %cst {dimension_numbers = #tpu.dot_dimension_numbers<[1], [0], [0], [1], [0, 0, 1, 1], [], []>} : vector<256x4xf32>, vector<4x4xf32>, vector<256x4xf32> -> vector<256x4xf32>
    %c0_5 = arith.constant 0 : index
    %c0_6 = arith.constant 0 : index
    %5 = vector.load %arg4[%c0_5, %c0_6] : memref<1x4xf32, #tpu.memory_space<vmem>>, vector<1x4xf32>
    %6 = vector.broadcast %5 : vector<1x4xf32> to vector<256x4xf32>
    %7 = arith.addf %4, %6 : vector<256x4xf32>
    %cst_7 = arith.constant 0.000000e+00 : f32
    %8 = vector.broadcast %cst_7 : f32 to vector<256x4xf32>
    %9 = arith.maximumf %7, %8 : vector<256x4xf32>
    %10 = vector.shape_cast %9 : vector<256x4xf32> to vector<16x16x4xf32>
    %cst_8 = arith.constant 0.000000e+00 : f32
    %11 = vector.broadcast %cst_8 : f32 to vector<18x18x4xf32>
    %c0_9 = arith.constant 0 : index
    %c0_10 = arith.constant 0 : index
    %c0_11 = arith.constant 0 : index
    %12 = vector.load %arg16[%c0_9, %c0_10, %c0_11] : memref<18x18x4xf32, #tpu.memory_space<vmem>>, vector<18x18x4xf32>
    tpu.vector_store %arg16[%c0_9, %c0_10, %c0_11], %11 {strides = array<i32>} : memref<18x18x4xf32, #tpu.memory_space<vmem>>, vector<18x18x4xf32>,
    %c1 = arith.constant 1 : index
    %c1_12 = arith.constant 1 : index
    %c0_13 = arith.constant 0 : index
    %13 = vector.load %arg16[%c1, %c1_12, %c0_13] : memref<18x18x4xf32, #tpu.memory_space<vmem>>, vector<16x16x4xf32>
    tpu.vector_store %arg16[%c1, %c1_12, %c0_13], %10 {strides = array<i32>} : memref<18x18x4xf32, #tpu.memory_space<vmem>>, vector<16x16x4xf32>,
    %c0_14 = arith.constant 0 : index
    %c0_15 = arith.constant 0 : index
    %c0_16 = arith.constant 0 : index
    %14 = vector.load %arg5[%c0_14, %c0_15, %c0_16] : memref<9x1x4xf32, #tpu.memory_space<vmem>>, vector<9x1x4xf32>
    %cst_17 = arith.constant 0.000000e+00 : f32
    %15 = vector.broadcast %cst_17 : f32 to vector<16x16x4xf32>
    %c0_18 = arith.constant 0 : index
    %c0_19 = arith.constant 0 : index
    %c0_20 = arith.constant 0 : index
    %16 = vector.load %arg16[%c0_18, %c0_19, %c0_20] : memref<18x18x4xf32, #tpu.memory_space<vmem>>, vector<18x18x4xf32>
    %17 = vector.extract_strided_slice %16 {offsets = [0, 0, 0], sizes = [16, 16, 4], strides = [1, 1, 1]} : vector<18x18x4xf32> to vector<16x16x4xf32>
    %18 = vector.extract_strided_slice %14 {offsets = [0, 0, 0], sizes = [1, 1, 4], strides = [1, 1, 1]} : vector<9x1x4xf32> to vector<1x1x4xf32>
    %19 = vector.shape_cast %18 : vector<1x1x4xf32> to vector<1x4xf32>
    %20 = vector.shape_cast %19 : vector<1x4xf32> to vector<1x1x4xf32>
    %21 = vector.broadcast %20 : vector<1x1x4xf32> to vector<16x16x4xf32>
    %22 = arith.mulf %17, %21 : vector<16x16x4xf32>
    %23 = arith.addf %15, %22 : vector<16x16x4xf32>
    %24 = vector.extract_strided_slice %16 {offsets = [0, 1, 0], sizes = [16, 16, 4], strides = [1, 1, 1]} : vector<18x18x4xf32> to vector<16x16x4xf32>
    %25 = vector.extract_strided_slice %14 {offsets = [1, 0, 0], sizes = [1, 1, 4], strides = [1, 1, 1]} : vector<9x1x4xf32> to vector<1x1x4xf32>
    %26 = vector.shape_cast %25 : vector<1x1x4xf32> to vector<1x4xf32>
    %27 = vector.shape_cast %26 : vector<1x4xf32> to vector<1x1x4xf32>
    %28 = vector.broadcast %27 : vector<1x1x4xf32> to vector<16x16x4xf32>
    %29 = arith.mulf %24, %28 : vector<16x16x4xf32>
    %30 = arith.addf %23, %29 : vector<16x16x4xf32>
    %31 = vector.extract_strided_slice %16 {offsets = [0, 2, 0], sizes = [16, 16, 4], strides = [1, 1, 1]} : vector<18x18x4xf32> to vector<16x16x4xf32>
    %32 = vector.extract_strided_slice %14 {offsets = [2, 0, 0], sizes = [1, 1, 4], strides = [1, 1, 1]} : vector<9x1x4xf32> to vector<1x1x4xf32>
    %33 = vector.shape_cast %32 : vector<1x1x4xf32> to vector<1x4xf32>
    %34 = vector.shape_cast %33 : vector<1x4xf32> to vector<1x1x4xf32>
    %35 = vector.broadcast %34 : vector<1x1x4xf32> to vector<16x16x4xf32>
    %36 = arith.mulf %31, %35 : vector<16x16x4xf32>
    %37 = arith.addf %30, %36 : vector<16x16x4xf32>
    %38 = vector.extract_strided_slice %16 {offsets = [1, 0, 0], sizes = [16, 16, 4], strides = [1, 1, 1]} : vector<18x18x4xf32> to vector<16x16x4xf32>
    %39 = vector.extract_strided_slice %14 {offsets = [3, 0, 0], sizes = [1, 1, 4], strides = [1, 1, 1]} : vector<9x1x4xf32> to vector<1x1x4xf32>
    %40 = vector.shape_cast %39 : vector<1x1x4xf32> to vector<1x4xf32>
    %41 = vector.shape_cast %40 : vector<1x4xf32> to vector<1x1x4xf32>
    %42 = vector.broadcast %41 : vector<1x1x4xf32> to vector<16x16x4xf32>
    %43 = arith.mulf %38, %42 : vector<16x16x4xf32>
    %44 = arith.addf %37, %43 : vector<16x16x4xf32>
    %45 = vector.extract_strided_slice %16 {offsets = [1, 1, 0], sizes = [16, 16, 4], strides = [1, 1, 1]} : vector<18x18x4xf32> to vector<16x16x4xf32>
    %46 = vector.extract_strided_slice %14 {offsets = [4, 0, 0], sizes = [1, 1, 4], strides = [1, 1, 1]} : vector<9x1x4xf32> to vector<1x1x4xf32>
    %47 = vector.shape_cast %46 : vector<1x1x4xf32> to vector<1x4xf32>
    %48 = vector.shape_cast %47 : vector<1x4xf32> to vector<1x1x4xf32>
    %49 = vector.broadcast %48 : vector<1x1x4xf32> to vector<16x16x4xf32>
    %50 = arith.mulf %45, %49 : vector<16x16x4xf32>
    %51 = arith.addf %44, %50 : vector<16x16x4xf32>
    %52 = vector.extract_strided_slice %16 {offsets = [1, 2, 0], sizes = [16, 16, 4], strides = [1, 1, 1]} : vector<18x18x4xf32> to vector<16x16x4xf32>
    %53 = vector.extract_strided_slice %14 {offsets = [5, 0, 0], sizes = [1, 1, 4], strides = [1, 1, 1]} : vector<9x1x4xf32> to vector<1x1x4xf32>
    %54 = vector.shape_cast %53 : vector<1x1x4xf32> to vector<1x4xf32>
    %55 = vector.shape_cast %54 : vector<1x4xf32> to vector<1x1x4xf32>
    %56 = vector.broadcast %55 : vector<1x1x4xf32> to vector<16x16x4xf32>
    %57 = arith.mulf %52, %56 : vector<16x16x4xf32>
    %58 = arith.addf %51, %57 : vector<16x16x4xf32>
    %59 = vector.extract_strided_slice %16 {offsets = [2, 0, 0], sizes = [16, 16, 4], strides = [1, 1, 1]} : vector<18x18x4xf32> to vector<16x16x4xf32>
    %60 = vector.extract_strided_slice %14 {offsets = [6, 0, 0], sizes = [1, 1, 4], strides = [1, 1, 1]} : vector<9x1x4xf32> to vector<1x1x4xf32>
    %61 = vector.shape_cast %60 : vector<1x1x4xf32> to vector<1x4xf32>
    %62 = vector.shape_cast %61 : vector<1x4xf32> to vector<1x1x4xf32>
    %63 = vector.broadcast %62 : vector<1x1x4xf32> to vector<16x16x4xf32>
    %64 = arith.mulf %59, %63 : vector<16x16x4xf32>
    %65 = arith.addf %58, %64 : vector<16x16x4xf32>
    %66 = vector.extract_strided_slice %16 {offsets = [2, 1, 0], sizes = [16, 16, 4], strides = [1, 1, 1]} : vector<18x18x4xf32> to vector<16x16x4xf32>
    %67 = vector.extract_strided_slice %14 {offsets = [7, 0, 0], sizes = [1, 1, 4], strides = [1, 1, 1]} : vector<9x1x4xf32> to vector<1x1x4xf32>
    %68 = vector.shape_cast %67 : vector<1x1x4xf32> to vector<1x4xf32>
    %69 = vector.shape_cast %68 : vector<1x4xf32> to vector<1x1x4xf32>
    %70 = vector.broadcast %69 : vector<1x1x4xf32> to vector<16x16x4xf32>
    %71 = arith.mulf %66, %70 : vector<16x16x4xf32>
    %72 = arith.addf %65, %71 : vector<16x16x4xf32>
    %73 = vector.extract_strided_slice %16 {offsets = [2, 2, 0], sizes = [16, 16, 4], strides = [1, 1, 1]} : vector<18x18x4xf32> to vector<16x16x4xf32>
    %74 = vector.extract_strided_slice %14 {offsets = [8, 0, 0], sizes = [1, 1, 4], strides = [1, 1, 1]} : vector<9x1x4xf32> to vector<1x1x4xf32>
    %75 = vector.shape_cast %74 : vector<1x1x4xf32> to vector<1x4xf32>
    %76 = vector.shape_cast %75 : vector<1x4xf32> to vector<1x1x4xf32>
    %77 = vector.broadcast %76 : vector<1x1x4xf32> to vector<16x16x4xf32>
    %78 = arith.mulf %73, %77 : vector<16x16x4xf32>
    %79 = arith.addf %72, %78 : vector<16x16x4xf32>
    %c0_21 = arith.constant 0 : index
    %c0_22 = arith.constant 0 : index
    %80 = vector.load %arg6[%c0_21, %c0_22] : memref<1x4xf32, #tpu.memory_space<vmem>>, vector<1x4xf32>
    %81 = vector.shape_cast %80 : vector<1x4xf32> to vector<1x1x4xf32>
    %82 = vector.broadcast %81 : vector<1x1x4xf32> to vector<16x16x4xf32>
    %83 = arith.addf %79, %82 : vector<16x16x4xf32>
    %cst_23 = arith.constant 0.000000e+00 : f32
    %84 = vector.broadcast %cst_23 : f32 to vector<16x16x4xf32>
    %85 = arith.maximumf %83, %84 : vector<16x16x4xf32>
    %86 = vector.shape_cast %85 : vector<16x16x4xf32> to vector<256x4xf32>
    %c0_24 = arith.constant 0 : index
    %c0_25 = arith.constant 0 : index
    %87 = vector.load %arg7[%c0_24, %c0_25] : memref<8x2xf32, #tpu.memory_space<vmem>>, vector<8x2xf32>
    %cst_26 = arith.constant dense<0.000000e+00> : vector<4xf32>
    %88 = vector.multi_reduction <add>, %9, %cst_26 [0] : vector<256x4xf32> to vector<4xf32>
    %89 = vector.shape_cast %88 : vector<4xf32> to vector<1x4xf32>
    %cst_27 = arith.constant 3.906250e-03 : f32
    %90 = vector.broadcast %cst_27 : f32 to vector<1x4xf32>
    %91 = arith.mulf %89, %90 : vector<1x4xf32>
    %92 = vector.extract_strided_slice %87 {offsets = [0, 0], sizes = [4, 2], strides = [1, 1]} : vector<8x2xf32> to vector<4x2xf32>
    %cst_28 = arith.constant dense<0.000000e+00> : vector<1x2xf32>
    %93 = tpu.matmul %91, %92, %cst_28 {dimension_numbers = #tpu.dot_dimension_numbers<[1], [0], [0], [1], [0, 0, 1, 1], [], []>} : vector<1x4xf32>, vector<4x2xf32>, vector<1x2xf32> -> vector<1x2xf32>
    %cst_29 = arith.constant dense<0.000000e+00> : vector<4xf32>
    %94 = vector.multi_reduction <add>, %86, %cst_29 [0] : vector<256x4xf32> to vector<4xf32>
    %95 = vector.shape_cast %94 : vector<4xf32> to vector<1x4xf32>
    %cst_30 = arith.constant 3.906250e-03 : f32
    %96 = vector.broadcast %cst_30 : f32 to vector<1x4xf32>
    %97 = arith.mulf %95, %96 : vector<1x4xf32>
    %98 = vector.extract_strided_slice %87 {offsets = [4, 0], sizes = [4, 2], strides = [1, 1]} : vector<8x2xf32> to vector<4x2xf32>
    %cst_31 = arith.constant dense<0.000000e+00> : vector<1x2xf32>
    %99 = tpu.matmul %97, %98, %cst_31 {dimension_numbers = #tpu.dot_dimension_numbers<[1], [0], [0], [1], [0, 0, 1, 1], [], []>} : vector<1x4xf32>, vector<4x2xf32>, vector<1x2xf32> -> vector<1x2xf32>
    %100 = arith.addf %93, %99 : vector<1x2xf32>
    %c0_32 = arith.constant 0 : index
    %c0_33 = arith.constant 0 : index
    %101 = vector.load %arg8[%c0_32, %c0_33] : memref<1x2xf32, #tpu.memory_space<vmem>>, vector<1x2xf32>
    %102 = arith.addf %100, %101 : vector<1x2xf32>
    %cst_34 = arith.constant 0.000000e+00 : f32
    %103 = vector.broadcast %cst_34 : f32 to vector<1x2xf32>
    %104 = arith.maximumf %102, %103 : vector<1x2xf32>
    %c0_35 = arith.constant 0 : index
    %c0_36 = arith.constant 0 : index
    %105 = vector.load %arg9[%c0_35, %c0_36] : memref<2x8xf32, #tpu.memory_space<vmem>>, vector<2x8xf32>
    %cst_37 = arith.constant dense<0.000000e+00> : vector<1x8xf32>
    %106 = tpu.matmul %104, %105, %cst_37 {dimension_numbers = #tpu.dot_dimension_numbers<[1], [0], [0], [1], [0, 0, 1, 1], [], []>} : vector<1x2xf32>, vector<2x8xf32>, vector<1x8xf32> -> vector<1x8xf32>
    %c0_38 = arith.constant 0 : index
    %c0_39 = arith.constant 0 : index
    %107 = vector.load %arg10[%c0_38, %c0_39] : memref<1x8xf32, #tpu.memory_space<vmem>>, vector<1x8xf32>
    %108 = arith.addf %106, %107 : vector<1x8xf32>
    %cst_40 = arith.constant 0.000000e+00 : f32
    %cst_41 = arith.constant 1.000000e+00 : f32
    %109 = vector.broadcast %cst_40 : f32 to vector<1x8xf32>
    %110 = arith.maximumf %109, %108 : vector<1x8xf32>
    %111 = vector.broadcast %cst_41 : f32 to vector<1x8xf32>
    %112 = arith.minimumf %111, %110 : vector<1x8xf32>
    %113 = vector.extract_strided_slice %112 {offsets = [0, 0], sizes = [1, 4], strides = [1, 1]} : vector<1x8xf32> to vector<1x4xf32>
    %114 = vector.broadcast %113 : vector<1x4xf32> to vector<256x4xf32>
    %115 = arith.mulf %9, %114 : vector<256x4xf32>
    %116 = vector.extract_strided_slice %112 {offsets = [0, 4], sizes = [1, 4], strides = [1, 1]} : vector<1x8xf32> to vector<1x4xf32>
    %117 = vector.broadcast %116 : vector<1x4xf32> to vector<256x4xf32>
    %118 = arith.mulf %86, %117 : vector<256x4xf32>
    %c0_42 = arith.constant 0 : index
    %c0_43 = arith.constant 0 : index
    %119 = vector.load %arg11[%c0_42, %c0_43] : memref<8x2xf32, #tpu.memory_space<vmem>>, vector<8x2xf32>
    %120 = vector.extract_strided_slice %119 {offsets = [0, 0], sizes = [4, 2], strides = [1, 1]} : vector<8x2xf32> to vector<4x2xf32>
    %cst_44 = arith.constant dense<0.000000e+00> : vector<256x2xf32>
    %121 = tpu.matmul %115, %120, %cst_44 {dimension_numbers = #tpu.dot_dimension_numbers<[1], [0], [0], [1], [0, 0, 1, 1], [], []>} : vector<256x4xf32>, vector<4x2xf32>, vector<256x2xf32> -> vector<256x2xf32>
    %c0_45 = arith.constant 0 : index
    %c0_46 = arith.constant 0 : index
    %122 = vector.load %arg12[%c0_45, %c0_46] : memref<1x2xf32, #tpu.memory_space<vmem>>, vector<1x2xf32>
    %123 = vector.broadcast %122 : vector<1x2xf32> to vector<256x2xf32>
    %124 = arith.addf %121, %123 : vector<256x2xf32>
    %125 = vector.extract_strided_slice %119 {offsets = [4, 0], sizes = [4, 2], strides = [1, 1]} : vector<8x2xf32> to vector<4x2xf32>
    %cst_47 = arith.constant dense<0.000000e+00> : vector<256x2xf32>
    %126 = tpu.matmul %118, %125, %cst_47 {dimension_numbers = #tpu.dot_dimension_numbers<[1], [0], [0], [1], [0, 0, 1, 1], [], []>} : vector<256x4xf32>, vector<4x2xf32>, vector<256x2xf32> -> vector<256x2xf32>
    %127 = arith.addf %124, %126 : vector<256x2xf32>
    %128 = vector.shape_cast %127 : vector<256x2xf32> to vector<16x16x2xf32>
    %cst_48 = arith.constant 0.000000e+00 : f32
    %129 = vector.broadcast %cst_48 : f32 to vector<18x18x2xf32>
    %c0_49 = arith.constant 0 : index
    %c0_50 = arith.constant 0 : index
    %c0_51 = arith.constant 0 : index
    %130 = vector.load %arg17[%c0_49, %c0_50, %c0_51] : memref<18x18x2xf32, #tpu.memory_space<vmem>>, vector<18x18x2xf32>
    tpu.vector_store %arg17[%c0_49, %c0_50, %c0_51], %129 {strides = array<i32>} : memref<18x18x2xf32, #tpu.memory_space<vmem>>, vector<18x18x2xf32>,
    %c1_52 = arith.constant 1 : index
    %c1_53 = arith.constant 1 : index
    %c0_54 = arith.constant 0 : index
    %131 = vector.load %arg17[%c1_52, %c1_53, %c0_54] : memref<18x18x2xf32, #tpu.memory_space<vmem>>, vector<16x16x2xf32>
    tpu.vector_store %arg17[%c1_52, %c1_53, %c0_54], %128 {strides = array<i32>} : memref<18x18x2xf32, #tpu.memory_space<vmem>>, vector<16x16x2xf32>,
    %c0_55 = arith.constant 0 : index
    %c0_56 = arith.constant 0 : index
    %c0_57 = arith.constant 0 : index
    %132 = vector.load %arg13[%c0_55, %c0_56, %c0_57] : memref<9x1x2xf32, #tpu.memory_space<vmem>>, vector<9x1x2xf32>
    %cst_58 = arith.constant 0.000000e+00 : f32
    %133 = vector.broadcast %cst_58 : f32 to vector<16x16x2xf32>
    %c0_59 = arith.constant 0 : index
    %c0_60 = arith.constant 0 : index
    %c0_61 = arith.constant 0 : index
    %134 = vector.load %arg17[%c0_59, %c0_60, %c0_61] : memref<18x18x2xf32, #tpu.memory_space<vmem>>, vector<18x18x2xf32>
    %135 = vector.extract_strided_slice %134 {offsets = [0, 0, 0], sizes = [16, 16, 2], strides = [1, 1, 1]} : vector<18x18x2xf32> to vector<16x16x2xf32>
    %136 = vector.extract_strided_slice %132 {offsets = [0, 0, 0], sizes = [1, 1, 2], strides = [1, 1, 1]} : vector<9x1x2xf32> to vector<1x1x2xf32>
    %137 = vector.shape_cast %136 : vector<1x1x2xf32> to vector<1x2xf32>
    %138 = vector.shape_cast %137 : vector<1x2xf32> to vector<1x1x2xf32>
    %139 = vector.broadcast %138 : vector<1x1x2xf32> to vector<16x16x2xf32>
    %140 = arith.mulf %135, %139 : vector<16x16x2xf32>
    %141 = arith.addf %133, %140 : vector<16x16x2xf32>
    %142 = vector.extract_strided_slice %134 {offsets = [0, 1, 0], sizes = [16, 16, 2], strides = [1, 1, 1]} : vector<18x18x2xf32> to vector<16x16x2xf32>
    %143 = vector.extract_strided_slice %132 {offsets = [1, 0, 0], sizes = [1, 1, 2], strides = [1, 1, 1]} : vector<9x1x2xf32> to vector<1x1x2xf32>
    %144 = vector.shape_cast %143 : vector<1x1x2xf32> to vector<1x2xf32>
    %145 = vector.shape_cast %144 : vector<1x2xf32> to vector<1x1x2xf32>
    %146 = vector.broadcast %145 : vector<1x1x2xf32> to vector<16x16x2xf32>
    %147 = arith.mulf %142, %146 : vector<16x16x2xf32>
    %148 = arith.addf %141, %147 : vector<16x16x2xf32>
    %149 = vector.extract_strided_slice %134 {offsets = [0, 2, 0], sizes = [16, 16, 2], strides = [1, 1, 1]} : vector<18x18x2xf32> to vector<16x16x2xf32>
    %150 = vector.extract_strided_slice %132 {offsets = [2, 0, 0], sizes = [1, 1, 2], strides = [1, 1, 1]} : vector<9x1x2xf32> to vector<1x1x2xf32>
    %151 = vector.shape_cast %150 : vector<1x1x2xf32> to vector<1x2xf32>
    %152 = vector.shape_cast %151 : vector<1x2xf32> to vector<1x1x2xf32>
    %153 = vector.broadcast %152 : vector<1x1x2xf32> to vector<16x16x2xf32>
    %154 = arith.mulf %149, %153 : vector<16x16x2xf32>
    %155 = arith.addf %148, %154 : vector<16x16x2xf32>
    %156 = vector.extract_strided_slice %134 {offsets = [1, 0, 0], sizes = [16, 16, 2], strides = [1, 1, 1]} : vector<18x18x2xf32> to vector<16x16x2xf32>
    %157 = vector.extract_strided_slice %132 {offsets = [3, 0, 0], sizes = [1, 1, 2], strides = [1, 1, 1]} : vector<9x1x2xf32> to vector<1x1x2xf32>
    %158 = vector.shape_cast %157 : vector<1x1x2xf32> to vector<1x2xf32>
    %159 = vector.shape_cast %158 : vector<1x2xf32> to vector<1x1x2xf32>
    %160 = vector.broadcast %159 : vector<1x1x2xf32> to vector<16x16x2xf32>
    %161 = arith.mulf %156, %160 : vector<16x16x2xf32>
    %162 = arith.addf %155, %161 : vector<16x16x2xf32>
    %163 = vector.extract_strided_slice %134 {offsets = [1, 1, 0], sizes = [16, 16, 2], strides = [1, 1, 1]} : vector<18x18x2xf32> to vector<16x16x2xf32>
    %164 = vector.extract_strided_slice %132 {offsets = [4, 0, 0], sizes = [1, 1, 2], strides = [1, 1, 1]} : vector<9x1x2xf32> to vector<1x1x2xf32>
    %165 = vector.shape_cast %164 : vector<1x1x2xf32> to vector<1x2xf32>
    %166 = vector.shape_cast %165 : vector<1x2xf32> to vector<1x1x2xf32>
    %167 = vector.broadcast %166 : vector<1x1x2xf32> to vector<16x16x2xf32>
    %168 = arith.mulf %163, %167 : vector<16x16x2xf32>
    %169 = arith.addf %162, %168 : vector<16x16x2xf32>
    %170 = vector.extract_strided_slice %134 {offsets = [1, 2, 0], sizes = [16, 16, 2], strides = [1, 1, 1]} : vector<18x18x2xf32> to vector<16x16x2xf32>
    %171 = vector.extract_strided_slice %132 {offsets = [5, 0, 0], sizes = [1, 1, 2], strides = [1, 1, 1]} : vector<9x1x2xf32> to vector<1x1x2xf32>
    %172 = vector.shape_cast %171 : vector<1x1x2xf32> to vector<1x2xf32>
    %173 = vector.shape_cast %172 : vector<1x2xf32> to vector<1x1x2xf32>
    %174 = vector.broadcast %173 : vector<1x1x2xf32> to vector<16x16x2xf32>
    %175 = arith.mulf %170, %174 : vector<16x16x2xf32>
    %176 = arith.addf %169, %175 : vector<16x16x2xf32>
    %177 = vector.extract_strided_slice %134 {offsets = [2, 0, 0], sizes = [16, 16, 2], strides = [1, 1, 1]} : vector<18x18x2xf32> to vector<16x16x2xf32>
    %178 = vector.extract_strided_slice %132 {offsets = [6, 0, 0], sizes = [1, 1, 2], strides = [1, 1, 1]} : vector<9x1x2xf32> to vector<1x1x2xf32>
    %179 = vector.shape_cast %178 : vector<1x1x2xf32> to vector<1x2xf32>
    %180 = vector.shape_cast %179 : vector<1x2xf32> to vector<1x1x2xf32>
    %181 = vector.broadcast %180 : vector<1x1x2xf32> to vector<16x16x2xf32>
    %182 = arith.mulf %177, %181 : vector<16x16x2xf32>
    %183 = arith.addf %176, %182 : vector<16x16x2xf32>
    %184 = vector.extract_strided_slice %134 {offsets = [2, 1, 0], sizes = [16, 16, 2], strides = [1, 1, 1]} : vector<18x18x2xf32> to vector<16x16x2xf32>
    %185 = vector.extract_strided_slice %132 {offsets = [7, 0, 0], sizes = [1, 1, 2], strides = [1, 1, 1]} : vector<9x1x2xf32> to vector<1x1x2xf32>
    %186 = vector.shape_cast %185 : vector<1x1x2xf32> to vector<1x2xf32>
    %187 = vector.shape_cast %186 : vector<1x2xf32> to vector<1x1x2xf32>
    %188 = vector.broadcast %187 : vector<1x1x2xf32> to vector<16x16x2xf32>
    %189 = arith.mulf %184, %188 : vector<16x16x2xf32>
    %190 = arith.addf %183, %189 : vector<16x16x2xf32>
    %191 = vector.extract_strided_slice %134 {offsets = [2, 2, 0], sizes = [16, 16, 2], strides = [1, 1, 1]} : vector<18x18x2xf32> to vector<16x16x2xf32>
    %192 = vector.extract_strided_slice %132 {offsets = [8, 0, 0], sizes = [1, 1, 2], strides = [1, 1, 1]} : vector<9x1x2xf32> to vector<1x1x2xf32>
    %193 = vector.shape_cast %192 : vector<1x1x2xf32> to vector<1x2xf32>
    %194 = vector.shape_cast %193 : vector<1x2xf32> to vector<1x1x2xf32>
    %195 = vector.broadcast %194 : vector<1x1x2xf32> to vector<16x16x2xf32>
    %196 = arith.mulf %191, %195 : vector<16x16x2xf32>
    %197 = arith.addf %190, %196 : vector<16x16x2xf32>
    %c0_62 = arith.constant 0 : index
    %c0_63 = arith.constant 0 : index
    %198 = vector.load %arg14[%c0_62, %c0_63] : memref<1x2xf32, #tpu.memory_space<vmem>>, vector<1x2xf32>
    %199 = vector.shape_cast %198 : vector<1x2xf32> to vector<1x1x2xf32>
    %200 = vector.broadcast %199 : vector<1x1x2xf32> to vector<16x16x2xf32>
    %201 = arith.addf %197, %200 : vector<16x16x2xf32>
    %202 = vector.shape_cast %201 : vector<16x16x2xf32> to vector<256x2xf32>
    %c0_64 = arith.constant 0 : index
    %c0_65 = arith.constant 0 : index
    %203 = vector.load %arg2[%c0_64, %c0_65] : memref<4x4xf32, #tpu.memory_space<vmem>>, vector<4x4xf32>
    %204 = vector.extract_strided_slice %2 {offsets = [0, 0], sizes = [256, 2], strides = [1, 1]} : vector<256x4xf32> to vector<256x2xf32>
    %205 = arith.addf %127, %204 : vector<256x2xf32>
    %206 = vector.extract_strided_slice %203 {offsets = [0, 0], sizes = [2, 4], strides = [1, 1]} : vector<4x4xf32> to vector<2x4xf32>
    %cst_66 = arith.constant dense<0.000000e+00> : vector<256x4xf32>
    %207 = tpu.matmul %205, %206, %cst_66 {dimension_numbers = #tpu.dot_dimension_numbers<[1], [0], [0], [1], [0, 0, 1, 1], [], []>} : vector<256x2xf32>, vector<2x4xf32>, vector<256x4xf32> -> vector<256x4xf32>
    %208 = vector.extract_strided_slice %2 {offsets = [0, 2], sizes = [256, 2], strides = [1, 1]} : vector<256x4xf32> to vector<256x2xf32>
    %209 = arith.addf %202, %208 : vector<256x2xf32>
    %210 = vector.extract_strided_slice %203 {offsets = [2, 0], sizes = [2, 4], strides = [1, 1]} : vector<4x4xf32> to vector<2x4xf32>
    %cst_67 = arith.constant dense<0.000000e+00> : vector<256x4xf32>
    %211 = tpu.matmul %209, %210, %cst_67 {dimension_numbers = #tpu.dot_dimension_numbers<[1], [0], [0], [1], [0, 0, 1, 1], [], []>} : vector<256x2xf32>, vector<2x4xf32>, vector<256x4xf32> -> vector<256x4xf32>
    %212 = arith.addf %207, %211 : vector<256x4xf32>
    %213 = vector.shape_cast %212 : vector<256x4xf32> to vector<16x16x4xf32>
    %c0_68 = arith.constant 0 : index
    %c0_69 = arith.constant 0 : index
    %c0_70 = arith.constant 0 : index
    %c0_71 = arith.constant 0 : index
    %214 = vector.load %arg15[%c0_68, %c0_69, %c0_70, %c0_71] : memref<1x16x16x4xf32, #tpu.memory_space<vmem>>, vector<1x16x16x4xf32>
    %215 = vector.shape_cast %214 : vector<1x16x16x4xf32> to vector<16x16x4xf32>
    %216 = vector.shape_cast %213 : vector<16x16x4xf32> to vector<1x16x16x4xf32>
    tpu.vector_store %arg15[%c0_68, %c0_69, %c0_70, %c0_71], %216 {strides = array<i32>} : memref<1x16x16x4xf32, #tpu.memory_space<vmem>>, vector<1x16x16x4xf32>,
    return
  }
  func.func @transform_0(%arg0: i32) -> (i32, i32, i32, i32) {
    %c0_i32 = arith.constant 0 : i32
    %c0_i32_0 = arith.constant 0 : i32
    %c0_i32_1 = arith.constant 0 : i32
    %c0_i32_2 = arith.constant 0 : i32
    return %arg0, %c0_i32, %c0_i32_0, %c0_i32_1 : i32, i32, i32, i32
  }
  func.func @transform_1(%arg0: i32) -> (i32, i32) {
    %c0_i32 = arith.constant 0 : i32
    %c0_i32_0 = arith.constant 0 : i32
    %c0_i32_1 = arith.constant 0 : i32
    return %c0_i32, %c0_i32_0 : i32, i32
  }
  func.func @transform_2(%arg0: i32) -> (i32, i32) {
    %c0_i32 = arith.constant 0 : i32
    %c0_i32_0 = arith.constant 0 : i32
    %c0_i32_1 = arith.constant 0 : i32
    return %c0_i32, %c0_i32_0 : i32, i32
  }
  func.func @transform_3(%arg0: i32) -> (i32, i32) {
    %c0_i32 = arith.constant 0 : i32
    %c0_i32_0 = arith.constant 0 : i32
    %c0_i32_1 = arith.constant 0 : i32
    return %c0_i32, %c0_i32_0 : i32, i32
  }
  func.func @transform_4(%arg0: i32) -> (i32, i32, i32) {
    %c0_i32 = arith.constant 0 : i32
    %c0_i32_0 = arith.constant 0 : i32
    %c0_i32_1 = arith.constant 0 : i32
    %c0_i32_2 = arith.constant 0 : i32
    return %c0_i32, %c0_i32_0, %c0_i32_1 : i32, i32, i32
  }
  func.func @transform_5(%arg0: i32) -> (i32, i32) {
    %c0_i32 = arith.constant 0 : i32
    %c0_i32_0 = arith.constant 0 : i32
    %c0_i32_1 = arith.constant 0 : i32
    return %c0_i32, %c0_i32_0 : i32, i32
  }
  func.func @transform_6(%arg0: i32) -> (i32, i32) {
    %c0_i32 = arith.constant 0 : i32
    %c0_i32_0 = arith.constant 0 : i32
    %c0_i32_1 = arith.constant 0 : i32
    return %c0_i32, %c0_i32_0 : i32, i32
  }
  func.func @transform_7(%arg0: i32) -> (i32, i32) {
    %c0_i32 = arith.constant 0 : i32
    %c0_i32_0 = arith.constant 0 : i32
    %c0_i32_1 = arith.constant 0 : i32
    return %c0_i32, %c0_i32_0 : i32, i32
  }
  func.func @transform_8(%arg0: i32) -> (i32, i32) {
    %c0_i32 = arith.constant 0 : i32
    %c0_i32_0 = arith.constant 0 : i32
    %c0_i32_1 = arith.constant 0 : i32
    return %c0_i32, %c0_i32_0 : i32, i32
  }
  func.func @transform_9(%arg0: i32) -> (i32, i32) {
    %c0_i32 = arith.constant 0 : i32
    %c0_i32_0 = arith.constant 0 : i32
    %c0_i32_1 = arith.constant 0 : i32
    return %c0_i32, %c0_i32_0 : i32, i32
  }
  func.func @transform_10(%arg0: i32) -> (i32, i32) {
    %c0_i32 = arith.constant 0 : i32
    %c0_i32_0 = arith.constant 0 : i32
    %c0_i32_1 = arith.constant 0 : i32
    return %c0_i32, %c0_i32_0 : i32, i32
  }
  func.func @transform_11(%arg0: i32) -> (i32, i32) {
    %c0_i32 = arith.constant 0 : i32
    %c0_i32_0 = arith.constant 0 : i32
    %c0_i32_1 = arith.constant 0 : i32
    return %c0_i32, %c0_i32_0 : i32, i32
  }
  func.func @transform_12(%arg0: i32) -> (i32, i32, i32) {
    %c0_i32 = arith.constant 0 : i32
    %c0_i32_0 = arith.constant 0 : i32
    %c0_i32_1 = arith.constant 0 : i32
    %c0_i32_2 = arith.constant 0 : i32
    return %c0_i32, %c0_i32_0, %c0_i32_1 : i32, i32, i32
  }
  func.func @transform_13(%arg0: i32) -> (i32, i32) {
    %c0_i32 = arith.constant 0 : i32
    %c0_i32_0 = arith.constant 0 : i32
    %c0_i32_1 = arith.constant 0 : i32
    return %c0_i32, %c0_i32_0 : i32, i32
  }
  func.func @transform_14(%arg0: i32) -> (i32, i32, i32, i32) {
    %c0_i32 = arith.constant 0 : i32
    %c0_i32_0 = arith.constant 0 : i32
    %c0_i32_1 = arith.constant 0 : i32
    %c0_i32_2 = arith.constant 0 : i32
    return %arg0, %c0_i32, %c0_i32_0, %c0_i32_1 : i32, i32, i32, i32
  }
}

</mosaic_0001>

<bundles_post_ra>
// kernel: tpu_custom_call.1
= control target key start
LH: loop header
LB: loop body
LE: loop exit
PB: predicated region body
PF: predicated region fallthrough
CT: control target
= control target key end

     0   :  { %s7508_s29 = smov 0   ;;  %s12303_s0 = inlined_call_operand.vmem [shape: f32[2,16,16,4], index: 0, kind: input, shape index: {}]   ;;  %s12304_s1 = inlined_call_operand.vmem [shape: f32[4,4], index: 1, kind: input, shape index: {}]   ;;  %s12305_s2 = inlined_call_operand.vmem [shape: f32[4,4], index: 2, kind: input, shape index: {}]   ;;  %s12306_s3 = inlined_call_operand.vmem [shape: f32[1,4], index: 3, kind: input, shape index: {}]   ;;  %s12307_s4 = inlined_call_operand.vmem [shape: f32[9,1,4], index: 4, kind: input, shape index: {}]   ;;  %s12308_s5 = inlined_call_operand.vmem [shape: f32[1,4], index: 5, kind: input, shape index: {}]   ;;  %s12309_s6 = inlined_call_operand.vmem [shape: f32[8,2], index: 6, kind: input, shape index: {}]   ;;  %s12310_s7 = inlined_call_operand.vmem [shape: f32[1,2], index: 7, kind: input, shape index: {}]   ;;  %s12311_s8 = inlined_call_operand.vmem [shape: f32[2,8], index: 8, kind: input, shape index: {}]   ;;  %s12312_s9 = inlined_call_operand.vmem [shape: f32[1,8], index: 9, kind: input, shape index: {}]   ;;  %s12313_s10 = inlined_call_operand.vmem [shape: f32[8,2], index: 10, kind: input, shape index: {}]   ;;  %s12314_s11 = inlined_call_operand.vmem [shape: f32[1,2], index: 11, kind: input, shape index: {}]   ;;  %s12315_s12 = inlined_call_operand.vmem [shape: f32[9,1,2], index: 12, kind: input, shape index: {}]   ;;  %s12316_s13 = inlined_call_operand.vmem [shape: f32[1,2], index: 13, kind: input, shape index: {}]   ;;  %s12317_s14 = inlined_call_operand.vmem [shape: f32[2,16,16,4], index: 14, kind: output, shape index: {}]  }
   0x1 LB: > { %s6686_s30 = sadd.s32 4294967295, %s7427_s29   ;;  %p6690_p0 = scmp.ge.s32.totalorder %s7427_s29, 1  ;;  %s7427_s29 = sphi %s7508_s29, %s24_s29  }
   0x2   : > { %p412_p1 = scmp.lt.s32.totalorder %s7427_s29, 3 }
   0x4   : > { %p413_p2 = pnand %p6690_p0, %p412_p1 }
   0x6   : > { %416 = sbr.rel (%p413_p2) target bundleno = 1830 (0x726), region = 76 }
   0xb   : > { %v500_v0 = vld [vmem:[%s12305_s2] sm:$0xf]  ;;  %vm605_vm0 = vcmask 1043456   ;;  %p458_p3 = scmp.lt.s32.totalorder %s6686_s30, 1  ;;  %vm508_vm1 = vcmask 31744   ;;  %vm868_vm2 = vcmask 25600  }
   0xc   : > { %7063 = vmatprep.subr.msk.mxu0 %vm605_vm0, %v500_v0  ;;  %7328 = vmatprep.subr.msk.mxu1 %vm605_vm0, %v500_v0  ;;  %v12318_v33 = vmov 0.0   ;;  %v7709_v34 = vld [vmem:[%s12306_s3] ss:$0 sm:$0xff]  ;;  %v7744_v53 = vld [vmem:[%s12307_s4 + $0x1] ss:$0 sm:$0xff]  ;;  %vm1189_vm3 = vcmask 1046528  }
   0xd   : > { %7064 = vmatpush3.msk.msra.mxu0 %vm605_vm0, %v500_v0  ;;  %s12810_s30 = smov (!%p458_p3, %s6686_s30), 1  ;;  %7329 = vmatpush3.msk.msra.mxu1 %vm605_vm0, %v500_v0  ;;  %871 = vst.msk [vmem:[#allocation2 + $0x20] sm:$0xff] %vm508_vm1, %v12318_v33  ;;  %866 = vst.msk [vmem:[#allocation2] sm:$0xff] %vm508_vm1, %v12318_v33  ;;  %v7752_v60 = vld [vmem:[%s12307_s4 + $0x2] ss:$0 sm:$0xff]  ;;  %vm1436_vm4 = vcmask 1045504  }
   0xe   : > { %s6890_s17 = sshll.u32 %s12810_s30, 8  ;;  %872 = vst.msk [vmem:[#allocation2 + $0x28] sm:$0x3] %vm868_vm2, %v12318_v33  ;;  %869 = vst.msk [vmem:[#allocation2 + $0x10] sm:$0x3] %vm868_vm2, %v12318_v33  ;;  %7113 = vmatprep.subr.mxu1 %v12318_v33  ;;  %vm7430_vm5 = vmmov 0  }
   0xf   : > { %s7531_s20 = scalar_lea.vmem %s12303_s0, %s6890_s17  ;;  %867 = vst.msk [vmem:[#allocation2 + $0x8] sm:$0xff] %vm508_vm1, %v12318_v33  ;;  %870 = vst.msk [vmem:[#allocation2 + $0x18] sm:$0xff] %vm508_vm1, %v12318_v33  ;;  %v7757_v63 = vld [vmem:[%s12307_s4] ss:$0 sm:$0xff]  ;;  %vm3078_vm6 = vcmask 1041408   ;;  %vm3074_vm7 = vcmask 15360   ;;  %s12192_s21 = scalar_lea.vmem %s12317_s14, %s6890_s17 }
  0x10   : > { %v468_v1 = vld [vmem:[%s7531_s20] sm:$0xff]  ;;  %v469_v2 = vld [vmem:[%s7531_s20 + $0x8] sm:$0xff]  ;;  %v470_v3 = vld [vmem:[%s7531_s20 + $0x10] sm:$0xff]  ;;  %873 = vst.msk [vmem:[#allocation2 + $0x30] sm:$0xff] %vm508_vm1, %v12318_v33  ;;  %s7431_s27 = smov 124   ;;  %s7432_s28 = smov 126  }
  0x11   : > { %7065 = vmatprep.mubr.msk.f32.mxu0 %vm508_vm1, %v468_v1  ;;  %v471_v4 = vld [vmem:[%s7531_s20 + $0x18] sm:$0xff]  ;;  %v472_v5 = vld [vmem:[%s7531_s20 + $0x20] sm:$0xff]  ;;  %v489_v7 = vld [vmem:[%s7531_s20 + $0xa8] sm:$0xff]  ;;  %874 = vst.msk [vmem:[#allocation2 + $0x38] sm:$0xff] %vm508_vm1, %v12318_v33  ;;  %vm3916_vm8 = vcmask 9216  }
  0x12   : > { %7066 = vmatmul.mubr.msk.f32.vlgmr.msra.gmra.mxu0 %vm508_vm1, %v469_v2  ;;  %v488_v6 = vld [vmem:[%s7531_s20 + $0xa0] sm:$0xff]  ;;  %v473_v8 = vld [vmem:[%s7531_s20 + $0x28] sm:$0xff]  ;;  %v490_v9 = vld [vmem:[%s7531_s20 + $0xb0] sm:$0xff]  ;;  %875 = vst.msk [vmem:[#allocation2 + $0x40] sm:$0x3] %vm868_vm2, %v12318_v33 }
  0x13   : > { %7068 = vmatprep.mubr.msk.f32.mxu0 %vm508_vm1, %v470_v3  ;;  %7095 = vmatprep.mubr.msk.f32.mxu1 %vm508_vm1, %v488_v6  ;;  %v474_v10 = vld [vmem:[%s7531_s20 + $0x30] sm:$0xff]  ;;  %v491_v11 = vld [vmem:[%s7531_s20 + $0xb8] sm:$0xff]  ;;  %v492_v12 = vld [vmem:[%s7531_s20 + $0xc0] sm:$0xff]  ;;  %876 = vst.msk [vmem:[#allocation2 + $0x48] sm:$0xff] %vm508_vm1, %v12318_v33 }
  0x14   : > { %7096 = vmatmul.mubr.msk.f32.vlgmr.msra.gmra.mxu1 %vm508_vm1, %v489_v7  ;;  %v475_v13 = vld [vmem:[%s7531_s20 + $0x38] sm:$0xff]  ;;  %v476_v14 = vld [vmem:[%s7531_s20 + $0x40] sm:$0xff]  ;;  %v493_v15 = vld [vmem:[%s7531_s20 + $0xc8] sm:$0xff]  ;;  %877 = vst.msk [vmem:[#allocation2 + $0x50] sm:$0xff] %vm508_vm1, %v12318_v33 }
  0x15   : > { %7098 = vmatprep.mubr.msk.f32.mxu1 %vm508_vm1, %v490_v9  ;;  %v494_v16 = vld [vmem:[%s7531_s20 + $0xd0] sm:$0xff]  ;;  %v477_v17 = vld [vmem:[%s7531_s20 + $0x48] sm:$0xff]  ;;  %v495_v19 = vld [vmem:[%s7531_s20 + $0xd8] sm:$0xff]  ;;  %878 = vst.msk [vmem:[#allocation2 + $0x58] sm:$0x3] %vm868_vm2, %v12318_v33 }
  0x16   : > { %7069 = vmatmul.mubr.msk.f32.gmra.mxu0 %vm508_vm1, %v471_v4  ;;  %v478_v18 = vld [vmem:[%s7531_s20 + $0x50] sm:$0xff]  ;;  %v496_v20 = vld [vmem:[%s7531_s20 + $0xe0] sm:$0xff]  ;;  %v479_v21 = vld [vmem:[%s7531_s20 + $0x58] sm:$0xff]  ;;  %879 = vst.msk [vmem:[#allocation2 + $0x60] sm:$0xff] %vm508_vm1, %v12318_v33 }
  0x17   : > { %7071 = vmatprep.mubr.msk.f32.mxu0 %vm508_vm1, %v472_v5  ;;  %v480_v22 = vld [vmem:[%s7531_s20 + $0x60] sm:$0xff]  ;;  %v497_v23 = vld [vmem:[%s7531_s20 + $0xe8] sm:$0xff]  ;;  %v498_v24 = vld [vmem:[%s7531_s20 + $0xf0] sm:$0xff]  ;;  %880 = vst.msk [vmem:[#allocation2 + $0x68] sm:$0xff] %vm508_vm1, %v12318_v33 }
  0x18   : > { %7099 = vmatmul.mubr.msk.f32.gmra.mxu1 %vm508_vm1, %v491_v11  ;;  %v481_v25 = vld [vmem:[%s7531_s20 + $0x68] sm:$0xff]  ;;  %v482_v26 = vld [vmem:[%s7531_s20 + $0x70] sm:$0xff]  ;;  %v499_v27 = vld [vmem:[%s7531_s20 + $0xf8] sm:$0xff]  ;;  %881 = vst.msk [vmem:[#allocation2 + $0x70] sm:$0x3] %vm868_vm2, %v12318_v33 }
  0x19   : > { %7101 = vmatprep.mubr.msk.f32.mxu1 %vm508_vm1, %v492_v12  ;;  %v483_v28 = vld [vmem:[%s7531_s20 + $0x78] sm:$0xff]  ;;  %v484_v29 = vld [vmem:[%s7531_s20 + $0x80] sm:$0xff]  ;;  %v485_v30 = vld [vmem:[%s7531_s20 + $0x88] sm:$0xff]  ;;  %882 = vst.msk [vmem:[#allocation2 + $0x78] sm:$0xff] %vm508_vm1, %v12318_v33 }
  0x1a   : > { %7072 = vmatmul.mubr.msk.f32.gmra.mxu0 %vm508_vm1, %v473_v8  ;;  %v486_v31 = vld [vmem:[%s7531_s20 + $0x90] sm:$0xff]  ;;  %v487_v32 = vld [vmem:[%s7531_s20 + $0x98] sm:$0xff]  ;;  %883 = vst.msk [vmem:[#allocation2 + $0x80] sm:$0xff] %vm508_vm1, %v12318_v33  ;;  %885 = vst.msk [vmem:[#allocation2 + $0x90] sm:$0xff] %vm508_vm1, %v12318_v33 }
  0x1b   : > { %7074 = vmatprep.mubr.msk.f32.mxu0 %vm508_vm1, %v474_v10  ;;  %884 = vst.msk [vmem:[#allocation2 + $0x88] sm:$0x3] %vm868_vm2, %v12318_v33  ;;  %887 = vst.msk [vmem:[#allocation2 + $0xa0] sm:$0x3] %vm868_vm2, %v12318_v33  ;;  %v963_v54 = vld [vmem:[#allocation2] sm:$0xff]  ;;  %v964_v55 = vld [vmem:[#allocation2 + $0x8] sm:$0xff] }
  0x1c   : > { %7102 = vmatmul.mubr.msk.f32.gmra.mxu1 %vm508_vm1, %v493_v15  ;;  %886 = vst.msk [vmem:[#allocation2 + $0x98] sm:$0xff] %vm508_vm1, %v12318_v33  ;;  %888 = vst.msk [vmem:[#allocation2 + $0xa8] sm:$0xff] %vm508_vm1, %v12318_v33  ;;  %v965_v56 = vld [vmem:[#allocation2 + $0x10] sm:$0x3]  ;;  %v1093_v57 = vmul.f32 %v7744_v53, %v963_v54  ;;  %v1094_v58 = vmul.f32 %v7744_v53, %v964_v55  ;;  %v1340_v1 = vmul.f32 %v7752_v60, %v963_v54 }
  0x1d   : > { %7104 = vmatprep.mubr.msk.f32.mxu1 %vm508_vm1, %v494_v16  ;;  %889 = vst.msk [vmem:[#allocation2 + $0xb0] sm:$0xff] %vm508_vm1, %v12318_v33  ;;  %891 = vst.msk [vmem:[#allocation2 + $0xc0] sm:$0xff] %vm508_vm1, %v12318_v33  ;;  %v1095_v59 = vmul.f32 %v7744_v53, %v965_v56  ;;  %v1341_v2 = vmul.f32 %v7752_v60, %v964_v55  ;;  %v1342_v3 = vmul.f32 %v7752_v60, %v965_v56 }
  0x1e   : > { %7075 = vmatmul.mubr.msk.f32.gmra.mxu0 %vm508_vm1, %v475_v13  ;;  %890 = vst.msk [vmem:[#allocation2 + $0xb8] sm:$0x3] %vm868_vm2, %v12318_v33  ;;  %893 = vst.msk [vmem:[#allocation2 + $0xd0] sm:$0x3] %vm868_vm2, %v12318_v33  ;;  %v1190_v61 = vrot.slane %v1093_v57, 1  ;;  %v1191_v62 = vrot.slane %v1094_v58, 1  ;;  %v1023_v6 = vmul.f32 %v7757_v63, %v963_v54  ;;  %v1024_v7 = vmul.f32 %v7757_v63, %v964_v55 }
  0x1f   : > { %7077 = vmatprep.mubr.msk.f32.mxu0 %vm508_vm1, %v476_v14  ;;  %892 = vst.msk [vmem:[#allocation2 + $0xc8] sm:$0xff] %vm508_vm1, %v12318_v33  ;;  %894 = vst.msk [vmem:[#allocation2 + $0xd8] sm:$0xff] %vm508_vm1, %v12318_v33  ;;  %v1193_v0 = vrot.slane %v1095_v59, 1  ;;  %v1437_v10 = vrot.slane %v1340_v1, 2  ;;  %v1438_v11 = vrot.slane %v1341_v2, 2  ;;  %v1440_v12 = vrot.slane %v1342_v3, 2 }
  0x20   : > { %7105 = vmatmul.mubr.msk.f32.gmra.mxu1 %vm508_vm1, %v495_v19  ;;  %895 = vst.msk [vmem:[#allocation2 + $0xe0] sm:$0xff] %vm508_vm1, %v12318_v33  ;;  %897 = vst.msk [vmem:[#allocation2 + $0xf0] sm:$0xff] %vm508_vm1, %v12318_v33  ;;  %v1192_v8 = vsel %vm1189_vm3, %v1190_v61, %v1191_v62 }
  0x21   : > { %7107 = vmatprep.mubr.msk.f32.mxu1 %vm508_vm1, %v496_v20  ;;  %896 = vst.msk [vmem:[#allocation2 + $0xe8] sm:$0x3] %vm868_vm2, %v12318_v33  ;;  %899 = vst.msk [vmem:[#allocation2 + $0x100] sm:$0x3] %vm868_vm2, %v12318_v33  ;;  %v1194_v9 = vsel %vm1189_vm3, %v1191_v62, %v1193_v0  ;;  %v1302_v19 = vadd.f32 %v1192_v8, %v1023_v6 }
  0x22   : > { %7078 = vmatmul.mubr.msk.f32.gmra.mxu0 %vm508_vm1, %v477_v17  ;;  %898 = vst.msk [vmem:[#allocation2 + $0xf8] sm:$0xff] %vm508_vm1, %v12318_v33  ;;  %900 = vst.msk [vmem:[#allocation2 + $0x108] sm:$0xff] %vm508_vm1, %v12318_v33  ;;  %v7773_v17 = vld [vmem:[%s12307_s4 + $0x4] ss:$0 sm:$0xff]  ;;  %v1303_v20 = vadd.f32 %v1194_v9, %v1024_v7 }
  0x23   : > { %7080 = vmatprep.mubr.msk.f32.mxu0 %vm508_vm1, %v478_v18  ;;  %901 = vst.msk [vmem:[#allocation2 + $0x110] sm:$0xff] %vm508_vm1, %v12318_v33  ;;  %903 = vst.msk [vmem:[#allocation2 + $0x120] sm:$0xff] %vm508_vm1, %v12318_v33 }
  0x24   : > { %7108 = vmatmul.mubr.msk.f32.gmra.mxu1 %vm508_vm1, %v497_v23  ;;  %902 = vst.msk [vmem:[#allocation2 + $0x118] sm:$0x3] %vm868_vm2, %v12318_v33  ;;  %905 = vst.msk [vmem:[#allocation2 + $0x130] sm:$0x3] %vm868_vm2, %v12318_v33 }
  0x25   : > { %7110 = vmatprep.mubr.msk.f32.mxu1 %vm508_vm1, %v498_v24  ;;  %904 = vst.msk [vmem:[#allocation2 + $0x128] sm:$0xff] %vm508_vm1, %v12318_v33  ;;  %906 = vst.msk [vmem:[#allocation2 + $0x138] sm:$0xff] %vm508_vm1, %v12318_v33 }
  0x26   : > { %7081 = vmatmul.mubr.msk.f32.gmra.mxu0 %vm508_vm1, %v479_v21  ;;  %907 = vst.msk [vmem:[#allocation2 + $0x140] sm:$0xff] %vm508_vm1, %v12318_v33  ;;  %909 = vst.msk [vmem:[#allocation2 + $0x150] sm:$0xff] %vm508_vm1, %v12318_v33  ;;  %v1439_v21 = vsel %vm1436_vm4, %v1437_v10, %v1438_v11 }
  0x27   : > { %7083 = vmatprep.mubr.msk.f32.mxu0 %vm508_vm1, %v480_v22  ;;  %908 = vst.msk [vmem:[#allocation2 + $0x148] sm:$0x3] %vm868_vm2, %v12318_v33  ;;  %911 = vst.msk [vmem:[#allocation2 + $0x160] sm:$0x3] %vm868_vm2, %v12318_v33  ;;  %v1441_v22 = vsel %vm1436_vm4, %v1438_v11, %v1440_v12 }
  0x28   : > { %7111 = vmatmul.mubr.msk.f32.gmra.mxu1 %vm508_vm1, %v499_v27  ;;  %910 = vst.msk [vmem:[#allocation2 + $0x158] sm:$0xff] %vm508_vm1, %v12318_v33  ;;  %912 = vst.msk [vmem:[#allocation2 + $0x168] sm:$0xff] %vm508_vm1, %v12318_v33 }
  0x29   : > { %913 = vst.msk [vmem:[#allocation2 + $0x170] sm:$0xff] %vm508_vm1, %v12318_v33  ;;  %915 = vst.msk [vmem:[#allocation2 + $0x180] sm:$0xff] %vm508_vm1, %v12318_v33 }
  0x2a   : > { %7084 = vmatmul.mubr.msk.f32.gmra.mxu0 %vm508_vm1, %v481_v25  ;;  %914 = vst.msk [vmem:[#allocation2 + $0x178] sm:$0x3] %vm868_vm2, %v12318_v33  ;;  %917 = vst.msk [vmem:[#allocation2 + $0x190] sm:$0x3] %vm868_vm2, %v12318_v33  ;;  %v7783_v25 = vld [vmem:[%s12307_s4 + $0x3] ss:$0 sm:$0xff] }
  0x2b   : > { %7086 = vmatprep.mubr.msk.f32.mxu0 %vm508_vm1, %v482_v26  ;;  %916 = vst.msk [vmem:[#allocation2 + $0x188] sm:$0xff] %vm508_vm1, %v12318_v33  ;;  %918 = vst.msk [vmem:[#allocation2 + $0x198] sm:$0xff] %vm508_vm1, %v12318_v33 }
  0x2c   : > { %919 = vst.msk [vmem:[#allocation2 + $0x1a0] sm:$0xff] %vm508_vm1, %v12318_v33 }
  0x2d   : > { %920 = vst.msk [vmem:[#allocation2 + $0x1a8] sm:$0x3] %vm868_vm2, %v12318_v33 }
  0x2e   : > { %7087 = vmatmul.mubr.msk.f32.gmra.mxu0 %vm508_vm1, %v483_v28 }
  0x2f   : > { %7089 = vmatprep.mubr.msk.f32.mxu0 %vm508_vm1, %v484_v29 }
  0x32   : > { %7090 = vmatmul.mubr.msk.f32.gmra.mxu0 %vm508_vm1, %v485_v30 }
  0x33   : > { %7092 = vmatprep.mubr.msk.f32.mxu0 %vm508_vm1, %v486_v31 }
  0x36   : > { %7093 = vmatmul.mubr.msk.f32.gmra.mxu0 %vm508_vm1, %v487_v32 }
  0xd2   : > { %v7067_v35 = vpop.f32.mrf.mxu0 }
  0xd3   : > { %v681_v36 = vadd.f32 %v7067_v35, %v7709_v34 }
  0xd4   : > { %v675_v37 = vpop.f32.mrf.mxu0 }
  0xd5   : > { %v7712_v38 = vmax.f32 %v681_v36, 0.0  ;;  %v676_v39 = vadd.f32 %v7709_v34, %v675_v37  ;;  %v1549_v37 = vadd.f32 %v1439_v21, %v1302_v19 }
  0xd6   : > { %v7070_v40 = vpop.f32.mrf.mxu0 }
  0xd7   : > { %12444 = vst [vmem:[#allocation4_spill] sm:$0xff] %v7712_v38  ;;  %923 = vst.msk [vmem:[#allocation2 + $0x21] sm:$0xff] %vm508_vm1, %v7712_v38  ;;  %v7717_v41 = vmax.f32 %v676_v39, 0.0  ;;  %v691_v42 = vadd.f32 %v7070_v40, %v7709_v34  ;;  %v2778_v18 = vsel %vm508_vm1, %v7712_v38, 0.0  ;;  %v1550_v39 = vadd.f32 %v1441_v22, %v1303_v20  ;;  %v7824_v20 = vld [vmem:[%s12307_s4 + $0x7] ss:$0 sm:$0xff] }
  0xd8   : > { %v685_v43 = vpop.f32.mrf.mxu0 }
  0xd9   : > { %12445 = vst [vmem:[#allocation5_spill] sm:$0xff] %v7717_v41  ;;  %922 = vst.msk [vmem:[#allocation2 + $0x19] sm:$0xff] %vm508_vm1, %v7717_v41  ;;  %v7722_v44 = vmax.f32 %v691_v42, 0.0  ;;  %v686_v45 = vadd.f32 %v7709_v34, %v685_v43  ;;  %v2777_v13 = vsel %vm508_vm1, %v7717_v41, 0.0 }
  0xda   : > { %v7073_v46 = vpop.f32.mrf.mxu0  ;;  %v2779_v23 = vadd.f32 %v2778_v18, %v2777_v13 }
  0xdb   : > { %12446 = vst [vmem:[#allocation6_spill] sm:$0xff] %v7722_v44  ;;  %925 = vst.msk [vmem:[#allocation2 + $0x39] sm:$0xff] %vm508_vm1, %v7722_v44  ;;  %v7727_v47 = vmax.f32 %v686_v45, 0.0  ;;  %v701_v48 = vadd.f32 %v7073_v46, %v7709_v34  ;;  %v2782_v43 = vsel %vm508_vm1, %v7722_v44, 0.0  ;;  %v7799_v46 = vld [vmem:[%s12307_s4 + $0x5] ss:$0 sm:$0xff] }
  0xdc   : > { %v695_v49 = vpop.f32.mrf.mxu0 }
  0xdd   : > { %12447 = vst [vmem:[#allocation7_spill] sm:$0xff] %v7727_v47  ;;  %924 = vst.msk [vmem:[#allocation2 + $0x31] sm:$0xff] %vm508_vm1, %v7727_v47  ;;  %v7732_v50 = vmax.f32 %v701_v48, 0.0  ;;  %v696_v51 = vadd.f32 %v7709_v34, %v695_v49  ;;  %v2780_v28 = vsel %vm508_vm1, %v7727_v47, 0.0 }
  0xde   : > { %v968_v14 = vld [vmem:[#allocation2 + $0x28] sm:$0x3]  ;;  %v7076_v35 = vpop.f32.mrf.mxu0  ;;  %v2781_v45 = vadd.f32 %v2780_v28, %v2779_v23 }
  0xdf   : > { %12448 = vst [vmem:[#allocation8_spill] sm:$0xff] %v7732_v50  ;;  %927 = vst.msk [vmem:[#allocation2 + $0x51] sm:$0xff] %vm508_vm1, %v7732_v50  ;;  %v7737_v52 = vmax.f32 %v696_v51, 0.0  ;;  %v1098_v24 = vmul.f32 %v7744_v53, %v968_v14  ;;  %v1659_v29 = vmul.f32 %v7773_v17, %v968_v14  ;;  %v1345_v49 = vmul.f32 %v7752_v60, %v968_v14 }
  0xe0   : > { %v966_v4 = vld [vmem:[#allocation2 + $0x18] sm:$0xff]  ;;  %v967_v5 = vld [vmem:[#allocation2 + $0x20] sm:$0xff]  ;;  %v705_v59 = vpop.f32.mrf.mxu0  ;;  %v1905_v2 = vmul.f32 %v7799_v46, %v968_v14  ;;  %v7813_v12 = vsel %vm508_vm1, %v7732_v50, 0.0  ;;  %v711_v14 = vadd.f32 %v7076_v35, %v7709_v34 }
  0xe1   : > { %12449 = vst [vmem:[#allocation9_spill] sm:$0xff] %v7737_v52  ;;  %926 = vst.msk [vmem:[#allocation2 + $0x49] sm:$0xff] %vm508_vm1, %v7737_v52  ;;  %v1096_v15 = vmul.f32 %v7744_v53, %v966_v4  ;;  %v1097_v16 = vmul.f32 %v7744_v53, %v967_v5  ;;  %v1657_v26 = vmul.f32 %v7773_v17, %v966_v4  ;;  %v1198_v48 = vrot.slane %v1098_v24, 1 }
  0xe2   : > { %v1658_v27 = vmul.f32 %v7773_v17, %v967_v5  ;;  %v1343_v32 = vmul.f32 %v7752_v60, %v966_v4  ;;  %v1344_v36 = vmul.f32 %v7752_v60, %v967_v5  ;;  %v1587_v40 = vmul.f32 %v7783_v25, %v966_v4  ;;  %v971_v8 = vld [vmem:[#allocation2 + $0x40] sm:$0x3] }
  0xe3   : > { %v1195_v30 = vrot.slane %v1096_v15, 1  ;;  %v1196_v31 = vrot.slane %v1097_v16, 1  ;;  %v1588_v42 = vmul.f32 %v7783_v25, %v967_v5  ;;  %v1753_v51 = vrot.slane %v1657_v26, 1  ;;  %v7818_v16 = vpop.f32.mrf.mxu0 }
  0xe4   : > { %v1754_v54 = vrot.slane %v1658_v27, 1  ;;  %v1756_v55 = vrot.slane %v1659_v29, 1  ;;  %v1025_v56 = vmul.f32 %v7757_v63, %v966_v4  ;;  %v1442_v58 = vrot.slane %v1343_v32, 2  ;;  %v969_v22 = vld [vmem:[#allocation2 + $0x30] sm:$0xff]  ;;  %v970_v23 = vld [vmem:[#allocation2 + $0x38] sm:$0xff] }
  0xe5   : > { %v1197_v57 = vsel %vm1189_vm3, %v1195_v30, %v1196_v31  ;;  %v1199_v61 = vsel %vm1189_vm3, %v1196_v31, %v1198_v48  ;;  %v1443_v62 = vrot.slane %v1344_v36, 2  ;;  %v1903_v0 = vmul.f32 %v7799_v46, %v966_v4  ;;  %v7832_v27 = vld [vmem:[%s12307_s4 + $0x8] ss:$0 sm:$0xff] }
  0xe6   : > { %v1904_v1 = vmul.f32 %v7799_v46, %v967_v5  ;;  %v1026_v3 = vmul.f32 %v7757_v63, %v967_v5  ;;  %v1619_v6 = vadd.f32 %v1587_v40, %v1549_v37  ;;  %v1620_v7 = vadd.f32 %v1588_v42, %v1550_v39  ;;  %v715_v42 = vpop.f32.mrf.mxu0 }
  0xe7   : > { %v1304_v9 = vadd.f32 %v1197_v57, %v1025_v56  ;;  %v1755_v10 = vsel %vm1189_vm3, %v1753_v51, %v1754_v54  ;;  %v1757_v11 = vsel %vm1189_vm3, %v1754_v54, %v1756_v55  ;;  %v1445_v13 = vrot.slane %v1345_v49, 2 }
  0xe8   : > { %v1305_v4 = vadd.f32 %v1199_v61, %v1026_v3  ;;  %v7815_v15 = vadd.f32 %v2782_v43, %v2781_v45  ;;  %v1444_v5 = vsel %vm1436_vm4, %v1442_v58, %v1443_v62  ;;  %v1999_v18 = vrot.slane %v1903_v0, 2  ;;  %v7912_v33 = vld [vmem:[#allocation2 + $0x50] sm:$0xff] }
  0xe9   : > { %v2000_v19 = vrot.slane %v1904_v1, 2  ;;  %v7827_v21 = vmul.f32 %v7744_v53, %v971_v8  ;;  %v1865_v24 = vadd.f32 %v1755_v10, %v1619_v6  ;;  %v1866_v26 = vadd.f32 %v1757_v11, %v1620_v7  ;;  %v7082_v6 = vpop.f32.mrf.mxu0 }
  0xea   : > { %v7835_v28 = vmul.f32 %v7752_v60, %v971_v8  ;;  %v7838_v29 = vmul.f32 %v7773_v17, %v971_v8  ;;  %v2002_v30 = vrot.slane %v1905_v2, 2  ;;  %v1446_v31 = vsel %vm1436_vm4, %v1443_v62, %v1445_v13 }
  0xeb   : > { %v1551_v32 = vadd.f32 %v1444_v5, %v1304_v9  ;;  %v7842_v35 = vmul.f32 %v7799_v46, %v971_v8  ;;  %v1552_v36 = vadd.f32 %v1446_v31, %v1305_v4  ;;  %v7845_v37 = vmul.f32 %v7824_v20, %v971_v8 }
  0xec   : > { %v1660_v39 = vmul.f32 %v7773_v17, %v969_v22  ;;  %v7849_v40 = vmul.f32 %v7773_v17, %v970_v23  ;;  %v2001_v43 = vsel %vm1436_vm4, %v1999_v18, %v2000_v19  ;;  %v2003_v45 = vsel %vm1436_vm4, %v2000_v19, %v2002_v30 }
  0xed   : > { %v1203_v48 = vrot.slane %v7827_v21, 1  ;;  %v7855_v49 = vmul.f32 %v7832_v27, %v971_v8  ;;  %v2111_v51 = vadd.f32 %v2001_v43, %v1865_v24  ;;  %v2112_v54 = vadd.f32 %v2003_v45, %v1866_v26 }
  0xee   : > { %v1761_v56 = vrot.slane %v7838_v29, 1  ;;  %v1099_v58 = vmul.f32 %v7744_v53, %v969_v22  ;;  %v7862_v61 = vmul.f32 %v7744_v53, %v970_v23  ;;  %v1589_v62 = vmul.f32 %v7783_v25, %v969_v22 }
  0xef   : > { %v1758_v0 = vrot.slane %v1660_v39, 1  ;;  %v1759_v1 = vrot.slane %v7849_v40, 1  ;;  %v7866_v2 = vmax.f32 %v711_v14, 0.0  ;;  %v706_v3 = vadd.f32 %v7709_v34, %v705_v59  ;;  %v7888_v14 = vld [vmem:[%s12307_s4 + $0x6] ss:$0 sm:$0xff] }
  0xf0   : > { %v2318_v7 = vrot.slane %v7845_v37, 1  ;;  %v1621_v8 = vadd.f32 %v1589_v62, %v1551_v32  ;;  %v1906_v9 = vmul.f32 %v7799_v46, %v969_v22  ;;  %v7872_v10 = vmul.f32 %v7799_v46, %v970_v23  ;;  %v725_v32 = vpop.f32.mrf.mxu0 }
  0xf1   : > { %12450 = vst [vmem:[#allocation10_spill] sm:$0xff] %v7866_v2  ;;  %v7876_v13 = vmul.f32 %v7757_v63, %v969_v22  ;;  %v7879_v4 = vmul.f32 %v7757_v63, %v970_v23  ;;  %929 = vst.msk [vmem:[#allocation2 + $0x69] sm:$0xff] %vm508_vm1, %v7866_v2  ;;  %v7883_v59 = vmax.f32 %v706_v3, 0.0  ;;  %v1200_v5 = vrot.slane %v1099_v58, 1  ;;  %v7910_v3 = vld [vmem:[#allocation2 + $0x48] sm:$0xff] }
  0xf2   : > { %v7891_v18 = vmul.f32 %v7752_v60, %v969_v22  ;;  %v7894_v19 = vmul.f32 %v7752_v60, %v970_v23  ;;  %v1590_v24 = vmul.f32 %v7783_v25, %v970_v23  ;;  %v1201_v26 = vrot.slane %v7862_v61, 1 }
  0xf3   : > { %12451 = vst [vmem:[#allocation11_spill] sm:$0xff] %v7883_v59  ;;  %v1760_v29 = vsel %vm1189_vm3, %v1758_v0, %v1759_v1  ;;  %v2219_v30 = vmul.f32 %v7824_v20, %v969_v22  ;;  %v2220_v31 = vmul.f32 %v7824_v20, %v970_v23  ;;  %928 = vst.msk [vmem:[#allocation2 + $0x61] sm:$0xff] %vm508_vm1, %v7883_v59  ;;  %v2004_v40 = vrot.slane %v1906_v9, 2 }
  0xf4   : > { %v1622_v37 = vadd.f32 %v1590_v24, %v1552_v36  ;;  %v1867_v39 = vadd.f32 %v1760_v29, %v1621_v8  ;;  %v2005_v43 = vrot.slane %v7872_v10, 2  ;;  %v2149_v45 = vmul.f32 %v7888_v14, %v969_v22 }
  0xf5   : > { %v2150_v58 = vmul.f32 %v7888_v14, %v970_v23  ;;  %v2465_v61 = vmul.f32 %v7832_v27, %v969_v22  ;;  %v721_v62 = vadd.f32 %v7818_v16, %v7709_v34  ;;  %v2466_v0 = vmul.f32 %v7832_v27, %v970_v23 }
  0xf6   : > { %v716_v36 = vadd.f32 %v7709_v34, %v715_v42  ;;  %v731_v8 = vadd.f32 %v7082_v6, %v7709_v34  ;;  %v726_v9 = vadd.f32 %v7709_v34, %v725_v32  ;;  %v2181_v10 = vadd.f32 %v2149_v45, %v2111_v51 }
  0xf7   : > { %v2315_v24 = vrot.slane %v2219_v30, 1  ;;  %v2316_v29 = vrot.slane %v2220_v31, 1  ;;  %v7917_v55 = vmax.f32 %v721_v62, 0.0  ;;  %v2182_v22 = vadd.f32 %v2150_v58, %v2112_v54 }
  0xf8   : > { %v7919_v11 = vmax.f32 %v716_v36, 0.0  ;;  %v7921_v16 = vmax.f32 %v731_v8, 0.0  ;;  %v7923_v23 = vmax.f32 %v726_v9, 0.0  ;;  %v1762_v57 = vsel %vm1189_vm3, %v1759_v1, %v1761_v56 }
  0xf9   : > { %12452 = vst [vmem:[#allocation12_spill] sm:$0xff] %v7917_v55  ;;  %v2006_v42 = vsel %vm1436_vm4, %v2004_v40, %v2005_v43  ;;  %v2222_v6 = vmul.f32 %v7824_v20, %v7910_v3  ;;  %v2223_v51 = vmul.f32 %v7824_v20, %v7912_v33  ;;  %931 = vst.msk [vmem:[#allocation2 + $0x81] sm:$0xff] %vm508_vm1, %v7917_v55  ;;  %v1447_v30 = vrot.slane %v7891_v18, 2 }
  0xfa   : > { %12453 = vst [vmem:[#allocation13_spill] sm:$0xff] %v7919_v11  ;;  %12454 = vst [vmem:[#allocation14_spill] sm:$0xff] %v7921_v16  ;;  %v1202_v54 = vsel %vm1189_vm3, %v1200_v5, %v1201_v26  ;;  %v1868_v31 = vadd.f32 %v1762_v57, %v1622_v37  ;;  %v2113_v32 = vadd.f32 %v2006_v42, %v1867_v39  ;;  %v2561_v40 = vrot.slane %v2465_v61, 2  ;;  %v974_v5 = vld [vmem:[#allocation2 + $0x58] sm:$0x3] }
  0xfb   : > { %12455 = vst [vmem:[#allocation15_spill] sm:$0xff] %v7923_v23  ;;  %930 = vst.msk [vmem:[#allocation2 + $0x79] sm:$0xff] %vm508_vm1, %v7919_v11  ;;  %v2317_v56 = vsel %vm1189_vm3, %v2315_v24, %v2316_v29  ;;  %v2319_v1 = vsel %vm1189_vm3, %v2316_v29, %v2318_v7  ;;  %v2562_v45 = vrot.slane %v2466_v0, 2  ;;  %v1204_v57 = vsel %vm1189_vm3, %v1201_v26, %v1203_v48 }
  0xfc   : > { %933 = vst.msk [vmem:[#allocation2 + $0x99] sm:$0xff] %vm508_vm1, %v7921_v16  ;;  %932 = vst.msk [vmem:[#allocation2 + $0x91] sm:$0xff] %vm508_vm1, %v7923_v23  ;;  %v2427_v18 = vadd.f32 %v2317_v56, %v2181_v10  ;;  %v2428_v37 = vadd.f32 %v2319_v1, %v2182_v22  ;;  %v2151_v39 = vmul.f32 %v7888_v14, %v7910_v3  ;;  %v2320_v58 = vrot.slane %v2222_v6, 1 }
  0xfd   : > { %v2321_v62 = vrot.slane %v2223_v51, 1  ;;  %v2468_v36 = vmul.f32 %v7832_v27, %v7910_v3  ;;  %v2469_v7 = vmul.f32 %v7832_v27, %v7912_v33  ;;  %v1104_v61 = vmul.f32 %v7744_v53, %v974_v5 }
  0xfe   : > { %v7954_v0 = vmul.f32 %v7773_v17, %v974_v5  ;;  %v12456_v21 = vrot.slane %v7842_v35, 2  ;;  %v2183_v26 = vadd.f32 %v2151_v39, %v2113_v32  ;;  %v2563_v8 = vsel %vm1436_vm4, %v2561_v40, %v2562_v45 }
  0xff   : > { %v12457_v9 = vrot.slane %v7855_v49, 2  ;;  %v2224_v24 = vmul.f32 %v7824_v20, %v974_v5  ;;  %v2673_v22 = vadd.f32 %v2563_v8, %v2427_v18  ;;  %v1102_v6 = vmul.f32 %v7744_v53, %v7910_v3 }
 0x100   : > { %v2008_v48 = vsel %vm1436_vm4, %v2005_v43, %v12456_v21  ;;  %v1103_v35 = vmul.f32 %v7744_v53, %v7912_v33  ;;  %v7971_v43 = vld [vmem:[%s12308_s5] ss:$0 sm:$0xff]  ;;  %v2152_v49 = vmul.f32 %v7888_v14, %v7912_v33  ;;  %v2322_v51 = vsel %vm1189_vm3, %v2320_v58, %v2321_v62 }
 0x101   : > { %v2565_v10 = vsel %vm1436_vm4, %v2562_v45, %v12457_v9  ;;  %v2114_v29 = vadd.f32 %v2008_v48, %v1868_v31  ;;  %v2566_v32 = vrot.slane %v2468_v36, 2  ;;  %v2567_v31 = vrot.slane %v2469_v7, 2 }
 0x102   : > { %v2674_v42 = vadd.f32 %v2565_v10, %v2428_v37  ;;  %v1306_v56 = vadd.f32 %v1202_v54, %v7876_v13  ;;  %v1448_v1 = vrot.slane %v7894_v19, 2  ;;  %v2470_v40 = vmul.f32 %v7832_v27, %v974_v5 }
 0x103   : > { %v2429_v45 = vadd.f32 %v2322_v51, %v2183_v26  ;;  %v1307_v18 = vadd.f32 %v1204_v57, %v7879_v4  ;;  %v1208_v37 = vrot.slane %v1104_v61, 1  ;;  %v7981_v39 = vmul.f32 %v7752_v60, %v974_v5 }
 0x104   : > { %v2184_v21 = vadd.f32 %v2152_v49, %v2114_v29  ;;  %v7984_v48 = vadd.f32 %v7971_v43, %v2673_v22  ;;  %v1766_v58 = vrot.slane %v7954_v0, 1  ;;  %v7988_v36 = vmul.f32 %v7799_v46, %v974_v5 }
 0x105   : > { %v2323_v13 = vrot.slane %v2224_v24, 1  ;;  %v7991_v19 = vadd.f32 %v7971_v43, %v2674_v42  ;;  %v1205_v54 = vrot.slane %v1102_v6, 1  ;;  %v1206_v7 = vrot.slane %v1103_v35, 1 }
 0x106   : > { %12458 = vst [vmem:[#allocation16_spill] sm:$0xff] %v7984_v48  ;;  %v2568_v4 = vsel %vm1436_vm4, %v2566_v32, %v2567_v31  ;;  %v2569_v57 = vrot.slane %v2470_v40, 2  ;;  %v1029_v61 = vmul.f32 %v7757_v63, %v7910_v3  ;;  %v1349_v0 = vmul.f32 %v7752_v60, %v7910_v3 }
 0x107   : > { %12459 = vst [vmem:[#allocation17_spill] sm:$0xff] %v7991_v19  ;;  %v2324_v26 = vsel %vm1189_vm3, %v2321_v62, %v2323_v13  ;;  %v2675_v8 = vadd.f32 %v2568_v4, %v2429_v45  ;;  %v1350_v5 = vmul.f32 %v7752_v60, %v7912_v33  ;;  %v1449_v9 = vsel %vm1436_vm4, %v1447_v30, %v1448_v1 }
 0x108   : > { %v2430_v10 = vadd.f32 %v2324_v26, %v2184_v21  ;;  %v12460_v24 = vrot.slane %v7835_v28, 2  ;;  %v1663_v22 = vmul.f32 %v7773_v17, %v7910_v3  ;;  %v1664_v62 = vmul.f32 %v7773_v17, %v7912_v33 }
 0x109   : > { %v2784_v42 = vsel %vm508_vm1, %v7737_v52, 0.0  ;;  %v12323_v6 = vmax.f32 %v7984_v48, 0.0  ;;  %v12322_v35 = vmax.f32 %v7991_v19, 0.0  ;;  %v1207_v30 = vsel %vm1189_vm3, %v1205_v54, %v1206_v7  ;;  %v980_v19 = vld [vmem:[#allocation2 + $0x88] sm:$0x3] }
 0x10a   : > { %v1451_v29 = vsel %vm1436_vm4, %v1448_v1, %v12460_v24  ;;  %v1553_v49 = vadd.f32 %v1449_v9, %v1306_v56  ;;  %v1209_v28 = vsel %vm1189_vm3, %v1206_v7, %v1208_v37  ;;  %v2570_v32 = vsel %vm1436_vm4, %v2567_v31, %v2569_v57  ;;  %v983_v52 = vld [vmem:[#allocation2 + $0xa0] sm:$0x3] }
 0x10b   : > { %v1554_v51 = vadd.f32 %v1451_v29, %v1307_v18  ;;  %v8017_v1 = vadd.f32 %v7971_v43, %v2675_v8  ;;  %v1591_v40 = vmul.f32 %v7783_v25, %v7910_v3  ;;  %v1592_v45 = vmul.f32 %v7783_v25, %v7912_v33 }
 0x10c   : > { %v2676_v21 = vadd.f32 %v2570_v32, %v2430_v10  ;;  %v2785_v13 = vadd.f32 %v2784_v42, %v7815_v15  ;;  %v1763_v4 = vrot.slane %v1663_v22, 1  ;;  %v1764_v54 = vrot.slane %v1664_v62, 1 }
 0x10d   : > { %12461 = vst [vmem:[#allocation18_spill] sm:$0xff] %v8017_v1  ;;  %v1909_v56 = vmul.f32 %v7799_v46, %v7910_v3  ;;  %v1910_v31 = vmul.f32 %v7799_v46, %v7912_v33  ;;  %v1030_v18 = vmul.f32 %v7757_v63, %v7912_v33  ;;  %v1452_v37 = vrot.slane %v1349_v0, 2 }
 0x10e   : > { %v1453_v7 = vrot.slane %v1350_v5, 2  ;;  %v1623_v57 = vadd.f32 %v1591_v40, %v1553_v49  ;;  %v2847_v26 = vsel %vm508_vm1, %v12323_v6, 0.0  ;;  %v2848_v15 = vsel %vm508_vm1, %v12322_v35, 0.0 }
 0x10f   : > { %v1624_v8 = vadd.f32 %v1592_v45, %v1554_v51  ;;  %v12321_v3 = vmax.f32 %v8017_v1, 0.0  ;;  %v1308_v9 = vadd.f32 %v1207_v30, %v1029_v61  ;;  %v1309_v10 = vadd.f32 %v1209_v28, %v1030_v18  ;;  %v977_v30 = vld [vmem:[#allocation2 + $0x70] sm:$0x3] }
 0x110   : > { %v8038_v24 = vadd.f32 %v7971_v43, %v2676_v21  ;;  %v2787_v33 = vadd.f32 %v7813_v12, %v2785_v13  ;;  %v1765_v0 = vsel %vm1189_vm3, %v1763_v4, %v1764_v54  ;;  %v2009_v5 = vrot.slane %v1909_v56, 2  ;;  %v7085_v13 = vpop.f32.mrf.mxu0 }
 0x111   : > { %v2010_v29 = vrot.slane %v1910_v31, 2  ;;  %v2788_v22 = vsel %vm508_vm1, %v7883_v59, 0.0  ;;  %v1455_v62 = vrot.slane %v7981_v39, 2  ;;  %v2012_v42 = vrot.slane %v7988_v36, 2  ;;  %v8054_v39 = vld [vmem:[#allocation2 + $0x60] sm:$0xff]  ;;  %v8056_v36 = vld [vmem:[#allocation2 + $0x68] sm:$0xff] }
 0x112   : > { %12462 = vst [vmem:[#allocation19_spill] sm:$0xff] %v8038_v24  ;;  %v1767_v49 = vsel %vm1189_vm3, %v1764_v54, %v1766_v58  ;;  %v1869_v61 = vadd.f32 %v1765_v0, %v1623_v57  ;;  %v2849_v28 = vadd.f32 %v2848_v15, %v2847_v26  ;;  %v2850_v12 = vsel %vm508_vm1, %v12321_v3, 0.0 }
 0x113   : > { %v1870_v51 = vadd.f32 %v1767_v49, %v1624_v8  ;;  %v1454_v32 = vsel %vm1436_vm4, %v1452_v37, %v1453_v7  ;;  %v12320_v40 = vmax.f32 %v8038_v24, 0.0  ;;  %v2790_v45 = vsel %vm508_vm1, %v7866_v2, 0.0 }
 0x114   : > { %v1456_v58 = vsel %vm1436_vm4, %v1453_v7, %v1455_v62  ;;  %v2789_v21 = vadd.f32 %v2788_v22, %v2787_v33  ;;  %v1107_v4 = vmul.f32 %v7744_v53, %v977_v30  ;;  %v1555_v54 = vadd.f32 %v1454_v32, %v1308_v9 }
 0x115   : > { %v1556_v56 = vadd.f32 %v1456_v58, %v1309_v10  ;;  %v2011_v31 = vsel %vm1436_vm4, %v2009_v5, %v2010_v29  ;;  %v2851_v18 = vadd.f32 %v2850_v12, %v2849_v28  ;;  %v8062_v37 = vmul.f32 %v7752_v60, %v977_v30 }
 0x116   : > { %v2013_v57 = vsel %vm1436_vm4, %v2010_v29, %v2012_v42  ;;  %v2115_v26 = vadd.f32 %v2011_v31, %v1869_v61  ;;  %v1105_v15 = vmul.f32 %v7744_v53, %v8054_v39  ;;  %v1106_v7 = vmul.f32 %v7744_v53, %v8056_v36 }
 0x117   : > { %v2116_v8 = vadd.f32 %v2013_v57, %v1870_v51  ;;  %v8070_v33 = vadd.f32 %v7085_v13, %v7709_v34  ;;  %v2852_v9 = vsel %vm508_vm1, %v12320_v40, 0.0  ;;  %v2225_v10 = vmul.f32 %v7824_v20, %v8054_v39 }
 0x118   : > { %v2226_v0 = vmul.f32 %v7824_v20, %v8056_v36  ;;  %v8079_v5 = vadd.f32 %v2790_v45, %v2789_v21  ;;  %v1213_v29 = vrot.slane %v1107_v4, 1  ;;  %v1668_v22 = vmul.f32 %v7773_v17, %v977_v30 }
 0x119   : > { %v8083_v62 = vmul.f32 %v7799_v46, %v977_v30  ;;  %v2227_v42 = vmul.f32 %v7824_v20, %v977_v30  ;;  %v8086_v49 = vadd.f32 %v2852_v9, %v2851_v18  ;;  %v2473_v28 = vmul.f32 %v7832_v27, %v977_v30 }
 0x11a   : > { %v1031_v51 = vmul.f32 %v7757_v63, %v8054_v39  ;;  %v1210_v12 = vrot.slane %v1105_v15, 1  ;;  %v1211_v32 = vrot.slane %v1106_v7, 1  ;;  %v2153_v45 = vmul.f32 %v7888_v14, %v8054_v39 }
 0x11b   : > { %v2154_v58 = vmul.f32 %v7888_v14, %v8056_v36  ;;  %v2325_v21 = vrot.slane %v2225_v10, 1  ;;  %v2326_v13 = vrot.slane %v2226_v0, 1  ;;  %v2471_v4 = vmul.f32 %v7832_v27, %v8054_v39 }
 0x11c   : > { %v2472_v31 = vmul.f32 %v7832_v27, %v8056_v36  ;;  %v1771_v30 = vrot.slane %v1668_v22, 1  ;;  %v2185_v57 = vadd.f32 %v2153_v45, %v2115_v26  ;;  %v2328_v7 = vrot.slane %v2227_v42, 1 }
 0x11d   : > { %v2186_v15 = vadd.f32 %v2154_v58, %v2116_v8  ;;  %v8103_v9 = vmul.f32 %v7752_v60, %v8054_v39  ;;  %v1666_v10 = vmul.f32 %v7773_v17, %v8054_v39  ;;  %v1667_v0 = vmul.f32 %v7773_v17, %v8056_v36 }
 0x11e   : > { %v2574_v40 = vrot.slane %v2473_v28, 2  ;;  %v1212_v3 = vsel %vm1189_vm3, %v1210_v12, %v1211_v32  ;;  %v8112_v22 = vmul.f32 %v7752_v60, %v8056_v36  ;;  %v1593_v26 = vmul.f32 %v7783_v25, %v8054_v39 }
 0x11f   : > { %v2327_v8 = vsel %vm1189_vm3, %v2325_v21, %v2326_v13  ;;  %v2329_v42 = vsel %vm1189_vm3, %v2326_v13, %v2328_v7  ;;  %v2571_v45 = vrot.slane %v2471_v4, 2  ;;  %v2572_v58 = vrot.slane %v2472_v31, 2  ;;  %v8125_v7 = vld [vmem:[#allocation2 + $0x78] sm:$0xff] }
 0x120   : > { %v1214_v35 = vsel %vm1189_vm3, %v1211_v32, %v1213_v29  ;;  %v1594_v28 = vmul.f32 %v7783_v25, %v8056_v36  ;;  %v2431_v6 = vadd.f32 %v2327_v8, %v2185_v57  ;;  %v2432_v12 = vadd.f32 %v2329_v42, %v2186_v15  ;;  %v8127_v29 = vld [vmem:[#allocation2 + $0x80] sm:$0xff] }
 0x121   : > { %v1032_v18 = vmul.f32 %v7757_v63, %v8056_v36  ;;  %v1457_v61 = vrot.slane %v8103_v9, 2  ;;  %v1768_v24 = vrot.slane %v1666_v10, 1  ;;  %v1769_v1 = vrot.slane %v1667_v0, 1 }
 0x122   : > { %v1310_v21 = vadd.f32 %v1212_v3, %v1031_v51  ;;  %v1458_v13 = vrot.slane %v8112_v22, 2  ;;  %v1625_v4 = vadd.f32 %v1593_v26, %v1555_v54  ;;  %v1626_v31 = vadd.f32 %v1594_v28, %v1556_v56  ;;  %v735_v26 = vpop.f32.mrf.mxu0 }
 0x123   : > { %v1311_v32 = vadd.f32 %v1214_v35, %v1032_v18  ;;  %v1912_v57 = vmul.f32 %v7799_v46, %v8054_v39  ;;  %v2573_v15 = vsel %vm1436_vm4, %v2571_v45, %v2572_v58  ;;  %v2575_v9 = vsel %vm1436_vm4, %v2572_v58, %v2574_v40 }
 0x124   : > { %v1913_v10 = vmul.f32 %v7799_v46, %v8056_v36  ;;  %v2677_v3 = vadd.f32 %v2573_v15, %v2431_v6  ;;  %v2678_v51 = vadd.f32 %v2575_v9, %v2432_v12  ;;  %v1110_v54 = vmul.f32 %v7744_v53, %v980_v19 }
 0x125   : > { %v1770_v56 = vsel %vm1189_vm3, %v1768_v24, %v1769_v1  ;;  %v1772_v0 = vsel %vm1189_vm3, %v1769_v1, %v1771_v30  ;;  %v1108_v35 = vmul.f32 %v7744_v53, %v8125_v7  ;;  %v1109_v39 = vmul.f32 %v7744_v53, %v8127_v29 }
 0x126   : > { %v1871_v18 = vadd.f32 %v1770_v56, %v1625_v4  ;;  %v8143_v40 = vmul.f32 %v7752_v60, %v980_v19  ;;  %v8146_v36 = vmul.f32 %v7773_v17, %v980_v19  ;;  %v8149_v6 = vmul.f32 %v7799_v46, %v980_v19  ;;  %v7088_v56 = vpop.f32.mrf.mxu0 }
 0x127   : > { %v1872_v22 = vadd.f32 %v1772_v0, %v1626_v31  ;;  %v2014_v24 = vrot.slane %v1912_v57, 2  ;;  %v8152_v1 = vmul.f32 %v7824_v20, %v980_v19  ;;  %v8155_v30 = vmul.f32 %v7832_v27, %v980_v19 }
 0x128   : > { %v2015_v8 = vrot.slane %v1913_v10, 2  ;;  %v8158_v42 = vadd.f32 %v7971_v43, %v2677_v3  ;;  %v8161_v45 = vadd.f32 %v7971_v43, %v2678_v51  ;;  %v1218_v58 = vrot.slane %v1110_v54, 1 }
 0x129   : > { %v1215_v28 = vrot.slane %v1108_v35, 1  ;;  %v1216_v12 = vrot.slane %v1109_v39, 1  ;;  %v8165_v4 = vmul.f32 %v7752_v60, %v8125_v7  ;;  %v8169_v31 = vmul.f32 %v7752_v60, %v8127_v29 }
 0x12a   : > { %12463 = vst [vmem:[#allocation20_spill] sm:$0xff] %v8158_v42  ;;  %12464 = vst [vmem:[#allocation21_spill] sm:$0xff] %v8161_v45  ;;  %v8176_v9 = vsel %vm508_vm1, %v7917_v55, 0.0  ;;  %v2333_v10 = vrot.slane %v8152_v1, 1  ;;  %v1033_v51 = vmul.f32 %v7757_v63, %v8125_v7  ;;  %v1034_v54 = vmul.f32 %v7757_v63, %v8127_v29 }
 0x12b   : > { %v1459_v39 = vsel %vm1436_vm4, %v1457_v61, %v1458_v13  ;;  %v12465_v19 = vrot.slane %v8062_v37, 2  ;;  %v1217_v1 = vsel %vm1189_vm3, %v1215_v28, %v1216_v12  ;;  %v1219_v55 = vsel %vm1189_vm3, %v1216_v12, %v1218_v58 }
 0x12c   : > { %v1557_v48 = vadd.f32 %v1459_v39, %v1310_v21  ;;  %v1595_v0 = vmul.f32 %v7783_v25, %v8125_v7  ;;  %v2016_v35 = vsel %vm1436_vm4, %v2014_v24, %v2015_v8  ;;  %v2228_v37 = vmul.f32 %v7824_v20, %v8125_v7  ;;  %v745_v21 = vpop.f32.mrf.mxu0 }
 0x12d   : > { %v1461_v15 = vsel %vm1436_vm4, %v1458_v13, %v12465_v19  ;;  %v2229_v61 = vmul.f32 %v7824_v20, %v8127_v29  ;;  %v8202_v13 = vmax.f32 %v8070_v33, 0.0  ;;  %v736_v28 = vadd.f32 %v7709_v34, %v735_v26 }
 0x12e   : > { %v1558_v2 = vadd.f32 %v1461_v15, %v1311_v32  ;;  %v12467_v58 = vmax.f32 %v8158_v42, 0.0  ;;  %v12468_v12 = vmax.f32 %v8161_v45, 0.0  ;;  %v12469_v19 = vrot.slane %v8083_v62, 2 }
 0x12f   : > { %12466 = vst [vmem:[#allocation22_spill] sm:$0xff] %v8202_v13  ;;  %v2117_v39 = vadd.f32 %v2016_v35, %v1871_v18  ;;  %v8214_v3 = vadd.f32 %v1217_v1, %v1033_v51  ;;  %v1596_v33 = vmul.f32 %v7783_v25, %v8127_v29  ;;  %v1669_v26 = vmul.f32 %v7773_v17, %v8125_v7 }
 0x130   : > { %v2854_v32 = vsel %vm508_vm1, %v12467_v58, 0.0  ;;  %v2856_v24 = vsel %vm508_vm1, %v12468_v12, 0.0  ;;  %v2018_v15 = vsel %vm1436_vm4, %v2015_v8, %v12469_v19  ;;  %935 = vst.msk [vmem:[#allocation2 + $0xb1] sm:$0xff] %vm508_vm1, %v8202_v13  ;;  %v1670_v58 = vmul.f32 %v7773_v17, %v8127_v29  ;;  %v7091_v12 = vpop.f32.mrf.mxu0 }
 0x131   : > { %v2118_v57 = vadd.f32 %v2018_v15, %v1872_v22  ;;  %v2155_v62 = vmul.f32 %v7888_v14, %v8125_v7  ;;  %v2156_v18 = vmul.f32 %v7888_v14, %v8127_v29  ;;  %v8228_v8 = vmax.f32 %v736_v28, 0.0 }
 0x132   : > { %v2330_v51 = vrot.slane %v2228_v37, 1  ;;  %v2331_v35 = vrot.slane %v2229_v61, 1  ;;  %v2474_v1 = vmul.f32 %v7832_v27, %v8125_v7  ;;  %v2475_v22 = vmul.f32 %v7832_v27, %v8127_v29 }
 0x133   : > { %12470 = vst [vmem:[#allocation23_spill] sm:$0xff] %v8228_v8  ;;  %v2855_v19 = vadd.f32 %v2854_v32, %v8086_v49  ;;  %v1627_v15 = vadd.f32 %v1595_v0, %v1557_v48  ;;  %v1915_v45 = vmul.f32 %v7799_v46, %v8125_v7  ;;  %v2187_v42 = vadd.f32 %v2155_v62, %v2117_v39 }
 0x134   : > { %934 = vst.msk [vmem:[#allocation2 + $0xa9] sm:$0xff] %vm508_vm1, %v8228_v8  ;;  %v1628_v28 = vadd.f32 %v1596_v33, %v1558_v2  ;;  %v1773_v37 = vrot.slane %v1669_v26, 1  ;;  %v1916_v61 = vmul.f32 %v7799_v46, %v8127_v29  ;;  %v2188_v59 = vadd.f32 %v2156_v18, %v2118_v57 }
 0x135   : > { %v1774_v50 = vrot.slane %v1670_v58, 1  ;;  %v751_v44 = vadd.f32 %v7088_v56, %v7709_v34  ;;  %v746_v49 = vadd.f32 %v7709_v34, %v745_v21  ;;  %v761_v48 = vadd.f32 %v7091_v12, %v7709_v34  ;;  %v982_v12 = vld [vmem:[#allocation2 + $0x98] sm:$0xff] }
 0x136   : > { %v2332_v7 = vsel %vm1189_vm3, %v2330_v51, %v2331_v35  ;;  %v2334_v0 = vsel %vm1189_vm3, %v2331_v35, %v2333_v10  ;;  %v2576_v32 = vrot.slane %v2474_v1, 2  ;;  %v2577_v39 = vrot.slane %v2475_v22, 2  ;;  %v981_v22 = vld [vmem:[#allocation2 + $0x90] sm:$0xff] }
 0x137   : > { %v2433_v2 = vadd.f32 %v2332_v7, %v2187_v42  ;;  %v8246_v33 = vmax.f32 %v751_v44, 0.0  ;;  %v8248_v26 = vmax.f32 %v746_v49, 0.0  ;;  %v8250_v29 = vmax.f32 %v761_v48, 0.0 }
 0x138   : > { %v8252_v57 = vadd.f32 %v1219_v55, %v1034_v54  ;;  %v2434_v56 = vadd.f32 %v2334_v0, %v2188_v59  ;;  %v8255_v21 = vmul.f32 %v7744_v53, %v983_v52  ;;  %v8258_v34 = vmul.f32 %v7752_v60, %v983_v52 }
 0x139   : > { %12471 = vst [vmem:[#allocation24_spill] sm:$0xff] %v8246_v33  ;;  %12472 = vst [vmem:[#allocation25_spill] sm:$0xff] %v8248_v26  ;;  %v8260_v58 = vadd.f32 %v2856_v24, %v2855_v19  ;;  %v2019_v10 = vrot.slane %v1915_v45, 2  ;;  %v2792_v44 = vsel %vm508_vm1, %v7919_v11, 0.0  ;;  %v8265_v42 = vmul.f32 %v7773_v17, %v983_v52 }
 0x13a   : > { %12473 = vst [vmem:[#allocation26_spill] sm:$0xff] %v8250_v29  ;;  %937 = vst.msk [vmem:[#allocation2 + $0xc9] sm:$0xff] %vm508_vm1, %v8246_v33  ;;  %v1775_v55 = vsel %vm1189_vm3, %v1773_v37, %v1774_v50  ;;  %v12474_v59 = vrot.slane %v8146_v36, 1  ;;  %v2020_v54 = vrot.slane %v1916_v61, 2  ;;  %v2578_v24 = vsel %vm1436_vm4, %v2576_v32, %v2577_v39 }
 0x13b   : > { %936 = vst.msk [vmem:[#allocation2 + $0xc1] sm:$0xff] %vm508_vm1, %v8248_v26  ;;  %939 = vst.msk [vmem:[#allocation2 + $0xe1] sm:$0xff] %vm508_vm1, %v8250_v29  ;;  %v1873_v62 = vadd.f32 %v1775_v55, %v1627_v15  ;;  %v12475_v51 = vrot.slane %v8155_v30, 2  ;;  %v2679_v1 = vadd.f32 %v2578_v24, %v2433_v2  ;;  %v2793_v49 = vadd.f32 %v2792_v44, %v8079_v5 }
 0x13c   : > { %v1777_v45 = vsel %vm1189_vm3, %v1774_v50, %v12474_v59  ;;  %v1223_v37 = vrot.slane %v8255_v21, 1  ;;  %v8286_v61 = vmul.f32 %v7799_v46, %v983_v52  ;;  %v2233_v15 = vmul.f32 %v7824_v20, %v983_v52 }
 0x13d   : > { %v1874_v18 = vadd.f32 %v1777_v45, %v1628_v28  ;;  %v2580_v35 = vsel %vm1436_vm4, %v2577_v39, %v12475_v51  ;;  %v8290_v30 = vmul.f32 %v7832_v27, %v983_v52  ;;  %v8294_v28 = vsel %vm508_vm1, %v7921_v16, 0.0 }
 0x13e   : > { %v2680_v19 = vadd.f32 %v2580_v35, %v2434_v56  ;;  %v2021_v5 = vsel %vm1436_vm4, %v2019_v10, %v2020_v54  ;;  %v2231_v48 = vmul.f32 %v7824_v20, %v981_v22  ;;  %v2232_v7 = vmul.f32 %v7824_v20, %v982_v12 }
 0x13f   : > { %v8300_v0 = vadd.f32 %v7971_v43, %v2679_v1  ;;  %v1035_v32 = vmul.f32 %v7757_v63, %v981_v22  ;;  %v1036_v39 = vmul.f32 %v7757_v63, %v982_v12  ;;  %v2119_v2 = vadd.f32 %v2021_v5, %v1873_v62 }
 0x140   : > { %v8305_v52 = vadd.f32 %v7971_v43, %v2680_v19  ;;  %v1111_v56 = vmul.f32 %v7744_v53, %v981_v22  ;;  %v1112_v21 = vmul.f32 %v7744_v53, %v982_v12  ;;  %v12478_v10 = vrot.slane %v8149_v6, 2 }
 0x141   : > { %12476 = vst [vmem:[#allocation27_spill] sm:$0xff] %v8300_v0  ;;  %v2338_v55 = vrot.slane %v2233_v15, 1  ;;  %v2584_v59 = vrot.slane %v8290_v30, 2  ;;  %v2157_v24 = vmul.f32 %v7888_v14, %v981_v22  ;;  %v2335_v51 = vrot.slane %v2231_v48, 1 }
 0x142   : > { %12477 = vst [vmem:[#allocation28_spill] sm:$0xff] %v8305_v52  ;;  %v2023_v44 = vsel %vm1436_vm4, %v2020_v54, %v12478_v10  ;;  %v2336_v63 = vrot.slane %v2232_v7, 1  ;;  %v2477_v62 = vmul.f32 %v7832_v27, %v981_v22  ;;  %v2478_v35 = vmul.f32 %v7832_v27, %v982_v12 }
 0x143   : > { %v2120_v45 = vadd.f32 %v2023_v44, %v1874_v18  ;;  %v1358_v1 = vmul.f32 %v7752_v60, %v981_v22  ;;  %v1359_v53 = vmul.f32 %v7752_v60, %v982_v12  ;;  %v2158_v6 = vmul.f32 %v7888_v14, %v982_v12 }
 0x144   : > { %v2189_v19 = vadd.f32 %v2157_v24, %v2119_v2  ;;  %v12337_v54 = vmax.f32 %v8300_v0, 0.0  ;;  %v1220_v15 = vrot.slane %v1111_v56, 1  ;;  %v1221_v30 = vrot.slane %v1112_v21, 1 }
 0x145   : > { %v12479_v18 = vrot.slane %v8169_v31, 2  ;;  %v12480_v5 = vrot.slane %v8165_v4, 2  ;;  %v12481_v7 = vrot.slane %v8143_v40, 2  ;;  %v1672_v60 = vmul.f32 %v7773_v17, %v981_v22 }
 0x146   : > { %v1673_v2 = vmul.f32 %v7773_v17, %v982_v12  ;;  %v2190_v24 = vadd.f32 %v2158_v6, %v2120_v45  ;;  %v2337_v56 = vsel %vm1189_vm3, %v2335_v51, %v2336_v63  ;;  %v2581_v21 = vrot.slane %v2477_v62, 2 }
 0x147   : > { %v1464_v48 = vsel %vm1436_vm4, %v12480_v5, %v12479_v18  ;;  %v12482_v10 = vmov %v12479_v18  ;;  %v2582_v36 = vrot.slane %v2478_v35, 2  ;;  %v2795_v50 = vadd.f32 %v8176_v9, %v2793_v49 }
 0x148   : > { %v1466_v44 = vsel %vm1436_vm4, %v12482_v10, %v12481_v7  ;;  %v1559_v4 = vadd.f32 %v1464_v48, %v8214_v3  ;;  %v2435_v40 = vadd.f32 %v2337_v56, %v2189_v19  ;;  %v2796_v31 = vsel %vm508_vm1, %v7923_v23, 0.0  ;;  %v7097_v48 = vpop.f32.mrf.mxu1 }
 0x149   : > { %v1560_v18 = vadd.f32 %v1466_v44, %v8252_v57  ;;  %v1222_v5 = vsel %vm1189_vm3, %v1220_v15, %v1221_v30  ;;  %v1224_v7 = vsel %vm1189_vm3, %v1221_v30, %v1223_v37  ;;  %v1597_v17 = vmul.f32 %v7783_v25, %v981_v22 }
 0x14a   : > { %v2339_v45 = vsel %vm1189_vm3, %v2336_v63, %v2338_v55  ;;  %v1598_v51 = vmul.f32 %v7783_v25, %v982_v12  ;;  %v1918_v9 = vmul.f32 %v7799_v46, %v981_v22  ;;  %v1919_v3 = vmul.f32 %v7799_v46, %v982_v12 }
 0x14b   : > { %v2436_v49 = vadd.f32 %v2339_v45, %v2190_v24  ;;  %v1778_v57 = vrot.slane %v1672_v60, 1  ;;  %v1779_v62 = vrot.slane %v1673_v2, 1  ;;  %v2583_v35 = vsel %vm1436_vm4, %v2581_v21, %v2582_v36 }
 0x14c   : > { %v2797_v6 = vadd.f32 %v2796_v31, %v2795_v50  ;;  %v12336_v19 = vmax.f32 %v8305_v52, 0.0  ;;  %v1629_v15 = vadd.f32 %v1597_v17, %v1559_v4  ;;  %v1630_v37 = vadd.f32 %v1598_v51, %v1560_v18 }
 0x14d   : > { %v2681_v30 = vadd.f32 %v2583_v35, %v2435_v40  ;;  %v2858_v25 = vsel %vm508_vm1, %v12337_v54, 0.0  ;;  %v1467_v55 = vrot.slane %v1358_v1, 2  ;;  %v1468_v22 = vrot.slane %v1359_v53, 2  ;;  %v986_v53 = vld [vmem:[#allocation2 + $0xb8] sm:$0x3] }
 0x14e   : > { %v2585_v12 = vsel %vm1436_vm4, %v2582_v36, %v2584_v59  ;;  %v1314_v63 = vadd.f32 %v1222_v5, %v1035_v32  ;;  %v1315_v10 = vadd.f32 %v1224_v7, %v1036_v39  ;;  %v2024_v44 = vrot.slane %v1918_v9, 2  ;;  %v8361_v32 = vpop.f32.mrf.mxu1  ;;  %v8384_v9 = vld [vmem:[#allocation2 + $0xa8] sm:$0xff] }
 0x14f   : > { %v2682_v60 = vadd.f32 %v2585_v12, %v2436_v49  ;;  %v1780_v50 = vsel %vm1189_vm3, %v1778_v57, %v1779_v62  ;;  %v12483_v2 = vrot.slane %v8265_v42, 1  ;;  %v2025_v56 = vrot.slane %v1919_v3, 2  ;;  %v8386_v3 = vld [vmem:[#allocation2 + $0xb0] sm:$0xff] }
 0x150   : > { %v2799_v21 = vadd.f32 %v8294_v28, %v2797_v6  ;;  %v1875_v4 = vadd.f32 %v1780_v50, %v1629_v15  ;;  %v8357_v1 = vadd.f32 %v7971_v43, %v2681_v30  ;;  %v2800_v36 = vsel %vm508_vm1, %v8228_v8, 0.0  ;;  %v8392_v35 = vpop.f32.mrf.mxu1  ;;  %v8397_v6 = vld [vmem:[%s12307_s4 + $0x1] ss:$0 sm:$0xff] }
 0x151   : > { %v1782_v24 = vsel %vm1189_vm3, %v1779_v62, %v12483_v2  ;;  %v8364_v39 = vadd.f32 %v2858_v25, %v8260_v58  ;;  %v8369_v42 = vsel %vm508_vm1, %v12336_v19, 0.0  ;;  %v2027_v28 = vrot.slane %v8286_v61, 2  ;;  %v8411_v25 = vld [vmem:[%s12307_s4 + $0x4] ss:$0 sm:$0xff] }
 0x152   : > { %v1876_v18 = vadd.f32 %v1782_v24, %v1630_v37  ;;  %12484 = vst [vmem:[#allocation29_spill] sm:$0xff] %v8357_v1  ;;  %12486 = vst [vmem:[#allocation31_spill] sm:$0xff] %v8369_v42  ;;  %v8373_v59 = vadd.f32 %v7971_v43, %v2682_v60  ;;  %v2802_v40 = vsel %vm508_vm1, %v8202_v13, 0.0  ;;  %v1469_v31 = vsel %vm1436_vm4, %v1467_v55, %v1468_v22  ;;  %v8403_v37 = vld [vmem:[%s12307_s4 + $0x2] ss:$0 sm:$0xff] }
 0x153   : > { %12485 = vst [vmem:[#allocation30_spill] sm:$0xff] %v8364_v39  ;;  %v12488_v5 = vrot.slane %v8258_v34, 2  ;;  %v1561_v7 = vadd.f32 %v1469_v31, %v1314_v63  ;;  %v2026_v17 = vsel %vm1436_vm4, %v2024_v44, %v2025_v56  ;;  %v2028_v45 = vsel %vm1436_vm4, %v2025_v56, %v2027_v28  ;;  %v755_v34 = vpop.f32.mrf.mxu0  ;;  %v8429_v44 = vld [vmem:[%s12306_s3] ss:$0 sm:$0xff] }
 0x154   : > { %12487 = vst [vmem:[#allocation32_spill] sm:$0xff] %v8373_v59  ;;  %v2801_v51 = vadd.f32 %v2800_v36, %v2799_v21  ;;  %v8388_v57 = vadd.f32 %v2026_v17, %v1875_v4  ;;  %v8390_v62 = vadd.f32 %v2028_v45, %v1876_v18  ;;  %v1116_v15 = vmul.f32 %v8397_v6, %v986_v53  ;;  %v785_v21 = vpop.f32.mrf.mxu1  ;;  %v8463_v31 = vld [vmem:[%s12307_s4] ss:$0 sm:$0xff]  ;;  %v8491_v18 = vld [vmem:[%s12307_s4 + $0x7] ss:$0 sm:$0xff] }
 0x155   : > { %v1471_v58 = vsel %vm1436_vm4, %v1468_v22, %v12488_v5  ;;  %v8406_v30 = vmul.f32 %v8403_v37, %v986_v53  ;;  %v8414_v55 = vmul.f32 %v8411_v25, %v986_v53  ;;  %v8417_v22 = vmul.f32 %v7799_v46, %v986_v53  ;;  %v7094_v19 = vpop.f32.mrf.mxu0 }
 0x156   : > { %v1562_v49 = vadd.f32 %v1471_v58, %v1315_v10  ;;  %v8421_v63 = vmul.f32 %v7824_v20, %v986_v53  ;;  %v8424_v10 = vmul.f32 %v7832_v27, %v986_v53  ;;  %v781_v60 = vadd.f32 %v8429_v44, %v7097_v48  ;;  %v7103_v61 = vpop.f32.mrf.mxu1 }
 0x157   : > { %v1114_v50 = vmul.f32 %v8397_v6, %v8384_v9  ;;  %v1115_v46 = vmul.f32 %v8397_v6, %v8386_v3  ;;  %v8436_v2 = vadd.f32 %v2802_v40, %v2801_v51  ;;  %v756_v20 = vadd.f32 %v8429_v44, %v755_v34  ;;  %v8474_v51 = vld [vmem:[%s12307_s4 + $0x3] ss:$0 sm:$0xff] }
 0x158   : > { %v8441_v27 = vmul.f32 %v8403_v37, %v8384_v9  ;;  %v8445_v24 = vmul.f32 %v8403_v37, %v8386_v3  ;;  %v8449_v48 = vsel %vm508_vm1, %v8246_v33, 0.0  ;;  %v8453_v56 = vsel %vm508_vm1, %v8248_v26, 0.0 }
 0x159   : > { %v1228_v4 = vrot.slane %v1116_v15, 1  ;;  %v1037_v5 = vmul.f32 %v8463_v31, %v8384_v9  ;;  %v8469_v58 = vmul.f32 %v8411_v25, %v8384_v9  ;;  %v1225_v17 = vrot.slane %v1114_v50, 1 }
 0x15a   : > { %v1226_v45 = vrot.slane %v1115_v46, 1  ;;  %v1599_v34 = vmul.f32 %v8474_v51, %v8384_v9  ;;  %v8480_v15 = vmul.f32 %v8411_v25, %v8386_v3  ;;  %v1038_v54 = vmul.f32 %v8463_v31, %v8386_v3 }
 0x15b   : > { %v1600_v46 = vmul.f32 %v8474_v51, %v8386_v3  ;;  %v2234_v40 = vmul.f32 %v8491_v18, %v8384_v9  ;;  %v8495_v53 = vmax.f32 %v781_v60, 0.0  ;;  %v8497_v36 = vmax.f32 %v756_v20, 0.0  ;;  %v8510_v60 = vld [vmem:[%s12307_s4 + $0x5] ss:$0 sm:$0xff]  ;;  %v765_v20 = vpop.f32.mrf.mxu0 }
 0x15c   : > { %v1631_v28 = vadd.f32 %v1599_v34, %v1561_v7  ;;  %v1783_v50 = vrot.slane %v8469_v58, 1  ;;  %v2159_v52 = vmul.f32 %v7888_v14, %v8384_v9  ;;  %v2235_v7 = vmul.f32 %v8491_v18, %v8386_v3 }
 0x15d   : > { %12489 = vst [vmem:[#allocation33_spill] sm:$0xff] %v8495_v53  ;;  %12490 = vst [vmem:[#allocation34_spill] sm:$0xff] %v8497_v36  ;;  %v1632_v12 = vadd.f32 %v1600_v46, %v1562_v49  ;;  %v1227_v34 = vsel %vm1189_vm3, %v1225_v17, %v1226_v45  ;;  %v1229_v0 = vsel %vm1189_vm3, %v1226_v45, %v1228_v4  ;;  %v1784_v33 = vrot.slane %v8480_v15, 1  ;;  %v8526_v17 = vld [vmem:[%s12307_s4 + $0x8] ss:$0 sm:$0xff]  ;;  %v795_v46 = vpop.f32.mrf.mxu1 }
 0x15e   : > { %v8514_v49 = vmul.f32 %v8510_v60, %v8384_v9  ;;  %943 = vst.msk [vmem:[#allocation2 + $0x111] sm:$0xff] %vm508_vm1, %v8495_v53  ;;  %938 = vst.msk [vmem:[#allocation2 + $0xd9] sm:$0xff] %vm508_vm1, %v8497_v36  ;;  %v2160_v4 = vmul.f32 %v7888_v14, %v8386_v3  ;;  %v2191_v58 = vadd.f32 %v2159_v52, %v8388_v57  ;;  %v2340_v26 = vrot.slane %v2234_v40, 1 }
 0x15f   : > { %v2480_v45 = vmul.f32 %v8526_v17, %v8384_v9  ;;  %v2481_v15 = vmul.f32 %v8526_v17, %v8386_v3  ;;  %v776_v13 = vadd.f32 %v8429_v44, %v8361_v32  ;;  %v771_v14 = vadd.f32 %v8429_v44, %v7094_v19 }
 0x160   : > { %v791_v52 = vadd.f32 %v8429_v44, %v8392_v35  ;;  %v2341_v57 = vrot.slane %v2235_v7, 1  ;;  %v766_v8 = vadd.f32 %v8429_v44, %v765_v20  ;;  %v786_v16 = vadd.f32 %v8429_v44, %v785_v21  ;;  %v989_v35 = vld [vmem:[#allocation2 + $0xd0] sm:$0x3] }
 0x161   : > { %v801_v9 = vadd.f32 %v8429_v44, %v7103_v61  ;;  %v8540_v23 = vmax.f32 %v776_v13, 0.0  ;;  %v8542_v11 = vmax.f32 %v771_v14, 0.0  ;;  %v796_v32 = vadd.f32 %v8429_v44, %v795_v46 }
 0x162   : > { %v8544_v40 = vmax.f32 %v791_v52, 0.0  ;;  %v8549_v19 = vmul.f32 %v8510_v60, %v8386_v3  ;;  %v8551_v7 = vmax.f32 %v766_v8, 0.0  ;;  %v8553_v20 = vmax.f32 %v786_v16, 0.0 }
 0x163   : > { %12491 = vst [vmem:[#allocation35_spill] sm:$0xff] %v8540_v23  ;;  %12492 = vst [vmem:[#allocation36_spill] sm:$0xff] %v8542_v11  ;;  %v8555_v21 = vmax.f32 %v801_v9, 0.0  ;;  %v2192_v13 = vadd.f32 %v2160_v4, %v8390_v62  ;;  %v2586_v61 = vrot.slane %v2480_v45, 2  ;;  %v2587_v14 = vrot.slane %v2481_v15, 2 }
 0x164   : > { %12493 = vst [vmem:[#allocation37_spill] sm:$0xff] %v8544_v40  ;;  %12494 = vst [vmem:[#allocation38_spill] sm:$0xff] %v8551_v7  ;;  %v8564_v3 = vmax.f32 %v796_v32, 0.0  ;;  %v1316_v8 = vadd.f32 %v1227_v34, %v1037_v5  ;;  %v1317_v16 = vadd.f32 %v1229_v0, %v1038_v54  ;;  %v1785_v46 = vsel %vm1189_vm3, %v1783_v50, %v1784_v33  ;;  %v988_v5 = vld [vmem:[#allocation2 + $0xc8] sm:$0xff] }
 0x165   : > { %12495 = vst [vmem:[#allocation39_spill] sm:$0xff] %v8553_v20  ;;  %12496 = vst [vmem:[#allocation40_spill] sm:$0xff] %v8555_v21  ;;  %v2342_v52 = vsel %vm1189_vm3, %v2340_v26, %v2341_v57  ;;  %v12498_v62 = vrot.slane %v8414_v55, 1  ;;  %v1119_v0 = vmul.f32 %v8397_v6, %v989_v35  ;;  %v8579_v54 = vmul.f32 %v8403_v37, %v989_v35  ;;  %v987_v26 = vld [vmem:[#allocation2 + $0xc0] sm:$0xff] }
 0x166   : > { %942 = vst.msk [vmem:[#allocation2 + $0x109] sm:$0xff] %vm508_vm1, %v8540_v23  ;;  %941 = vst.msk [vmem:[#allocation2 + $0xf9] sm:$0xff] %vm508_vm1, %v8542_v11  ;;  %v2437_v45 = vadd.f32 %v2342_v52, %v2191_v58  ;;  %v1877_v50 = vadd.f32 %v1785_v46, %v1631_v28  ;;  %v12499_v15 = vrot.slane %v8421_v63, 1  ;;  %v8587_v55 = vmul.f32 %v8411_v25, %v989_v35 }
 0x167   : > { %945 = vst.msk [vmem:[#allocation2 + $0x129] sm:$0xff] %vm508_vm1, %v8544_v40  ;;  %12497 = vst [vmem:[#allocation41_spill] sm:$0xff] %v8564_v3  ;;  %v1787_v4 = vsel %vm1189_vm3, %v1784_v33, %v12498_v62  ;;  %v2029_v33 = vrot.slane %v8514_v49, 2  ;;  %v2588_v32 = vsel %vm1436_vm4, %v2586_v61, %v2587_v14  ;;  %v8592_v52 = vmul.f32 %v8510_v60, %v989_v35 }
 0x168   : > { %940 = vst.msk [vmem:[#allocation2 + $0xf1] sm:$0xff] %vm508_vm1, %v8551_v7  ;;  %944 = vst.msk [vmem:[#allocation2 + $0x121] sm:$0xff] %vm508_vm1, %v8553_v20  ;;  %v1878_v34 = vadd.f32 %v1787_v4, %v1632_v12  ;;  %v2344_v9 = vsel %vm1189_vm3, %v2341_v57, %v12499_v15  ;;  %v8595_v62 = vmul.f32 %v8491_v18, %v989_v35  ;;  %v2030_v57 = vrot.slane %v8549_v19, 2 }
 0x169   : > { %947 = vst.msk [vmem:[#allocation2 + $0x141] sm:$0xff] %vm508_vm1, %v8555_v21  ;;  %946 = vst.msk [vmem:[#allocation2 + $0x139] sm:$0xff] %vm508_vm1, %v8564_v3  ;;  %v2438_v58 = vadd.f32 %v2344_v9, %v2192_v13  ;;  %v8598_v12 = vmul.f32 %v8526_v17, %v989_v35  ;;  %v1117_v63 = vmul.f32 %v8397_v6, %v987_v26  ;;  %v1233_v49 = vrot.slane %v1119_v0, 1 }
 0x16a   : > { %v1118_v28 = vmul.f32 %v8397_v6, %v988_v5  ;;  %v2683_v46 = vadd.f32 %v2588_v32, %v2437_v45  ;;  %v12500_v61 = vrot.slane %v8424_v10, 2  ;;  %v1791_v15 = vrot.slane %v8587_v55, 1 }
 0x16b   : > { %v8609_v9 = vmul.f32 %v8403_v37, %v987_v26  ;;  %v8612_v35 = vmul.f32 %v8403_v37, %v988_v5  ;;  %v1039_v45 = vmul.f32 %v8463_v31, %v987_v26  ;;  %v1040_v0 = vmul.f32 %v8463_v31, %v988_v5 }
 0x16c   : > { %v2590_v4 = vsel %vm1436_vm4, %v2587_v14, %v12500_v61  ;;  %v2348_v10 = vrot.slane %v8595_v62, 1  ;;  %v1230_v32 = vrot.slane %v1117_v63, 1  ;;  %v1231_v55 = vrot.slane %v1118_v28, 1 }
 0x16d   : > { %v8614_v47 = vadd.f32 %v2590_v4, %v2438_v58  ;;  %v8622_v61 = vadd.f32 %v7971_v43, %v2683_v46  ;;  %v12503_v13 = vrot.slane %v8445_v24, 2  ;;  %v12504_v58 = vrot.slane %v8441_v27, 2 }
 0x16e   : > { %v12505_v19 = vrot.slane %v8406_v30, 2  ;;  %v1678_v62 = vmul.f32 %v8411_v25, %v987_v26  ;;  %v1679_v46 = vmul.f32 %v8411_v25, %v988_v5  ;;  %v2031_v27 = vsel %vm1436_vm4, %v2029_v33, %v2030_v57 }
 0x16f   : > { %12501 = vst [vmem:[#allocation42_spill] sm:$0xff] %v8614_v47  ;;  %12502 = vst [vmem:[#allocation43_spill] sm:$0xff] %v8622_v61  ;;  %v1474_v4 = vsel %vm1436_vm4, %v12504_v58, %v12503_v13  ;;  %v12506_v38 = vmov %v12503_v13  ;;  %v2237_v13 = vmul.f32 %v8491_v18, %v987_v26  ;;  %v2238_v30 = vmul.f32 %v8491_v18, %v988_v5 }
 0x170   : > { %v1476_v41 = vsel %vm1436_vm4, %v12506_v38, %v12505_v19  ;;  %v1563_v43 = vadd.f32 %v1474_v4, %v1316_v8  ;;  %v1232_v24 = vsel %vm1189_vm3, %v1230_v32, %v1231_v55  ;;  %v1234_v38 = vsel %vm1189_vm3, %v1231_v55, %v1233_v49  ;;  %v8653_v49 = vld [vmem:[%s12307_s4 + $0x6] ss:$0 sm:$0xff] }
 0x171   : > { %v1564_v14 = vadd.f32 %v1476_v41, %v1317_v16  ;;  %v1601_v19 = vmul.f32 %v8474_v51, %v987_v26  ;;  %v2123_v58 = vadd.f32 %v2031_v27, %v1877_v50  ;;  %v1602_v63 = vmul.f32 %v8474_v51, %v988_v5 }
 0x172   : > { %v1788_v28 = vrot.slane %v1678_v62, 1  ;;  %v1924_v8 = vmul.f32 %v8510_v60, %v987_v26  ;;  %v12507_v41 = vrot.slane %v8417_v22, 2  ;;  %v1789_v33 = vrot.slane %v1679_v46, 1  ;;  %v992_v22 = vld [vmem:[#allocation2 + $0xe8] sm:$0x3] }
 0x173   : > { %v1925_v4 = vmul.f32 %v8510_v60, %v988_v5  ;;  %v2161_v50 = vmul.f32 %v8653_v49, %v987_v26  ;;  %v2345_v32 = vrot.slane %v2237_v13, 1  ;;  %v2346_v55 = vrot.slane %v2238_v30, 1 }
 0x174   : > { %v2033_v16 = vsel %vm1436_vm4, %v2030_v57, %v12507_v41  ;;  %v2483_v62 = vmul.f32 %v8526_v17, %v987_v26  ;;  %v2484_v27 = vmul.f32 %v8526_v17, %v988_v5  ;;  %v1318_v1 = vadd.f32 %v1232_v24, %v1039_v45 }
 0x175   : > { %v2124_v59 = vadd.f32 %v2033_v16, %v1878_v34  ;;  %v2162_v57 = vmul.f32 %v8653_v49, %v988_v5  ;;  %v2193_v46 = vadd.f32 %v2161_v50, %v2123_v58  ;;  %v2805_v34 = vadd.f32 %v8453_v56, %v8436_v2  ;;  %v7106_v50 = vpop.f32.mrf.mxu1 }
 0x176   : > { %v1319_v41 = vadd.f32 %v1234_v38, %v1040_v0  ;;  %v1633_v16 = vadd.f32 %v1601_v19, %v1563_v43  ;;  %v1634_v42 = vadd.f32 %v1602_v63, %v1564_v14  ;;  %v2034_v39 = vrot.slane %v1924_v8, 2 }
 0x177   : > { %v1790_v61 = vsel %vm1189_vm3, %v1788_v28, %v1789_v33  ;;  %v2035_v13 = vrot.slane %v1925_v4, 2  ;;  %v2194_v30 = vadd.f32 %v2162_v57, %v2124_v59  ;;  %v8663_v26 = vmul.f32 %v8397_v6, %v992_v22 }
 0x178   : > { %v2347_v47 = vsel %vm1189_vm3, %v2345_v32, %v2346_v55  ;;  %v2591_v45 = vrot.slane %v2483_v62, 2  ;;  %v2592_v24 = vrot.slane %v2484_v27, 2  ;;  %v8667_v5 = vmul.f32 %v8403_v37, %v992_v22 }
 0x179   : > { %v2439_v58 = vadd.f32 %v2347_v47, %v2193_v46  ;;  %v8670_v2 = vmul.f32 %v8411_v25, %v992_v22  ;;  %v8673_v56 = vmul.f32 %v8510_v60, %v992_v22  ;;  %v2807_v0 = vadd.f32 %v8449_v48, %v2805_v34  ;;  %v8713_v34 = vld [vmem:[#allocation2 + $0xd8] sm:$0xff] }
 0x17a   : > { %v1792_v59 = vsel %vm1189_vm3, %v1789_v33, %v1791_v15  ;;  %v8678_v14 = vmul.f32 %v8491_v18, %v992_v22  ;;  %v8681_v63 = vmul.f32 %v8526_v17, %v992_v22  ;;  %v2808_v28 = vsel %vm508_vm1, %v8497_v36, 0.0 }
 0x17b   : > { %12508 = vst [vmem:[#allocation44_spill] sm:$0xff] %v8673_v56  ;;  %v1879_v47 = vadd.f32 %v1790_v61, %v1633_v16  ;;  %v1880_v43 = vadd.f32 %v1792_v59, %v1634_v42  ;;  %v2349_v38 = vsel %vm1189_vm3, %v2346_v55, %v2348_v10  ;;  %v2593_v48 = vsel %vm1436_vm4, %v2591_v45, %v2592_v24  ;;  %v8715_v16 = vld [vmem:[#allocation2 + $0xe0] sm:$0xff] }
 0x17c   : > { %12509 = vst [vmem:[#allocation45_spill] sm:$0xff] %v8678_v14  ;;  %12510 = vst [vmem:[#allocation46_spill] sm:$0xff] %v8681_v63  ;;  %v8687_v8 = vadd.f32 %v2349_v38, %v2194_v30  ;;  %v12512_v15 = vrot.slane %v8598_v12, 2  ;;  %v8696_v32 = vadd.f32 %v2593_v48, %v2439_v58  ;;  %v2809_v61 = vadd.f32 %v2808_v28, %v2807_v0 }
 0x17d   : > { %v2810_v12 = vsel %vm508_vm1, %v8250_v29, 0.0  ;;  %v12515_v27 = vrot.slane %v8612_v35, 2  ;;  %v12516_v22 = vrot.slane %v8609_v9, 2  ;;  %v8711_v46 = vsel %vm508_vm1, %v8495_v53, 0.0 }
 0x17e   : > { %12511 = vst [vmem:[#allocation47_spill] sm:$0xff] %v8687_v8  ;;  %v8693_v33 = vsel %vm1436_vm4, %v2592_v24, %v12512_v15  ;;  %12514 = vst [vmem:[#allocation49_spill] sm:$0xff] %v8696_v32  ;;  %v12517_v30 = vrot.slane %v8579_v54, 2  ;;  %v2036_v58 = vsel %vm1436_vm4, %v2034_v39, %v2035_v13  ;;  %v12519_v9 = vrot.slane %v8592_v52, 2  ;;  %v805_v15 = vpop.f32.mrf.mxu1  ;;  %v8838_v32 = vld [vmem:[#allocation2 + $0x110] sm:$0xff] }
 0x17f   : > { %12513 = vst [vmem:[#allocation48_spill] sm:$0xff] %v8693_v33  ;;  %v1479_v57 = vsel %vm1436_vm4, %v12516_v22, %v12515_v27  ;;  %v12518_v45 = vmov %v12515_v27  ;;  %v2125_v38 = vadd.f32 %v2036_v58, %v1879_v47  ;;  %v998_v27 = vld [vmem:[#allocation2 + $0x118] sm:$0x3]  ;;  %v8728_v22 = vsel %vm508_vm1, %v8540_v23, 0.0  ;;  %12530 = vst [vmem:[#allocation58_spill] sm:$0xff] %v8838_v32 }
 0x180   : > { %v1481_v24 = vsel %vm1436_vm4, %v12518_v45, %v12517_v30  ;;  %v2038_v0 = vsel %vm1436_vm4, %v2035_v13, %v12519_v9  ;;  %v1565_v59 = vadd.f32 %v1479_v57, %v1318_v1  ;;  %v8732_v54 = vsel %vm508_vm1, %v8542_v11, 0.0 }
 0x181   : > { %v1566_v28 = vadd.f32 %v1481_v24, %v1319_v41  ;;  %v2126_v48 = vadd.f32 %v2038_v0, %v1880_v43  ;;  %v8736_v39 = vsel %vm508_vm1, %v8544_v40, 0.0  ;;  %v8738_v52 = vadd.f32 %v2810_v12, %v2809_v61 }
 0x182   : > { %v1120_v1 = vmul.f32 %v8397_v6, %v8713_v34  ;;  %v1121_v35 = vmul.f32 %v8397_v6, %v8715_v16  ;;  %v8746_v41 = vsel %vm508_vm1, %v8551_v7, 0.0  ;;  %v8750_v13 = vsel %vm508_vm1, %v8553_v20, 0.0 }
 0x183   : > { %v1681_v47 = vmul.f32 %v8411_v25, %v8713_v34  ;;  %v1682_v43 = vmul.f32 %v8411_v25, %v8715_v16  ;;  %v811_v61 = vadd.f32 %v8429_v44, %v7106_v50  ;;  %v806_v12 = vadd.f32 %v8429_v44, %v805_v15  ;;  %v7109_v15 = vpop.f32.mrf.mxu1 }
 0x184   : > { %v8759_v57 = vmul.f32 %v8397_v6, %v998_v27  ;;  %v8762_v30 = vmul.f32 %v8403_v37, %v998_v27  ;;  %v8765_v45 = vmul.f32 %v8411_v25, %v998_v27  ;;  %v8768_v24 = vmul.f32 %v8510_v60, %v998_v27 }
 0x185   : > { %v8771_v58 = vmul.f32 %v8491_v18, %v998_v27  ;;  %v8774_v9 = vmul.f32 %v8526_v17, %v998_v27  ;;  %v1041_v50 = vmul.f32 %v8463_v31, %v8713_v34  ;;  %v1042_v0 = vmul.f32 %v8463_v31, %v8715_v16  ;;  %v815_v36 = vpop.f32.mrf.mxu1 }
 0x186   : > { %12520 = vst [vmem:[#allocation50_spill] sm:$0xff] %v8765_v45  ;;  %12521 = vst [vmem:[#allocation51_spill] sm:$0xff] %v8768_v24  ;;  %v1235_v62 = vrot.slane %v1120_v1, 1  ;;  %v1236_v55 = vrot.slane %v1121_v35, 1  ;;  %v8782_v10 = vmul.f32 %v8403_v37, %v8713_v34  ;;  %v8786_v4 = vmul.f32 %v8403_v37, %v8715_v16 }
 0x187   : > { %12522 = vst [vmem:[#allocation52_spill] sm:$0xff] %v8771_v58  ;;  %12523 = vst [vmem:[#allocation53_spill] sm:$0xff] %v8774_v9  ;;  %v1603_v27 = vmul.f32 %v8474_v51, %v8713_v34  ;;  %v1604_v42 = vmul.f32 %v8474_v51, %v8715_v16  ;;  %v1793_v19 = vrot.slane %v1681_v47, 1  ;;  %v1794_v40 = vrot.slane %v1682_v43, 1 }
 0x188   : > { %v1237_v63 = vsel %vm1189_vm3, %v1235_v62, %v1236_v55  ;;  %v12524_v47 = vrot.slane %v8663_v26, 1  ;;  %v8804_v1 = vmul.f32 %v8510_v60, %v8713_v34  ;;  %v8808_v53 = vmul.f32 %v8510_v60, %v8715_v16  ;;  %v7112_v26 = vpop.f32.mrf.mxu1 }
 0x189   : > { %v1635_v7 = vadd.f32 %v1603_v27, %v1565_v59  ;;  %v1636_v29 = vadd.f32 %v1604_v42, %v1566_v28  ;;  %v1795_v42 = vsel %vm1189_vm3, %v1793_v19, %v1794_v40  ;;  %v2240_v62 = vmul.f32 %v8491_v18, %v8713_v34 }
 0x18a   : > { %v1239_v43 = vsel %vm1189_vm3, %v1236_v55, %v12524_v47  ;;  %12525 = vst [vmem:[#allocation54_spill] sm:$0xff] %v8808_v53  ;;  %v12526_v55 = vrot.slane %v8670_v2, 1  ;;  %v2163_v27 = vmul.f32 %v8653_v49, %v8713_v34  ;;  %v2164_v47 = vmul.f32 %v8653_v49, %v8715_v16  ;;  %v996_v2 = vld [vmem:[#allocation2 + $0x108] sm:$0xff] }
 0x18b   : > { %v8824_v11 = vmul.f32 %v8491_v18, %v8715_v16  ;;  %v8826_v35 = vadd.f32 %v1237_v63, %v1041_v50  ;;  %v8828_v19 = vadd.f32 %v1239_v43, %v1042_v0  ;;  %v8830_v20 = vadd.f32 %v1795_v42, %v1635_v7  ;;  %v825_v50 = vpop.f32.mrf.mxu1 }
 0x18c   : > { %v1797_v28 = vsel %vm1189_vm3, %v1794_v40, %v12526_v55  ;;  %v2195_v59 = vadd.f32 %v2163_v27, %v2125_v38  ;;  %v8836_v9 = vadd.f32 %v2164_v47, %v2126_v48  ;;  %v2350_v33 = vrot.slane %v2240_v62, 1  ;;  %v2776_v38 = vld [vmem:[%s12309_s6] sm:$0xff] }
 0x18d   : > { %12527 = vst [vmem:[#allocation55_spill] sm:$0xff] %v8824_v11  ;;  %v8832_v23 = vadd.f32 %v1797_v28, %v1636_v29  ;;  %v8842_v63 = vmul.f32 %v8526_v17, %v8713_v34  ;;  %v8846_v7 = vmul.f32 %v8526_v17, %v8715_v16  ;;  %v8849_v29 = vmul.f32 %v8463_v31, %v996_v2 }
 0x18e   : > { %12529 = vst [vmem:[#allocation57_spill] sm:$0xff] %v8836_v9  ;;  %v8856_v0 = vmul.f32 %v8397_v6, %v996_v2  ;;  %v8858_v43 = vmax.f32 %v811_v61, 0.0  ;;  %v8860_v34 = vmax.f32 %v806_v12, 0.0  ;;  %v8864_v16 = vmul.f32 %v8397_v6, %v8838_v32 }
 0x18f   : > { %12528 = vst [vmem:[#allocation56_spill] sm:$0xff] %v8832_v23  ;;  %12531 = vst [vmem:[#allocation59_spill] sm:$0xff] %v8842_v63  ;;  %v821_v42 = vadd.f32 %v8429_v44, %v7109_v15  ;;  %v816_v62 = vadd.f32 %v8429_v44, %v815_v36  ;;  %v831_v28 = vadd.f32 %v8429_v44, %v7112_v26  ;;  %v2918_v12 = vrot.slane %v2776_v38, 4  ;;  %v1001_v38 = vld [vmem:[#allocation2 + $0x130] sm:$0x3]  ;;  %v8959_v63 = vld [vmem:[#allocation2 + $0xf8] sm:$0xff] }
 0x190   : > { %12532 = vst [vmem:[#allocation60_spill] sm:$0xff] %v8846_v7  ;;  %12533 = vst [vmem:[#allocation61_spill] sm:$0xff] %v8858_v43  ;;  %v8870_v27 = vmul.f32 %v8403_v37, %v996_v2  ;;  %v8874_v47 = vmul.f32 %v8403_v37, %v8838_v32  ;;  %v826_v61 = vadd.f32 %v8429_v44, %v825_v50  ;;  %v12539_v44 = vrot.slane %v8824_v11, 1 }
 0x191   : > { %12534 = vst [vmem:[#allocation62_spill] sm:$0xff] %v8860_v34  ;;  %949 = vst.msk [vmem:[#allocation2 + $0x159] sm:$0xff] %vm508_vm1, %v8858_v43  ;;  %v2813_v36 = vadd.f32 %v8746_v41, %v8738_v52  ;;  %v8883_v15 = vmax.f32 %v821_v42, 0.0  ;;  %v8885_v26 = vmax.f32 %v816_v62, 0.0  ;;  %v8887_v40 = vmax.f32 %v831_v28, 0.0  ;;  %7114 = vmatpush3.msk.msra.mxu1 %vm605_vm0, %v2918_v12 }
 0x192   : > { %948 = vst.msk [vmem:[#allocation2 + $0x151] sm:$0xff] %vm508_vm1, %v8860_v34  ;;  %v8892_v48 = vmul.f32 %v8463_v31, %v8838_v32  ;;  %v8894_v8 = vmax.f32 %v826_v61, 0.0  ;;  %v2352_v52 = vsel %vm1189_vm3, %v2350_v33, %v12539_v44  ;;  %v12540_v42 = vmov 0.0   ;;  %v995_v12 = vld [vmem:[#allocation2 + $0x100] sm:$0x3] }
 0x193   : > { %12535 = vst [vmem:[#allocation63_spill] sm:$0xff] %v8883_v15  ;;  %12536 = vst [vmem:[#allocation64_spill] sm:$0xff] %v8885_v26  ;;  %7115 = vmatprep.mubr.msk.f32.mxu1 %vm7430_vm5, %v12540_v42  ;;  %7118 = vmatprep.subr.mxu1 %v12540_v42  ;;  %v8912_v33 = vadd.f32 %v2352_v52, %v2195_v59  ;;  %v8916_v28 = vmul.f32 %v8474_v51, %v996_v2  ;;  %v12560_v45 = vrot.slane %v8786_v4, 2 }
 0x194   : > { %12537 = vst [vmem:[#allocation65_spill] sm:$0xff] %v8887_v40  ;;  %12538 = vst [vmem:[#allocation66_spill] sm:$0xff] %v8894_v8  ;;  %v8919_v61 = vmul.f32 %v8411_v25, %v996_v2  ;;  %v8926_v55 = vmul.f32 %v8474_v51, %v8838_v32  ;;  %v8930_v59 = vmul.f32 %v8411_v25, %v8838_v32 }
 0x195   : > { %951 = vst.msk [vmem:[#allocation2 + $0x171] sm:$0xff] %vm508_vm1, %v8883_v15  ;;  %950 = vst.msk [vmem:[#allocation2 + $0x169] sm:$0xff] %vm508_vm1, %v8885_v26  ;;  %v2815_v52 = vadd.f32 %v8732_v54, %v2813_v36  ;;  %v8934_v41 = vmul.f32 %v8510_v60, %v996_v2  ;;  %v8938_v62 = vmul.f32 %v8510_v60, %v8838_v32 }
 0x196   : > { %953 = vst.msk [vmem:[#allocation2 + $0x189] sm:$0xff] %vm508_vm1, %v8887_v40  ;;  %12541 = vst [vmem:[#allocation67_spill] sm:$0xff] %v8912_v33  ;;  %v8941_v50 = vmul.f32 %v8653_v49, %v996_v2  ;;  %v8944_v44 = vmul.f32 %v8491_v18, %v996_v2  ;;  %v8948_v42 = vmul.f32 %v8491_v18, %v8838_v32  ;;  %v8957_v33 = vld [vmem:[#allocation2 + $0xf0] sm:$0xff] }
 0x197   : > { %12542 = vst [vmem:[#allocation68_spill] sm:$0xff] %v8916_v28  ;;  %12543 = vst [vmem:[#allocation69_spill] sm:$0xff] %v8919_v61  ;;  %v8951_v54 = vmul.f32 %v8526_v17, %v996_v2  ;;  %v1125_v36 = vmul.f32 %v8397_v6, %v995_v12  ;;  %v8955_v40 = vmul.f32 %v8403_v37, %v995_v12 }
 0x198   : > { %952 = vst.msk [vmem:[#allocation2 + $0x181] sm:$0xff] %vm508_vm1, %v8894_v8  ;;  %12544 = vst [vmem:[#allocation70_spill] sm:$0xff] %v8926_v55  ;;  %v8963_v9 = vmul.f32 %v8411_v25, %v995_v12  ;;  %v8966_v58 = vmul.f32 %v8510_v60, %v995_v12  ;;  %v8969_v2 = vmul.f32 %v8491_v18, %v995_v12 }
 0x199   : > { %12545 = vst [vmem:[#allocation71_spill] sm:$0xff] %v8930_v59  ;;  %12546 = vst [vmem:[#allocation72_spill] sm:$0xff] %v8934_v41  ;;  %v8976_v11 = vmul.f32 %v8397_v6, %v1001_v38  ;;  %v2817_v14 = vadd.f32 %v8728_v22, %v2815_v52  ;;  %v1123_v32 = vmul.f32 %v8397_v6, %v8957_v33 }
 0x19a   : > { %12547 = vst [vmem:[#allocation73_spill] sm:$0xff] %v8938_v62  ;;  %12548 = vst [vmem:[#allocation74_spill] sm:$0xff] %v8941_v50  ;;  %v8981_v50 = vmul.f32 %v8403_v37, %v1001_v38  ;;  %v1124_v23 = vmul.f32 %v8397_v6, %v8959_v63  ;;  %v8990_v62 = vmul.f32 %v8411_v25, %v1001_v38 }
 0x19b   : > { %12549 = vst [vmem:[#allocation75_spill] sm:$0xff] %v8944_v44  ;;  %12550 = vst [vmem:[#allocation76_spill] sm:$0xff] %v8948_v42  ;;  %v8973_v42 = vmul.f32 %v8526_v17, %v995_v12  ;;  %v1243_v12 = vrot.slane %v1125_v36, 1  ;;  %v8996_v41 = vmul.f32 %v8510_v60, %v1001_v38  ;;  %v9001_v36 = vmul.f32 %v8491_v18, %v1001_v38 }
 0x19c   : > { %12551 = vst [vmem:[#allocation77_spill] sm:$0xff] %v8951_v54  ;;  %12552 = vst [vmem:[#allocation78_spill] sm:$0xff] %v8963_v9  ;;  %v2819_v54 = vadd.f32 %v8711_v46, %v2817_v14  ;;  %v9006_v22 = vmul.f32 %v8526_v17, %v1001_v38  ;;  %v1240_v52 = vrot.slane %v1123_v32, 1  ;;  %v1241_v44 = vrot.slane %v1124_v23, 1 }
 0x19d   : > { %12553 = vst [vmem:[#allocation79_spill] sm:$0xff] %v8966_v58  ;;  %12554 = vst [vmem:[#allocation80_spill] sm:$0xff] %v8969_v2  ;;  %v9011_v2 = vmul.f32 %v8403_v37, %v8957_v33  ;;  %v9015_v56 = vmul.f32 %v8403_v37, %v8959_v63  ;;  %v12561_v14 = vrot.slane %v8782_v10, 2  ;;  %v1043_v23 = vmul.f32 %v8463_v31, %v8957_v33 }
 0x19e   : > { %12555 = vst [vmem:[#allocation81_spill] sm:$0xff] %v8973_v42  ;;  %12556 = vst [vmem:[#allocation82_spill] sm:$0xff] %v8990_v62  ;;  %v1044_v32 = vmul.f32 %v8463_v31, %v8959_v63  ;;  %v12562_v42 = vrot.slane %v8667_v5, 2  ;;  %v12563_v58 = vmov %v12560_v45  ;;  %v1242_v38 = vsel %vm1189_vm3, %v1240_v52, %v1241_v44 }
 0x19f   : > { %12557 = vst [vmem:[#allocation83_spill] sm:$0xff] %v8996_v41  ;;  %12558 = vst [vmem:[#allocation84_spill] sm:$0xff] %v9001_v36  ;;  %v1484_v46 = vsel %vm1436_vm4, %v12561_v14, %v12560_v45  ;;  %v1605_v45 = vmul.f32 %v8474_v51, %v8957_v33  ;;  %v2821_v14 = vadd.f32 %v8750_v13, %v2819_v54  ;;  %v9159_v36 = vld [vmem:[#allocation2 + $0x140] sm:$0xff] }
 0x1a0   : > { %12559 = vst [vmem:[#allocation85_spill] sm:$0xff] %v9006_v22  ;;  %v1567_v7 = vadd.f32 %v1484_v46, %v8826_v35  ;;  %v1486_v10 = vsel %vm1436_vm4, %v12563_v58, %v12562_v42  ;;  %v9041_v35 = vmul.f32 %v8411_v25, %v8957_v33  ;;  %v9045_v5 = vmul.f32 %v8411_v25, %v8959_v63  ;;  %v9078_v22 = vld [vmem:[#allocation2 + $0x120] sm:$0xff] }
 0x1a1   : > { %v1568_v41 = vadd.f32 %v1486_v10, %v8828_v19  ;;  %v1244_v58 = vsel %vm1189_vm3, %v1241_v44, %v1243_v12  ;;  %v1606_v54 = vmul.f32 %v8474_v51, %v8959_v63  ;;  %v9057_v52 = vmul.f32 %v8510_v60, %v8957_v33 }
 0x1a2   : > { %12564 = vst [vmem:[#allocation86_spill] sm:$0xff] %v9041_v35  ;;  %12565 = vst [vmem:[#allocation87_spill] sm:$0xff] %v9045_v5  ;;  %v9053_v19 = vadd.f32 %v1605_v45, %v1567_v7  ;;  %v12568_v46 = vrot.slane %v8808_v53, 2  ;;  %v12569_v10 = vrot.slane %v8804_v1, 2  ;;  %v9064_v44 = vadd.f32 %v1242_v38, %v1043_v23 }
 0x1a3   : > { %12567 = vst [vmem:[#allocation89_spill] sm:$0xff] %v9057_v52  ;;  %v9068_v12 = vmul.f32 %v8510_v60, %v8959_v63  ;;  %v2823_v7 = vadd.f32 %v8736_v39, %v2821_v14  ;;  %v9072_v45 = vadd.f32 %v1244_v58, %v1044_v32  ;;  %v9074_v42 = vadd.f32 %v1606_v54, %v1568_v41  ;;  %v1004_v41 = vld [vmem:[#allocation2 + $0x148] sm:$0x3] }
 0x1a4   : > { %12566 = vst [vmem:[#allocation88_spill] sm:$0xff] %v9053_v19  ;;  %v2041_v4 = vsel %vm1436_vm4, %v12569_v10, %v12568_v46  ;;  %v2165_v38 = vmul.f32 %v8653_v49, %v8957_v33  ;;  %v9084_v23 = vmul.f32 %v8653_v49, %v8959_v63  ;;  %v9092_v39 = vmul.f32 %v8491_v18, %v8959_v63  ;;  %v9108_v46 = vld [vmem:[#allocation2 + $0x128] sm:$0xff] }
 0x1a5   : > { %12570 = vst [vmem:[#allocation90_spill] sm:$0xff] %v9068_v12  ;;  %v2127_v24 = vadd.f32 %v2041_v4, %v8830_v20  ;;  %12571 = vst [vmem:[#allocation91_spill] sm:$0xff] %v9074_v42  ;;  %v9088_v20 = vmul.f32 %v8491_v18, %v8957_v33  ;;  %v9097_v14 = vmul.f32 %v8526_v17, %v8957_v33  ;;  %v2824_v49 = vsel %vm508_vm1, %v8564_v3, 0.0  ;;  %v9179_v3 = vld [vmem:[#allocation2 + $0x160] sm:$0x3] }
 0x1a6   : > { %12572 = vst [vmem:[#allocation92_spill] sm:$0xff] %v9084_v23  ;;  %12574 = vst [vmem:[#allocation94_spill] sm:$0xff] %v9092_v39  ;;  %v9101_v4 = vmul.f32 %v8526_v17, %v8959_v63  ;;  %v9112_v10 = vmul.f32 %v8397_v6, %v9078_v22  ;;  %v2825_v32 = vadd.f32 %v2824_v49, %v2823_v7  ;;  %v9192_v39 = vld [vmem:[#allocation2 + $0x178] sm:$0x3]  ;;  %v9194_v23 = vld [vmem:[#allocation2 + $0x168] sm:$0xff] }
 0x1a7   : > { %12573 = vst [vmem:[#allocation93_spill] sm:$0xff] %v9088_v20  ;;  %12575 = vst [vmem:[#allocation95_spill] sm:$0xff] %v9097_v14  ;;  %v9106_v54 = vadd.f32 %v2165_v38, %v2127_v24  ;;  %v9115_v33 = vmul.f32 %v8397_v6, %v1004_v41  ;;  %v9118_v63 = vmul.f32 %v8403_v37, %v1004_v41  ;;  %v9142_v24 = vld [vmem:[#allocation2 + $0x138] sm:$0xff]  ;;  %v2830_v20 = vsel %vm508_vm1, %v8858_v43, 0.0 }
 0x1a8   : > { %12576 = vst [vmem:[#allocation96_spill] sm:$0xff] %v9101_v4  ;;  %v9121_v13 = vmul.f32 %v8411_v25, %v1004_v41  ;;  %v9124_v58 = vmul.f32 %v8510_v60, %v1004_v41  ;;  %v9129_v1 = vmul.f32 %v8491_v18, %v1004_v41  ;;  %v9132_v7 = vmul.f32 %v8526_v17, %v1004_v41 }
 0x1a9   : > { %12577 = vst [vmem:[#allocation97_spill] sm:$0xff] %v9106_v54  ;;  %v9138_v54 = vmul.f32 %v8397_v6, %v9108_v46  ;;  %v2826_v60 = vsel %vm508_vm1, %v8555_v21, 0.0  ;;  %v1250_v38 = vrot.slane %v9112_v10, 1  ;;  %v9147_v18 = vmul.f32 %v8403_v37, %v9078_v22  ;;  %12584 = vst [vmem:[#allocation104_spill] sm:$0xff] %v9179_v3 }
 0x1aa   : > { %12578 = vst [vmem:[#allocation98_spill] sm:$0xff] %v9121_v13  ;;  %12579 = vst [vmem:[#allocation99_spill] sm:$0xff] %v9124_v58  ;;  %v9151_v17 = vmul.f32 %v8411_v25, %v9078_v22  ;;  %v2827_v41 = vadd.f32 %v2826_v60, %v2825_v32  ;;  %v1258_v49 = vrot.slane %v9115_v33, 1  ;;  %v1132_v32 = vmul.f32 %v8397_v6, %v9142_v24  ;;  %v9165_v60 = vld [vmem:[#allocation2 + $0x150] sm:$0xff]  ;;  %v9167_v33 = vld [vmem:[#allocation2 + $0x158] sm:$0xff] }
 0x1ab   : > { %12580 = vst [vmem:[#allocation100_spill] sm:$0xff] %v9129_v1  ;;  %12581 = vst [vmem:[#allocation101_spill] sm:$0xff] %v9132_v7  ;;  %v2828_v14 = vsel %vm508_vm1, %v8860_v34, 0.0  ;;  %v9173_v4 = vsel %vm508_vm1, %v8883_v15, 0.0  ;;  %v1047_v10 = vmul.f32 %v8463_v31, %v9078_v22  ;;  %v1048_v21 = vmul.f32 %v8463_v31, %v9108_v46  ;;  %v9196_v58 = vld [vmem:[#allocation2 + $0x170] sm:$0xff] }
 0x1ac   : > { %12582 = vst [vmem:[#allocation102_spill] sm:$0xff] %v9151_v17  ;;  %12583 = vst [vmem:[#allocation103_spill] sm:$0xff] %v9173_v4  ;;  %v2829_v43 = vadd.f32 %v2828_v14, %v2827_v41  ;;  %v2832_v7 = vsel %vm508_vm1, %v8885_v26, 0.0  ;;  %v9185_v1 = vsel %vm508_vm1, %v8894_v8, 0.0  ;;  %v12586_v34 = vrot.slane %v8864_v16, 1 }
 0x1ad   : > { %12585 = vst [vmem:[#allocation105_spill] sm:$0xff] %v9185_v1  ;;  %v12587_v15 = vrot.slane %v8856_v0, 1  ;;  %12588 = vst [vmem:[#allocation106_spill] sm:$0xff] %v9196_v58  ;;  %v1049_v14 = vmul.f32 %v8463_v31, %v9142_v24  ;;  %v1050_v41 = vmul.f32 %v8463_v31, %v9159_v36  ;;  %v1133_v8 = vmul.f32 %v8397_v6, %v9159_v36 }
 0x1ae   : > { %v12589_v26 = vrot.slane %v8759_v57, 1  ;;  %v12590_v0 = vmov %v12586_v34  ;;  %v1136_v1 = vmul.f32 %v8397_v6, %v9167_v33  ;;  %v1251_v52 = vrot.slane %v9138_v54, 1 }
 0x1af   : > { %v1247_v4 = vsel %vm1189_vm3, %v12587_v15, %v12586_v34  ;;  %v1135_v15 = vmul.f32 %v8397_v6, %v9165_v60  ;;  %v1255_v12 = vrot.slane %v1132_v32, 1  ;;  %v1137_v53 = vmul.f32 %v8397_v6, %v9179_v3 }
 0x1b0   : > { %v1249_v34 = vsel %vm1189_vm3, %v12590_v0, %v12589_v26  ;;  %v9218_v42 = vmul.f32 %v8403_v37, %v9179_v3  ;;  %v9222_v57 = vmul.f32 %v8411_v25, %v9179_v3  ;;  %v9225_v16 = vadd.f32 %v1247_v4, %v8849_v29 }
 0x1b1   : > { %v2831_v26 = vadd.f32 %v2830_v20, %v2829_v43  ;;  %v1138_v0 = vmul.f32 %v8397_v6, %v9194_v23  ;;  %v1139_v54 = vmul.f32 %v8397_v6, %v9196_v58  ;;  %v1140_v32 = vmul.f32 %v8397_v6, %v9192_v39 }
 0x1b2   : > { %12591 = vst [vmem:[#allocation107_spill] sm:$0xff] %v9222_v57  ;;  %v1256_v19 = vrot.slane %v1133_v8, 1  ;;  %v1325_v13 = vadd.f32 %v1249_v34, %v8892_v48  ;;  %v1377_v25 = vmul.f32 %v8403_v37, %v9108_v46  ;;  %v1379_v29 = vmul.f32 %v8403_v37, %v9142_v24 }
 0x1b3   : > { %v1051_v43 = vmul.f32 %v8463_v31, %v9165_v60  ;;  %v1052_v20 = vmul.f32 %v8463_v31, %v9167_v33  ;;  %v1260_v4 = vrot.slane %v1135_v15, 1  ;;  %v1261_v3 = vrot.slane %v1136_v1, 1 }
 0x1b4   : > { %v1263_v62 = vrot.slane %v1137_v53, 1  ;;  %v1510_v6 = vrot.slane %v9218_v42, 2  ;;  %v1252_v48 = vsel %vm1189_vm3, %v1250_v38, %v1251_v52  ;;  %v9245_v34 = vadd.f32 %v2832_v7, %v2831_v26 }
 0x1b5   : > { %v1265_v61 = vrot.slane %v1138_v0, 1  ;;  %v1266_v59 = vrot.slane %v1139_v54, 1  ;;  %v1268_v9 = vrot.slane %v1140_v32, 1  ;;  %v1053_v35 = vmul.f32 %v8463_v31, %v9194_v23 }
 0x1b6   : > { %12592 = vst [vmem:[#allocation108_spill] sm:$0xff] %v9245_v34  ;;  %v1054_v5 = vmul.f32 %v8463_v31, %v9196_v58  ;;  %v12593_v1 = vrot.slane %v8976_v11, 1  ;;  %v1257_v42 = vsel %vm1189_vm3, %v1255_v12, %v1256_v19  ;;  %v1259_v15 = vsel %vm1189_vm3, %v1256_v19, %v1258_v49 }
 0x1b7   : > { %v1262_v38 = vsel %vm1189_vm3, %v1260_v4, %v1261_v3  ;;  %v1326_v7 = vadd.f32 %v1252_v48, %v1047_v10  ;;  %v1380_v26 = vmul.f32 %v8403_v37, %v9159_v36  ;;  %v1382_v0 = vmul.f32 %v8403_v37, %v9165_v60 }
 0x1b8   : > { %v1254_v53 = vsel %vm1189_vm3, %v1251_v52, %v12593_v1  ;;  %v1383_v31 = vmul.f32 %v8403_v37, %v9167_v33  ;;  %v1385_v11 = vmul.f32 %v8403_v37, %v9194_v23  ;;  %v1386_v52 = vmul.f32 %v8403_v37, %v9196_v58 }
 0x1b9   : > { %v1264_v19 = vsel %vm1189_vm3, %v1261_v3, %v1263_v62  ;;  %v1267_v12 = vsel %vm1189_vm3, %v1265_v61, %v1266_v59  ;;  %v1269_v49 = vsel %vm1189_vm3, %v1266_v59, %v1268_v9  ;;  %v1327_v10 = vadd.f32 %v1254_v53, %v1048_v21 }
 0x1ba   : > { %v1328_v54 = vadd.f32 %v1257_v42, %v1049_v14  ;;  %v1387_v32 = vmul.f32 %v8403_v37, %v9192_v39  ;;  %v1497_v4 = vrot.slane %v9147_v18, 2  ;;  %v1498_v48 = vrot.slane %v1377_v25, 2 }
 0x1bb   : > { %v1329_v1 = vadd.f32 %v1259_v15, %v1050_v41  ;;  %v1330_v8 = vadd.f32 %v1262_v38, %v1051_v43  ;;  %v1502_v34 = vrot.slane %v1379_v29, 2  ;;  %v1503_v57 = vrot.slane %v1380_v26, 2 }
 0x1bc   : > { %v1507_v17 = vrot.slane %v1382_v0, 2  ;;  %v1508_v55 = vrot.slane %v1383_v31, 2  ;;  %v1512_v28 = vrot.slane %v1385_v11, 2  ;;  %v1513_v3 = vrot.slane %v1386_v52, 2 }
 0x1bd   : > { %v1331_v62 = vadd.f32 %v1264_v19, %v1052_v20  ;;  %v1332_v61 = vadd.f32 %v1267_v12, %v1053_v35  ;;  %v1333_v58 = vadd.f32 %v1269_v49, %v1054_v5  ;;  %v12594_v21 = vrot.slane %v9015_v56, 2 }
 0x1be   : > { %v12595_v9 = vrot.slane %v9011_v2, 2  ;;  %v12596_v59 = vrot.slane %v8874_v47, 2  ;;  %v12597_v18 = vrot.slane %v8870_v27, 2  ;;  %v12598_v41 = vrot.slane %v8762_v30, 2 }
 0x1bf   : > { %v1499_v35 = vsel %vm1436_vm4, %v1497_v4, %v1498_v48  ;;  %v1515_v5 = vrot.slane %v1387_v32, 2  ;;  %v12600_v43 = vrot.slane %v8955_v40, 2  ;;  %v12601_v2 = vmov %v12594_v21  ;;  %v12606_v4 = vld [vmem:[#allocation68_spill] sm:$0xff] }
 0x1c0   : > { %v1489_v37 = vsel %vm1436_vm4, %v12595_v9, %v12594_v21  ;;  %v1494_v14 = vsel %vm1436_vm4, %v12597_v18, %v12596_v59  ;;  %v12599_v25 = vmov %v12596_v59  ;;  %v12602_v53 = vrot.slane %v8981_v50, 2  ;;  %v9334_v9 = vld [vmem:[#allocation2 + $0x190] sm:$0x3]  ;;  %v7352_v59 = vld [vmem:[%s12307_s4 + $0x4] ss:$0 sm:$0xff] }
 0x1c1   : > { %v1496_v29 = vsel %vm1436_vm4, %v12599_v25, %v12598_v41  ;;  %v1491_v20 = vsel %vm1436_vm4, %v12601_v2, %v12600_v43  ;;  %v1504_v42 = vsel %vm1436_vm4, %v1502_v34, %v1503_v57  ;;  %v12603_v30 = vrot.slane %v9118_v63, 2 }
 0x1c2   : > { %v1501_v27 = vsel %vm1436_vm4, %v1498_v48, %v12602_v53  ;;  %v1509_v15 = vsel %vm1436_vm4, %v1507_v17, %v1508_v55  ;;  %v1511_v38 = vsel %vm1436_vm4, %v1508_v55, %v1510_v6  ;;  %v1514_v40 = vsel %vm1436_vm4, %v1512_v28, %v1513_v3  ;;  %v9310_v17 = vld [vmem:[#allocation2 + $0x188] sm:$0xff] }
 0x1c3   : > { %v1506_v47 = vsel %vm1436_vm4, %v1503_v57, %v12603_v30  ;;  %v1569_v56 = vadd.f32 %v1489_v37, %v9064_v44  ;;  %v1570_v26 = vadd.f32 %v1491_v20, %v9072_v45  ;;  %v1571_v50 = vadd.f32 %v1494_v14, %v9225_v16  ;;  %v9308_v57 = vld [vmem:[#allocation2 + $0x180] sm:$0xff]  ;;  %12604 = vst [vmem:[#allocation109_spill] sm:$0xff] %v9310_v17 }
 0x1c4   : > { %v1572_v0 = vadd.f32 %v1496_v29, %v1325_v13  ;;  %v1573_v31 = vadd.f32 %v1499_v35, %v1326_v7  ;;  %v1516_v34 = vsel %vm1436_vm4, %v1513_v3, %v1515_v5  ;;  %v1574_v11 = vadd.f32 %v1501_v27, %v1327_v10  ;;  %v12605_v10 = vld [vmem:[#allocation106_spill] sm:$0xff] }
 0x1c5   : > { %v1575_v63 = vadd.f32 %v1504_v42, %v1328_v54  ;;  %v1576_v52 = vadd.f32 %v1506_v47, %v1329_v1  ;;  %v1609_v55 = vmul.f32 %v8474_v51, %v9078_v22  ;;  %v1610_v28 = vmul.f32 %v8474_v51, %v9108_v46  ;;  %v12607_v1 = vld [vmem:[#allocation70_spill] sm:$0xff]  ;;  %12608 = vst [vmem:[#allocation106_spill] sm:$0xff] %v9334_v9 }
 0x1c6   : > { %v1611_v44 = vmul.f32 %v8474_v51, %v9142_v24  ;;  %v1612_v13 = vmul.f32 %v8474_v51, %v9159_v36  ;;  %v1577_v45 = vadd.f32 %v1509_v15, %v1330_v8  ;;  %v1578_v16 = vadd.f32 %v1511_v38, %v1331_v62  ;;  %v12609_v47 = vld [vmem:[#allocation102_spill] sm:$0xff] }
 0x1c7   : > { %v1579_v6 = vadd.f32 %v1514_v40, %v1332_v61  ;;  %v1613_v7 = vmul.f32 %v8474_v51, %v9165_v60  ;;  %v1580_v19 = vadd.f32 %v1516_v34, %v1333_v58  ;;  %v1614_v12 = vmul.f32 %v8474_v51, %v9167_v33 }
 0x1c8   : > { %v1615_v49 = vmul.f32 %v8474_v51, %v9194_v23  ;;  %v1616_v54 = vmul.f32 %v8474_v51, %v12605_v10  ;;  %v1617_v32 = vmul.f32 %v8474_v51, %v9308_v57  ;;  %v1618_v8 = vmul.f32 %v8474_v51, %v9310_v17 }
 0x1c9   : > { %v1639_v48 = vadd.f32 %v12606_v4, %v1569_v56  ;;  %v1640_v3 = vadd.f32 %v12607_v1, %v1570_v26  ;;  %v1641_v58 = vadd.f32 %v1609_v55, %v1571_v50  ;;  %v1642_v62 = vadd.f32 %v1610_v28, %v1572_v0  ;;  %v12610_v55 = vld [vmem:[#allocation87_spill] sm:$0xff] }
 0x1ca   : > { %v1643_v61 = vadd.f32 %v1611_v44, %v1573_v31  ;;  %v1644_v21 = vadd.f32 %v1612_v13, %v1574_v11  ;;  %v1645_v37 = vadd.f32 %v1613_v7, %v1575_v63  ;;  %v1691_v18 = vmul.f32 %v7352_v59, %v9108_v46  ;;  %v12612_v44 = vld [vmem:[#allocation86_spill] sm:$0xff] }
 0x1cb   : > { %v1693_v14 = vmul.f32 %v7352_v59, %v9142_v24  ;;  %v1694_v51 = vmul.f32 %v7352_v59, %v9159_v36  ;;  %v1696_v41 = vmul.f32 %v7352_v59, %v9165_v60  ;;  %v1697_v25 = vmul.f32 %v7352_v59, %v9167_v33 }
 0x1cc   : > { %v1699_v29 = vmul.f32 %v7352_v59, %v9194_v23  ;;  %v1700_v35 = vmul.f32 %v7352_v59, %v12605_v10  ;;  %v1646_v5 = vadd.f32 %v1614_v12, %v1576_v52  ;;  %v1701_v43 = vmul.f32 %v7352_v59, %v9192_v39 }
 0x1cd   : > { %v1702_v2 = vmul.f32 %v7352_v59, %v9308_v57  ;;  %v1703_v20 = vmul.f32 %v7352_v59, %v9310_v17  ;;  %v1647_v53 = vadd.f32 %v1615_v49, %v1577_v45  ;;  %v1648_v27 = vadd.f32 %v1616_v54, %v1578_v16  ;;  %v12614_v16 = vld [vmem:[#allocation78_spill] sm:$0xff]  ;;  %v12617_v49 = vld [vmem:[#allocation71_spill] sm:$0xff] }
 0x1ce   : > { %v1649_v42 = vadd.f32 %v1617_v32, %v1579_v6  ;;  %v1704_v30 = vmul.f32 %v7352_v59, %v9334_v9  ;;  %v1808_v15 = vrot.slane %v12609_v47, 1  ;;  %v1809_v38 = vrot.slane %v1691_v18, 1  ;;  %v12619_v32 = vld [vmem:[#allocation69_spill] sm:$0xff] }
 0x1cf   : > { %v1813_v40 = vrot.slane %v1693_v14, 1  ;;  %v1814_v56 = vrot.slane %v1694_v51, 1  ;;  %v1818_v26 = vrot.slane %v1696_v41, 1  ;;  %v1819_v50 = vrot.slane %v1697_v25, 1  ;;  %v12624_v51 = vld [vmem:[#allocation82_spill] sm:$0xff] }
 0x1d0   : > { %v1823_v0 = vrot.slane %v1699_v29, 1  ;;  %v1824_v31 = vrot.slane %v1700_v35, 1  ;;  %v1650_v34 = vadd.f32 %v1618_v8, %v1580_v19  ;;  %v1826_v11 = vrot.slane %v1701_v43, 1  ;;  %v12621_v8 = vld [vmem:[#allocation50_spill] sm:$0xff] }
 0x1d1   : > { %v1828_v63 = vrot.slane %v1702_v2, 1  ;;  %v1829_v52 = vrot.slane %v1703_v20, 1  ;;  %v12611_v28 = vrot.slane %v12610_v55, 1  ;;  %v12613_v13 = vrot.slane %v12612_v44, 1  ;;  %v12626_v43 = vld [vmem:[#allocation98_spill] sm:$0xff]  ;;  %v12628_v55 = vld [vmem:[#allocation107_spill] sm:$0xff] }
 0x1d2   : > { %v12615_v6 = vrot.slane %v12614_v16, 1  ;;  %v12618_v54 = vrot.slane %v12617_v49, 1  ;;  %v12620_v4 = vrot.slane %v12619_v32, 1  ;;  %v12622_v1 = vrot.slane %v12621_v8, 1 }
 0x1d3   : > { %v1800_v45 = vsel %vm1189_vm3, %v12613_v13, %v12611_v28  ;;  %v12616_v7 = vmov %v12611_v28  ;;  %v1810_v14 = vsel %vm1189_vm3, %v1808_v15, %v1809_v38  ;;  %v12625_v41 = vrot.slane %v12624_v51, 1  ;;  %v12637_v51 = vld [vmem:[#allocation73_spill] sm:$0xff] }
 0x1d4   : > { %v1802_v12 = vsel %vm1189_vm3, %v12616_v7, %v12615_v6  ;;  %v1805_v19 = vsel %vm1189_vm3, %v12620_v4, %v12618_v54  ;;  %v12623_v59 = vmov %v12618_v54  ;;  %v1815_v29 = vsel %vm1189_vm3, %v1813_v40, %v1814_v56  ;;  %v12631_v40 = vld [vmem:[#allocation91_spill] sm:$0xff] }
 0x1d5   : > { %v1807_v18 = vsel %vm1189_vm3, %v12623_v59, %v12622_v1  ;;  %v1812_v25 = vsel %vm1189_vm3, %v1809_v38, %v12625_v41  ;;  %v1831_v35 = vrot.slane %v1704_v30, 1  ;;  %v12627_v2 = vrot.slane %v12626_v43, 1  ;;  %v12630_v38 = vld [vmem:[#allocation88_spill] sm:$0xff] }
 0x1d6   : > { %v1820_v47 = vsel %vm1189_vm3, %v1818_v26, %v1819_v50  ;;  %v12629_v28 = vrot.slane %v12628_v55, 1  ;;  %v1825_v13 = vsel %vm1189_vm3, %v1823_v0, %v1824_v31  ;;  %v1827_v15 = vsel %vm1189_vm3, %v1824_v31, %v1826_v11  ;;  %v7353_v31 = vld [vmem:[%s12307_s4 + $0x5] ss:$0 sm:$0xff] }
 0x1d7   : > { %v1817_v20 = vsel %vm1189_vm3, %v1814_v56, %v12627_v2  ;;  %v1830_v16 = vsel %vm1189_vm3, %v1828_v63, %v1829_v52  ;;  %v1883_v6 = vadd.f32 %v1800_v45, %v12630_v38  ;;  %v1884_v30 = vadd.f32 %v1802_v12, %v12631_v40  ;;  %v12638_v2 = vld [vmem:[#allocation90_spill] sm:$0xff] }
 0x1d8   : > { %v1822_v44 = vsel %vm1189_vm3, %v1819_v50, %v12629_v28  ;;  %v1885_v7 = vadd.f32 %v1805_v19, %v1639_v48  ;;  %v1886_v49 = vadd.f32 %v1807_v18, %v1640_v3  ;;  %v1887_v54 = vadd.f32 %v1810_v14, %v1641_v58  ;;  %v12635_v19 = vld [vmem:[#allocation54_spill] sm:$0xff] }
 0x1d9   : > { %v1888_v56 = vadd.f32 %v1812_v25, %v1642_v62  ;;  %v1832_v26 = vsel %vm1189_vm3, %v1829_v52, %v1831_v35  ;;  %v1889_v32 = vadd.f32 %v1815_v29, %v1643_v61  ;;  %v1890_v4 = vadd.f32 %v1817_v20, %v1644_v21 }
 0x1da   : > { %v1891_v8 = vadd.f32 %v1820_v47, %v1645_v37  ;;  %v1892_v50 = vadd.f32 %v1822_v44, %v1646_v5  ;;  %v1893_v1 = vadd.f32 %v1825_v13, %v1647_v53  ;;  %v1894_v0 = vadd.f32 %v1827_v15, %v1648_v27  ;;  %v12632_v37 = vld [vmem:[#allocation104_spill] sm:$0xff]  ;;  %v12640_v47 = vld [vmem:[#allocation89_spill] sm:$0xff] }
 0x1db   : > { %v1895_v59 = vadd.f32 %v1830_v16, %v1649_v42  ;;  %v1936_v11 = vmul.f32 %v7353_v31, %v9078_v22  ;;  %v1937_v48 = vmul.f32 %v7353_v31, %v9108_v46  ;;  %v1939_v3 = vmul.f32 %v7353_v31, %v9142_v24  ;;  %v12642_v16 = vld [vmem:[#allocation79_spill] sm:$0xff] }
 0x1dc   : > { %v1940_v58 = vmul.f32 %v7353_v31, %v9159_v36  ;;  %v9396_v62 = vadd.f32 %v1832_v26, %v1650_v34  ;;  %v1942_v61 = vmul.f32 %v7353_v31, %v9165_v60  ;;  %v1943_v21 = vmul.f32 %v7353_v31, %v9167_v33  ;;  %v12633_v34 = vld [vmem:[#allocation44_spill] sm:$0xff] }
 0x1dd   : > { %v1944_v5 = vmul.f32 %v7353_v31, %v12632_v37  ;;  %v1945_v53 = vmul.f32 %v7353_v31, %v9194_v23  ;;  %v1946_v27 = vmul.f32 %v7353_v31, %v12605_v10  ;;  %v1947_v42 = vmul.f32 %v7353_v31, %v9192_v39 }
 0x1de   : > { %v1948_v63 = vmul.f32 %v7353_v31, %v9308_v57  ;;  %v1949_v52 = vmul.f32 %v7353_v31, %v9310_v17  ;;  %v1950_v45 = vmul.f32 %v7353_v31, %v9334_v9  ;;  %v12634_v12 = vrot.slane %v12633_v34, 2 }
 0x1df   : > { %v12636_v18 = vrot.slane %v12635_v19, 2  ;;  %v2050_v41 = vrot.slane %v12637_v51, 2  ;;  %v2054_v25 = vrot.slane %v1936_v11, 2  ;;  %v2055_v29 = vrot.slane %v1937_v48, 2  ;;  %v12647_v51 = vld [vmem:[#allocation51_spill] sm:$0xff] }
 0x1e0   : > { %v2059_v35 = vrot.slane %v1939_v3, 2  ;;  %v2060_v43 = vrot.slane %v1940_v58, 2  ;;  %v12639_v20 = vrot.slane %v12638_v2, 2  ;;  %v12641_v55 = vrot.slane %v12640_v47, 2  ;;  %v12645_v3 = vld [vmem:[#allocation72_spill] sm:$0xff] }
 0x1e1   : > { %v2043_v14 = vsel %vm1436_vm4, %v12636_v18, %v12634_v12  ;;  %v2064_v44 = vrot.slane %v1942_v61, 2  ;;  %v2065_v13 = vrot.slane %v1943_v21, 2  ;;  %v2067_v15 = vrot.slane %v1944_v5, 2 }
 0x1e2   : > { %v2046_v28 = vsel %vm1436_vm4, %v12641_v55, %v12639_v20  ;;  %v12643_v38 = vrot.slane %v12642_v16, 2  ;;  %v12644_v40 = vmov %v12639_v20  ;;  %v2069_v31 = vrot.slane %v1945_v53, 2  ;;  %v12649_v20 = vld [vmem:[#allocation83_spill] sm:$0xff] }
 0x1e3   : > { %v2070_v11 = vrot.slane %v1946_v27, 2  ;;  %v2072_v48 = vrot.slane %v1947_v42, 2  ;;  %v12646_v58 = vrot.slane %v12645_v3, 2  ;;  %v2074_v12 = vrot.slane %v1948_v63, 2  ;;  %v12651_v27 = vld [vmem:[#allocation99_spill] sm:$0xff] }
 0x1e4   : > { %v2048_v26 = vsel %vm1436_vm4, %v12644_v40, %v12643_v38  ;;  %v2075_v19 = vrot.slane %v1949_v52, 2  ;;  %v2077_v18 = vrot.slane %v1950_v45, 2  ;;  %v12648_v61 = vrot.slane %v12647_v51, 2  ;;  %v12653_v45 = vld [vmem:[#allocation56_spill] sm:$0xff] }
 0x1e5   : > { %v2051_v34 = vsel %vm1436_vm4, %v12646_v58, %v2050_v41  ;;  %v2056_v5 = vsel %vm1436_vm4, %v2054_v25, %v2055_v29  ;;  %v12650_v2 = vrot.slane %v12649_v20, 2  ;;  %v2061_v53 = vsel %vm1436_vm4, %v2059_v35, %v2060_v43 }
 0x1e6   : > { %v2053_v21 = vsel %vm1436_vm4, %v2050_v41, %v12648_v61  ;;  %v12652_v42 = vrot.slane %v12651_v27, 2  ;;  %v2066_v63 = vsel %vm1436_vm4, %v2064_v44, %v2065_v13  ;;  %v2068_v52 = vsel %vm1436_vm4, %v2065_v13, %v2067_v15 }
 0x1e7   : > { %v2058_v47 = vsel %vm1436_vm4, %v2055_v29, %v12650_v2  ;;  %v2128_v16 = vadd.f32 %v2043_v14, %v12653_v45  ;;  %v2071_v41 = vsel %vm1436_vm4, %v2069_v31, %v2070_v11  ;;  %v2073_v25 = vsel %vm1436_vm4, %v2070_v11, %v2072_v48  ;;  %v9444_v2 = vld [vmem:[#allocation2 + $0x198] sm:$0xff]  ;;  %v9446_v31 = vld [vmem:[#allocation2 + $0x1a0] sm:$0xff] }
 0x1e8   : > { %v2063_v55 = vsel %vm1436_vm4, %v2060_v43, %v12652_v42  ;;  %v2129_v38 = vadd.f32 %v2046_v28, %v1883_v6  ;;  %v2130_v40 = vadd.f32 %v2048_v26, %v1884_v30  ;;  %v2076_v29 = vsel %vm1436_vm4, %v2074_v12, %v2075_v19  ;;  %12654 = vst [vmem:[#allocation68_spill] sm:$0xff] %v9444_v2  ;;  %v7354_v30 = vld [vmem:[%s12307_s4 + $0x6] ss:$0 sm:$0xff]  ;;  %v12656_v28 = vld [vmem:[#allocation58_spill] sm:$0xff] }
 0x1e9   : > { %v2078_v35 = vsel %vm1436_vm4, %v2075_v19, %v2077_v18  ;;  %v2131_v3 = vadd.f32 %v2051_v34, %v1885_v7  ;;  %v2132_v58 = vadd.f32 %v2053_v21, %v1886_v49  ;;  %v2133_v51 = vadd.f32 %v2056_v5, %v1887_v54  ;;  %12655 = vst [vmem:[#allocation70_spill] sm:$0xff] %v9446_v31  ;;  %v12657_v34 = vld [vmem:[#allocation92_spill] sm:$0xff]  ;;  %v12658_v19 = vld [vmem:[#allocation74_spill] sm:$0xff] }
 0x1ea   : > { %v2134_v43 = vadd.f32 %v2058_v47, %v1888_v56  ;;  %v2135_v61 = vadd.f32 %v2061_v53, %v1889_v32  ;;  %v2136_v44 = vadd.f32 %v2063_v55, %v1890_v4  ;;  %v2137_v20 = vadd.f32 %v2066_v63, %v1891_v8 }
 0x1eb   : > { %v2138_v13 = vadd.f32 %v2068_v52, %v1892_v50  ;;  %v2139_v15 = vadd.f32 %v2071_v41, %v1893_v1  ;;  %v2140_v14 = vadd.f32 %v2073_v25, %v1894_v0  ;;  %v2141_v6 = vadd.f32 %v2076_v29, %v1895_v59  ;;  %v7355_v25 = vld [vmem:[%s12307_s4 + $0x7] ss:$0 sm:$0xff]  ;;  %v9502_v29 = vld [vmem:[#allocation2 + $0x1a8] sm:$0x3] }
 0x1ec   : > { %v2168_v7 = vmul.f32 %v7354_v30, %v12656_v28  ;;  %v2169_v49 = vmul.f32 %v7354_v30, %v9078_v22  ;;  %v2170_v54 = vmul.f32 %v7354_v30, %v9108_v46  ;;  %v2171_v56 = vmul.f32 %v7354_v30, %v9142_v24  ;;  %12662 = vst [vmem:[#allocation78_spill] sm:$0xff] %v9502_v29 }
 0x1ed   : > { %v2172_v32 = vmul.f32 %v7354_v30, %v9159_v36  ;;  %v2173_v4 = vmul.f32 %v7354_v30, %v9165_v60  ;;  %v2174_v8 = vmul.f32 %v7354_v30, %v9167_v33  ;;  %v2175_v50 = vmul.f32 %v7354_v30, %v9194_v23 }
 0x1ee   : > { %v2176_v1 = vmul.f32 %v7354_v30, %v12605_v10  ;;  %v2177_v0 = vmul.f32 %v7354_v30, %v9308_v57  ;;  %v2178_v59 = vmul.f32 %v7354_v30, %v9310_v17  ;;  %v2142_v26 = vadd.f32 %v2078_v35, %v9396_v62 }
 0x1ef   : > { %v2179_v11 = vmul.f32 %v7354_v30, %v9444_v2  ;;  %v2180_v48 = vmul.f32 %v7354_v30, %v9446_v31  ;;  %v9466_v12 = vadd.f32 %v12657_v34, %v2128_v16  ;;  %v9469_v18 = vadd.f32 %v12658_v19, %v2129_v38 }
 0x1f0   : > { %v9471_v21 = vadd.f32 %v2168_v7, %v2130_v40  ;;  %v9473_v5 = vadd.f32 %v2169_v49, %v2131_v3  ;;  %v9475_v47 = vadd.f32 %v2170_v54, %v2132_v58  ;;  %v9477_v53 = vadd.f32 %v2171_v56, %v2133_v51  ;;  %v12663_v49 = vld [vmem:[#allocation45_spill] sm:$0xff]  ;;  %v12665_v56 = vld [vmem:[#allocation55_spill] sm:$0xff] }
 0x1f1   : > { %v9479_v27 = vadd.f32 %v2172_v32, %v2134_v43  ;;  %v9481_v62 = vadd.f32 %v2173_v4, %v2135_v61  ;;  %v9483_v42 = vadd.f32 %v2174_v8, %v2136_v44  ;;  %v9485_v55 = vadd.f32 %v2175_v50, %v2137_v20  ;;  %v12667_v8 = vld [vmem:[#allocation76_spill] sm:$0xff] }
 0x1f2   : > { %v9487_v63 = vadd.f32 %v2176_v1, %v2138_v13  ;;  %v9489_v52 = vadd.f32 %v2177_v0, %v2139_v15  ;;  %v9491_v45 = vadd.f32 %v2178_v59, %v2140_v14  ;;  %v9493_v16 = vadd.f32 %v2179_v11, %v2141_v6  ;;  %v12668_v1 = vld [vmem:[#allocation94_spill] sm:$0xff]  ;;  %v12670_v59 = vld [vmem:[#allocation93_spill] sm:$0xff] }
 0x1f3   : > { %v9495_v41 = vadd.f32 %v2180_v48, %v2142_v26  ;;  %v2249_v38 = vmul.f32 %v7355_v25, %v9078_v22  ;;  %v2250_v40 = vmul.f32 %v7355_v25, %v9108_v46  ;;  %v2252_v35 = vmul.f32 %v7355_v25, %v9142_v24  ;;  %v12672_v48 = vld [vmem:[#allocation80_spill] sm:$0xff] }
 0x1f4   : > { %12659 = vst [vmem:[#allocation102_spill] sm:$0xff] %v9491_v45  ;;  %12660 = vst [vmem:[#allocation87_spill] sm:$0xff] %v9493_v16  ;;  %v2253_v3 = vmul.f32 %v7355_v25, %v9159_v36  ;;  %v2255_v58 = vmul.f32 %v7355_v25, %v9165_v60  ;;  %v2256_v51 = vmul.f32 %v7355_v25, %v9167_v33  ;;  %v12664_v54 = vrot.slane %v12663_v49, 1 }
 0x1f5   : > { %12661 = vst [vmem:[#allocation86_spill] sm:$0xff] %v9495_v41  ;;  %v2257_v43 = vmul.f32 %v7355_v25, %v12632_v37  ;;  %v2258_v61 = vmul.f32 %v7355_v25, %v9194_v23  ;;  %v2259_v44 = vmul.f32 %v7355_v25, %v12605_v10  ;;  %v2260_v20 = vmul.f32 %v7355_v25, %v9192_v39 }
 0x1f6   : > { %v2261_v13 = vmul.f32 %v7355_v25, %v9308_v57  ;;  %v2262_v15 = vmul.f32 %v7355_v25, %v9310_v17  ;;  %v2263_v14 = vmul.f32 %v7355_v25, %v9334_v9  ;;  %v2264_v6 = vmul.f32 %v7355_v25, %v9444_v2  ;;  %v12675_v2 = vld [vmem:[#allocation75_spill] sm:$0xff] }
 0x1f7   : > { %v2265_v30 = vmul.f32 %v7355_v25, %v9446_v31  ;;  %v2266_v7 = vmul.f32 %v7355_v25, %v9502_v29  ;;  %v12666_v32 = vrot.slane %v12665_v56, 1  ;;  %v2361_v50 = vrot.slane %v12667_v8, 1 }
 0x1f8   : > { %v12669_v0 = vrot.slane %v12668_v1, 1  ;;  %v12671_v26 = vrot.slane %v12670_v59, 1  ;;  %v12673_v34 = vrot.slane %v12672_v48, 1  ;;  %v2365_v41 = vrot.slane %v2249_v38, 1  ;;  %v12677_v1 = vld [vmem:[#allocation52_spill] sm:$0xff] }
 0x1f9   : > { %v2354_v4 = vsel %vm1189_vm3, %v12666_v32, %v12664_v54  ;;  %v2366_v49 = vrot.slane %v2250_v40, 1  ;;  %v2370_v16 = vrot.slane %v2252_v35, 1  ;;  %v2371_v56 = vrot.slane %v2253_v3, 1 }
 0x1fa   : > { %v2357_v11 = vsel %vm1189_vm3, %v12671_v26, %v12669_v0  ;;  %v12674_v19 = vmov %v12669_v0  ;;  %v2375_v45 = vrot.slane %v2255_v58, 1  ;;  %v2376_v54 = vrot.slane %v2256_v51, 1  ;;  %v12679_v51 = vld [vmem:[#allocation84_spill] sm:$0xff] }
 0x1fb   : > { %v2359_v25 = vsel %vm1189_vm3, %v12674_v19, %v12673_v34  ;;  %v2378_v32 = vrot.slane %v2257_v43, 1  ;;  %v2380_v8 = vrot.slane %v2258_v61, 1  ;;  %v2381_v29 = vrot.slane %v2259_v44, 1  ;;  %v12681_v44 = vld [vmem:[#allocation100_spill] sm:$0xff] }
 0x1fc   : > { %v2383_v31 = vrot.slane %v2260_v20, 1  ;;  %v12676_v59 = vrot.slane %v12675_v2, 1  ;;  %v2385_v26 = vrot.slane %v2261_v13, 1  ;;  %v2386_v48 = vrot.slane %v2262_v15, 1 }
 0x1fd   : > { %v2388_v9 = vrot.slane %v2263_v14, 1  ;;  %v12678_v17 = vrot.slane %v12677_v1, 1  ;;  %v2390_v40 = vrot.slane %v2264_v6, 1  ;;  %v2391_v35 = vrot.slane %v2265_v30, 1  ;;  %v12692_v1 = vld [vmem:[#allocation42_spill] sm:$0xff] }
 0x1fe   : > { %v2362_v0 = vsel %vm1189_vm3, %v12676_v59, %v2361_v50  ;;  %v2393_v3 = vrot.slane %v2266_v7, 1  ;;  %v2367_v58 = vsel %vm1189_vm3, %v2365_v41, %v2366_v49  ;;  %v12680_v43 = vrot.slane %v12679_v51, 1  ;;  %v12683_v7 = vld [vmem:[#allocation57_spill] sm:$0xff] }
 0x1ff   : > { %v2364_v38 = vsel %vm1189_vm3, %v2361_v50, %v12678_v17  ;;  %v2372_v2 = vsel %vm1189_vm3, %v2370_v16, %v2371_v56  ;;  %v12682_v20 = vrot.slane %v12681_v44, 1  ;;  %v2377_v15 = vsel %vm1189_vm3, %v2375_v45, %v2376_v54  ;;  %v12684_v16 = vld [vmem:[#allocation97_spill] sm:$0xff] }
 0x200   : > { %v2369_v61 = vsel %vm1189_vm3, %v2366_v49, %v12680_v43  ;;  %v2379_v14 = vsel %vm1189_vm3, %v2376_v54, %v2378_v32  ;;  %v2382_v17 = vsel %vm1189_vm3, %v2380_v8, %v2381_v29  ;;  %v2384_v6 = vsel %vm1189_vm3, %v2381_v29, %v2383_v31  ;;  %v12689_v32 = vld [vmem:[#allocation47_spill] sm:$0xff]  ;;  %v12690_v8 = vld [vmem:[#allocation48_spill] sm:$0xff] }
 0x201   : > { %v2374_v13 = vsel %vm1189_vm3, %v2371_v56, %v12682_v20  ;;  %v2387_v41 = vsel %vm1189_vm3, %v2385_v26, %v2386_v48  ;;  %v9554_v30 = vsel %vm1189_vm3, %v2386_v48, %v2388_v9  ;;  %v2442_v50 = vadd.f32 %v2354_v4, %v12683_v7  ;;  %v9616_v48 = vld [vmem:[%s12308_s5] ss:$0 sm:$0xff]  ;;  %v12700_v20 = vld [vmem:[#allocation29_spill] sm:$0xff] }
 0x202   : > { %v2443_v34 = vadd.f32 %v2357_v11, %v12684_v16  ;;  %v9559_v19 = vsel %vm1189_vm3, %v2390_v40, %v2391_v35  ;;  %v9562_v45 = vsel %vm1189_vm3, %v2391_v35, %v2393_v3  ;;  %v2444_v49 = vadd.f32 %v2359_v25, %v9466_v12  ;;  %v12694_v40 = vld [vmem:[#allocation43_spill] sm:$0xff] }
 0x203   : > { %v2445_v56 = vadd.f32 %v2362_v0, %v9469_v18  ;;  %v2446_v31 = vadd.f32 %v2364_v38, %v9471_v21  ;;  %v2447_v29 = vadd.f32 %v2367_v58, %v9473_v5  ;;  %v9569_v9 = vadd.f32 %v2369_v61, %v9475_v47  ;;  %v9595_v47 = vld [vmem:[%s12307_s4 + $0x8] ss:$0 sm:$0xff]  ;;  %v12691_v0 = vld [vmem:[#allocation67_spill] sm:$0xff]  ;;  %v12695_v58 = vld [vmem:[#allocation46_spill] sm:$0xff] }
 0x204   : > { %v9572_v4 = vadd.f32 %v2372_v2, %v9477_v53  ;;  %v9575_v11 = vadd.f32 %v2374_v13, %v9479_v27  ;;  %v9578_v54 = vadd.f32 %v2377_v15, %v9481_v62  ;;  %v9581_v12 = vadd.f32 %v2379_v14, %v9483_v42  ;;  %v12685_v27 = vld [vmem:[#allocation60_spill] sm:$0xff]  ;;  %v12687_v42 = vld [vmem:[#allocation59_spill] sm:$0xff]  ;;  %v12698_v61 = vld [vmem:[#allocation30_spill] sm:$0xff] }
 0x205   : > { %v9584_v18 = vadd.f32 %v2382_v17, %v9485_v55  ;;  %v9587_v21 = vadd.f32 %v2384_v6, %v9487_v63  ;;  %v9590_v5 = vadd.f32 %v2387_v41, %v9489_v52  ;;  %v2493_v53 = vmul.f32 %v9595_v47, %v12656_v28  ;;  %v12699_v2 = vld [vmem:[#allocation31_spill] sm:$0xff]  ;;  %v12702_v14 = vld [vmem:[#allocation96_spill] sm:$0xff] }
 0x206   : > { %v12686_v62 = vrot.slane %v12685_v27, 2  ;;  %v12688_v25 = vrot.slane %v12687_v42, 2  ;;  %v2495_v63 = vmul.f32 %v9595_v47, %v9078_v22  ;;  %v2496_v52 = vmul.f32 %v9595_v47, %v9108_v46  ;;  %v12693_v22 = vld [vmem:[#allocation49_spill] sm:$0xff]  ;;  %v12704_v6 = vld [vmem:[#allocation95_spill] sm:$0xff] }
 0x207   : > { %v2686_v59 = vadd.f32 %v12690_v8, %v12689_v32  ;;  %v2498_v28 = vmul.f32 %v9595_v47, %v9142_v24  ;;  %v9620_v38 = vadd.f32 %v9616_v48, %v12692_v1  ;;  %v9624_v46 = vadd.f32 %v9616_v48, %v12693_v22  ;;  %v12707_v1 = vld [vmem:[#allocation32_spill] sm:$0xff] }
 0x208   : > { %v2598_v55 = vsel %vm1436_vm4, %v12688_v25, %v12686_v62  ;;  %v2754_v35 = vmax.f32 %v12694_v40, 0.0  ;;  %v2499_v3 = vmul.f32 %v9595_v47, %v9159_v36  ;;  %v12696_v24 = vrot.slane %v12695_v58, 2  ;;  %v12706_v36 = vld [vmem:[#allocation77_spill] sm:$0xff] }
 0x209   : > { %v2687_v26 = vadd.f32 %v2598_v55, %v12691_v0  ;;  %v12697_v51 = vmov %v12686_v62  ;;  %v2861_v44 = vadd.f32 %v12699_v2, %v12698_v61  ;;  %v12701_v13 = vmax.f32 %v12700_v20, 0.0 }
 0x20a   : > { %v2600_v43 = vsel %vm1436_vm4, %v12697_v51, %v12696_v24  ;;  %v12703_v17 = vrot.slane %v12702_v14, 2  ;;  %v12705_v41 = vrot.slane %v12704_v6, 2  ;;  %v2606_v16 = vrot.slane %v12706_v36, 2 }
 0x20b   : > { %v2862_v15 = vsel %vm508_vm1, %v12701_v13, 0.0  ;;  %v2607_v62 = vrot.slane %v2493_v53, 2  ;;  %v2688_v42 = vadd.f32 %v2600_v43, %v2442_v50  ;;  %v9646_v25 = vadd.f32 %v9616_v48, %v2686_v59  ;;  %v12709_v59 = vld [vmem:[#allocation81_spill] sm:$0xff] }
 0x20c   : > { %v2603_v7 = vsel %vm1436_vm4, %v12705_v41, %v12703_v17  ;;  %v9649_v55 = vadd.f32 %v9616_v48, %v2687_v26  ;;  %v2863_v32 = vadd.f32 %v2862_v15, %v2861_v44  ;;  %v2755_v8 = vmax.f32 %v9620_v38, 0.0 }
 0x20d   : > { %v2689_v27 = vadd.f32 %v2603_v7, %v2443_v34  ;;  %v2756_v0 = vmax.f32 %v9624_v46, 0.0  ;;  %v12708_v22 = vmax.f32 %v12707_v1, 0.0  ;;  %v2866_v50 = vsel %vm508_vm1, %v2754_v35, 0.0 }
 0x20e   : > { %v2501_v34 = vmul.f32 %v9595_v47, %v9165_v60  ;;  %v2502_v53 = vmul.f32 %v9595_v47, %v9167_v33  ;;  %v12710_v26 = vrot.slane %v12709_v59, 2  ;;  %v12711_v24 = vmov %v12703_v17 }
 0x20f   : > { %v2864_v58 = vsel %vm508_vm1, %v12708_v22, 0.0  ;;  %v2608_v61 = vsel %vm1436_vm4, %v2606_v16, %v2607_v62  ;;  %v2611_v2 = vrot.slane %v2495_v63, 2  ;;  %v2612_v44 = vrot.slane %v2496_v52, 2  ;;  %v12712_v52 = vld [vmem:[#allocation53_spill] sm:$0xff] }
 0x210   : > { %v2605_v51 = vsel %vm1436_vm4, %v12711_v24, %v12710_v26  ;;  %v2865_v43 = vadd.f32 %v2864_v58, %v2863_v32  ;;  %v2691_v15 = vadd.f32 %v2608_v61, %v2445_v56  ;;  %v9670_v17 = vadd.f32 %v9616_v48, %v2688_v42 }
 0x211   : > { %v2690_v13 = vadd.f32 %v2605_v51, %v2444_v49  ;;  %v9673_v60 = vadd.f32 %v9616_v48, %v2689_v27  ;;  %v2757_v6 = vmax.f32 %v9646_v25, 0.0  ;;  %v2758_v14 = vmax.f32 %v9649_v55, 0.0  ;;  %v12714_v51 = vld [vmem:[#allocation85_spill] sm:$0xff] }
 0x212   : > { %v2867_v33 = vadd.f32 %v2866_v50, %v2865_v43  ;;  %v2868_v41 = vsel %vm508_vm1, %v2755_v8, 0.0  ;;  %v2870_v49 = vsel %vm508_vm1, %v2756_v0, 0.0  ;;  %v2503_v56 = vmul.f32 %v9595_v47, %v12632_v37 }
 0x213   : > { %v2504_v63 = vmul.f32 %v9595_v47, %v9194_v23  ;;  %v12713_v7 = vrot.slane %v12712_v52, 2  ;;  %v2613_v42 = vsel %vm1436_vm4, %v2611_v2, %v2612_v44  ;;  %v2616_v27 = vrot.slane %v2498_v28, 2 }
 0x214   : > { %v2869_v16 = vadd.f32 %v2868_v41, %v2867_v33  ;;  %v2617_v32 = vrot.slane %v2499_v3, 2  ;;  %v2693_v58 = vadd.f32 %v2613_v42, %v2447_v29  ;;  %v9692_v50 = vadd.f32 %v9616_v48, %v2690_v13  ;;  %v12716_v13 = vld [vmem:[#allocation101_spill] sm:$0xff] }
 0x215   : > { %v2610_v36 = vsel %vm1436_vm4, %v2607_v62, %v12713_v7  ;;  %v9695_v59 = vadd.f32 %v9616_v48, %v2691_v15  ;;  %v2759_v23 = vmax.f32 %v9670_v17, 0.0  ;;  %v2760_v26 = vmax.f32 %v9673_v60, 0.0 }
 0x216   : > { %v2692_v22 = vadd.f32 %v2610_v36, %v2446_v31  ;;  %v2871_v37 = vadd.f32 %v2870_v49, %v2869_v16  ;;  %v2872_v62 = vsel %vm508_vm1, %v2757_v6, 0.0  ;;  %v2874_v31 = vsel %vm508_vm1, %v2758_v14, 0.0  ;;  %v12718_v16 = vld [vmem:[#allocation109_spill] sm:$0xff] }
 0x217   : > { %v2505_v29 = vmul.f32 %v9595_v47, %v12605_v10  ;;  %v2621_v28 = vrot.slane %v2501_v34, 2  ;;  %v2622_v3 = vrot.slane %v2502_v53, 2  ;;  %v12715_v43 = vrot.slane %v12714_v51, 2 }
 0x218   : > { %v2873_v24 = vadd.f32 %v2872_v62, %v2871_v37  ;;  %v2618_v2 = vsel %vm1436_vm4, %v2616_v27, %v2617_v32  ;;  %v12717_v15 = vrot.slane %v12716_v13, 2  ;;  %v2624_v41 = vrot.slane %v2503_v56, 2 }
 0x219   : > { %v2615_v61 = vsel %vm1436_vm4, %v2612_v44, %v12715_v43  ;;  %v9716_v52 = vadd.f32 %v9616_v48, %v2692_v22  ;;  %v9719_v10 = vadd.f32 %v9616_v48, %v2693_v58  ;;  %v2761_v53 = vmax.f32 %v9692_v50, 0.0 }
 0x21a   : > { %v2620_v33 = vsel %vm1436_vm4, %v2617_v32, %v12717_v15  ;;  %v2694_v49 = vadd.f32 %v2615_v61, %v9569_v9  ;;  %v2875_v34 = vadd.f32 %v2874_v31, %v2873_v24  ;;  %v2762_v44 = vmax.f32 %v9695_v59, 0.0 }
 0x21b   : > { %v2876_v7 = vsel %vm508_vm1, %v2759_v23, 0.0  ;;  %v2878_v56 = vsel %vm508_vm1, %v2760_v26, 0.0  ;;  %v2506_v9 = vmul.f32 %v9595_v47, %v9192_v39  ;;  %v2507_v36 = vmul.f32 %v9595_v47, %v9308_v57 }
 0x21c   : > { %v2508_v42 = vmul.f32 %v9595_v47, %v12718_v16  ;;  %v2877_v27 = vadd.f32 %v2876_v7, %v2875_v34  ;;  %v2623_v32 = vsel %vm1436_vm4, %v2621_v28, %v2622_v3  ;;  %v2626_v22 = vrot.slane %v2504_v63, 2  ;;  %v12719_v63 = vld [vmem:[#allocation106_spill] sm:$0xff] }
 0x21d   : > { %v2627_v58 = vrot.slane %v2505_v29, 2  ;;  %v2695_v37 = vadd.f32 %v2618_v2, %v9572_v4  ;;  %v2625_v62 = vsel %vm1436_vm4, %v2622_v3, %v2624_v41  ;;  %v2696_v31 = vadd.f32 %v2620_v33, %v9575_v11  ;;  %v12720_v11 = vld [vmem:[#allocation68_spill] sm:$0xff]  ;;  %v12721_v2 = vld [vmem:[#allocation70_spill] sm:$0xff] }
 0x21e   : > { %v9740_v24 = vadd.f32 %v9616_v48, %v2694_v49  ;;  %v2879_v39 = vadd.f32 %v2878_v56, %v2877_v27  ;;  %v2763_v57 = vmax.f32 %v9716_v52, 0.0  ;;  %v2764_v51 = vmax.f32 %v9719_v10, 0.0  ;;  %v12722_v27 = vld [vmem:[#allocation78_spill] sm:$0xff] }
 0x21f   : > { %v2880_v28 = vsel %vm508_vm1, %v2761_v53, 0.0  ;;  %v2882_v4 = vsel %vm508_vm1, %v2762_v44, 0.0  ;;  %v2509_v29 = vmul.f32 %v9595_v47, %v12719_v63  ;;  %v2510_v3 = vmul.f32 %v9595_v47, %v12720_v11 }
 0x220   : > { %v2629_v43 = vrot.slane %v2506_v9, 2  ;;  %v2881_v61 = vadd.f32 %v2880_v28, %v2879_v39  ;;  %v2511_v13 = vmul.f32 %v9595_v47, %v12721_v2  ;;  %v2631_v15 = vrot.slane %v2507_v36, 2 }
 0x221   : > { %v2697_v33 = vadd.f32 %v2623_v32, %v9578_v54  ;;  %v9758_v41 = vadd.f32 %v9616_v48, %v2695_v37  ;;  %v2628_v49 = vsel %vm1436_vm4, %v2626_v22, %v2627_v58  ;;  %v2632_v34 = vrot.slane %v2508_v42, 2  ;;  %v12723_v37 = vld [vmem:[#allocation102_spill] sm:$0xff] }
 0x222   : > { %v2698_v7 = vadd.f32 %v2625_v62, %v9581_v12  ;;  %v2883_v56 = vadd.f32 %v2882_v4, %v2881_v61  ;;  %v9763_v16 = vadd.f32 %v9616_v48, %v2696_v31  ;;  %v2765_v9 = vmax.f32 %v9740_v24, 0.0 }
 0x223   : > { %v2884_v36 = vsel %vm508_vm1, %v2763_v57, 0.0  ;;  %v2886_v54 = vsel %vm508_vm1, %v2764_v51, 0.0  ;;  %v2512_v32 = vmul.f32 %v9595_v47, %v12722_v27  ;;  %v2630_v42 = vsel %vm1436_vm4, %v2627_v58, %v2629_v43 }
 0x224   : > { %v2634_v12 = vrot.slane %v2509_v29, 2  ;;  %v2885_v22 = vadd.f32 %v2884_v36, %v2883_v56  ;;  %v2456_v62 = vadd.f32 %v9554_v30, %v12723_v37  ;;  %v2699_v31 = vadd.f32 %v2628_v49, %v9584_v18  ;;  %v12724_v18 = vld [vmem:[#allocation87_spill] sm:$0xff] }
 0x225   : > { %v9779_v39 = vadd.f32 %v9616_v48, %v2697_v33  ;;  %v2766_v28 = vmax.f32 %v9758_v41, 0.0  ;;  %v2633_v4 = vsel %vm1436_vm4, %v2631_v15, %v2632_v34  ;;  %v2636_v63 = vrot.slane %v2510_v3, 2  ;;  %v12726_v56 = vld [vmem:[#allocation103_spill] sm:$0xff] }
 0x226   : > { %v2637_v11 = vrot.slane %v2511_v13, 2  ;;  %v2887_v61 = vadd.f32 %v2886_v54, %v2885_v22  ;;  %v2700_v47 = vadd.f32 %v2630_v42, %v9587_v21  ;;  %v9785_v58 = vadd.f32 %v9616_v48, %v2698_v7  ;;  %v12725_v7 = vld [vmem:[#allocation108_spill] sm:$0xff]  ;;  %v12727_v54 = vld [vmem:[#allocation86_spill] sm:$0xff] }
 0x227   : > { %v2767_v29 = vmax.f32 %v9763_v16, 0.0  ;;  %v2888_v30 = vsel %vm508_vm1, %v2765_v9, 0.0  ;;  %v2457_v43 = vadd.f32 %v9559_v19, %v12724_v18  ;;  %v2635_v2 = vsel %vm1436_vm4, %v2632_v34, %v2634_v12 }
 0x228   : > { %v2639_v15 = vrot.slane %v2512_v32, 2  ;;  %v2889_v3 = vadd.f32 %v2888_v30, %v2887_v61  ;;  %v2701_v13 = vadd.f32 %v2633_v4, %v9590_v5  ;;  %v9796_v21 = vadd.f32 %v9616_v48, %v2699_v31 }
 0x229   : > { %v2768_v33 = vmax.f32 %v9779_v39, 0.0  ;;  %v2890_v49 = vsel %vm508_vm1, %v2766_v28, 0.0  ;;  %v2835_v36 = vadd.f32 %v12726_v56, %v12725_v7  ;;  %v2458_v19 = vadd.f32 %v9562_v45, %v12727_v54 }
 0x22a   : > { %v2638_v34 = vsel %vm1436_vm4, %v2636_v63, %v2637_v11  ;;  %v2891_v27 = vadd.f32 %v2890_v49, %v2889_v3  ;;  %v2702_v32 = vadd.f32 %v2635_v2, %v2456_v62  ;;  %v9808_v5 = vadd.f32 %v9616_v48, %v2700_v47  ;;  %v12728_v63 = vld [vmem:[#allocation105_spill] sm:$0xff] }
 0x22b   : > { %v12432_v42 = vmax.f32 %v9785_v58, 0.0  ;;  %v2892_v12 = vsel %vm508_vm1, %v2767_v29, 0.0  ;;  %v2640_v22 = vsel %vm1436_vm4, %v2637_v11, %v2639_v15  ;;  %v2703_v31 = vadd.f32 %v2638_v34, %v2457_v43  ;;  %v12729_v15 = vld [vmem:[#allocation65_spill] sm:$0xff] }
 0x22c   : > { %v2893_v37 = vadd.f32 %v2892_v12, %v2891_v27  ;;  %v9816_v4 = vadd.f32 %v9616_v48, %v2701_v13  ;;  %v12431_v45 = vmax.f32 %v9796_v21, 0.0  ;;  %v2894_v62 = vsel %vm508_vm1, %v2768_v33, 0.0 }
 0x22d   : > { %v2837_v61 = vadd.f32 %v12728_v63, %v2835_v36  ;;  %v2704_v30 = vadd.f32 %v2640_v22, %v2458_v19  ;;  %v9824_v18 = vadd.f32 %v9616_v48, %v2702_v32  ;;  %v12430_v11 = vmax.f32 %v9808_v5, 0.0 }
 0x22e   : > { %v2895_v47 = vadd.f32 %v2894_v62, %v2893_v37  ;;  %v2896_v43 = vsel %vm508_vm1, %v12432_v42, 0.0  ;;  %v2838_v3 = vsel %vm508_vm1, %v12729_v15, 0.0  ;;  %v9833_v13 = vadd.f32 %v9616_v48, %v2703_v31  ;;  %v10172_v42 = vld [vmem:[%s7531_s20 + $0x78] sm:$0xff] }
 0x22f   : > { %v12427_v49 = vmax.f32 %v9816_v4, 0.0  ;;  %v2898_v7 = vsel %vm508_vm1, %v12431_v45, 0.0  ;;  %v2839_v56 = vadd.f32 %v2838_v3, %v2837_v61  ;;  %v9840_v54 = vadd.f32 %v9616_v48, %v2704_v30  ;;  %v10154_v45 = vld [vmem:[%s7531_s20 + $0x68] sm:$0xff]  ;;  %12781 = vst [vmem:[#allocation50_spill] sm:$0xff] %v10172_v42 }
 0x230   : > { %v2897_v2 = vadd.f32 %v2896_v43, %v2895_v47  ;;  %v12426_v19 = vmax.f32 %v9824_v18, 0.0  ;;  %v2900_v34 = vsel %vm508_vm1, %v12430_v11, 0.0  ;;  %v12429_v32 = vmax.f32 %v9833_v13, 0.0 }
 0x231   : > { %v2902_v12 = vsel %vm508_vm1, %v12427_v49, 0.0  ;;  %v2840_v22 = vrot.slane %v2839_v56, 4  ;;  %v12428_v31 = vmax.f32 %v9840_v54, 0.0  ;;  %v12791_v39 = vmax.f32 %v9808_v5, 0.0 }
 0x232   : > { %v2899_v36 = vadd.f32 %v2898_v7, %v2897_v2  ;;  %v2904_v48 = vsel %vm508_vm1, %v12426_v19, 0.0  ;;  %v2906_v63 = vsel %vm508_vm1, %v12429_v32, 0.0  ;;  %v12768_v32 = vld [vmem:[#allocation19_spill] sm:$0xff]  ;;  %v12795_v5 = vmax.f32 %v9840_v54, 0.0 }
 0x233   : > { %v2841_v61 = vadd.f32 %v2840_v22, %v2839_v56  ;;  %v2908_v30 = vsel %vm508_vm1, %v12428_v31, 0.0  ;;  %v7358_v56 = vld [vmem:[%s12309_s6] sm:$0xff]  ;;  %v12730_v22 = vmov 0.0  }
 0x234   : > { %v2901_v27 = vadd.f32 %v2900_v34, %v2899_v36  ;;  %3914 = vst.msk [vmem:[#allocation3] sm:$0xff] %vm3074_vm7, %v12730_v22  ;;  %3915 = vst.msk [vmem:[#allocation3 + $0x8] sm:$0xff] %vm3074_vm7, %v12730_v22 }
 0x235   : > { %v2842_v2 = vrot.slane %v2841_v61, 2  ;;  %3918 = vst.msk [vmem:[#allocation3 + $0x18] sm:$0xff] %vm3074_vm7, %v12730_v22  ;;  %3919 = vst.msk [vmem:[#allocation3 + $0x20] sm:$0xff] %vm3074_vm7, %v12730_v22 }
 0x236   : > { %v2903_v37 = vadd.f32 %v2902_v12, %v2901_v27  ;;  %3921 = vst.msk [vmem:[#allocation3 + $0x30] sm:$0xff] %vm3074_vm7, %v12730_v22  ;;  %3922 = vst.msk [vmem:[#allocation3 + $0x38] sm:$0xff] %vm3074_vm7, %v12730_v22 }
 0x237   : > { %v2843_v36 = vadd.f32 %v2842_v2, %v2841_v61  ;;  %3924 = vst.msk [vmem:[#allocation3 + $0x48] sm:$0xff] %vm3074_vm7, %v12730_v22  ;;  %3925 = vst.msk [vmem:[#allocation3 + $0x50] sm:$0xff] %vm3074_vm7, %v12730_v22 }
 0x238   : > { %v2905_v62 = vadd.f32 %v2904_v48, %v2903_v37  ;;  %3927 = vst.msk [vmem:[#allocation3 + $0x60] sm:$0xff] %vm3074_vm7, %v12730_v22  ;;  %3928 = vst.msk [vmem:[#allocation3 + $0x68] sm:$0xff] %vm3074_vm7, %v12730_v22 }
 0x239   : > { %v2844_v19 = vrot.slane %v2843_v36, 1  ;;  %3930 = vst.msk [vmem:[#allocation3 + $0x78] sm:$0xff] %vm3074_vm7, %v12730_v22  ;;  %3931 = vst.msk [vmem:[#allocation3 + $0x80] sm:$0xff] %vm3074_vm7, %v12730_v22 }
 0x23a   : > { %v2907_v47 = vadd.f32 %v2906_v63, %v2905_v62  ;;  %3933 = vst.msk [vmem:[#allocation3 + $0x90] sm:$0xff] %vm3074_vm7, %v12730_v22  ;;  %3934 = vst.msk [vmem:[#allocation3 + $0x98] sm:$0xff] %vm3074_vm7, %v12730_v22 }
 0x23b   : > { %v2845_v49 = vadd.f32 %v2844_v19, %v2843_v36  ;;  %v3072_v19 = vld [vmem:[%s12311_s8] sm:$0x3]  ;;  %3936 = vst.msk [vmem:[#allocation3 + $0xa8] sm:$0xff] %vm3074_vm7, %v12730_v22  ;;  %3937 = vst.msk [vmem:[#allocation3 + $0xb0] sm:$0xff] %vm3074_vm7, %v12730_v22 }
 0x23c   : > { %v2909_v43 = vadd.f32 %v2908_v30, %v2907_v47  ;;  %3939 = vst.msk [vmem:[#allocation3 + $0xc0] sm:$0xff] %vm3074_vm7, %v12730_v22  ;;  %3940 = vst.msk [vmem:[#allocation3 + $0xc8] sm:$0xff] %vm3074_vm7, %v12730_v22  ;;  %v3069_v47 = vld [vmem:[%s12310_s7] sm:$0x1] }
 0x23d   : > { %v2846_v62 = vmul.f32 0.00390625, %v2845_v49  ;;  %3942 = vst.msk [vmem:[#allocation3 + $0xd8] sm:$0xff] %vm3074_vm7, %v12730_v22  ;;  %3943 = vst.msk [vmem:[#allocation3 + $0xe0] sm:$0xff] %vm3074_vm7, %v12730_v22 }
 0x23e   : > { %v2910_v3 = vrot.slane %v2909_v43, 4  ;;  %3945 = vst.msk [vmem:[#allocation3 + $0xf0] sm:$0xff] %vm3074_vm7, %v12730_v22  ;;  %3946 = vst.msk [vmem:[#allocation3 + $0xf8] sm:$0xff] %vm3074_vm7, %v12730_v22 }
 0x23f   : > { %3948 = vst.msk [vmem:[#allocation3 + $0x108] sm:$0xff] %vm3074_vm7, %v12730_v22  ;;  %3949 = vst.msk [vmem:[#allocation3 + $0x110] sm:$0xff] %vm3074_vm7, %v12730_v22 }
 0x240   : > { %v2911_v7 = vadd.f32 %v2910_v3, %v2909_v43  ;;  %3951 = vst.msk [vmem:[#allocation3 + $0x120] sm:$0xff] %vm3074_vm7, %v12730_v22  ;;  %3952 = vst.msk [vmem:[#allocation3 + $0x128] sm:$0xff] %vm3074_vm7, %v12730_v22 }
 0x241   : > { %3954 = vst.msk [vmem:[#allocation3 + $0x138] sm:$0xff] %vm3074_vm7, %v12730_v22  ;;  %3955 = vst.msk [vmem:[#allocation3 + $0x140] sm:$0xff] %vm3074_vm7, %v12730_v22 }
 0x242   : > { %v2912_v34 = vrot.slane %v2911_v7, 2  ;;  %3957 = vst.msk [vmem:[#allocation3 + $0x150] sm:$0xff] %vm3074_vm7, %v12730_v22  ;;  %3958 = vst.msk [vmem:[#allocation3 + $0x158] sm:$0xff] %vm3074_vm7, %v12730_v22 }
 0x243   : > { %3960 = vst.msk [vmem:[#allocation3 + $0x168] sm:$0xff] %vm3074_vm7, %v12730_v22  ;;  %3961 = vst.msk [vmem:[#allocation3 + $0x170] sm:$0xff] %vm3074_vm7, %v12730_v22 }
 0x244   : > { %v2913_v27 = vadd.f32 %v2912_v34, %v2911_v7  ;;  %3963 = vst.msk [vmem:[#allocation3 + $0x180] sm:$0xff] %vm3074_vm7, %v12730_v22  ;;  %3964 = vst.msk [vmem:[#allocation3 + $0x188] sm:$0xff] %vm3074_vm7, %v12730_v22  ;;  %v3226_v7 = vld [vmem:[%s12313_s10] sm:$0xff]  ;;  %v3154_v34 = vlaneseq }
 0x245   : > { %3966 = vst.msk [vmem:[#allocation3 + $0x198] sm:$0xff] %vm3074_vm7, %v12730_v22  ;;  %3967 = vst.msk [vmem:[#allocation3 + $0x1a0] sm:$0xff] %vm3074_vm7, %v12730_v22  ;;  %v3558_v36 = vrot.slane %v3226_v7, 4 }
 0x246   : > { %v2914_v12 = vrot.slane %v2913_v27, 1  ;;  %3920 = vst.msk [vmem:[#allocation3 + $0x28] sm:$0x3] %vm3916_vm8, %v12730_v22  ;;  %3917 = vst.msk [vmem:[#allocation3 + $0x10] sm:$0x3] %vm3916_vm8, %v12730_v22 }
 0x247   : > { %7178 = vmatprep.subr.msk.mxu0 %vm605_vm0, %v3558_v36  ;;  %3923 = vst.msk [vmem:[#allocation3 + $0x40] sm:$0x3] %vm3916_vm8, %v12730_v22  ;;  %3926 = vst.msk [vmem:[#allocation3 + $0x58] sm:$0x3] %vm3916_vm8, %v12730_v22 }
 0x248   : > { %v2915_v37 = vadd.f32 %v2914_v12, %v2913_v27  ;;  %7179 = vmatpush3.msk.msra.mxu0 %vm605_vm0, %v3558_v36  ;;  %v3073_v27 = vld [vmem:[%s12312_s9] sm:$0x1]  ;;  %v3155_v12 = vshrl.u32 %v3154_v34, 7  ;;  %v12735_v34 = vld [vmem:[#allocation9_spill] sm:$0xff]  ;;  %3929 = vst.msk [vmem:[#allocation3 + $0x70] sm:$0x3] %vm3916_vm8, %v12730_v22 }
 0x249   : > { %3932 = vst.msk [vmem:[#allocation3 + $0x88] sm:$0x3] %vm3916_vm8, %v12730_v22  ;;  %3935 = vst.msk [vmem:[#allocation3 + $0xa0] sm:$0x3] %vm3916_vm8, %v12730_v22 }
 0x24a   : > { %v2916_v48 = vmul.f32 0.00390625, %v2915_v37  ;;  %3938 = vst.msk [vmem:[#allocation3 + $0xb8] sm:$0x3] %vm3916_vm8, %v12730_v22  ;;  %3941 = vst.msk [vmem:[#allocation3 + $0xd0] sm:$0x3] %vm3916_vm8, %v12730_v22 }
 0x24b   : > { %3944 = vst.msk [vmem:[#allocation3 + $0xe8] sm:$0x3] %vm3916_vm8, %v12730_v22  ;;  %3947 = vst.msk [vmem:[#allocation3 + $0x100] sm:$0x3] %vm3916_vm8, %v12730_v22 }
 0x24c   : > { %7116 = vmatmul.mubr.msk.f32.vlgmr.msra.gmra.mxu1 %vm508_vm1, %v2916_v48  ;;  %3950 = vst.msk [vmem:[#allocation3 + $0x118] sm:$0x3] %vm3916_vm8, %v12730_v22  ;;  %3953 = vst.msk [vmem:[#allocation3 + $0x130] sm:$0x3] %vm3916_vm8, %v12730_v22 }
 0x24d   : > { %7119 = vmatpush3.msk.msra.mxu1 %vm605_vm0, %v7358_v56  ;;  %7120 = vmatprep.mubr.msk.f32.mxu1 %vm7430_vm5, %v12730_v22  ;;  %3956 = vst.msk [vmem:[#allocation3 + $0x148] sm:$0x3] %vm3916_vm8, %v12730_v22  ;;  %3959 = vst.msk [vmem:[#allocation3 + $0x160] sm:$0x3] %vm3916_vm8, %v12730_v22 }
 0x24e   : > { %7123 = vmatprep.subr.mxu1 %v12730_v22  ;;  %3962 = vst.msk [vmem:[#allocation3 + $0x178] sm:$0x3] %vm3916_vm8, %v12730_v22  ;;  %3965 = vst.msk [vmem:[#allocation3 + $0x190] sm:$0x3] %vm3916_vm8, %v12730_v22 }
 0x24f   : > { %3968 = vst.msk [vmem:[#allocation3 + $0x1a8] sm:$0x3] %vm3916_vm8, %v12730_v22 }
 0x250   : > { %7121 = vmatmul.mubr.msk.f32.vlgmr.msra.gmra.mxu1 %vm508_vm1, %v2846_v62 }
 0x251   : > { %7125 = vmatprep.mubr.msk.f32.mxu1 %vm7430_vm5, %v12730_v22  ;;  %7124 = vmatpush3.msk.msra.mxu1 %vm3078_vm6, %v3072_v19  ;;  %v3156_v19 = vsub.s32 0, %v3155_v12  ;;  %v12736_v12 = vld [vmem:[#allocation8_spill] sm:$0xff] }
 0x252   : > { %7128 = vmatprep.subr.msk.mxu1 %vm605_vm0, %v3226_v7 }
 0x30c   : > { %v2990_v49 = vpop.f32.mrf.mxu1 }
 0x30e   : > { %v7117_v63 = vpop.f32.mrf.mxu1 }
 0x310   : > { %v3065_v61 = vpop.f32.mrf.mxu1 }
 0x311   : > { %v3066_v30 = vadd.f32 %v3065_v61, %v2990_v49  ;;  %v12731_v61 = vld [vmem:[#allocation5_spill] sm:$0xff] }
 0x312   : > { %v7122_v43 = vpop.f32.mrf.mxu1 }
 0x313   : > { %v3070_v2 = vadd.f32 %v3069_v47, %v3066_v30  ;;  %v12732_v30 = vld [vmem:[#allocation4_spill] sm:$0xff] }
 0x315   : > { %v3071_v3 = vmax.f32 %v3070_v2, 0.0  ;;  %v12733_v2 = vld [vmem:[#allocation7_spill] sm:$0xff] }
 0x317   : > { %7126 = vmatmul.mubr.msk.f32.vlgmr.msra.gmra.mxu1 %vm3074_vm7, %v3071_v3 }
 0x318   : > { %7129 = vmatpush3.msk.msra.mxu1 %vm605_vm0, %v3226_v7  ;;  %v12734_v7 = vld [vmem:[#allocation6_spill] sm:$0xff] }
 0x3d7   : > { %v3148_v37 = vpop.f32.mrf.mxu1 }
 0x3d8   : > { %v3149_v48 = vadd.f32 %v3148_v37, %v3073_v27 }
 0x3d9   : > { %v7127_v56 = vpop.f32.mrf.mxu1 }
 0x3da   : > { %v3152_v62 = vmax.f32 %v3149_v48, 0.0  ;;  %v12737_v48 = vld [vmem:[#allocation11_spill] sm:$0xff] }
 0x3dc   : > { %v3153_v49 = vmin.f32 %v3152_v62, 1.0  ;;  %v12738_v62 = vld [vmem:[#allocation10_spill] sm:$0xff] }
 0x3de   : > { %v9961_v63 = vrot.slane %v3153_v49, %v3156_v19  ;;  %v12739_v49 = vld [vmem:[#allocation13_spill] sm:$0xff] }
 0x3e0   : > { %v3158_v47 = vmul.f32 %v9961_v63, %v12731_v61  ;;  %v3159_v43 = vmul.f32 %v9961_v63, %v12732_v30  ;;  %3191 = vrot.lane.b32.xlu0 %v9961_v63, %s7431_s27  ;;  %v3160_v3 = vmul.f32 %v9961_v63, %v12733_v2  ;;  %v3161_v36 = vmul.f32 %v9961_v63, %v12734_v7 }
 0x3e1   : > { %v3162_v27 = vmul.f32 %v9961_v63, %v12735_v34  ;;  %v3163_v37 = vmul.f32 %v9961_v63, %v12736_v12  ;;  %v3164_v56 = vmul.f32 %v9961_v63, %v12737_v48  ;;  %v3165_v19 = vmul.f32 %v9961_v63, %v12738_v62 }
 0x3e2   : > { %7130 = vmatprep.mubr.msk.f32.mxu1 %vm508_vm1, %v3158_v47  ;;  %v3166_v61 = vmul.f32 %v9961_v63, %v12739_v49  ;;  %v12740_v47 = vld [vmem:[#allocation12_spill] sm:$0xff] }
 0x3e3   : > { %7131 = vmatmul.mubr.msk.f32.vlgmr.msra.gmra.mxu1 %vm508_vm1, %v3159_v43  ;;  %v3167_v30 = vmul.f32 %v9961_v63, %v12740_v47  ;;  %v12741_v43 = vld [vmem:[#allocation15_spill] sm:$0xff] }
 0x3e4   : > { %7133 = vmatprep.mubr.msk.f32.mxu1 %vm508_vm1, %v3160_v3  ;;  %v3168_v2 = vmul.f32 %v9961_v63, %v12741_v43  ;;  %v12742_v3 = vld [vmem:[#allocation14_spill] sm:$0xff] }
 0x3e5   : > { %v3169_v7 = vmul.f32 %v9961_v63, %v12742_v3 }
 0x3e7   : > { %7134 = vmatmul.mubr.msk.f32.gmra.mxu1 %vm508_vm1, %v3161_v36  ;;  %v12743_v36 = vld [vmem:[#allocation23_spill] sm:$0xff] }
 0x3e8   : > { %7136 = vmatprep.mubr.msk.f32.mxu1 %vm508_vm1, %v3162_v27  ;;  %v3170_v34 = vmul.f32 %v9961_v63, %v12743_v36  ;;  %v12744_v27 = vld [vmem:[#allocation22_spill] sm:$0xff] }
 0x3e9   : > { %v3171_v12 = vmul.f32 %v9961_v63, %v12744_v27 }
 0x3eb   : > { %7137 = vmatmul.mubr.msk.f32.gmra.mxu1 %vm508_vm1, %v3163_v37  ;;  %v12745_v37 = vld [vmem:[#allocation25_spill] sm:$0xff] }
 0x3ec   : > { %7139 = vmatprep.mubr.msk.f32.mxu1 %vm508_vm1, %v3164_v56  ;;  %v3172_v48 = vmul.f32 %v9961_v63, %v12745_v37  ;;  %v12746_v56 = vld [vmem:[#allocation24_spill] sm:$0xff] }
 0x3ed   : > { %v3173_v62 = vmul.f32 %v9961_v63, %v12746_v56 }
 0x3ef   : > { %7140 = vmatmul.mubr.msk.f32.gmra.mxu1 %vm508_vm1, %v3165_v19  ;;  %v12747_v19 = vld [vmem:[#allocation34_spill] sm:$0xff] }
 0x3f0   : > { %7142 = vmatprep.mubr.msk.f32.mxu1 %vm508_vm1, %v3166_v61  ;;  %v3174_v49 = vmul.f32 %v9961_v63, %v12747_v19  ;;  %v12748_v61 = vld [vmem:[#allocation26_spill] sm:$0xff] }
 0x3f1   : > { %v3175_v47 = vmul.f32 %v9961_v63, %v12748_v61 }
 0x3f3   : > { %7143 = vmatmul.mubr.msk.f32.gmra.mxu1 %vm508_vm1, %v3167_v30  ;;  %v12749_v30 = vld [vmem:[#allocation38_spill] sm:$0xff] }
 0x3f4   : > { %7145 = vmatprep.mubr.msk.f32.mxu1 %vm508_vm1, %v3168_v2  ;;  %v3176_v43 = vmul.f32 %v9961_v63, %v12749_v30  ;;  %v12750_v2 = vld [vmem:[#allocation36_spill] sm:$0xff] }
 0x3f5   : > { %v3177_v3 = vmul.f32 %v9961_v63, %v12750_v2 }
 0x3f7   : > { %7146 = vmatmul.mubr.msk.f32.gmra.mxu1 %vm508_vm1, %v3169_v7  ;;  %v12751_v7 = vld [vmem:[#allocation35_spill] sm:$0xff] }
 0x3f8   : > { %7148 = vmatprep.mubr.msk.f32.mxu1 %vm508_vm1, %v3170_v34  ;;  %v3178_v36 = vmul.f32 %v9961_v63, %v12751_v7  ;;  %v12752_v34 = vld [vmem:[#allocation33_spill] sm:$0xff] }
 0x3f9   : > { %v3179_v27 = vmul.f32 %v9961_v63, %v12752_v34 }
 0x3fb   : > { %7149 = vmatmul.mubr.msk.f32.gmra.mxu1 %vm508_vm1, %v3171_v12  ;;  %v12753_v12 = vld [vmem:[#allocation39_spill] sm:$0xff] }
 0x3fc   : > { %7151 = vmatprep.mubr.msk.f32.mxu1 %vm508_vm1, %v3172_v48  ;;  %v3180_v37 = vmul.f32 %v9961_v63, %v12753_v12  ;;  %v12754_v48 = vld [vmem:[#allocation37_spill] sm:$0xff] }
 0x3fd   : > { %v3181_v56 = vmul.f32 %v9961_v63, %v12754_v48  ;;  %v10061_v48 = vld [vmem:[%s7531_s20 + $0x8] sm:$0xff] }
 0x3fe   : > { %5825 = vrot.lane.b32.xlu1 %v10061_v48, %s7432_s28 }
 0x3ff   : > { %7152 = vmatmul.mubr.msk.f32.gmra.mxu1 %vm508_vm1, %v3173_v62  ;;  %v12755_v62 = vld [vmem:[#allocation41_spill] sm:$0xff] }
 0x400   : > { %7154 = vmatprep.mubr.msk.f32.mxu1 %vm508_vm1, %v3174_v49  ;;  %v3182_v19 = vmul.f32 %v9961_v63, %v12755_v62  ;;  %v12756_v49 = vld [vmem:[#allocation40_spill] sm:$0xff]  ;;  %v10071_v62 = vld [vmem:[%s7531_s20 + $0x10] sm:$0xff] }
 0x401   : > { %v3183_v61 = vmul.f32 %v9961_v63, %v12756_v49  ;;  %v10091_v49 = vld [vmem:[%s7531_s20 + $0x30] sm:$0xff] }
 0x402   : > { %5827 = vrot.lane.b32.xlu1 %v10071_v62, %s7432_s28 }
 0x403   : > { %7155 = vmatmul.mubr.msk.f32.gmra.mxu1 %vm508_vm1, %v3175_v47  ;;  %v12757_v47 = vld [vmem:[#allocation62_spill] sm:$0xff] }
 0x404   : > { %7157 = vmatprep.mubr.msk.f32.mxu1 %vm508_vm1, %v3176_v43  ;;  %v3184_v30 = vmul.f32 %v9961_v63, %v12757_v47  ;;  %v12758_v43 = vld [vmem:[#allocation61_spill] sm:$0xff]  ;;  %v10101_v47 = vld [vmem:[%s7531_s20 + $0x40] sm:$0xff] }
 0x405   : > { %v3185_v2 = vmul.f32 %v9961_v63, %v12758_v43 }
 0x407   : > { %7158 = vmatmul.mubr.msk.f32.gmra.mxu1 %vm508_vm1, %v3177_v3  ;;  %v12759_v3 = vld [vmem:[#allocation64_spill] sm:$0xff] }
 0x408   : > { %7160 = vmatprep.mubr.msk.f32.mxu1 %vm508_vm1, %v3178_v36  ;;  %v3186_v7 = vmul.f32 %v9961_v63, %v12759_v3  ;;  %v12760_v36 = vld [vmem:[#allocation63_spill] sm:$0xff] }
 0x409   : > { %v3187_v34 = vmul.f32 %v9961_v63, %v12760_v36  ;;  %v12764_v36 = vld [vmem:[#allocation17_spill] sm:$0xff] }
 0x40b   : > { %7161 = vmatmul.mubr.msk.f32.gmra.mxu1 %vm508_vm1, %v3179_v27  ;;  %v12761_v27 = vld [vmem:[#allocation66_spill] sm:$0xff] }
 0x40c   : > { %7163 = vmatprep.mubr.msk.f32.mxu1 %vm508_vm1, %v3180_v37  ;;  %v3188_v12 = vmul.f32 %v9961_v63, %v12761_v27  ;;  %v3189_v37 = vmul.f32 %v9961_v63, %v12729_v15  ;;  %v10076_v15 = vld [vmem:[%s7531_s20 + $0x18] sm:$0xff]  ;;  %v10081_v63 = vld [vmem:[%s7531_s20 + $0x20] sm:$0xff] }
 0x40d   : > { %5831 = vrot.lane.b32.xlu1 %v10081_v63, %s7432_s28 }
 0x40f   : > { %7164 = vmatmul.mubr.msk.f32.gmra.mxu1 %vm508_vm1, %v3181_v56  ;;  %v10066_v56 = vld [vmem:[%s7531_s20] sm:$0xff] }
 0x410   : > { %7166 = vmatprep.mubr.msk.f32.mxu1 %vm508_vm1, %v3182_v19  ;;  %5823 = vrot.lane.b32.xlu0 %v10066_v56, %s7432_s28  ;;  %v10086_v19 = vld [vmem:[%s7531_s20 + $0x28] sm:$0xff] }
 0x411   : > { %5835 = vrot.lane.b32.xlu1 %v10091_v49, %s7432_s28 }
 0x413   : > { %7167 = vmatmul.mubr.msk.f32.gmra.mxu1 %vm508_vm1, %v3183_v61  ;;  %v10096_v61 = vld [vmem:[%s7531_s20 + $0x38] sm:$0xff] }
 0x414   : > { %7169 = vmatprep.mubr.msk.f32.mxu1 %vm508_vm1, %v3184_v30  ;;  %5829 = vrot.lane.b32.xlu0 %v10076_v15, %s7432_s28  ;;  %v10106_v30 = vld [vmem:[%s7531_s20 + $0x48] sm:$0xff] }
 0x415   : > { %5839 = vrot.lane.b32.xlu1 %v10101_v47, %s7432_s28 }
 0x417   : > { %7170 = vmatmul.mubr.msk.f32.gmra.mxu1 %vm508_vm1, %v3185_v2  ;;  %v12762_v2 = vld [vmem:[#allocation16_spill] sm:$0xff] }
 0x418   : > { %7172 = vmatprep.mubr.msk.f32.mxu1 %vm508_vm1, %v3186_v7  ;;  %5833 = vrot.lane.b32.xlu0 %v10086_v19, %s7432_s28  ;;  %v12763_v3 = vmax.f32 %v12762_v2, 0.0  ;;  %v12769_v2 = vmax.f32 %v12768_v32, 0.0  ;;  %v12772_v32 = vld [vmem:[#allocation21_spill] sm:$0xff] }
 0x41b   : > { %7173 = vmatmul.mubr.msk.f32.gmra.mxu1 %vm508_vm1, %v3187_v34  ;;  %v12765_v34 = vmax.f32 %v12764_v36, 0.0 }
 0x41c   : > { %7175 = vmatprep.mubr.msk.f32.mxu1 %vm508_vm1, %v3188_v12  ;;  %5837 = vrot.lane.b32.xlu0 %v10096_v61, %s7432_s28  ;;  %v12766_v12 = vld [vmem:[#allocation18_spill] sm:$0xff] }
 0x41f   : > { %7176 = vmatmul.mubr.msk.f32.gmra.mxu1 %vm508_vm1, %v3189_v37  ;;  %v12767_v37 = vmax.f32 %v12766_v12, 0.0  ;;  %v10136_v12 = vld [vmem:[%s7531_s20 + $0x58] sm:$0xff] }
 0x420   : > { %5841 = vrot.lane.b32.xlu0 %v10106_v30, %s7432_s28 }
 0x424   : > { %5845 = vrot.lane.b32.xlu0 %v10136_v12, %s7432_s28 }
 0x428   : > { %5849 = vrot.lane.b32.xlu0 %v10154_v45, %s7432_s28 }
 0x42c   : > { %5853 = vrot.lane.b32.xlu0 %v10172_v42, %s7432_s28 }
 0x452   : > { %v10110_v43 = vpop.permute.xlu0 %3191 }
 0x453   : > { %v3194_v7 = vmul.f32 %v10110_v43, %v12763_v3  ;;  %v3195_v27 = vmul.f32 %v10110_v43, %v12765_v34  ;;  %v3196_v31 = vmul.f32 %v10110_v43, %v12767_v37  ;;  %v3197_v11 = vmul.f32 %v10110_v43, %v12769_v2  ;;  %v10128_v3 = vld [vmem:[%s7531_s20 + $0x50] sm:$0xff]  ;;  %v10146_v37 = vld [vmem:[%s7531_s20 + $0x60] sm:$0xff]  ;;  %v12775_v2 = vld [vmem:[#allocation27_spill] sm:$0xff] }
 0x454   : > { %5843 = vrot.lane.b32.xlu1 %v10128_v3, %s7432_s28  ;;  %12774 = vst [vmem:[#allocation71_spill] sm:$0xff] %v10146_v37  ;;  %v3205_v40 = vmul.f32 %v10110_v43, %v2755_v8  ;;  %v3207_v38 = vmul.f32 %v10110_v43, %v2757_v6  ;;  %v10225_v8 = vld [vmem:[%s7531_s20 + $0xa0] sm:$0xff]  ;;  %v3208_v46 = vmul.f32 %v10110_v43, %v2758_v14  ;;  %v7381_v6 = vld [vmem:[%s7531_s20 + $0xb0] sm:$0xff]  ;;  %v7382_v14 = vld [vmem:[%s7531_s20 + $0xb8] sm:$0xff] }
 0x455   : > { %7180 = vmatprep.mubr.msk.f32.mxu0 %vm508_vm1, %v3194_v7  ;;  %v12770_v7 = vld [vmem:[#allocation20_spill] sm:$0xff]  ;;  %12787 = vst [vmem:[#allocation91_spill] sm:$0xff] %v10225_v8  ;;  %v3209_v25 = vmul.f32 %v10110_v43, %v2759_v23  ;;  %v3210_v55 = vmul.f32 %v10110_v43, %v2760_v26  ;;  %v3211_v17 = vmul.f32 %v10110_v43, %v2761_v53  ;;  %v7384_v26 = vld [vmem:[%s7531_s20 + $0xc8] sm:$0xff]  ;;  %v7385_v53 = vld [vmem:[%s7531_s20 + $0xd0] sm:$0xff] }
 0x456   : > { %7181 = vmatmul.mubr.msk.f32.vlgmr.msra.gmra.mxu0 %vm508_vm1, %v3195_v27  ;;  %v12771_v36 = vmax.f32 %v12770_v7, 0.0  ;;  %v12776_v7 = vmax.f32 %v12775_v2, 0.0  ;;  %v12780_v2 = vmax.f32 %v12700_v20, 0.0  ;;  %v12782_v20 = vmax.f32 %v12707_v1, 0.0  ;;  %v7383_v23 = vld [vmem:[%s7531_s20 + $0xc0] sm:$0xff] }
 0x457   : > { %7183 = vmatprep.mubr.msk.f32.mxu0 %vm508_vm1, %v3196_v31  ;;  %v12773_v31 = vmax.f32 %v12772_v32, 0.0  ;;  %v3206_v1 = vmul.f32 %v10110_v43, %v2756_v0  ;;  %v10233_v0 = vld [vmem:[%s7531_s20 + $0xa8] sm:$0xff]  ;;  %v3212_v60 = vmul.f32 %v10110_v43, %v2762_v44  ;;  %v3213_v50 = vmul.f32 %v10110_v43, %v2763_v57  ;;  %v7386_v44 = vld [vmem:[%s7531_s20 + $0xd8] sm:$0xff]  ;;  %v7387_v57 = vld [vmem:[%s7531_s20 + $0xe0] sm:$0xff] }
 0x458   : > { %v3198_v34 = vmul.f32 %v10110_v43, %v12771_v36  ;;  %5847 = vrot.lane.b32.xlu1 %v10146_v37, %s7432_s28  ;;  %v3200_v36 = vmul.f32 %v10110_v43, %v12776_v7  ;;  %v3202_v7 = vmul.f32 %v10110_v43, %v12780_v2  ;;  %v10195_v2 = vld [vmem:[%s7531_s20 + $0x88] sm:$0xff]  ;;  %12788 = vst [vmem:[#allocation104_spill] sm:$0xff] %v10233_v0 }
 0x459   : > { %v3199_v27 = vmul.f32 %v10110_v43, %v12773_v31  ;;  %v10164_v31 = vld [vmem:[%s7531_s20 + $0x70] sm:$0xff]  ;;  %12784 = vst [vmem:[#allocation98_spill] sm:$0xff] %v10195_v2  ;;  %5857 = vrot.lane.b32.xlu0 %v10195_v2, %s7432_s28  ;;  %v3214_v59 = vmul.f32 %v10110_v43, %v2764_v51  ;;  %v3215_v52 = vmul.f32 %v10110_v43, %v2765_v9  ;;  %v7388_v51 = vld [vmem:[%s7531_s20 + $0xe8] sm:$0xff]  ;;  %v7390_v9 = vld [vmem:[%s7531_s20 + $0xf8] sm:$0xff] }
 0x45a   : > { %7184 = vmatmul.mubr.msk.f32.gmra.mxu0 %vm508_vm1, %v3197_v11  ;;  %v12777_v11 = vld [vmem:[#allocation28_spill] sm:$0xff]  ;;  %12779 = vst [vmem:[#allocation69_spill] sm:$0xff] %v10164_v31  ;;  %v3216_v10 = vmul.f32 %v10110_v43, %v2766_v28  ;;  %v3217_v24 = vmul.f32 %v10110_v43, %v2767_v29  ;;  %v3218_v41 = vmul.f32 %v10110_v43, %v2768_v33  ;;  %v12789_v28 = vmax.f32 %v9785_v58, 0.0 }
 0x45b   : > { %7186 = vmatprep.mubr.msk.f32.mxu0 %vm508_vm1, %v3198_v34  ;;  %v12778_v34 = vmax.f32 %v12777_v11, 0.0  ;;  %v3203_v11 = vmul.f32 %v10110_v43, %v12782_v20  ;;  %v12790_v29 = vmax.f32 %v9796_v21, 0.0  ;;  %v3221_v33 = vmul.f32 %v10110_v43, %v12791_v39 }
 0x45c   : > { %5851 = vrot.lane.b32.xlu1 %v10164_v31, %s7432_s28  ;;  %v3219_v16 = vmul.f32 %v10110_v43, %v12789_v28  ;;  %v12792_v20 = vmax.f32 %v9816_v4, 0.0  ;;  %v12793_v58 = vmax.f32 %v9824_v18, 0.0  ;;  %v3225_v4 = vmul.f32 %v10110_v43, %v12795_v5 }
 0x45d   : > { %v3201_v32 = vmul.f32 %v10110_v43, %v12778_v34  ;;  %v10186_v34 = vld [vmem:[%s7531_s20 + $0x80] sm:$0xff] }
 0x45e   : > { %7187 = vmatmul.mubr.msk.f32.gmra.mxu0 %vm508_vm1, %v3199_v27  ;;  %v5790_v27 = vld [vmem:[%s12304_s1] sm:$0xf]  ;;  %12783 = vst [vmem:[#allocation82_spill] sm:$0xff] %v10186_v34  ;;  %v3223_v21 = vmul.f32 %v10110_v43, %v12793_v58 }
 0x45f   : > { %7189 = vmatprep.mubr.msk.f32.mxu0 %vm508_vm1, %v3200_v36  ;;  %v5952_v36 = vrot.slane %v5790_v27, 2  ;;  %7278 = vmatprep.subr.msk.mxu0 %vm3078_vm6, %v5790_v27 }
 0x460   : > { %5855 = vrot.lane.b32.xlu1 %v10186_v34, %s7432_s28  ;;  %7279 = vmatpush3.msk.msra.mxu0 %vm3078_vm6, %v5790_v27  ;;  %v7389_v27 = vld [vmem:[%s7531_s20 + $0xf0] sm:$0xff] }
 0x461   : > { %7228 = vmatprep.subr.msk.mxu1 %vm3078_vm6, %v5952_v36 }
 0x462   : > { %7190 = vmatmul.mubr.msk.f32.gmra.mxu0 %vm508_vm1, %v3201_v32  ;;  %v3204_v32 = vmul.f32 %v10110_v43, %v2754_v35  ;;  %7229 = vmatpush3.msk.msra.mxu1 %vm3078_vm6, %v5952_v36  ;;  %v10207_v35 = vld [vmem:[%s7531_s20 + $0x90] sm:$0xff]  ;;  %v3220_v36 = vmul.f32 %v10110_v43, %v12790_v29  ;;  %v10401_v29 = vld [vmem:[%s12315_s12 + $0x2] ss:$0 sm:$0xff] }
 0x463   : > { %7192 = vmatprep.mubr.msk.f32.mxu0 %vm508_vm1, %v3202_v7  ;;  %12785 = vst [vmem:[#allocation107_spill] sm:$0xff] %v10207_v35  ;;  %v10215_v7 = vld [vmem:[%s7531_s20 + $0x98] sm:$0xff] }
 0x464   : > { %5859 = vrot.lane.b32.xlu1 %v10207_v35, %s7432_s28  ;;  %12786 = vst [vmem:[#allocation88_spill] sm:$0xff] %v10215_v7  ;;  %5861 = vrot.lane.b32.xlu0 %v10215_v7, %s7432_s28 }
 0x466   : > { %7193 = vmatmul.mubr.msk.f32.gmra.mxu0 %vm508_vm1, %v3203_v11  ;;  %v3222_v11 = vmul.f32 %v10110_v43, %v12792_v20 }
 0x467   : > { %7195 = vmatprep.mubr.msk.f32.mxu0 %vm508_vm1, %v3204_v32  ;;  %v12794_v32 = vmax.f32 %v9833_v13, 0.0 }
 0x468   : > { %5863 = vrot.lane.b32.xlu1 %v10225_v8, %s7432_s28  ;;  %5865 = vrot.lane.b32.xlu0 %v10233_v0, %s7432_s28 }
 0x46a   : > { %7196 = vmatmul.mubr.msk.f32.gmra.mxu0 %vm508_vm1, %v3205_v40  ;;  %v3224_v40 = vmul.f32 %v10110_v43, %v12794_v32 }
 0x46b   : > { %7198 = vmatprep.mubr.msk.f32.mxu0 %vm508_vm1, %v3206_v1 }
 0x46c   : > { %5867 = vrot.lane.b32.xlu1 %v7381_v6, %s7432_s28  ;;  %5869 = vrot.lane.b32.xlu0 %v7382_v14, %s7432_s28 }
 0x46e   : > { %7199 = vmatmul.mubr.msk.f32.gmra.mxu0 %vm508_vm1, %v3207_v38 }
 0x46f   : > { %7201 = vmatprep.mubr.msk.f32.mxu0 %vm508_vm1, %v3208_v46 }
 0x470   : > { %5871 = vrot.lane.b32.xlu1 %v7383_v23, %s7432_s28  ;;  %5873 = vrot.lane.b32.xlu0 %v7384_v26, %s7432_s28 }
 0x472   : > { %7202 = vmatmul.mubr.msk.f32.gmra.mxu0 %vm508_vm1, %v3209_v25 }
 0x473   : > { %7204 = vmatprep.mubr.msk.f32.mxu0 %vm508_vm1, %v3210_v55 }
 0x474   : > { %5875 = vrot.lane.b32.xlu1 %v7385_v53, %s7432_s28  ;;  %5877 = vrot.lane.b32.xlu0 %v7386_v44, %s7432_s28 }
 0x476   : > { %7205 = vmatmul.mubr.msk.f32.gmra.mxu0 %vm508_vm1, %v3211_v17 }
 0x477   : > { %7207 = vmatprep.mubr.msk.f32.mxu0 %vm508_vm1, %v3212_v60 }
 0x478   : > { %5879 = vrot.lane.b32.xlu1 %v7387_v57, %s7432_s28  ;;  %5881 = vrot.lane.b32.xlu0 %v7388_v51, %s7432_s28  ;;  %v10392_v51 = vld [vmem:[%s12315_s12 + $0x1] ss:$0 sm:$0xff] }
 0x47a   : > { %7208 = vmatmul.mubr.msk.f32.gmra.mxu0 %vm508_vm1, %v3213_v50 }
 0x47b   : > { %7210 = vmatprep.mubr.msk.f32.mxu0 %vm508_vm1, %v3214_v59 }
 0x47c   : > { %5883 = vrot.lane.b32.xlu1 %v7389_v27, %s7432_s28  ;;  %5885 = vrot.lane.b32.xlu0 %v7390_v9, %s7432_s28  ;;  %v4013_v27 = vld [vmem:[#allocation3 + $0x10] sm:$0x3]  ;;  %v4011_v9 = vld [vmem:[#allocation3] sm:$0xff] }
 0x47e   : > { %7211 = vmatmul.mubr.msk.f32.gmra.mxu0 %vm508_vm1, %v3215_v52 }
 0x47f   : > { %7213 = vmatprep.mubr.msk.f32.mxu0 %vm508_vm1, %v3216_v10 }
 0x482   : > { %7214 = vmatmul.mubr.msk.f32.gmra.mxu0 %vm508_vm1, %v3217_v24  ;;  %v4012_v24 = vld [vmem:[#allocation3 + $0x8] sm:$0xff] }
 0x483   : > { %7216 = vmatprep.mubr.msk.f32.mxu0 %vm508_vm1, %v3218_v41  ;;  %v4142_v28 = vmul.f32 %v10392_v51, %v4012_v24  ;;  %v4388_v58 = vmul.f32 %v10401_v29, %v4012_v24 }
 0x485   : > { %v4238_v20 = vrot.slane %v4142_v28, 1  ;;  %v4484_v0 = vrot.slane %v4388_v58, 2  ;;  %v10422_v28 = vld [vmem:[%s12314_s11] ss:$0 sm:$0xff] }
 0x486   : > { %7217 = vmatmul.mubr.msk.f32.gmra.mxu0 %vm508_vm1, %v3219_v16  ;;  %v4143_v16 = vmul.f32 %v10392_v51, %v4013_v27 }
 0x487   : > { %7219 = vmatprep.mubr.msk.f32.mxu0 %vm508_vm1, %v3220_v36  ;;  %v4141_v36 = vmul.f32 %v10392_v51, %v4011_v9 }
 0x489   : > { %v4237_v32 = vrot.slane %v4141_v36, 1 }
 0x48a   : > { %7220 = vmatmul.mubr.msk.f32.gmra.mxu0 %vm508_vm1, %v3221_v33  ;;  %v10409_v33 = vld [vmem:[%s12315_s12] ss:$0 sm:$0xff] }
 0x48b   : > { %7222 = vmatprep.mubr.msk.f32.mxu0 %vm508_vm1, %v3222_v11  ;;  %12796 = vst [vmem:[#allocation44_spill] sm:$0xff] %v10409_v33  ;;  %v4240_v11 = vrot.slane %v4143_v16, 1  ;;  %v4071_v35 = vmul.f32 %v10409_v33, %v4011_v9 }
 0x48d   : > { %v4241_v8 = vsel %vm1189_vm3, %v4238_v20, %v4240_v11 }
 0x48e   : > { %7223 = vmatmul.mubr.msk.f32.gmra.mxu0 %vm508_vm1, %v3223_v21  ;;  %v4389_v21 = vmul.f32 %v10401_v29, %v4013_v27  ;;  %v4239_v27 = vsel %vm1189_vm3, %v4237_v32, %v4238_v20 }
 0x48f   : > { %7225 = vmatprep.mubr.msk.f32.mxu0 %vm508_vm1, %v3224_v40  ;;  %v4387_v40 = vmul.f32 %v10401_v29, %v4011_v9  ;;  %v4349_v31 = vadd.f32 %v4239_v27, %v4071_v35 }
 0x490   : > { %v4486_v7 = vrot.slane %v4389_v21, 2 }
 0x491   : > { %v4483_v16 = vrot.slane %v4387_v40, 2 }
 0x492   : > { %7226 = vmatmul.mubr.msk.f32.gmra.mxu0 %vm508_vm1, %v3225_v4  ;;  %v4072_v4 = vmul.f32 %v10409_v33, %v4012_v24  ;;  %v4487_v24 = vsel %vm1436_vm4, %v4484_v0, %v4486_v7 }
 0x493   : > { %v4485_v58 = vsel %vm1436_vm4, %v4483_v16, %v4484_v0 }
 0x494   : > { %v4350_v34 = vadd.f32 %v4241_v8, %v4072_v4  ;;  %v10436_v7 = vadd.f32 %v4485_v58, %v4349_v31 }
 0x496   : > { %v10431_v32 = vadd.f32 %v4487_v24, %v4350_v34  ;;  %v10537_v24 = vld [vmem:[%s12315_s12 + $0x3] ss:$0 sm:$0xff] }
 0x4a3   : > { %v7132_v18 = vpop.f32.mrf.mxu1 }
 0x4a4   : > { %v3405_v2 = vadd.f32 %v7132_v18, %v10422_v28 }
 0x4a5   : > { %v3399_v13 = vpop.f32.mrf.mxu1 }
 0x4a6   : > { %v3400_v9 = vadd.f32 %v10422_v28, %v3399_v13 }
 0x4a7   : > { %v7135_v54 = vpop.f32.mrf.mxu1 }
 0x4a8   : > { %v3415_v37 = vadd.f32 %v7135_v54, %v10422_v28 }
 0x4a9   : > { %v3409_v43 = vpop.f32.mrf.mxu1 }
 0x4aa   : > { %v3410_v33 = vadd.f32 %v10422_v28, %v3409_v43 }
 0x4ab   : > { %v7138_v1 = vpop.f32.mrf.mxu1 }
 0x4ac   : > { %v3425_v8 = vadd.f32 %v7138_v1, %v10422_v28 }
 0x4ad   : > { %v3419_v38 = vpop.f32.mrf.mxu1 }
 0x4ae   : > { %v3420_v18 = vadd.f32 %v10422_v28, %v3419_v38 }
 0x4af   : > { %v7141_v46 = vpop.f32.mrf.mxu1 }
 0x4b0   : > { %v3435_v0 = vadd.f32 %v7141_v46, %v10422_v28 }
 0x4b1   : > { %v3429_v25 = vpop.f32.mrf.mxu1 }
 0x4b3   : > { %v7144_v6 = vpop.f32.mrf.mxu1 }
 0x4b4   : > { %v10443_v13 = vadd.f32 %v7144_v6, %v10422_v28 }
 0x4b5   : > { %v3439_v55 = vpop.f32.mrf.mxu1 }
 0x4b6   : > { %v10446_v34 = vadd.f32 %v10422_v28, %v3439_v55 }
 0x4b7   : > { %v10363_v14 = vpop.f32.mrf.mxu1 }
 0x4b8   : > { %v10450_v43 = vadd.f32 %v10363_v14, %v10422_v28 }
 0x4b9   : > { %v10365_v17 = vpop.f32.mrf.mxu1 }
 0x4ba   : > { %v10454_v31 = vadd.f32 %v10422_v28, %v10365_v17 }
 0x4bb   : > { %v10367_v23 = vpop.f32.mrf.mxu1 }
 0x4bd   : > { %v10369_v60 = vpop.f32.mrf.mxu1 }
 0x4be   : > { %v10464_v6 = vadd.f32 %v10422_v28, %v10369_v60 }
 0x4bf   : > { %v10371_v26 = vpop.f32.mrf.mxu1 }
 0x4c0   : > { %v10468_v55 = vadd.f32 %v10371_v26, %v10422_v28 }
 0x4c1   : > { %v10373_v22 = vpop.f32.mrf.mxu1 }
 0x4c2   : > { %v10473_v40 = vadd.f32 %v10422_v28, %v10373_v22 }
 0x4c3   : > { %v10375_v50 = vpop.f32.mrf.mxu1 }
 0x4c5   : > { %v10377_v53 = vpop.f32.mrf.mxu1 }
 0x4c7   : > { %v10379_v59 = vpop.f32.mrf.mxu1 }
 0x4c9   : > { %v10381_v44 = vpop.f32.mrf.mxu1 }
 0x4cb   : > { %v10383_v52 = vpop.f32.mrf.mxu1 }
 0x4cc   : > { %v10495_v60 = vadd.f32 %v10383_v52, %v10422_v28 }
 0x4cd   : > { %v10385_v57 = vpop.f32.mrf.mxu1 }
 0x4ce   : > { %v10499_v26 = vadd.f32 %v10422_v28, %v10385_v57 }
 0x4cf   : > { %v10387_v10 = vpop.f32.mrf.mxu1 }
 0x4d1   : > { %v10394_v41 = vpop.f32.mrf.mxu1 }
 0x4d3   : > { %v10404_v39 = vpop.f32.mrf.mxu1 }
 0x4d4   : > { %v10524_v4 = vadd.f32 %v10404_v39, %v10422_v28 }
 0x4d5   : > { %v10414_v5 = vpop.f32.mrf.mxu1 }
 0x4d6   : > { %v10528_v27 = vadd.f32 %v10422_v28, %v10414_v5 }
 0x4d7   : > { %v7171_v36 = vpop.f32.mrf.mxu1 }
 0x4d9   : > { %v3529_v21 = vpop.f32.mrf.mxu1 }
 0x4db   : > { %v7174_v1 = vpop.f32.mrf.mxu1 }
 0x4dd   : > { %v3539_v52 = vpop.f32.mrf.mxu1 }
 0x4de   : > { %v10550_v58 = vadd.f32 %v10422_v28, %v3539_v52 }
 0x4e0   : > { %12797 = vst [vmem:[#allocation54_spill] sm:$0xff] %v10550_v58 }
 0x516   : > { %v7182_v11 = vpop.f32.mrf.mxu0 }
 0x517   : > { %v3883_v42 = vadd.f32 %v7182_v11, %v3405_v2  ;;  %v10440_v2 = vadd.f32 %v10422_v28, %v3429_v25  ;;  %v10460_v25 = vadd.f32 %v10367_v23, %v10422_v28  ;;  %v10540_v11 = vadd.f32 %v10422_v28, %v3529_v21 }
 0x518   : > { %v3723_v20 = vpop.f32.mrf.mxu0 }
 0x519   : > { %3971 = vst.msk [vmem:[#allocation3 + $0x21] sm:$0xff] %vm3074_vm7, %v3883_v42  ;;  %v3882_v35 = vadd.f32 %v3723_v20, %v3400_v9  ;;  %v5792_v14 = vadd.f32 %v10061_v48, %v3883_v42  ;;  %v10487_v42 = vadd.f32 %v10379_v59, %v10422_v28  ;;  %v10491_v48 = vadd.f32 %v10422_v28, %v10381_v44 }
 0x51a   : > { %v7185_v54 = vpop.f32.mrf.mxu0  ;;  %v10514_v59 = vadd.f32 %v10387_v10, %v10422_v28  ;;  %v10518_v44 = vadd.f32 %v10422_v28, %v10394_v41  ;;  %v10531_v10 = vadd.f32 %v7171_v36, %v10422_v28 }
 0x51b   : > { %3970 = vst.msk [vmem:[#allocation3 + $0x19] sm:$0xff] %vm3074_vm7, %v3882_v35  ;;  %v5791_v38 = vadd.f32 %v10066_v56, %v3882_v35  ;;  %v3885_v46 = vadd.f32 %v7185_v54, %v3415_v37  ;;  %v10477_v56 = vadd.f32 %v10375_v50, %v10422_v28  ;;  %v10481_v37 = vadd.f32 %v10422_v28, %v10377_v53  ;;  %v10505_v50 = vld [vmem:[%s12315_s12 + $0x4] ss:$0 sm:$0xff]  ;;  %v10510_v53 = vld [vmem:[%s12315_s12 + $0x5] ss:$0 sm:$0xff] }
 0x51c   : > { %v3733_v17 = vpop.f32.mrf.mxu0 }
 0x51d   : > { %3973 = vst.msk [vmem:[#allocation3 + $0x39] sm:$0xff] %vm3074_vm7, %v3885_v46  ;;  %v3884_v23 = vadd.f32 %v3733_v17, %v3410_v33  ;;  %7280 = vmatprep.mubr.msk.f32.mxu0 %vm3074_vm7, %v5791_v38  ;;  %v5794_v41 = vadd.f32 %v10076_v15, %v3885_v46  ;;  %v10547_v15 = vadd.f32 %v7174_v1, %v10422_v28  ;;  %v10566_v1 = vld [vmem:[%s12315_s12 + $0x7] ss:$0 sm:$0xff] }
 0x51e   : > { %v7188_v22 = vpop.f32.mrf.mxu0  ;;  %7281 = vmatmul.mubr.msk.f32.vlgmr.msra.gmra.mxu0 %vm3074_vm7, %v5792_v14 }
 0x51f   : > { %3972 = vst.msk [vmem:[#allocation3 + $0x31] sm:$0xff] %vm3074_vm7, %v3884_v23  ;;  %v5793_v57 = vadd.f32 %v10071_v62, %v3884_v23  ;;  %v3887_v33 = vadd.f32 %v7188_v22, %v3425_v8 }
 0x520   : > { %v3743_v16 = vpop.f32.mrf.mxu0  ;;  %v4016_v62 = vld [vmem:[#allocation3 + $0x28] sm:$0x3] }
 0x521   : > { %3975 = vst.msk [vmem:[#allocation3 + $0x51] sm:$0xff] %vm3074_vm7, %v3887_v33  ;;  %v3886_v39 = vadd.f32 %v3743_v16, %v3420_v18  ;;  %7283 = vmatprep.mubr.msk.f32.mxu0 %vm3074_vm7, %v5793_v57  ;;  %v4705_v5 = vmul.f32 %v10505_v50, %v4016_v62  ;;  %v4951_v36 = vmul.f32 %v10510_v53, %v4016_v62  ;;  %v10596_v57 = vld [vmem:[%s12315_s12 + $0x6] ss:$0 sm:$0xff] }
 0x522   : > { %v5796_v9 = vadd.f32 %v10086_v19, %v3887_v33  ;;  %v7191_v20 = vpop.f32.mrf.mxu0  ;;  %7284 = vmatmul.mubr.msk.f32.gmra.mxu0 %vm3074_vm7, %v5794_v41  ;;  %v10554_v21 = vld [vmem:[#allocation3 + $0x20] sm:$0xff]  ;;  %v10556_v8 = vld [vmem:[#allocation3 + $0x18] sm:$0xff]  ;;  %v10559_v18 = vmul.f32 %v10392_v51, %v4016_v62  ;;  %v10588_v22 = vmul.f32 %v10401_v29, %v4016_v62 }
 0x523   : > { %3974 = vst.msk [vmem:[#allocation3 + $0x49] sm:$0xff] %vm3074_vm7, %v3886_v39  ;;  %v5795_v35 = vadd.f32 %v10081_v63, %v3886_v39  ;;  %v3889_v54 = vadd.f32 %v7191_v20, %v3435_v0  ;;  %v10571_v19 = vld [vmem:[%s12315_s12 + $0x8] ss:$0 sm:$0xff]  ;;  %v4634_v38 = vmul.f32 %v10537_v24, %v10554_v21  ;;  %v10577_v46 = vmul.f32 %v10505_v50, %v10554_v21 }
 0x524   : > { %v3753_v14 = vpop.f32.mrf.mxu0  ;;  %v10579_v63 = vld [vmem:[#allocation3 + $0x40] sm:$0x3]  ;;  %v4802_v0 = vrot.slane %v4705_v5, 1  ;;  %v10583_v17 = vmul.f32 %v10510_v53, %v10554_v21  ;;  %v4633_v23 = vmul.f32 %v10537_v24, %v10556_v8  ;;  %v5048_v16 = vrot.slane %v4951_v36, 2 }
 0x525   : > { %3977 = vst.msk [vmem:[#allocation3 + $0x69] sm:$0xff] %vm3074_vm7, %v3889_v54  ;;  %v3888_v52 = vadd.f32 %v3753_v14, %v10440_v2  ;;  %7286 = vmatprep.mubr.msk.f32.mxu0 %vm3074_vm7, %v5795_v35  ;;  %v4666_v33 = vadd.f32 %v4634_v38, %v10431_v32  ;;  %v4800_v41 = vrot.slane %v10577_v46, 1  ;;  %v5798_v39 = vadd.f32 %v10096_v61, %v3889_v54 }
 0x526   : > { %v7194_v62 = vpop.f32.mrf.mxu0  ;;  %7287 = vmatmul.mubr.msk.f32.gmra.mxu0 %vm3074_vm7, %v5796_v9  ;;  %v10602_v5 = vld [vmem:[#allocation3 + $0x38] sm:$0xff]  ;;  %v5046_v2 = vrot.slane %v10583_v17, 2  ;;  %v5267_v20 = vmul.f32 %v10566_v1, %v10579_v63  ;;  %v5513_v35 = vmul.f32 %v10571_v19, %v10579_v63  ;;  %v4665_v9 = vadd.f32 %v4633_v23, %v10436_v7  ;;  %v10625_v23 = vld [vmem:[#allocation3 + $0x30] sm:$0xff] }
 0x527   : > { %3976 = vst.msk [vmem:[#allocation3 + $0x61] sm:$0xff] %vm3074_vm7, %v3888_v52  ;;  %v5797_v32 = vadd.f32 %v10091_v49, %v3888_v52  ;;  %v3891_v36 = vadd.f32 %v7194_v62, %v10443_v13  ;;  %v4803_v61 = vsel %vm1189_vm3, %v4800_v41, %v4802_v0  ;;  %v5196_v14 = vmul.f32 %v10596_v57, %v10602_v5 }
 0x528   : > { %v3763_v54 = vpop.f32.mrf.mxu0  ;;  %v4912_v38 = vadd.f32 %v4803_v61, %v4666_v33  ;;  %v5049_v46 = vsel %vm1436_vm4, %v5046_v2, %v5048_v16  ;;  %v5266_v17 = vmul.f32 %v10566_v1, %v10602_v5  ;;  %v5364_v0 = vrot.slane %v5267_v20, 1 }
 0x529   : > { %3979 = vst.msk [vmem:[#allocation3 + $0x81] sm:$0xff] %vm3074_vm7, %v3891_v36  ;;  %v5800_v49 = vadd.f32 %v10106_v30, %v3891_v36  ;;  %v3890_v13 = vadd.f32 %v3763_v54, %v10446_v34  ;;  %7289 = vmatprep.mubr.msk.f32.mxu0 %vm3074_vm7, %v5797_v32  ;;  %v5512_v7 = vmul.f32 %v10571_v19, %v10602_v5  ;;  %v5610_v36 = vrot.slane %v5513_v35, 2 }
 0x52a   : > { %v7197_v52 = vpop.f32.mrf.mxu0  ;;  %7290 = vmatmul.mubr.msk.f32.gmra.mxu0 %vm3074_vm7, %v5798_v39  ;;  %v5158_v33 = vadd.f32 %v5049_v46, %v4912_v38  ;;  %v5362_v16 = vrot.slane %v5266_v17, 1  ;;  %v4703_v62 = vmul.f32 %v10505_v50, %v10556_v8  ;;  %v4949_v30 = vmul.f32 %v10510_v53, %v10556_v8 }
 0x52b   : > { %3978 = vst.msk [vmem:[#allocation3 + $0x79] sm:$0xff] %vm3074_vm7, %v3890_v13  ;;  %v5799_v34 = vadd.f32 %v10101_v47, %v3890_v13  ;;  %v3893_v20 = vadd.f32 %v7197_v52, %v10450_v43  ;;  %v5608_v32 = vrot.slane %v5512_v7, 2  ;;  %v5195_v38 = vmul.f32 %v10596_v57, %v10625_v23  ;;  %v10655_v52 = vld [vmem:[%s12316_s13] ss:$0 sm:$0xff] }
 0x52c   : > { %v3773_v61 = vpop.f32.mrf.mxu0  ;;  %v5228_v54 = vadd.f32 %v5196_v14, %v5158_v33  ;;  %v4799_v58 = vrot.slane %v4703_v62, 1  ;;  %v5045_v39 = vrot.slane %v4949_v30, 2  ;;  %v5365_v47 = vsel %vm1189_vm3, %v5362_v16, %v5364_v0 }
 0x52d   : > { %3981 = vst.msk [vmem:[#allocation3 + $0x99] sm:$0xff] %vm3074_vm7, %v3893_v20  ;;  %v5802_v46 = vadd.f32 %v10136_v12, %v3893_v20  ;;  %v3892_v17 = vadd.f32 %v3773_v61, %v10454_v31  ;;  %7292 = vmatprep.mubr.msk.f32.mxu0 %vm3074_vm7, %v5799_v34  ;;  %v5265_v43 = vmul.f32 %v10566_v1, %v10625_v23  ;;  %v5826_v20 = vpop.permute.xlu1 %5825 }
 0x52e   : > { %v7200_v35 = vpop.f32.mrf.mxu0  ;;  %7293 = vmatmul.mubr.msk.f32.gmra.mxu0 %vm3074_vm7, %v5800_v49  ;;  %v5474_v14 = vadd.f32 %v5365_v47, %v5228_v54  ;;  %v5611_v13 = vsel %vm1436_vm4, %v5608_v32, %v5610_v36  ;;  %v4801_v7 = vsel %vm1189_vm3, %v4799_v58, %v4800_v41  ;;  %v5511_v12 = vmul.f32 %v10571_v19, %v10625_v23 }
 0x52f   : > { %3980 = vst.msk [vmem:[#allocation3 + $0x91] sm:$0xff] %vm3074_vm7, %v3892_v17  ;;  %v5801_v31 = vadd.f32 %v10128_v3, %v3892_v17  ;;  %v3895_v0 = vadd.f32 %v7200_v35, %v10460_v25  ;;  %v4911_v49 = vadd.f32 %v4801_v7, %v4665_v9  ;;  %v5361_v33 = vrot.slane %v5265_v43, 1  ;;  %v12798_v9 = vld [vmem:[#allocation44_spill] sm:$0xff] }
 0x530   : > { %v3783_v62 = vpop.f32.mrf.mxu0  ;;  %v5720_v30 = vadd.f32 %v5611_v13, %v5474_v14  ;;  %v5047_v58 = vsel %vm1436_vm4, %v5045_v39, %v5046_v2  ;;  %v5607_v41 = vrot.slane %v5511_v12, 2  ;;  %v4144_v34 = vmul.f32 %v10392_v51, %v10556_v8 }
 0x531   : > { %3983 = vst.msk [vmem:[#allocation3 + $0xb1] sm:$0xff] %vm3074_vm7, %v3895_v0  ;;  %v5804_v3 = vadd.f32 %v10154_v45, %v3895_v0  ;;  %v3894_v25 = vadd.f32 %v3783_v62, %v10464_v6  ;;  %7295 = vmatprep.mubr.msk.f32.mxu0 %vm3074_vm7, %v5801_v31  ;;  %v5157_v36 = vadd.f32 %v5047_v58, %v4911_v49  ;;  %v12799_v6 = vld [vmem:[#allocation71_spill] sm:$0xff]  ;;  %v12800_v31 = vld [vmem:[#allocation50_spill] sm:$0xff]  ;;  %v12801_v58 = vld [vmem:[#allocation69_spill] sm:$0xff] }
 0x532   : > { %v4073_v61 = vmul.f32 %v12798_v9, %v10556_v8  ;;  %v7203_v54 = vpop.f32.mrf.mxu0  ;;  %7296 = vmatmul.mubr.msk.f32.gmra.mxu0 %vm3074_vm7, %v5802_v46  ;;  %v5759_v2 = vadd.f32 %v10655_v52, %v5720_v30  ;;  %v5363_v39 = vsel %vm1189_vm3, %v5361_v33, %v5362_v16  ;;  %v10671_v17 = vmul.f32 %v10392_v51, %v10554_v21 }
 0x533   : > { %v4242_v45 = vrot.slane %v4144_v34, 1  ;;  %3982 = vst.msk [vmem:[#allocation3 + $0xa9] sm:$0xff] %vm3074_vm7, %v3894_v25  ;;  %v5803_v47 = vadd.f32 %v12799_v6, %v3894_v25  ;;  %v3897_v43 = vadd.f32 %v7203_v54, %v10468_v55  ;;  %v5227_v35 = vadd.f32 %v5195_v38, %v5157_v36  ;;  %v5824_v25 = vpop.permute.xlu0 %5823  ;;  %v10702_v36 = vld [vmem:[#allocation3 + $0x48] sm:$0xff] }
 0x534   : > { %v4390_v14 = vmul.f32 %v10401_v29, %v10556_v8  ;;  %v5920_v46 = vadd.f32 %v5826_v20, %v5759_v2  ;;  %v5609_v13 = vsel %vm1436_vm4, %v5607_v41, %v5608_v32  ;;  %v3793_v7 = vpop.f32.mrf.mxu0  ;;  %v4243_v16 = vrot.slane %v10671_v17, 1 }
 0x535   : > { %v10682_v12 = vmul.f32 %v10401_v29, %v10554_v21  ;;  %3985 = vst.msk [vmem:[#allocation3 + $0xc9] sm:$0xff] %vm3074_vm7, %v3897_v43  ;;  %v5806_v0 = vadd.f32 %v12800_v31, %v3897_v43  ;;  %v5473_v49 = vadd.f32 %v5363_v39, %v5227_v35  ;;  %v3896_v55 = vadd.f32 %v3793_v7, %v10473_v40  ;;  %v12802_v35 = vld [vmem:[#allocation98_spill] sm:$0xff] }
 0x536   : > { %7298 = vmatprep.mubr.msk.f32.mxu0 %vm3074_vm7, %v5803_v47  ;;  %v4488_v8 = vrot.slane %v4390_v14, 2  ;;  %v7206_v38 = vpop.f32.mrf.mxu0  ;;  %v4244_v32 = vsel %vm1189_vm3, %v4242_v45, %v4243_v16  ;;  %v4706_v62 = vmul.f32 %v10505_v50, %v10625_v23  ;;  %v10697_v30 = vmul.f32 %v10505_v50, %v10602_v5 }
 0x537   : > { %7299 = vmatmul.mubr.msk.f32.gmra.mxu0 %vm3074_vm7, %v5804_v3  ;;  %v4489_v33 = vrot.slane %v10682_v12, 2  ;;  %v5719_v40 = vadd.f32 %v5609_v13, %v5473_v49  ;;  %3984 = vst.msk [vmem:[#allocation3 + $0xc1] sm:$0xff] %vm3074_vm7, %v3896_v55  ;;  %v5805_v41 = vadd.f32 %v12801_v58, %v3896_v55  ;;  %v3899_v34 = vadd.f32 %v7206_v38, %v10477_v56  ;;  %v12803_v49 = vld [vmem:[#allocation82_spill] sm:$0xff] }
 0x538   : > { %v4351_v3 = vadd.f32 %v4244_v32, %v4073_v61  ;;  %v3803_v20 = vpop.f32.mrf.mxu0  ;;  %v4804_v2 = vrot.slane %v4706_v62, 1  ;;  %v4805_v39 = vrot.slane %v10697_v30, 1  ;;  %v4952_v45 = vmul.f32 %v10510_v53, %v10625_v23  ;;  %v10713_v61 = vld [vmem:[#allocation3 + $0x50] sm:$0xff] }
 0x539   : > { %v4490_v54 = vsel %vm1436_vm4, %v4488_v8, %v4489_v33  ;;  %v5758_v6 = vadd.f32 %v10655_v52, %v5719_v40  ;;  %3987 = vst.msk [vmem:[#allocation3 + $0xe1] sm:$0xff] %vm3074_vm7, %v3899_v34  ;;  %v3898_v56 = vadd.f32 %v3803_v20, %v10481_v37  ;;  %v4635_v43 = vmul.f32 %v10537_v24, %v10625_v23 }
 0x53a   : > { %v4597_v47 = vadd.f32 %v4490_v54, %v4351_v3  ;;  %7301 = vmatprep.mubr.msk.f32.mxu0 %vm3074_vm7, %v5805_v41  ;;  %v5808_v14 = vadd.f32 %v12802_v35, %v3899_v34  ;;  %v4806_v13 = vsel %vm1189_vm3, %v4804_v2, %v4805_v39  ;;  %v4953_v7 = vmul.f32 %v10510_v53, %v10602_v5  ;;  %v7177_v41 = vpop.f32.mrf.mxu1 }
 0x53b   : > { %v5050_v31 = vrot.slane %v4952_v45, 2  ;;  %7302 = vmatmul.mubr.msk.f32.gmra.mxu0 %vm3074_vm7, %v5806_v0  ;;  %v5919_v37 = vadd.f32 %v5824_v25, %v5758_v6  ;;  %3986 = vst.msk [vmem:[#allocation3 + $0xd9] sm:$0xff] %vm3074_vm7, %v3898_v56  ;;  %v5807_v55 = vadd.f32 %v12803_v49, %v3898_v56  ;;  %v5268_v38 = vmul.f32 %v10566_v1, %v10702_v36  ;;  %v7209_v0 = vpop.f32.mrf.mxu0 }
 0x53c   : > { %v4667_v8 = vadd.f32 %v4635_v43, %v4597_v47  ;;  %v5051_v32 = vrot.slane %v4953_v7, 2  ;;  %v5269_v62 = vmul.f32 %v10566_v1, %v10713_v61  ;;  %v5514_v40 = vmul.f32 %v10571_v19, %v10702_v36  ;;  %v10745_v43 = vld [vmem:[#allocation3 + $0x58] sm:$0x3] }
 0x53d   : > { %v5515_v58 = vmul.f32 %v10571_v19, %v10713_v61  ;;  %7230 = vmatprep.mubr.msk.f32.mxu1 %vm3074_vm7, %v5919_v37  ;;  %v5366_v3 = vrot.slane %v5268_v38, 1  ;;  %v4074_v25 = vmul.f32 %v12798_v9, %v10554_v21  ;;  %v4245_v20 = vrot.slane %v10559_v18, 1  ;;  %7304 = vmatprep.mubr.msk.f32.mxu0 %vm3074_vm7, %v5807_v55  ;;  %v3813_v7 = vpop.f32.mrf.mxu0 }
 0x53e   : > { %v4913_v34 = vadd.f32 %v4806_v13, %v4667_v8  ;;  %7231 = vmatmul.mubr.msk.f32.vlgmr.msra.gmra.mxu1 %vm3074_vm7, %v5920_v46  ;;  %v5052_v54 = vsel %vm1436_vm4, %v5050_v31, %v5051_v32  ;;  %v5367_v2 = vrot.slane %v5269_v62, 1  ;;  %v5612_v45 = vrot.slane %v5514_v40, 2 }
 0x53f   : > { %v5613_v6 = vrot.slane %v5515_v58, 2  ;;  %7305 = vmatmul.mubr.msk.f32.gmra.mxu0 %vm3074_vm7, %v5808_v14  ;;  %v5197_v47 = vmul.f32 %v10596_v57, %v10702_v36  ;;  %v4246_v21 = vsel %vm1189_vm3, %v4243_v16, %v4245_v20  ;;  %v4491_v18 = vrot.slane %v10588_v22, 2 }
 0x540   : > { %v5159_v56 = vadd.f32 %v5052_v54, %v4913_v34  ;;  %v10752_v46 = vadd.f32 %v7177_v41, %v10422_v28  ;;  %v4352_v35 = vadd.f32 %v4246_v21, %v4074_v25  ;;  %v4636_v13 = vmul.f32 %v10537_v24, %v10602_v5  ;;  %v12804_v54 = vld [vmem:[#allocation107_spill] sm:$0xff] }
 0x541   : > { %v4708_v14 = vmul.f32 %v10505_v50, %v10579_v63  ;;  %v5368_v37 = vsel %vm1189_vm3, %v5366_v3, %v5367_v2  ;;  %v4492_v17 = vsel %vm1436_vm4, %v4489_v33, %v4491_v18  ;;  %v4954_v22 = vmul.f32 %v10510_v53, %v10579_v63 }
 0x542   : > { %v5229_v31 = vadd.f32 %v5197_v47, %v5159_v56  ;;  %v5614_v16 = vsel %vm1436_vm4, %v5612_v45, %v5613_v6  ;;  %v4598_v49 = vadd.f32 %v4492_v17, %v4352_v35  ;;  %v5270_v55 = vmul.f32 %v10566_v1, %v10745_v43  ;;  %v12805_v47 = vld [vmem:[#allocation88_spill] sm:$0xff] }
 0x543   : > { %v5516_v8 = vmul.f32 %v10571_v19, %v10745_v43  ;;  %v4807_v62 = vrot.slane %v4708_v14, 1  ;;  %v3901_v40 = vadd.f32 %v7209_v0, %v10487_v42  ;;  %v3900_v12 = vadd.f32 %v3813_v7, %v10491_v48  ;;  %v5828_v0 = vpop.permute.xlu1 %5827 }
 0x544   : > { %v5475_v38 = vadd.f32 %v5368_v37, %v5229_v31  ;;  %v4668_v58 = vadd.f32 %v4636_v13, %v4598_v49  ;;  %v5053_v33 = vrot.slane %v4954_v22, 2  ;;  %v5198_v41 = vmul.f32 %v10596_v57, %v10713_v61  ;;  %v10803_v49 = vld [vmem:[#allocation3 + $0x68] sm:$0xff] }
 0x545   : > { %v5369_v34 = vrot.slane %v5270_v55, 1  ;;  %v4808_v25 = vsel %vm1189_vm3, %v4805_v39, %v4807_v62  ;;  %v5615_v20 = vrot.slane %v5516_v8, 2  ;;  %3989 = vst.msk [vmem:[#allocation3 + $0xf9] sm:$0xff] %vm3074_vm7, %v3901_v40  ;;  %3988 = vst.msk [vmem:[#allocation3 + $0xf1] sm:$0xff] %vm3074_vm7, %v3900_v12  ;;  %v5809_v42 = vadd.f32 %v12804_v54, %v3900_v12 }
 0x546   : > { %v5721_v3 = vadd.f32 %v5614_v16, %v5475_v38  ;;  %v4914_v48 = vadd.f32 %v4808_v25, %v4668_v58  ;;  %v5054_v45 = vsel %vm1436_vm4, %v5051_v32, %v5053_v33  ;;  %v5810_v21 = vadd.f32 %v12805_v47, %v3901_v40  ;;  %v10801_v16 = vld [vmem:[#allocation3 + $0x60] sm:$0xff]  ;;  %v3549_v58 = vpop.f32.mrf.mxu1  ;;  %v5830_v47 = vpop.permute.xlu0 %5829 }
 0x547   : > { %v5370_v56 = vsel %vm1189_vm3, %v5367_v2, %v5369_v34  ;;  %v4147_v30 = vmul.f32 %v10392_v51, %v10625_v23  ;;  %v10787_v39 = vmul.f32 %v10392_v51, %v10602_v5  ;;  %v4393_v35 = vmul.f32 %v10401_v29, %v10625_v23  ;;  %7307 = vmatprep.mubr.msk.f32.mxu0 %vm3074_vm7, %v5809_v42 }
 0x548   : > { %v5760_v18 = vadd.f32 %v10655_v52, %v5721_v3  ;;  %v5160_v13 = vadd.f32 %v5054_v45, %v4914_v48  ;;  %v5616_v32 = vsel %vm1436_vm4, %v5613_v6, %v5615_v20  ;;  %v10795_v2 = vmul.f32 %v10401_v29, %v10602_v5  ;;  %7308 = vmatmul.mubr.msk.f32.gmra.mxu0 %vm3074_vm7, %v5810_v21 }
 0x549   : > { %v4709_v14 = vmul.f32 %v10505_v50, %v10702_v36  ;;  %v4247_v31 = vrot.slane %v4147_v30, 1  ;;  %v4248_v37 = vrot.slane %v10787_v39, 1  ;;  %v4493_v17 = vrot.slane %v4393_v35, 2 }
 0x54a   : > { %v5921_v7 = vadd.f32 %v5828_v0, %v5760_v18  ;;  %v5230_v22 = vadd.f32 %v5198_v41, %v5160_v13  ;;  %v4075_v6 = vmul.f32 %v12798_v9, %v10625_v23  ;;  %v4494_v55 = vrot.slane %v10795_v2, 2  ;;  %v7212_v2 = vpop.f32.mrf.mxu0 }
 0x54b   : > { %v4710_v8 = vmul.f32 %v10505_v50, %v10713_v61  ;;  %v4249_v38 = vsel %vm1189_vm3, %v4247_v31, %v4248_v37  ;;  %v4637_v62 = vmul.f32 %v10537_v24, %v10702_v36  ;;  %v4955_v40 = vmul.f32 %v10510_v53, %v10702_v36 }
 0x54c   : > { %7233 = vmatprep.mubr.msk.f32.mxu1 %vm3074_vm7, %v5921_v7  ;;  %v4956_v12 = vmul.f32 %v10510_v53, %v10713_v61  ;;  %v5476_v23 = vadd.f32 %v5370_v56, %v5230_v22  ;;  %v4353_v33 = vadd.f32 %v4249_v38, %v4075_v6  ;;  %v4495_v41 = vsel %vm1436_vm4, %v4493_v17, %v4494_v55  ;;  %v10840_v7 = vld [vmem:[#allocation3 + $0x70] sm:$0x3] }
 0x54d   : > { %v4809_v34 = vrot.slane %v4709_v14, 1  ;;  %v4810_v3 = vrot.slane %v4710_v8, 1  ;;  %v5055_v25 = vrot.slane %v4955_v40, 2  ;;  %v5271_v20 = vmul.f32 %v10566_v1, %v10801_v16 }
 0x54e   : > { %v10823_v54 = vmul.f32 %v10566_v1, %v10803_v49  ;;  %v5722_v42 = vadd.f32 %v5616_v32, %v5476_v23  ;;  %v4599_v0 = vadd.f32 %v4495_v41, %v4353_v33  ;;  %v5056_v48 = vrot.slane %v4956_v12, 2 }
 0x54f   : > { %v5517_v45 = vmul.f32 %v10571_v19, %v10801_v16  ;;  %v10828_v56 = vadd.f32 %v10422_v28, %v3549_v58  ;;  %v5371_v21 = vrot.slane %v5271_v20, 1  ;;  %v10833_v30 = vmul.f32 %v10571_v19, %v10803_v49 }
 0x550   : > { %v5372_v18 = vrot.slane %v10823_v54, 1  ;;  %v5761_v39 = vadd.f32 %v10655_v52, %v5722_v42  ;;  %v4669_v35 = vadd.f32 %v4637_v62, %v4599_v0  ;;  %v5199_v13 = vmul.f32 %v10596_v57, %v10801_v16 }
 0x551   : > { %v5617_v32 = vrot.slane %v5517_v45, 2  ;;  %v4811_v14 = vsel %vm1189_vm3, %v4809_v34, %v4810_v3  ;;  %v5618_v28 = vrot.slane %v10833_v30, 2  ;;  %v4149_v31 = vmul.f32 %v10392_v51, %v10579_v63  ;;  %v3823_v34 = vpop.f32.mrf.mxu0 }
 0x552   : > { %v4395_v17 = vmul.f32 %v10401_v29, %v10579_v63  ;;  %v5922_v22 = vadd.f32 %v5830_v47, %v5761_v39  ;;  %v4915_v6 = vadd.f32 %v4811_v14, %v4669_v35  ;;  %v5057_v8 = vsel %vm1436_vm4, %v5055_v25, %v5056_v48 }
 0x553   : > { %v4711_v38 = vmul.f32 %v10505_v50, %v10745_v43  ;;  %v5373_v62 = vsel %vm1189_vm3, %v5371_v21, %v5372_v18  ;;  %v4076_v40 = vmul.f32 %v12798_v9, %v10602_v5  ;;  %v4250_v12 = vrot.slane %v4149_v31, 1 }
 0x554   : > { %v4957_v58 = vmul.f32 %v10510_v53, %v10745_v43  ;;  %v5161_v23 = vadd.f32 %v5057_v8, %v4915_v6  ;;  %v5619_v63 = vsel %vm1436_vm4, %v5617_v32, %v5618_v28  ;;  %v4638_v33 = vmul.f32 %v10537_v24, %v10713_v61  ;;  %7234 = vmatmul.mubr.msk.f32.gmra.mxu1 %vm3074_vm7, %v5922_v22  ;;  %v12807_v8 = vld [vmem:[#allocation91_spill] sm:$0xff] }
 0x555   : > { %v5273_v41 = vmul.f32 %v10566_v1, %v10840_v7  ;;  %v4251_v5 = vsel %vm1189_vm3, %v4248_v37, %v4250_v12  ;;  %v4496_v25 = vrot.slane %v4395_v17, 2  ;;  %v4812_v20 = vrot.slane %v4711_v38, 1  ;;  %v5832_v38 = vpop.permute.xlu1 %5831 }
 0x556   : > { %v5519_v54 = vmul.f32 %v10571_v19, %v10840_v7  ;;  %v5231_v42 = vadd.f32 %v5199_v13, %v5161_v23  ;;  %v4354_v0 = vadd.f32 %v4251_v5, %v4076_v40  ;;  %v5058_v45 = vrot.slane %v4957_v58, 2  ;;  %v12806_v13 = vld [vmem:[#allocation104_spill] sm:$0xff] }
 0x557   : > { %v5200_v47 = vmul.f32 %v10596_v57, %v10803_v49  ;;  %v4497_v21 = vsel %vm1436_vm4, %v4494_v55, %v4496_v25  ;;  %v4813_v39 = vsel %vm1189_vm3, %v4810_v3, %v4812_v20  ;;  %v3903_v35 = vadd.f32 %v7212_v2, %v10495_v60 }
 0x558   : > { %v3902_v32 = vadd.f32 %v3823_v34, %v10499_v26  ;;  %v5477_v37 = vadd.f32 %v5373_v62, %v5231_v42  ;;  %v4600_v14 = vadd.f32 %v4497_v21, %v4354_v0  ;;  %v5059_v31 = vsel %vm1436_vm4, %v5056_v48, %v5058_v45  ;;  %v10895_v34 = vld [vmem:[#allocation3 + $0x78] sm:$0xff]  ;;  %v10906_v0 = vld [vmem:[#allocation3 + $0x80] sm:$0xff] }
 0x559   : > { %v5374_v17 = vrot.slane %v5273_v41, 1  ;;  %v5620_v22 = vrot.slane %v5519_v54, 2  ;;  %3991 = vst.msk [vmem:[#allocation3 + $0x111] sm:$0xff] %vm3074_vm7, %v3903_v35  ;;  %v5812_v6 = vadd.f32 %v12806_v13, %v3903_v35  ;;  %v4150_v3 = vmul.f32 %v10392_v51, %v10702_v36 }
 0x55a   : > { %3990 = vst.msk [vmem:[#allocation3 + $0x109] sm:$0xff] %vm3074_vm7, %v3902_v32  ;;  %v5811_v55 = vadd.f32 %v12807_v8, %v3902_v32  ;;  %v5723_v60 = vadd.f32 %v5619_v63, %v5477_v37  ;;  %v4670_v2 = vadd.f32 %v4638_v33, %v4600_v14  ;;  %v10880_v26 = vmul.f32 %v10392_v51, %v10713_v61 }
 0x55b   : > { %v4396_v48 = vmul.f32 %v10401_v29, %v10702_v36  ;;  %v5375_v62 = vsel %vm1189_vm3, %v5372_v18, %v5374_v17  ;;  %v4252_v40 = vrot.slane %v4150_v3, 1  ;;  %v10887_v12 = vmul.f32 %v10401_v29, %v10713_v61 }
 0x55c   : > { %v4712_v58 = vmul.f32 %v10505_v50, %v10801_v16  ;;  %7310 = vmatprep.mubr.msk.f32.mxu0 %vm3074_vm7, %v5811_v55  ;;  %v5762_v23 = vadd.f32 %v10655_v52, %v5723_v60  ;;  %v4916_v63 = vadd.f32 %v4813_v39, %v4670_v2  ;;  %v4253_v33 = vrot.slane %v10880_v26, 1 }
 0x55d   : > { %v4498_v41 = vrot.slane %v4396_v48, 2  ;;  %7311 = vmatmul.mubr.msk.f32.gmra.mxu0 %vm3074_vm7, %v5812_v6  ;;  %v4077_v18 = vmul.f32 %v12798_v9, %v10702_v36  ;;  %v4499_v5 = vrot.slane %v10887_v12, 2  ;;  %v10902_v25 = vmul.f32 %v10505_v50, %v10803_v49  ;;  %v7215_v12 = vpop.f32.mrf.mxu0 }
 0x55e   : > { %v4958_v20 = vmul.f32 %v10510_v53, %v10801_v16  ;;  %v5923_v54 = vadd.f32 %v5832_v38, %v5762_v23  ;;  %v5162_v42 = vadd.f32 %v5059_v31, %v4916_v63  ;;  %v4254_v45 = vsel %vm1189_vm3, %v4252_v40, %v4253_v33 }
 0x55f   : > { %v4959_v21 = vmul.f32 %v10510_v53, %v10803_v49  ;;  %v4355_v39 = vadd.f32 %v4254_v45, %v4077_v18  ;;  %v4639_v36 = vmul.f32 %v10537_v24, %v10801_v16  ;;  %v4814_v35 = vrot.slane %v4712_v58, 1  ;;  %v10938_v18 = vld [vmem:[#allocation3 + $0x88] sm:$0x3] }
 0x560   : > { %v4815_v32 = vrot.slane %v10902_v25, 1  ;;  %v5232_v37 = vadd.f32 %v5200_v47, %v5162_v42  ;;  %7236 = vmatprep.mubr.msk.f32.mxu1 %vm3074_vm7, %v5923_v54  ;;  %v4500_v14 = vsel %vm1436_vm4, %v4498_v41, %v4499_v5  ;;  %v5060_v31 = vrot.slane %v4958_v20, 2 }
 0x561   : > { %v5274_v17 = vmul.f32 %v10566_v1, %v10895_v34  ;;  %v4601_v13 = vadd.f32 %v4500_v14, %v4355_v39  ;;  %v5061_v6 = vrot.slane %v4959_v21, 2  ;;  %v5275_v8 = vmul.f32 %v10566_v1, %v10906_v0 }
 0x562   : > { %v5520_v55 = vmul.f32 %v10571_v19, %v10895_v34  ;;  %v5478_v3 = vadd.f32 %v5375_v62, %v5232_v37  ;;  %v5621_v47 = vsel %vm1436_vm4, %v5618_v28, %v5620_v22  ;;  %v10927_v2 = vmul.f32 %v10571_v19, %v10906_v0  ;;  %v5834_v28 = vpop.permute.xlu0 %5833 }
 0x563   : > { %v5376_v60 = vrot.slane %v5274_v17, 1  ;;  %v4671_v26 = vadd.f32 %v4639_v36, %v4601_v13  ;;  %v4816_v48 = vsel %vm1189_vm3, %v4814_v35, %v4815_v32  ;;  %v5377_v38 = vrot.slane %v5275_v8, 1  ;;  %v3833_v35 = vpop.f32.mrf.mxu0 }
 0x564   : > { %v5622_v40 = vrot.slane %v5520_v55, 2  ;;  %v5724_v58 = vadd.f32 %v5621_v47, %v5478_v3  ;;  %v5623_v23 = vrot.slane %v10927_v2, 2  ;;  %v4152_v62 = vmul.f32 %v10392_v51, %v10745_v43  ;;  %v11034_v2 = vld [vmem:[%s12315_s12 + $0x1] ss:$0 sm:$0xff] }
 0x565   : > { %v4398_v30 = vmul.f32 %v10401_v29, %v10745_v43  ;;  %v4917_v22 = vadd.f32 %v4816_v48, %v4671_v26  ;;  %v5062_v63 = vsel %vm1436_vm4, %v5060_v31, %v5061_v6  ;;  %v5201_v41 = vmul.f32 %v10596_v57, %v10895_v34 }
 0x566   : > { %v4714_v25 = vmul.f32 %v10505_v50, %v10840_v7  ;;  %v5763_v20 = vadd.f32 %v10655_v52, %v5724_v58  ;;  %v5378_v54 = vsel %vm1189_vm3, %v5376_v60, %v5377_v38  ;;  %v4078_v42 = vmul.f32 %v12798_v9, %v10713_v61 }
 0x567   : > { %v4255_v43 = vrot.slane %v4152_v62, 1  ;;  %v5163_v45 = vadd.f32 %v5062_v63, %v4917_v22  ;;  %v5624_v21 = vsel %vm1436_vm4, %v5622_v40, %v5623_v23  ;;  %v4640_v39 = vmul.f32 %v10537_v24, %v10803_v49  ;;  %v7392_v22 = vld [vmem:[%s7531_s20 + $0xb0] sm:$0xff] }
 0x568   : > { %v4960_v36 = vmul.f32 %v10510_v53, %v10840_v7  ;;  %v5924_v37 = vadd.f32 %v5834_v28, %v5763_v20  ;;  %v4501_v31 = vrot.slane %v4398_v30, 2  ;;  %v5276_v61 = vmul.f32 %v10566_v1, %v10938_v18 }
 0x569   : > { %v4256_v14 = vsel %vm1189_vm3, %v4253_v33, %v4255_v43  ;;  %v5233_v17 = vadd.f32 %v5201_v41, %v5163_v45  ;;  %v4817_v8 = vrot.slane %v4714_v25, 1  ;;  %v5202_v55 = vmul.f32 %v10596_v57, %v10906_v0 }
 0x56a   : > { %v4356_v13 = vadd.f32 %v4256_v14, %v4078_v42  ;;  %v4502_v3 = vsel %vm1436_vm4, %v4499_v5, %v4501_v31  ;;  %v5063_v47 = vrot.slane %v4960_v36, 2  ;;  %7237 = vmatmul.mubr.msk.f32.gmra.mxu1 %vm3074_vm7, %v5924_v37  ;;  %v3905_v60 = vadd.f32 %v7215_v12, %v10514_v59  ;;  %v7391_v5 = vld [vmem:[%s7531_s20 + $0xb8] sm:$0xff]  ;;  %v10996_v36 = vld [vmem:[#allocation3 + $0x90] sm:$0xff] }
 0x56b   : > { %v3904_v33 = vadd.f32 %v3833_v35, %v10518_v44  ;;  %v5479_v26 = vadd.f32 %v5378_v54, %v5233_v17  ;;  %v4818_v40 = vsel %vm1189_vm3, %v4815_v32, %v4817_v8  ;;  %v5379_v58 = vrot.slane %v5276_v61, 1  ;;  %v10998_v35 = vld [vmem:[#allocation3 + $0x98] sm:$0xff] }
 0x56c   : > { %v4602_v48 = vadd.f32 %v4502_v3, %v4356_v13  ;;  %v5064_v62 = vsel %vm1436_vm4, %v5061_v6, %v5063_v47  ;;  %v5522_v30 = vmul.f32 %v10571_v19, %v10938_v18  ;;  %3993 = vst.msk [vmem:[#allocation3 + $0x129] sm:$0xff] %vm3074_vm7, %v3905_v60  ;;  %v5814_v28 = vadd.f32 %v7391_v5, %v3905_v60  ;;  %v5836_v6 = vpop.permute.xlu1 %5835 }
 0x56d   : > { %3992 = vst.msk [vmem:[#allocation3 + $0x121] sm:$0xff] %vm3074_vm7, %v3904_v33  ;;  %v5813_v59 = vadd.f32 %v7392_v22, %v3904_v33  ;;  %v5725_v12 = vadd.f32 %v5624_v21, %v5479_v26  ;;  %v4153_v63 = vmul.f32 %v10392_v51, %v10801_v16  ;;  %v10974_v32 = vmul.f32 %v10392_v51, %v10803_v49 }
 0x56e   : > { %v4672_v44 = vadd.f32 %v4640_v39, %v4602_v48  ;;  %v5380_v41 = vsel %vm1189_vm3, %v5377_v38, %v5379_v58  ;;  %v4079_v25 = vmul.f32 %v12798_v9, %v10801_v16  ;;  %v4399_v20 = vmul.f32 %v10401_v29, %v10801_v16 }
 0x56f   : > { %v10983_v54 = vmul.f32 %v10401_v29, %v10803_v49  ;;  %7313 = vmatprep.mubr.msk.f32.mxu0 %vm3074_vm7, %v5813_v59  ;;  %v5764_v42 = vadd.f32 %v10655_v52, %v5725_v12  ;;  %v4257_v51 = vrot.slane %v4153_v63, 1  ;;  %v4258_v45 = vrot.slane %v10974_v32, 1 }
 0x570   : > { %v4918_v43 = vadd.f32 %v4818_v40, %v4672_v44  ;;  %7314 = vmatmul.mubr.msk.f32.gmra.mxu0 %vm3074_vm7, %v5814_v28  ;;  %v4503_v38 = vrot.slane %v4399_v20, 2  ;;  %v4715_v16 = vmul.f32 %v10505_v50, %v10895_v34  ;;  %v10994_v29 = vmul.f32 %v10505_v50, %v10906_v0 }
 0x571   : > { %v4504_v9 = vrot.slane %v10983_v54, 2  ;;  %v5925_v21 = vadd.f32 %v5836_v6, %v5764_v42  ;;  %v4259_v37 = vsel %vm1189_vm3, %v4257_v51, %v4258_v45  ;;  %v4961_v14 = vmul.f32 %v10510_v53, %v10895_v34  ;;  %v7218_v6 = vpop.f32.mrf.mxu0  ;;  %v11029_v42 = vld [vmem:[#allocation3 + $0xa0] sm:$0x3] }
 0x572   : > { %v5164_v39 = vadd.f32 %v5064_v62, %v4918_v43  ;;  %v5625_v31 = vrot.slane %v5522_v30, 2  ;;  %v4357_v61 = vadd.f32 %v4259_v37, %v4079_v25  ;;  %v4641_v13 = vmul.f32 %v10537_v24, %v10895_v34  ;;  %v11041_v43 = vld [vmem:[%s12315_s12 + $0x2] ss:$0 sm:$0xff] }
 0x573   : > { %v4505_v17 = vsel %vm1436_vm4, %v4503_v38, %v4504_v9  ;;  %7239 = vmatprep.mubr.msk.f32.mxu1 %vm3074_vm7, %v5925_v21  ;;  %v4819_v3 = vrot.slane %v4715_v16, 1  ;;  %v4820_v47 = vrot.slane %v10994_v29, 1  ;;  %v4962_v60 = vmul.f32 %v10510_v53, %v10906_v0  ;;  %v11050_v29 = vld [vmem:[%s12315_s12] ss:$0 sm:$0xff] }
 0x574   : > { %v5234_v8 = vadd.f32 %v5202_v55, %v5164_v39  ;;  %v4603_v33 = vadd.f32 %v4505_v17, %v4357_v61  ;;  %v5065_v26 = vrot.slane %v4961_v14, 2  ;;  %v5277_v48 = vmul.f32 %v10566_v1, %v10996_v36 }
 0x575   : > { %v5278_v40 = vmul.f32 %v10566_v1, %v10998_v35  ;;  %v5066_v62 = vrot.slane %v4962_v60, 2  ;;  %v5523_v55 = vmul.f32 %v10571_v19, %v10996_v36  ;;  %v11020_v30 = vmul.f32 %v10571_v19, %v10998_v35 }
 0x576   : > { %v5480_v58 = vadd.f32 %v5380_v41, %v5234_v8  ;;  %v5626_v5 = vsel %vm1436_vm4, %v5623_v23, %v5625_v31  ;;  %v4673_v28 = vadd.f32 %v4641_v13, %v4603_v33  ;;  %v5381_v22 = vrot.slane %v5277_v48, 1  ;;  %v5838_v41 = vpop.permute.xlu0 %5837 }
 0x577   : > { %v5382_v59 = vrot.slane %v5278_v40, 1  ;;  %v4821_v44 = vsel %vm1189_vm3, %v4819_v3, %v4820_v47  ;;  %v5627_v63 = vrot.slane %v5523_v55, 2  ;;  %v5628_v32 = vrot.slane %v11020_v30, 2 }
 0x578   : > { %v5726_v12 = vadd.f32 %v5626_v5, %v5480_v58  ;;  %v4919_v25 = vadd.f32 %v4821_v44, %v4673_v28  ;;  %v5203_v20 = vmul.f32 %v10596_v57, %v10996_v36  ;;  %v4155_v23 = vmul.f32 %v11034_v2, %v10840_v7  ;;  %v7396_v44 = vld [vmem:[%s7531_s20 + $0xc0] sm:$0xff] }
 0x579   : > { %v4401_v51 = vmul.f32 %v11041_v43, %v10840_v7  ;;  %v5067_v16 = vsel %vm1436_vm4, %v5065_v26, %v5066_v62  ;;  %v4080_v21 = vmul.f32 %v11050_v29, %v10803_v49  ;;  %v4717_v39 = vmul.f32 %v10505_v50, %v10938_v18  ;;  %v3843_v49 = vpop.f32.mrf.mxu0 }
 0x57a   : > { %v5765_v38 = vadd.f32 %v10655_v52, %v5726_v12  ;;  %v5165_v37 = vadd.f32 %v5067_v16, %v4919_v25  ;;  %v5383_v14 = vsel %vm1189_vm3, %v5381_v22, %v5382_v59  ;;  %v4260_v31 = vrot.slane %v4155_v23, 1 }
 0x57b   : > { %v4963_v7 = vmul.f32 %v10510_v53, %v10938_v18  ;;  %v5629_v17 = vsel %vm1436_vm4, %v5627_v63, %v5628_v32  ;;  %v4506_v13 = vrot.slane %v4401_v51, 2  ;;  %v5279_v8 = vmul.f32 %v10566_v1, %v11029_v42 }
 0x57c   : > { %v5926_v61 = vadd.f32 %v5838_v41, %v5765_v38  ;;  %v5235_v3 = vadd.f32 %v5203_v20, %v5165_v37  ;;  %v4261_v50 = vsel %vm1189_vm3, %v4258_v45, %v4260_v31  ;;  %v4642_v60 = vmul.f32 %v10537_v24, %v10906_v0 }
 0x57d   : > { %v4822_v33 = vrot.slane %v4717_v39, 1  ;;  %v4358_v26 = vadd.f32 %v4261_v50, %v4080_v21  ;;  %v4507_v53 = vsel %vm1436_vm4, %v4504_v9, %v4506_v13  ;;  %v5068_v48 = vrot.slane %v4963_v7, 2  ;;  %v11104_v39 = vld [vmem:[%s12315_s12 + $0x4] ss:$0 sm:$0xff] }
 0x57e   : > { %v5204_v40 = vmul.f32 %v10596_v57, %v10998_v35  ;;  %7240 = vmatmul.mubr.msk.f32.gmra.mxu1 %vm3074_vm7, %v5926_v61  ;;  %v5481_v58 = vadd.f32 %v5383_v14, %v5235_v3  ;;  %v5384_v55 = vrot.slane %v5279_v8, 1  ;;  %v3907_v45 = vadd.f32 %v7218_v6, %v10524_v4  ;;  %v11109_v14 = vld [vmem:[#allocation3 + $0xa8] sm:$0xff]  ;;  %v11119_v61 = vld [vmem:[%s12315_s12 + $0x5] ss:$0 sm:$0xff] }
 0x57f   : > { %v3906_v24 = vadd.f32 %v3843_v49, %v10528_v27  ;;  %v4604_v5 = vadd.f32 %v4507_v53, %v4358_v26  ;;  %v4823_v28 = vsel %vm1189_vm3, %v4820_v47, %v4822_v33  ;;  %v5069_v54 = vsel %vm1436_vm4, %v5066_v62, %v5068_v48  ;;  %v5840_v27 = vpop.permute.xlu1 %5839  ;;  %v7397_v47 = vld [vmem:[%s7531_s20 + $0xc8] sm:$0xff]  ;;  %v11123_v49 = vld [vmem:[#allocation3 + $0xb0] sm:$0xff] }
 0x580   : > { %v5525_v9 = vmul.f32 %v10571_v19, %v11029_v42  ;;  %v5727_v22 = vadd.f32 %v5629_v17, %v5481_v58  ;;  %v5385_v12 = vsel %vm1189_vm3, %v5382_v59, %v5384_v55  ;;  %3995 = vst.msk [vmem:[#allocation3 + $0x141] sm:$0xff] %vm3074_vm7, %v3907_v45  ;;  %v4156_v4 = vmul.f32 %v11034_v2, %v10895_v34  ;;  %v11134_v33 = vld [vmem:[%s12315_s12 + $0x3] ss:$0 sm:$0xff] }
 0x581   : > { %3994 = vst.msk [vmem:[#allocation3 + $0x139] sm:$0xff] %vm3074_vm7, %v3906_v24  ;;  %v5815_v63 = vadd.f32 %v7396_v44, %v3906_v24  ;;  %v4674_v6 = vadd.f32 %v4642_v60, %v4604_v5  ;;  %v5816_v41 = vadd.f32 %v7397_v47, %v3907_v45  ;;  %v11088_v62 = vmul.f32 %v11034_v2, %v10906_v0  ;;  %v7221_v47 = vpop.f32.mrf.mxu0 }
 0x582   : > { %v4402_v59 = vmul.f32 %v11041_v43, %v10895_v34  ;;  %v5766_v25 = vadd.f32 %v10655_v52, %v5727_v22  ;;  %v4081_v20 = vmul.f32 %v11050_v29, %v10895_v34  ;;  %v4262_v23 = vrot.slane %v4156_v4, 1 }
 0x583   : > { %v11097_v51 = vmul.f32 %v11041_v43, %v10906_v0  ;;  %7316 = vmatprep.mubr.msk.f32.mxu0 %vm3074_vm7, %v5815_v63  ;;  %v4920_v38 = vadd.f32 %v4823_v28, %v4674_v6  ;;  %v4263_v16 = vrot.slane %v11088_v62, 1  ;;  %v4718_v37 = vmul.f32 %v11104_v39, %v10996_v36 }
 0x584   : > { %v4508_v21 = vrot.slane %v4402_v59, 2  ;;  %7317 = vmatmul.mubr.msk.f32.gmra.mxu0 %vm3074_vm7, %v5816_v41  ;;  %v5927_v34 = vadd.f32 %v5840_v27, %v5766_v25  ;;  %v11114_v7 = vmul.f32 %v11104_v39, %v10998_v35  ;;  %v4964_v17 = vmul.f32 %v11119_v61, %v10996_v36 }
 0x585   : > { %v4509_v31 = vrot.slane %v11097_v51, 2  ;;  %v5166_v13 = vadd.f32 %v5069_v54, %v4920_v38  ;;  %v5630_v8 = vrot.slane %v5525_v9, 2  ;;  %v4264_v3 = vsel %vm1189_vm3, %v4262_v23, %v4263_v16 }
 0x586   : > { %v11128_v50 = vmul.f32 %v11119_v61, %v10998_v35  ;;  %7242 = vmatprep.mubr.msk.f32.mxu1 %vm3074_vm7, %v5927_v34  ;;  %v4359_v60 = vadd.f32 %v4264_v3, %v4081_v20  ;;  %v4643_v26 = vmul.f32 %v11134_v33, %v10996_v36  ;;  %v4824_v53 = vrot.slane %v4718_v37, 1  ;;  %v11166_v20 = vld [vmem:[#allocation3 + $0xb8] sm:$0x3] }
 0x587   : > { %v4825_v48 = vrot.slane %v11114_v7, 1  ;;  %v5236_v58 = vadd.f32 %v5204_v40, %v5166_v13  ;;  %v4510_v55 = vsel %vm1436_vm4, %v4508_v21, %v4509_v31  ;;  %v5070_v45 = vrot.slane %v4964_v17, 2  ;;  %v3853_v17 = vpop.f32.mrf.mxu0 }
 0x588   : > { %v5280_v24 = vmul.f32 %v10566_v1, %v11109_v14  ;;  %v4605_v5 = vadd.f32 %v4510_v55, %v4359_v60  ;;  %v5071_v28 = vrot.slane %v11128_v50, 2  ;;  %v11145_v54 = vmul.f32 %v10566_v1, %v11123_v49 }
 0x589   : > { %v5526_v9 = vmul.f32 %v10571_v19, %v11109_v14  ;;  %v5482_v22 = vadd.f32 %v5385_v12, %v5236_v58  ;;  %v5631_v40 = vsel %vm1436_vm4, %v5628_v32, %v5630_v8  ;;  %v11154_v63 = vmul.f32 %v10571_v19, %v11123_v49  ;;  %v5842_v12 = vpop.permute.xlu0 %5841  ;;  %v11192_v58 = vld [vmem:[%s12315_s12 + $0x6] ss:$0 sm:$0xff] }
 0x58a   : > { %v5386_v44 = vrot.slane %v5280_v24, 1  ;;  %v4675_v4 = vadd.f32 %v4643_v26, %v4605_v5  ;;  %v4826_v27 = vsel %vm1189_vm3, %v4824_v53, %v4825_v48  ;;  %v5387_v6 = vrot.slane %v11145_v54, 1 }
 0x58b   : > { %v5632_v1 = vrot.slane %v5526_v9, 2  ;;  %v5728_v41 = vadd.f32 %v5631_v40, %v5482_v22  ;;  %v5633_v62 = vrot.slane %v11154_v63, 2  ;;  %v4158_v30 = vmul.f32 %v11034_v2, %v10938_v18 }
 0x58c   : > { %v4404_v32 = vmul.f32 %v11041_v43, %v10938_v18  ;;  %v4921_v59 = vadd.f32 %v4826_v27, %v4675_v4  ;;  %v5072_v19 = vsel %vm1436_vm4, %v5070_v45, %v5071_v28  ;;  %v5205_v25 = vmul.f32 %v10596_v57, %v11109_v14  ;;  %v11205_v4 = vld [vmem:[%s12315_s12 + $0x8] ss:$0 sm:$0xff] }
 0x58d   : > { %v4720_v23 = vmul.f32 %v11104_v39, %v11029_v42  ;;  %v5767_v51 = vadd.f32 %v10655_v52, %v5728_v41  ;;  %v5388_v38 = vsel %vm1189_vm3, %v5386_v44, %v5387_v6  ;;  %v4082_v21 = vmul.f32 %v11050_v29, %v10906_v0  ;;  %v11185_v0 = vld [vmem:[%s12315_s12 + $0x7] ss:$0 sm:$0xff] }
 0x58e   : > { %v4265_v18 = vrot.slane %v4158_v30, 1  ;;  %v5167_v37 = vadd.f32 %v5072_v19, %v4921_v59  ;;  %v5634_v34 = vsel %vm1436_vm4, %v5632_v1, %v5633_v62  ;;  %v4644_v57 = vmul.f32 %v11134_v33, %v10998_v35  ;;  %v5844_v30 = vpop.permute.xlu1 %5843 }
 0x58f   : > { %v4966_v7 = vmul.f32 %v11119_v61, %v11029_v42  ;;  %v5928_v13 = vadd.f32 %v5842_v12, %v5767_v51  ;;  %v4511_v3 = vrot.slane %v4404_v32, 2  ;;  %v5282_v50 = vmul.f32 %v11185_v0, %v11166_v20 }
 0x590   : > { %v4266_v8 = vsel %vm1189_vm3, %v4263_v16, %v4265_v18  ;;  %v5237_v60 = vadd.f32 %v5205_v25, %v5167_v37  ;;  %v4827_v53 = vrot.slane %v4720_v23, 1  ;;  %v5206_v16 = vmul.f32 %v11192_v58, %v11123_v49 }
 0x591   : > { %v4360_v26 = vadd.f32 %v4266_v8, %v4082_v21  ;;  %v4512_v55 = vsel %vm1436_vm4, %v4509_v31, %v4511_v3  ;;  %v5073_v45 = vrot.slane %v4966_v7, 2  ;;  %7243 = vmatmul.mubr.msk.f32.gmra.mxu1 %vm3074_vm7, %v5928_v13  ;;  %v3909_v24 = vadd.f32 %v7221_v47, %v10531_v10  ;;  %v7404_v10 = vld [vmem:[%s7531_s20 + $0xd8] sm:$0xff] }
 0x592   : > { %v3908_v5 = vadd.f32 %v3853_v17, %v10540_v11  ;;  %v5483_v54 = vadd.f32 %v5388_v38, %v5237_v60  ;;  %v4828_v22 = vsel %vm1189_vm3, %v4825_v48, %v4827_v53  ;;  %v5389_v40 = vrot.slane %v5282_v50, 1  ;;  %v7405_v11 = vld [vmem:[%s7531_s20 + $0xd0] sm:$0xff] }
 0x593   : > { %v4606_v9 = vadd.f32 %v4512_v55, %v4360_v26  ;;  %v5074_v44 = vsel %vm1436_vm4, %v5071_v28, %v5073_v45  ;;  %v5528_v31 = vmul.f32 %v11205_v4, %v11166_v20  ;;  %3997 = vst.msk [vmem:[#allocation3 + $0x159] sm:$0xff] %vm3074_vm7, %v3909_v24  ;;  %v5818_v27 = vadd.f32 %v7404_v10, %v3909_v24 }
 0x594   : > { %3996 = vst.msk [vmem:[#allocation3 + $0x151] sm:$0xff] %vm3074_vm7, %v3908_v5  ;;  %v5817_v1 = vadd.f32 %v7405_v11, %v3908_v5  ;;  %v5729_v48 = vadd.f32 %v5634_v34, %v5483_v54  ;;  %v4159_v28 = vmul.f32 %v11034_v2, %v10996_v36  ;;  %v11217_v41 = vmul.f32 %v11034_v2, %v10998_v35 }
 0x595   : > { %v4676_v47 = vadd.f32 %v4644_v57, %v4606_v9  ;;  %v5390_v32 = vsel %vm1189_vm3, %v5387_v6, %v5389_v40  ;;  %v4083_v12 = vmul.f32 %v11050_v29, %v10996_v36  ;;  %v4405_v59 = vmul.f32 %v11041_v43, %v10996_v36  ;;  %v11239_v57 = vld [vmem:[#allocation3 + $0xc0] sm:$0xff] }
 0x596   : > { %v11226_v19 = vmul.f32 %v11041_v43, %v10998_v35  ;;  %7319 = vmatprep.mubr.msk.f32.mxu0 %vm3074_vm7, %v5817_v1  ;;  %v5768_v25 = vadd.f32 %v10655_v52, %v5729_v48  ;;  %v4267_v51 = vrot.slane %v4159_v28, 1  ;;  %v4268_v38 = vrot.slane %v11217_v41, 1  ;;  %v11241_v52 = vld [vmem:[#allocation3 + $0xc8] sm:$0xff]  ;;  %v7224_v28 = vpop.f32.mrf.mxu0  ;;  %v5846_v41 = vpop.permute.xlu0 %5845 }
 0x597   : > { %v4922_v23 = vadd.f32 %v4828_v22, %v4676_v47  ;;  %7320 = vmatmul.mubr.msk.f32.gmra.mxu0 %vm3074_vm7, %v5818_v27  ;;  %v4513_v6 = vrot.slane %v4405_v59, 2  ;;  %v4721_v36 = vmul.f32 %v11104_v39, %v11109_v14  ;;  %v11237_v18 = vmul.f32 %v11104_v39, %v11123_v49  ;;  %v11279_v59 = vld [vmem:[%s12316_s13] ss:$0 sm:$0xff] }
 0x598   : > { %v4514_v21 = vrot.slane %v11226_v19, 2  ;;  %v5929_v37 = vadd.f32 %v5844_v30, %v5768_v25  ;;  %v4269_v7 = vsel %vm1189_vm3, %v4267_v51, %v4268_v38  ;;  %v4967_v17 = vmul.f32 %v11119_v61, %v11109_v14 }
 0x599   : > { %v5168_v34 = vadd.f32 %v5074_v44, %v4922_v23  ;;  %v5635_v13 = vrot.slane %v5528_v31, 2  ;;  %v4361_v8 = vadd.f32 %v4269_v7, %v4083_v12  ;;  %v4645_v50 = vmul.f32 %v11134_v33, %v11109_v14  ;;  %v11270_v12 = vld [vmem:[#allocation3 + $0xd0] sm:$0x3] }
 0x59a   : > { %v4515_v3 = vsel %vm1436_vm4, %v4513_v6, %v4514_v21  ;;  %7245 = vmatprep.mubr.msk.f32.mxu1 %vm3074_vm7, %v5929_v37  ;;  %v4829_v26 = vrot.slane %v4721_v36, 1  ;;  %v4830_v53 = vrot.slane %v11237_v18, 1  ;;  %v4968_v55 = vmul.f32 %v11119_v61, %v11123_v49 }
 0x59b   : > { %v5238_v60 = vadd.f32 %v5206_v16, %v5168_v34  ;;  %v4607_v45 = vadd.f32 %v4515_v3, %v4361_v8  ;;  %v5075_v24 = vrot.slane %v4967_v17, 2  ;;  %v5283_v5 = vmul.f32 %v11185_v0, %v11239_v57 }
 0x59c   : > { %v5284_v54 = vmul.f32 %v11185_v0, %v11241_v52  ;;  %v5076_v22 = vrot.slane %v4968_v55, 2  ;;  %v5529_v16 = vmul.f32 %v11205_v4, %v11239_v57  ;;  %v11261_v40 = vmul.f32 %v11205_v4, %v11241_v52 }
 0x59d   : > { %v5484_v9 = vadd.f32 %v5390_v32, %v5238_v60  ;;  %v5636_v44 = vsel %vm1436_vm4, %v5633_v62, %v5635_v13  ;;  %v4677_v31 = vadd.f32 %v4645_v50, %v4607_v45  ;;  %v5391_v10 = vrot.slane %v5283_v5, 1 }
 0x59e   : > { %v5392_v27 = vrot.slane %v5284_v54, 1  ;;  %v4831_v1 = vsel %vm1189_vm3, %v4829_v26, %v4830_v53  ;;  %v5637_v48 = vrot.slane %v5529_v16, 2  ;;  %v5638_v47 = vrot.slane %v11261_v40, 2 }
 0x59f   : > { %v5730_v11 = vadd.f32 %v5636_v44, %v5484_v9  ;;  %v4923_v30 = vadd.f32 %v4831_v1, %v4677_v31  ;;  %v5207_v32 = vmul.f32 %v11192_v58, %v11239_v57  ;;  %v4161_v63 = vmul.f32 %v11034_v2, %v11029_v42  ;;  %v7407_v1 = vld [vmem:[%s7531_s20 + $0xe0] sm:$0xff] }
 0x5a0   : > { %v4407_v62 = vmul.f32 %v11041_v43, %v11029_v42  ;;  %v5077_v25 = vsel %vm1436_vm4, %v5075_v24, %v5076_v22  ;;  %v4084_v23 = vmul.f32 %v11050_v29, %v10998_v35  ;;  %v4723_v51 = vmul.f32 %v11104_v39, %v11166_v20  ;;  %v3863_v35 = vpop.f32.mrf.mxu0 }
 0x5a1   : > { %v5769_v19 = vadd.f32 %v11279_v59, %v5730_v11  ;;  %v5169_v6 = vadd.f32 %v5077_v25, %v4923_v30  ;;  %v5393_v36 = vsel %vm1189_vm3, %v5391_v10, %v5392_v27  ;;  %v4270_v18 = vrot.slane %v4161_v63, 1 }
 0x5a2   : > { %v4969_v42 = vmul.f32 %v11119_v61, %v11166_v20  ;;  %v5639_v34 = vsel %vm1436_vm4, %v5637_v48, %v5638_v47  ;;  %v4516_v7 = vrot.slane %v4407_v62, 2  ;;  %v5285_v17 = vmul.f32 %v11185_v0, %v11270_v12 }
 0x5a3   : > { %v5930_v37 = vadd.f32 %v5846_v41, %v5769_v19  ;;  %v5239_v13 = vadd.f32 %v5207_v32, %v5169_v6  ;;  %v4271_v8 = vsel %vm1189_vm3, %v4268_v38, %v4270_v18  ;;  %v4646_v3 = vmul.f32 %v11134_v33, %v11123_v49  ;;  %v12808_v38 = vld [vmem:[#allocation54_spill] sm:$0xff]  ;;  %v11333_v18 = vld [vmem:[#allocation3 + $0xd8] sm:$0xff] }
 0x5a4   : > { %v4832_v50 = vrot.slane %v4723_v51, 1  ;;  %v4362_v60 = vadd.f32 %v4271_v8, %v4084_v23  ;;  %v4517_v26 = vsel %vm1436_vm4, %v4514_v21, %v4516_v7  ;;  %v5078_v55 = vrot.slane %v4969_v42, 2 }
 0x5a5   : > { %v5208_v45 = vmul.f32 %v11192_v58, %v11241_v52  ;;  %7246 = vmatmul.mubr.msk.f32.gmra.mxu1 %vm3074_vm7, %v5930_v37  ;;  %v5485_v24 = vadd.f32 %v5393_v36, %v5239_v13  ;;  %v5394_v5 = vrot.slane %v5285_v17, 1  ;;  %v3911_v54 = vadd.f32 %v7224_v28, %v10547_v15  ;;  %v5848_v28 = vpop.permute.xlu1 %5847  ;;  %v11342_v17 = vld [vmem:[#allocation3 + $0xe0] sm:$0xff] }
 0x5a6   : > { %v3910_v9 = vadd.f32 %v3863_v35, %v12808_v38  ;;  %v4608_v16 = vadd.f32 %v4517_v26, %v4362_v60  ;;  %v4833_v44 = vsel %vm1189_vm3, %v4830_v53, %v4832_v50  ;;  %v5079_v31 = vsel %vm1436_vm4, %v5076_v22, %v5078_v55  ;;  %v7408_v53 = vld [vmem:[%s7531_s20 + $0xe8] sm:$0xff] }
 0x5a7   : > { %v5531_v21 = vmul.f32 %v11205_v4, %v11270_v12  ;;  %v5731_v10 = vadd.f32 %v5639_v34, %v5485_v24  ;;  %v5395_v11 = vsel %vm1189_vm3, %v5392_v27, %v5394_v5  ;;  %3999 = vst.msk [vmem:[#allocation3 + $0x171] sm:$0xff] %vm3074_vm7, %v3911_v54  ;;  %v4162_v15 = vmul.f32 %v11034_v2, %v11109_v14 }
 0x5a8   : > { %3998 = vst.msk [vmem:[#allocation3 + $0x169] sm:$0xff] %vm3074_vm7, %v3910_v9  ;;  %v5819_v48 = vadd.f32 %v7407_v1, %v3910_v9  ;;  %v4678_v41 = vadd.f32 %v4646_v3, %v4608_v16  ;;  %v5820_v30 = vadd.f32 %v7408_v53, %v3911_v54  ;;  %v11317_v22 = vmul.f32 %v11034_v2, %v11123_v49 }
 0x5a9   : > { %v4408_v27 = vmul.f32 %v11041_v43, %v11109_v14  ;;  %v5770_v32 = vadd.f32 %v11279_v59, %v5731_v10  ;;  %v4085_v63 = vmul.f32 %v11050_v29, %v11109_v14  ;;  %v4272_v62 = vrot.slane %v4162_v15, 1 }
 0x5aa   : > { %v11326_v19 = vmul.f32 %v11041_v43, %v11123_v49  ;;  %7322 = vmatprep.mubr.msk.f32.mxu0 %vm3074_vm7, %v5819_v48  ;;  %v4924_v25 = vadd.f32 %v4833_v44, %v4678_v41  ;;  %v4273_v23 = vrot.slane %v11317_v22, 1  ;;  %v4724_v6 = vmul.f32 %v11104_v39, %v11239_v57 }
 0x5ab   : > { %v4518_v51 = vrot.slane %v4408_v27, 2  ;;  %7323 = vmatmul.mubr.msk.f32.gmra.mxu0 %vm3074_vm7, %v5820_v30  ;;  %v5931_v36 = vadd.f32 %v5848_v28, %v5770_v32  ;;  %v11338_v42 = vmul.f32 %v11104_v39, %v11241_v52  ;;  %v4970_v37 = vmul.f32 %v11119_v61, %v11239_v57  ;;  %v7227_v28 = vpop.f32.mrf.mxu0  ;;  %v11374_v32 = vld [vmem:[#allocation3 + $0xe8] sm:$0x3] }
 0x5ac   : > { %v4519_v14 = vrot.slane %v11326_v19, 2  ;;  %v5170_v34 = vadd.f32 %v5079_v31, %v4924_v25  ;;  %v5640_v7 = vrot.slane %v5531_v21, 2  ;;  %v4274_v35 = vsel %vm1189_vm3, %v4272_v62, %v4273_v23 }
 0x5ad   : > { %v4971_v13 = vmul.f32 %v11119_v61, %v11241_v52  ;;  %7248 = vmatprep.mubr.msk.f32.mxu1 %vm3074_vm7, %v5931_v36  ;;  %v4363_v8 = vadd.f32 %v4274_v35, %v4085_v63  ;;  %v4647_v3 = vmul.f32 %v11134_v33, %v11239_v57  ;;  %v4834_v50 = vrot.slane %v4724_v6, 1 }
 0x5ae   : > { %v4835_v60 = vrot.slane %v11338_v42, 1  ;;  %v5240_v26 = vadd.f32 %v5208_v45, %v5170_v34  ;;  %v4520_v55 = vsel %vm1436_vm4, %v4518_v51, %v4519_v14  ;;  %v5080_v24 = vrot.slane %v4970_v37, 2  ;;  %v3873_v37 = vpop.f32.mrf.mxu0 }
 0x5af   : > { %v5286_v5 = vmul.f32 %v11185_v0, %v11333_v18  ;;  %v4609_v54 = vadd.f32 %v4520_v55, %v4363_v8  ;;  %v5081_v38 = vrot.slane %v4971_v13, 2  ;;  %v5287_v9 = vmul.f32 %v11185_v0, %v11342_v17 }
 0x5b0   : > { %v5532_v16 = vmul.f32 %v11205_v4, %v11333_v18  ;;  %v5486_v44 = vadd.f32 %v5395_v11, %v5240_v26  ;;  %v5641_v31 = vsel %vm1436_vm4, %v5638_v47, %v5640_v7  ;;  %v11363_v21 = vmul.f32 %v11205_v4, %v11342_v17  ;;  %v5850_v47 = vpop.permute.xlu0 %5849 }
 0x5b1   : > { %v5396_v45 = vrot.slane %v5286_v5, 1  ;;  %v4679_v10 = vadd.f32 %v4647_v3, %v4609_v54  ;;  %v4836_v1 = vsel %vm1189_vm3, %v4834_v50, %v4835_v60  ;;  %v5397_v48 = vrot.slane %v5287_v9, 1 }
 0x5b2   : > { %v5642_v15 = vrot.slane %v5532_v16, 2  ;;  %v5732_v41 = vadd.f32 %v5641_v31, %v5486_v44  ;;  %v5643_v53 = vrot.slane %v11363_v21, 2  ;;  %v4164_v11 = vmul.f32 %v11034_v2, %v11166_v20 }
 0x5b3   : > { %v4410_v40 = vmul.f32 %v11041_v43, %v11166_v20  ;;  %v4925_v30 = vadd.f32 %v4836_v1, %v4679_v10  ;;  %v5082_v22 = vsel %vm1436_vm4, %v5080_v24, %v5081_v38  ;;  %v5209_v27 = vmul.f32 %v11192_v58, %v11333_v18  ;;  %v7410_v10 = vld [vmem:[%s7531_s20 + $0xf0] sm:$0xff] }
 0x5b4   : > { %v4726_v63 = vmul.f32 %v11104_v39, %v11270_v12  ;;  %v5771_v62 = vadd.f32 %v11279_v59, %v5732_v41  ;;  %v5398_v19 = vsel %vm1189_vm3, %v5396_v45, %v5397_v48  ;;  %v4086_v25 = vmul.f32 %v11050_v29, %v11123_v49 }
 0x5b5   : > { %v4275_v20 = vrot.slane %v4164_v11, 1  ;;  %v5171_v51 = vadd.f32 %v5082_v22, %v4925_v30  ;;  %v5644_v6 = vsel %vm1436_vm4, %v5642_v15, %v5643_v53  ;;  %v4648_v36 = vmul.f32 %v11134_v33, %v11241_v52 }
 0x5b6   : > { %v4972_v42 = vmul.f32 %v11119_v61, %v11270_v12  ;;  %v5932_v34 = vadd.f32 %v5850_v47, %v5771_v62  ;;  %v4521_v35 = vrot.slane %v4410_v40, 2  ;;  %v5288_v49 = vmul.f32 %v11185_v0, %v11374_v32 }
 0x5b7   : > { %v4276_v7 = vsel %vm1189_vm3, %v4273_v23, %v4275_v20  ;;  %v5241_v13 = vadd.f32 %v5209_v27, %v5171_v51  ;;  %v4837_v3 = vrot.slane %v4726_v63, 1  ;;  %v5210_v50 = vmul.f32 %v11192_v58, %v11342_v17  ;;  %v11432_v20 = vld [vmem:[#allocation3 + $0xf0] sm:$0xff]  ;;  %v11434_v51 = vld [vmem:[#allocation3 + $0xf8] sm:$0xff] }
 0x5b8   : > { %v4364_v8 = vadd.f32 %v4276_v7, %v4086_v25  ;;  %v4522_v26 = vsel %vm1436_vm4, %v4519_v14, %v4521_v35  ;;  %v5083_v55 = vrot.slane %v4972_v42, 2  ;;  %7249 = vmatmul.mubr.msk.f32.gmra.mxu1 %vm3074_vm7, %v5932_v34  ;;  %v3913_v24 = vadd.f32 %v7227_v28, %v10752_v46  ;;  %v7409_v14 = vld [vmem:[%s7531_s20 + $0xf8] sm:$0xff] }
 0x5b9   : > { %v3912_v23 = vadd.f32 %v3873_v37, %v10828_v56  ;;  %v5487_v5 = vadd.f32 %v5398_v19, %v5241_v13  ;;  %v4838_v9 = vsel %vm1189_vm3, %v4835_v60, %v4837_v3  ;;  %v5399_v16 = vrot.slane %v5288_v49, 1 }
 0x5ba   : > { %v4610_v54 = vadd.f32 %v4522_v26, %v4364_v8  ;;  %v5084_v44 = vsel %vm1436_vm4, %v5081_v38, %v5083_v55  ;;  %v5534_v31 = vmul.f32 %v11205_v4, %v11374_v32  ;;  %4001 = vst.msk [vmem:[#allocation3 + $0x189] sm:$0xff] %vm3074_vm7, %v3913_v24  ;;  %v5822_v45 = vadd.f32 %v7409_v14, %v3913_v24  ;;  %v5852_v38 = vpop.permute.xlu1 %5851 }
 0x5bb   : > { %4000 = vst.msk [vmem:[#allocation3 + $0x181] sm:$0xff] %vm3074_vm7, %v3912_v23  ;;  %v5821_v46 = vadd.f32 %v7410_v10, %v3912_v23  ;;  %v5733_v1 = vadd.f32 %v5644_v6, %v5487_v5  ;;  %v4165_v15 = vmul.f32 %v11034_v2, %v11239_v57  ;;  %v11410_v60 = vmul.f32 %v11034_v2, %v11241_v52 }
 0x5bc   : > { %v4680_v56 = vadd.f32 %v4648_v36, %v4610_v54  ;;  %v5400_v28 = vsel %vm1189_vm3, %v5397_v48, %v5399_v16  ;;  %v4087_v41 = vmul.f32 %v11050_v29, %v11239_v57  ;;  %v4411_v11 = vmul.f32 %v11041_v43, %v11239_v57 }
 0x5bd   : > { %v11419_v40 = vmul.f32 %v11041_v43, %v11241_v52  ;;  %7325 = vmatprep.mubr.msk.f32.mxu0 %vm3074_vm7, %v5821_v46  ;;  %v5772_v47 = vadd.f32 %v11279_v59, %v5733_v1  ;;  %v4277_v22 = vrot.slane %v4165_v15, 1  ;;  %v4278_v27 = vrot.slane %v11410_v60, 1  ;;  %v5854_v1 = vpop.permute.xlu0 %5853  ;;  %v11468_v60 = vld [vmem:[#allocation3 + $0x100] sm:$0x3] }
 0x5be   : > { %v4926_v30 = vadd.f32 %v4838_v9, %v4680_v56  ;;  %7326 = vmatmul.mubr.msk.f32.gmra.mxu0 %vm3074_vm7, %v5822_v45  ;;  %v4523_v48 = vrot.slane %v4411_v11, 2  ;;  %v4727_v57 = vmul.f32 %v11104_v39, %v11333_v18  ;;  %v11430_v62 = vmul.f32 %v11104_v39, %v11342_v17 }
 0x5bf   : > { %v4524_v63 = vrot.slane %v11419_v40, 2  ;;  %v5933_v19 = vadd.f32 %v5852_v38, %v5772_v47  ;;  %v4279_v6 = vsel %vm1189_vm3, %v4277_v22, %v4278_v27  ;;  %v4973_v36 = vmul.f32 %v11119_v61, %v11333_v18 }
 0x5c0   : > { %v5172_v25 = vadd.f32 %v5084_v44, %v4926_v30  ;;  %v5645_v42 = vrot.slane %v5534_v31, 2  ;;  %v4365_v37 = vadd.f32 %v4279_v6, %v4087_v41  ;;  %v4649_v7 = vmul.f32 %v11134_v33, %v11333_v18 }
 0x5c1   : > { %v4525_v34 = vsel %vm1436_vm4, %v4523_v48, %v4524_v63  ;;  %7251 = vmatprep.mubr.msk.f32.mxu1 %vm3074_vm7, %v5933_v19  ;;  %v4839_v49 = vrot.slane %v4727_v57, 1  ;;  %v4840_v13 = vrot.slane %v11430_v62, 1  ;;  %v4974_v8 = vmul.f32 %v11119_v61, %v11342_v17 }
 0x5c2   : > { %v5242_v35 = vadd.f32 %v5210_v50, %v5172_v25  ;;  %v4611_v3 = vadd.f32 %v4525_v34, %v4365_v37  ;;  %v5085_v26 = vrot.slane %v4973_v36, 2  ;;  %v5289_v55 = vmul.f32 %v11185_v0, %v11432_v20 }
 0x5c3   : > { %v11452_v24 = vmul.f32 %v11185_v0, %v11434_v51  ;;  %v5086_v5 = vrot.slane %v4974_v8, 2  ;;  %v5535_v50 = vmul.f32 %v11205_v4, %v11432_v20  ;;  %v11458_v54 = vmul.f32 %v11205_v4, %v11434_v51 }
 0x5c4   : > { %v5488_v23 = vadd.f32 %v5400_v28, %v5242_v35  ;;  %v5646_v9 = vsel %vm1436_vm4, %v5643_v53, %v5645_v42  ;;  %v4681_v16 = vadd.f32 %v4649_v7, %v4611_v3  ;;  %v5401_v44 = vrot.slane %v5289_v55, 1 }
 0x5c5   : > { %v5402_v31 = vrot.slane %v11452_v24, 1  ;;  %v4841_v45 = vsel %vm1189_vm3, %v4839_v49, %v4840_v13  ;;  %v5647_v10 = vrot.slane %v5535_v50, 2  ;;  %v5648_v46 = vrot.slane %v11458_v54, 2 }
 0x5c6   : > { %v5734_v14 = vadd.f32 %v5646_v9, %v5488_v23  ;;  %v4927_v56 = vadd.f32 %v4841_v45, %v4681_v16  ;;  %v5211_v15 = vmul.f32 %v11192_v58, %v11432_v20  ;;  %v4167_v21 = vmul.f32 %v11034_v2, %v11270_v12 }
 0x5c7   : > { %v4413_v53 = vmul.f32 %v11041_v43, %v11270_v12  ;;  %v5087_v28 = vsel %vm1436_vm4, %v5085_v26, %v5086_v5  ;;  %v4088_v41 = vmul.f32 %v11050_v29, %v11241_v52  ;;  %v4729_v11 = vmul.f32 %v11104_v39, %v11374_v32 }
 0x5c8   : > { %v5773_v38 = vadd.f32 %v11279_v59, %v5734_v14  ;;  %v5173_v47 = vadd.f32 %v5087_v28, %v4927_v56  ;;  %v5403_v30 = vsel %vm1189_vm3, %v5401_v44, %v5402_v31  ;;  %v4280_v22 = vrot.slane %v4167_v21, 1  ;;  %v11522_v21 = vld [vmem:[#allocation3 + $0x108] sm:$0xff] }
 0x5c9   : > { %v4975_v48 = vmul.f32 %v11119_v61, %v11374_v32  ;;  %v5649_v57 = vsel %vm1436_vm4, %v5647_v10, %v5648_v46  ;;  %v4650_v52 = vmul.f32 %v11134_v33, %v11342_v17  ;;  %v5291_v62 = vmul.f32 %v11185_v0, %v11468_v60 }
 0x5ca   : > { %v5934_v12 = vadd.f32 %v5854_v1, %v5773_v38  ;;  %v5243_v19 = vadd.f32 %v5211_v15, %v5173_v47  ;;  %v4281_v25 = vsel %vm1189_vm3, %v4278_v27, %v4280_v22  ;;  %v4526_v6 = vrot.slane %v4413_v53, 2  ;;  %v11524_v53 = vld [vmem:[#allocation3 + $0x110] sm:$0xff] }
 0x5cb   : > { %v4842_v36 = vrot.slane %v4729_v11, 1  ;;  %v4366_v42 = vadd.f32 %v4281_v25, %v4088_v41  ;;  %v5088_v37 = vrot.slane %v4975_v48, 2  ;;  %v5212_v34 = vmul.f32 %v11192_v58, %v11434_v51 }
 0x5cc   : > { %v5537_v7 = vmul.f32 %v11205_v4, %v11468_v60  ;;  %7252 = vmatmul.mubr.msk.f32.gmra.mxu1 %vm3074_vm7, %v5934_v12  ;;  %v5489_v35 = vadd.f32 %v5403_v30, %v5243_v19  ;;  %v4527_v49 = vsel %vm1436_vm4, %v4524_v63, %v4526_v6  ;;  %v4168_v27 = vmul.f32 %v11034_v2, %v11333_v18 }
 0x5cd   : > { %v4843_v8 = vsel %vm1189_vm3, %v4840_v13, %v4842_v36  ;;  %v4612_v3 = vadd.f32 %v4527_v49, %v4366_v42  ;;  %v5089_v26 = vsel %vm1436_vm4, %v5086_v5, %v5088_v37  ;;  %v5404_v55 = vrot.slane %v5291_v62, 1  ;;  %v5856_v13 = vpop.permute.xlu1 %5855 }
 0x5ce   : > { %v11507_v23 = vmul.f32 %v11034_v2, %v11342_v17  ;;  %v5735_v50 = vadd.f32 %v5649_v57, %v5489_v35  ;;  %v4282_v9 = vrot.slane %v4168_v27, 1  ;;  %v4414_v40 = vmul.f32 %v11041_v43, %v11333_v18 }
 0x5cf   : > { %v11513_v63 = vmul.f32 %v11041_v43, %v11342_v17  ;;  %v4682_v16 = vadd.f32 %v4650_v52, %v4612_v3  ;;  %v5650_v44 = vrot.slane %v5537_v7, 2  ;;  %v4089_v5 = vmul.f32 %v11050_v29, %v11333_v18 }
 0x5d0   : > { %v4283_v14 = vrot.slane %v11507_v23, 1  ;;  %v5774_v45 = vadd.f32 %v11279_v59, %v5735_v50  ;;  %v4528_v10 = vrot.slane %v4414_v40, 2  ;;  %v4730_v56 = vmul.f32 %v11104_v39, %v11432_v20  ;;  %v11560_v50 = vld [vmem:[#allocation3 + $0x118] sm:$0x3] }
 0x5d1   : > { %v4529_v1 = vrot.slane %v11513_v63, 2  ;;  %v4928_v15 = vadd.f32 %v4843_v8, %v4682_v16  ;;  %v4731_v18 = vmul.f32 %v11104_v39, %v11434_v51  ;;  %v4976_v28 = vmul.f32 %v11119_v61, %v11432_v20  ;;  %v5858_v63 = vpop.permute.xlu0 %5857 }
 0x5d2   : > { %v4284_v38 = vsel %vm1189_vm3, %v4282_v9, %v4283_v14  ;;  %v5935_v41 = vadd.f32 %v5856_v13, %v5774_v45  ;;  %v4651_v30 = vmul.f32 %v11134_v33, %v11432_v20  ;;  %v4844_v48 = vrot.slane %v4730_v56, 1 }
 0x5d3   : > { %v4367_v11 = vadd.f32 %v4284_v38, %v4089_v5  ;;  %v4530_v47 = vsel %vm1436_vm4, %v4528_v10, %v4529_v1  ;;  %v5174_v22 = vadd.f32 %v5089_v26, %v4928_v15  ;;  %v4845_v12 = vrot.slane %v4731_v18, 1 }
 0x5d4   : > { %v4977_v57 = vmul.f32 %v11119_v61, %v11434_v51  ;;  %7254 = vmatprep.mubr.msk.f32.mxu1 %vm3074_vm7, %v5935_v41  ;;  %v5090_v62 = vrot.slane %v4976_v28, 2  ;;  %v5292_v19 = vmul.f32 %v11185_v0, %v11522_v21  ;;  %v5293_v25 = vmul.f32 %v11185_v0, %v11524_v53 }
 0x5d5   : > { %v4613_v52 = vadd.f32 %v4530_v47, %v4367_v11  ;;  %v5244_v6 = vadd.f32 %v5212_v34, %v5174_v22  ;;  %v5405_v36 = vsel %vm1189_vm3, %v5402_v31, %v5404_v55  ;;  %v5538_v37 = vmul.f32 %v11205_v4, %v11522_v21 }
 0x5d6   : > { %v5091_v42 = vrot.slane %v4977_v57, 2  ;;  %v5651_v7 = vsel %vm1436_vm4, %v5648_v46, %v5650_v44  ;;  %v5213_v49 = vmul.f32 %v11192_v58, %v11522_v21  ;;  %v11553_v8 = vmul.f32 %v11205_v4, %v11524_v53 }
 0x5d7   : > { %v4683_v35 = vadd.f32 %v4651_v30, %v4613_v52  ;;  %v5490_v34 = vadd.f32 %v5405_v36, %v5244_v6  ;;  %v4846_v24 = vsel %vm1189_vm3, %v4844_v48, %v4845_v12  ;;  %v5406_v31 = vrot.slane %v5292_v19, 1  ;;  %v5860_v36 = vpop.permute.xlu1 %5859 }
 0x5d8   : > { %v5407_v27 = vrot.slane %v5293_v25, 1  ;;  %v5092_v26 = vsel %vm1436_vm4, %v5090_v62, %v5091_v42  ;;  %v5652_v55 = vrot.slane %v5538_v37, 2  ;;  %v4170_v54 = vmul.f32 %v11034_v2, %v11374_v32 }
 0x5d9   : > { %v4929_v3 = vadd.f32 %v4846_v24, %v4683_v35  ;;  %v5736_v46 = vadd.f32 %v5651_v7, %v5490_v34  ;;  %v5653_v23 = vrot.slane %v11553_v8, 2  ;;  %v4416_v9 = vmul.f32 %v11041_v43, %v11374_v32  ;;  %v11659_v8 = vld [vmem:[%s12315_s12 + $0x2] ss:$0 sm:$0xff] }
 0x5da   : > { %v4732_v40 = vmul.f32 %v11104_v39, %v11468_v60  ;;  %v4090_v16 = vmul.f32 %v11050_v29, %v11342_v17  ;;  %v4285_v44 = vrot.slane %v4170_v54, 1  ;;  %v4978_v5 = vmul.f32 %v11119_v61, %v11468_v60  ;;  %v11611_v54 = vld [vmem:[#allocation3 + $0x120] sm:$0xff] }
 0x5db   : > { %v5175_v13 = vadd.f32 %v5092_v26, %v4929_v3  ;;  %v5775_v45 = vadd.f32 %v11279_v59, %v5736_v46  ;;  %v5408_v10 = vsel %vm1189_vm3, %v5406_v31, %v5407_v27  ;;  %v4531_v56 = vrot.slane %v4416_v9, 2  ;;  %v11613_v46 = vld [vmem:[#allocation3 + $0x128] sm:$0xff] }
 0x5dc   : > { %v4652_v32 = vmul.f32 %v11134_v33, %v11434_v51  ;;  %v4286_v38 = vsel %vm1189_vm3, %v4283_v14, %v4285_v44  ;;  %v4847_v18 = vrot.slane %v4732_v40, 1  ;;  %v5294_v28 = vmul.f32 %v11185_v0, %v11560_v50 }
 0x5dd   : > { %v5245_v15 = vadd.f32 %v5213_v49, %v5175_v13  ;;  %v5936_v17 = vadd.f32 %v5858_v63, %v5775_v45  ;;  %v5654_v41 = vsel %vm1436_vm4, %v5652_v55, %v5653_v23  ;;  %v4368_v11 = vadd.f32 %v4286_v38, %v4090_v16 }
 0x5de   : > { %v5093_v47 = vrot.slane %v4978_v5, 2  ;;  %v4532_v22 = vsel %vm1436_vm4, %v4529_v1, %v4531_v56  ;;  %v4848_v48 = vsel %vm1189_vm3, %v4845_v12, %v4847_v18  ;;  %v5214_v57 = vmul.f32 %v11192_v58, %v11524_v53 }
 0x5df   : > { %v5491_v30 = vadd.f32 %v5408_v10, %v5245_v15  ;;  %v4614_v14 = vadd.f32 %v4532_v22, %v4368_v11  ;;  %7255 = vmatmul.mubr.msk.f32.gmra.mxu1 %vm3074_vm7, %v5936_v17  ;;  %v4171_v62 = vmul.f32 %v11034_v2, %v11432_v20  ;;  %v11590_v19 = vmul.f32 %v11034_v2, %v11434_v51 }
 0x5e0   : > { %v5094_v52 = vsel %vm1436_vm4, %v5091_v42, %v5093_v47  ;;  %v5409_v6 = vrot.slane %v5294_v28, 1  ;;  %v5540_v1 = vmul.f32 %v11205_v4, %v11560_v50  ;;  %v4417_v12 = vmul.f32 %v11041_v43, %v11432_v20 }
 0x5e1   : > { %v5737_v25 = vadd.f32 %v5654_v41, %v5491_v30  ;;  %v4684_v37 = vadd.f32 %v4652_v32, %v4614_v14  ;;  %v4287_v42 = vrot.slane %v4171_v62, 1  ;;  %v4288_v7 = vrot.slane %v11590_v19, 1 }
 0x5e2   : > { %v11599_v35 = vmul.f32 %v11041_v43, %v11434_v51  ;;  %v5410_v49 = vsel %vm1189_vm3, %v5407_v27, %v5409_v6  ;;  %v4091_v34 = vmul.f32 %v11050_v29, %v11432_v20  ;;  %v4533_v24 = vrot.slane %v4417_v12, 2  ;;  %v11652_v6 = vld [vmem:[%s12315_s12 + $0x1] ss:$0 sm:$0xff]  ;;  %v5862_v12 = vpop.permute.xlu0 %5861 }
 0x5e3   : > { %v5776_v2 = vadd.f32 %v11279_v59, %v5737_v25  ;;  %v4930_v31 = vadd.f32 %v4848_v48, %v4684_v37  ;;  %v4289_v3 = vsel %vm1189_vm3, %v4287_v42, %v4288_v7  ;;  %v4733_v55 = vmul.f32 %v11104_v39, %v11522_v21  ;;  %v11647_v25 = vld [vmem:[#allocation3 + $0x130] sm:$0x3] }
 0x5e4   : > { %v4534_v26 = vrot.slane %v11599_v35, 2  ;;  %v4369_v27 = vadd.f32 %v4289_v3, %v4091_v34  ;;  %v4734_v29 = vmul.f32 %v11104_v39, %v11524_v53  ;;  %v4979_v20 = vmul.f32 %v11119_v61, %v11522_v21  ;;  %v11668_v42 = vld [vmem:[%s12315_s12] ss:$0 sm:$0xff] }
 0x5e5   : > { %v5937_v43 = vadd.f32 %v5860_v36, %v5776_v2  ;;  %v5176_v9 = vadd.f32 %v5094_v52, %v4930_v31  ;;  %v4849_v63 = vrot.slane %v4733_v55, 1  ;;  %v11622_v13 = vmul.f32 %v11119_v61, %v11524_v53 }
 0x5e6   : > { %v4535_v40 = vsel %vm1436_vm4, %v4533_v24, %v4534_v26  ;;  %v4653_v44 = vmul.f32 %v11134_v33, %v11522_v21  ;;  %v4850_v5 = vrot.slane %v4734_v29, 1  ;;  %v5095_v45 = vrot.slane %v4979_v20, 2 }
 0x5e7   : > { %7257 = vmatprep.mubr.msk.f32.mxu1 %vm3074_vm7, %v5937_v43  ;;  %v4615_v16 = vadd.f32 %v4535_v40, %v4369_v27  ;;  %v5246_v10 = vadd.f32 %v5214_v57, %v5176_v9  ;;  %v5096_v56 = vrot.slane %v11622_v13, 2  ;;  %v5295_v32 = vmul.f32 %v11185_v0, %v11611_v54 }
 0x5e8   : > { %v11632_v15 = vmul.f32 %v11185_v0, %v11613_v46  ;;  %v5655_v38 = vrot.slane %v5540_v1, 2  ;;  %v5541_v28 = vmul.f32 %v11205_v4, %v11611_v54  ;;  %v11638_v17 = vmul.f32 %v11205_v4, %v11613_v46 }
 0x5e9   : > { %v4685_v18 = vadd.f32 %v4653_v44, %v4615_v16  ;;  %v5492_v41 = vadd.f32 %v5410_v49, %v5246_v10  ;;  %v4851_v11 = vsel %vm1189_vm3, %v4849_v63, %v4850_v5  ;;  %v5411_v47 = vrot.slane %v5295_v32, 1 }
 0x5ea   : > { %v5412_v30 = vrot.slane %v11632_v15, 1  ;;  %v5656_v22 = vsel %vm1436_vm4, %v5653_v23, %v5655_v38  ;;  %v5657_v57 = vrot.slane %v5541_v28, 2  ;;  %v5658_v14 = vrot.slane %v11638_v17, 2 }
 0x5eb   : > { %v4931_v48 = vadd.f32 %v4851_v11, %v4685_v18  ;;  %v5738_v52 = vadd.f32 %v5656_v22, %v5492_v41  ;;  %v5097_v62 = vsel %vm1436_vm4, %v5095_v45, %v5096_v56  ;;  %v4173_v1 = vmul.f32 %v11652_v6, %v11468_v60  ;;  %v5864_v45 = vpop.permute.xlu1 %5863 }
 0x5ec   : > { %v4419_v23 = vmul.f32 %v11659_v8, %v11468_v60  ;;  %v5215_v37 = vmul.f32 %v11192_v58, %v11611_v54  ;;  %v4092_v35 = vmul.f32 %v11668_v42, %v11434_v51  ;;  %v4735_v2 = vmul.f32 %v11104_v39, %v11560_v50 }
 0x5ed   : > { %v5177_v36 = vadd.f32 %v5097_v62, %v4931_v48  ;;  %v5777_v49 = vadd.f32 %v11279_v59, %v5738_v52  ;;  %v5413_v60 = vsel %vm1189_vm3, %v5411_v47, %v5412_v30  ;;  %v4290_v34 = vrot.slane %v4173_v1, 1  ;;  %v11718_v48 = vld [vmem:[%s12315_s12 + $0x4] ss:$0 sm:$0xff]  ;;  %v11722_v1 = vld [vmem:[#allocation3 + $0x138] sm:$0xff] }
 0x5ee   : > { %v4981_v24 = vmul.f32 %v11119_v61, %v11560_v50  ;;  %v5659_v3 = vsel %vm1436_vm4, %v5657_v57, %v5658_v14  ;;  %v4536_v55 = vrot.slane %v4419_v23, 2  ;;  %v5297_v51 = vmul.f32 %v11185_v0, %v11647_v25  ;;  %v11724_v23 = vld [vmem:[#allocation3 + $0x140] sm:$0xff] }
 0x5ef   : > { %v5247_v31 = vadd.f32 %v5215_v37, %v5177_v36  ;;  %v5938_v39 = vadd.f32 %v5862_v12, %v5777_v49  ;;  %v4291_v43 = vsel %vm1189_vm3, %v4288_v7, %v4290_v34  ;;  %v4654_v27 = vmul.f32 %v11134_v33, %v11524_v53  ;;  %v11742_v49 = vld [vmem:[%s12315_s12 + $0x5] ss:$0 sm:$0xff] }
 0x5f0   : > { %v4852_v29 = vrot.slane %v4735_v2, 1  ;;  %v4370_v61 = vadd.f32 %v4291_v43, %v4092_v35  ;;  %v4537_v9 = vsel %vm1436_vm4, %v4534_v26, %v4536_v55  ;;  %v5216_v40 = vmul.f32 %v11192_v58, %v11613_v46  ;;  %v11735_v35 = vld [vmem:[%s12315_s12 + $0x3] ss:$0 sm:$0xff] }
 0x5f1   : > { %v5493_v20 = vadd.f32 %v5413_v60, %v5247_v31  ;;  %v5098_v13 = vrot.slane %v4981_v24, 2  ;;  %v5543_v16 = vmul.f32 %v11205_v4, %v11647_v25  ;;  %7258 = vmatmul.mubr.msk.f32.gmra.mxu1 %vm3074_vm7, %v5938_v39  ;;  %v4174_v19 = vmul.f32 %v11652_v6, %v11522_v21 }
 0x5f2   : > { %v4853_v63 = vsel %vm1189_vm3, %v4850_v5, %v4852_v29  ;;  %v4616_v7 = vadd.f32 %v4537_v9, %v4370_v61  ;;  %v5414_v44 = vrot.slane %v5297_v51, 1  ;;  %v11701_v26 = vmul.f32 %v11652_v6, %v11524_v53 }
 0x5f3   : > { %v5739_v33 = vadd.f32 %v5659_v3, %v5493_v20  ;;  %v5099_v10 = vsel %vm1436_vm4, %v5096_v56, %v5098_v13  ;;  %v4292_v5 = vrot.slane %v4174_v19, 1  ;;  %v4420_v32 = vmul.f32 %v11659_v8, %v11522_v21 }
 0x5f4   : > { %v11708_v38 = vmul.f32 %v11659_v8, %v11524_v53  ;;  %v4686_v28 = vadd.f32 %v4654_v27, %v4616_v7  ;;  %v4093_v41 = vmul.f32 %v11668_v42, %v11522_v21  ;;  %v4293_v11 = vrot.slane %v11701_v26, 1 }
 0x5f5   : > { %v5778_v18 = vadd.f32 %v11279_v59, %v5739_v33  ;;  %v5660_v47 = vrot.slane %v5543_v16, 2  ;;  %v4538_v22 = vrot.slane %v4420_v32, 2  ;;  %v4736_v57 = vmul.f32 %v11718_v48, %v11611_v54 }
 0x5f6   : > { %v4539_v56 = vrot.slane %v11708_v38, 2  ;;  %v4932_v62 = vadd.f32 %v4853_v63, %v4686_v28  ;;  %v4294_v21 = vsel %vm1189_vm3, %v4292_v5, %v4293_v11  ;;  %v4737_v12 = vmul.f32 %v11718_v48, %v11613_v46 }
 0x5f7   : > { %v5939_v52 = vadd.f32 %v5864_v45, %v5778_v18  ;;  %v4371_v36 = vadd.f32 %v4294_v21, %v4093_v41  ;;  %v4655_v2 = vmul.f32 %v11735_v35, %v11611_v54  ;;  %v4982_v60 = vmul.f32 %v11742_v49, %v11611_v54  ;;  %v5866_v45 = vpop.permute.xlu0 %5865 }
 0x5f8   : > { %v4540_v37 = vsel %vm1436_vm4, %v4538_v22, %v4539_v56  ;;  %v5178_v34 = vadd.f32 %v5099_v10, %v4932_v62  ;;  %v4854_v24 = vrot.slane %v4736_v57, 1  ;;  %v4855_v31 = vrot.slane %v4737_v12, 1 }
 0x5f9   : > { %7260 = vmatprep.mubr.msk.f32.mxu1 %vm3074_vm7, %v5939_v52  ;;  %v4983_v3 = vmul.f32 %v11742_v49, %v11613_v46  ;;  %v4617_v55 = vadd.f32 %v4540_v37, %v4371_v36  ;;  %v5100_v51 = vrot.slane %v4982_v60, 2  ;;  %v5298_v39 = vmul.f32 %v11185_v0, %v11722_v1 }
 0x5fa   : > { %v11753_v43 = vmul.f32 %v11185_v0, %v11724_v23  ;;  %v5248_v27 = vadd.f32 %v5216_v40, %v5178_v34  ;;  %v5415_v29 = vsel %vm1189_vm3, %v5412_v30, %v5414_v44  ;;  %v5544_v61 = vmul.f32 %v11205_v4, %v11722_v1  ;;  %v11775_v44 = vld [vmem:[#allocation3 + $0x148] sm:$0x3]  ;;  %v11807_v34 = vld [vmem:[%s12315_s12 + $0x6] ss:$0 sm:$0xff] }
 0x5fb   : > { %v5101_v20 = vrot.slane %v4983_v3, 2  ;;  %v5661_v9 = vsel %vm1436_vm4, %v5658_v14, %v5660_v47  ;;  %v4687_v63 = vadd.f32 %v4655_v2, %v4617_v55  ;;  %v5217_v13 = vmul.f32 %v11192_v58, %v11722_v1 }
 0x5fc   : > { %v11767_v0 = vmul.f32 %v11205_v4, %v11724_v23  ;;  %v5494_v40 = vadd.f32 %v5415_v29, %v5248_v27  ;;  %v4856_v15 = vsel %vm1189_vm3, %v4854_v24, %v4855_v31  ;;  %v5416_v30 = vrot.slane %v5298_v39, 1  ;;  %v11822_v39 = vld [vmem:[%s12315_s12 + $0x8] ss:$0 sm:$0xff]  ;;  %v5868_v29 = vpop.permute.xlu1 %5867 }
 0x5fd   : > { %v5417_v16 = vrot.slane %v11753_v43, 1  ;;  %v4933_v19 = vadd.f32 %v4856_v15, %v4687_v63  ;;  %v5102_v33 = vsel %vm1436_vm4, %v5100_v51, %v5101_v20  ;;  %v5662_v17 = vrot.slane %v5544_v61, 2 }
 0x5fe   : > { %v4176_v14 = vmul.f32 %v11652_v6, %v11560_v50  ;;  %v5740_v7 = vadd.f32 %v5661_v9, %v5494_v40  ;;  %v5663_v58 = vrot.slane %v11767_v0, 2  ;;  %v4422_v4 = vmul.f32 %v11659_v8, %v11560_v50 }
 0x5ff   : > { %v4738_v26 = vmul.f32 %v11718_v48, %v11647_v25  ;;  %v5179_v10 = vadd.f32 %v5102_v33, %v4933_v19  ;;  %v4094_v5 = vmul.f32 %v11668_v42, %v11524_v53  ;;  %v4984_v18 = vmul.f32 %v11742_v49, %v11647_v25  ;;  %v11793_v53 = vld [vmem:[%s12315_s12 + $0x7] ss:$0 sm:$0xff] }
 0x600   : > { %v4295_v32 = vrot.slane %v4176_v14, 1  ;;  %v5779_v28 = vadd.f32 %v11279_v59, %v5740_v7  ;;  %v5418_v41 = vsel %vm1189_vm3, %v5416_v30, %v5417_v16  ;;  %v4541_v47 = vrot.slane %v4422_v4, 2  ;;  %v11841_v4 = vld [vmem:[#allocation3 + $0x150] sm:$0xff] }
 0x601   : > { %v4656_v50 = vmul.f32 %v11735_v35, %v11613_v46  ;;  %v5249_v22 = vadd.f32 %v5217_v13, %v5179_v10  ;;  %v4857_v52 = vrot.slane %v4738_v26, 1  ;;  %v5300_v62 = vmul.f32 %v11793_v53, %v11775_v44  ;;  %v11843_v26 = vld [vmem:[#allocation3 + $0x158] sm:$0xff] }
 0x602   : > { %v4296_v57 = vsel %vm1189_vm3, %v4293_v11, %v4295_v32  ;;  %v5940_v21 = vadd.f32 %v5866_v45, %v5779_v28  ;;  %v5664_v12 = vsel %vm1436_vm4, %v5662_v17, %v5663_v58  ;;  %v5103_v37 = vrot.slane %v4984_v18, 2 }
 0x603   : > { %v4372_v36 = vadd.f32 %v4296_v57, %v4094_v5  ;;  %v5495_v2 = vadd.f32 %v5418_v41, %v5249_v22  ;;  %v4542_v11 = vsel %vm1436_vm4, %v4539_v56, %v4541_v47  ;;  %v4858_v60 = vsel %vm1189_vm3, %v4855_v31, %v4857_v52 }
 0x604   : > { %v5218_v24 = vmul.f32 %v11807_v34, %v11724_v23  ;;  %v5104_v55 = vsel %vm1436_vm4, %v5101_v20, %v5103_v37  ;;  %7261 = vmatmul.mubr.msk.f32.gmra.mxu1 %vm3074_vm7, %v5940_v21  ;;  %v4177_v38 = vmul.f32 %v11652_v6, %v11611_v54  ;;  %v11817_v56 = vmul.f32 %v11652_v6, %v11613_v46 }
 0x605   : > { %v4618_v3 = vadd.f32 %v4542_v11, %v4372_v36  ;;  %v5741_v31 = vadd.f32 %v5664_v12, %v5495_v2  ;;  %v5419_v51 = vrot.slane %v5300_v62, 1  ;;  %v5546_v43 = vmul.f32 %v11822_v39, %v11775_v44 }
 0x606   : > { %v4423_v27 = vmul.f32 %v11659_v8, %v11611_v54  ;;  %v4297_v61 = vrot.slane %v4177_v38, 1  ;;  %v4298_v9 = vrot.slane %v11817_v56, 1  ;;  %v11831_v63 = vmul.f32 %v11659_v8, %v11613_v46 }
 0x607   : > { %v4688_v20 = vadd.f32 %v4656_v50, %v4618_v3  ;;  %v5780_v13 = vadd.f32 %v11279_v59, %v5741_v31  ;;  %v5420_v40 = vsel %vm1189_vm3, %v5417_v16, %v5419_v51  ;;  %v4095_v15 = vmul.f32 %v11668_v42, %v11611_v54 }
 0x608   : > { %v4543_v30 = vrot.slane %v4423_v27, 2  ;;  %v4299_v33 = vsel %vm1189_vm3, %v4297_v61, %v4298_v9  ;;  %v4544_v17 = vrot.slane %v11831_v63, 2  ;;  %v4739_v14 = vmul.f32 %v11718_v48, %v11722_v1 }
 0x609   : > { %v4934_v19 = vadd.f32 %v4858_v60, %v4688_v20  ;;  %v5941_v7 = vadd.f32 %v5868_v29, %v5780_v13  ;;  %v4373_v45 = vadd.f32 %v4299_v33, %v4095_v15  ;;  %v4740_v16 = vmul.f32 %v11718_v48, %v11724_v23  ;;  %v5870_v20 = vpop.permute.xlu0 %5869 }
 0x60a   : > { %v4985_v54 = vmul.f32 %v11742_v49, %v11722_v1  ;;  %v4545_v5 = vsel %vm1436_vm4, %v4543_v30, %v4544_v17  ;;  %v4859_v32 = vrot.slane %v4739_v14, 1  ;;  %v4986_v18 = vmul.f32 %v11742_v49, %v11724_v23 }
 0x60b   : > { %v5180_v10 = vadd.f32 %v5104_v55, %v4934_v19  ;;  %7263 = vmatprep.mubr.msk.f32.mxu1 %vm3074_vm7, %v5941_v7  ;;  %v4619_v28 = vadd.f32 %v4545_v5, %v4373_v45  ;;  %v4657_v41 = vmul.f32 %v11735_v35, %v11722_v1  ;;  %v4860_v47 = vrot.slane %v4740_v16, 1 }
 0x60c   : > { %v5105_v50 = vrot.slane %v4985_v54, 2  ;;  %v5106_v57 = vrot.slane %v4986_v18, 2  ;;  %v5301_v52 = vmul.f32 %v11793_v53, %v11841_v4  ;;  %v11859_v62 = vmul.f32 %v11793_v53, %v11843_v26 }
 0x60d   : > { %v5250_v22 = vadd.f32 %v5218_v24, %v5180_v10  ;;  %v5665_v21 = vrot.slane %v5546_v43, 2  ;;  %v4689_v12 = vadd.f32 %v4657_v41, %v4619_v28  ;;  %v5547_v36 = vmul.f32 %v11822_v39, %v11841_v4  ;;  %v11874_v43 = vld [vmem:[#allocation3 + $0x160] sm:$0x3] }
 0x60e   : > { %v11865_v37 = vmul.f32 %v11822_v39, %v11843_v26  ;;  %v4861_v11 = vsel %vm1189_vm3, %v4859_v32, %v4860_v47  ;;  %v5421_v60 = vrot.slane %v5301_v52, 1  ;;  %v5422_v24 = vrot.slane %v11859_v62, 1  ;;  %v5872_v52 = vpop.permute.xlu1 %5871 }
 0x60f   : > { %v5496_v2 = vadd.f32 %v5420_v40, %v5250_v22  ;;  %v5666_v3 = vsel %vm1436_vm4, %v5663_v58, %v5665_v21  ;;  %v4935_v55 = vadd.f32 %v4861_v11, %v4689_v12  ;;  %v5667_v38 = vrot.slane %v5547_v36, 2 }
 0x610   : > { %v5668_v56 = vrot.slane %v11865_v37, 2  ;;  %v5107_v51 = vsel %vm1436_vm4, %v5105_v50, %v5106_v57  ;;  %v4179_v27 = vmul.f32 %v11652_v6, %v11647_v25  ;;  %v4425_v29 = vmul.f32 %v11659_v8, %v11647_v25 }
 0x611   : > { %v5742_v31 = vadd.f32 %v5666_v3, %v5496_v2  ;;  %v5181_v61 = vadd.f32 %v5107_v51, %v4935_v55  ;;  %v5219_v0 = vmul.f32 %v11807_v34, %v11841_v4  ;;  %v4096_v58 = vmul.f32 %v11668_v42, %v11613_v46  ;;  %v11923_v2 = vld [vmem:[%s12316_s13] ss:$0 sm:$0xff] }
 0x612   : > { %v4741_v63 = vmul.f32 %v11718_v48, %v11775_v44  ;;  %v5423_v40 = vsel %vm1189_vm3, %v5421_v60, %v5422_v24  ;;  %v4300_v15 = vrot.slane %v4179_v27, 1  ;;  %v4987_v25 = vmul.f32 %v11742_v49, %v11775_v44 }
 0x613   : > { %v5781_v13 = vadd.f32 %v11279_v59, %v5742_v31  ;;  %v5251_v30 = vadd.f32 %v5219_v0, %v5181_v61  ;;  %v5669_v19 = vsel %vm1436_vm4, %v5667_v38, %v5668_v56  ;;  %v4546_v33 = vrot.slane %v4425_v29, 2  ;;  %v11934_v61 = vld [vmem:[#allocation3 + $0x170] sm:$0xff] }
 0x614   : > { %v5303_v46 = vmul.f32 %v11793_v53, %v11874_v43  ;;  %v4301_v59 = vsel %vm1189_vm3, %v4298_v9, %v4300_v15  ;;  %v4658_v7 = vmul.f32 %v11735_v35, %v11724_v23  ;;  %v4862_v45 = vrot.slane %v4741_v63, 1 }
 0x615   : > { %v5942_v14 = vadd.f32 %v5870_v20, %v5781_v13  ;;  %v5497_v16 = vadd.f32 %v5423_v40, %v5251_v30  ;;  %v4374_v54 = vadd.f32 %v4301_v59, %v4096_v58  ;;  %v4547_v10 = vsel %vm1436_vm4, %v4544_v17, %v4546_v33  ;;  %v11932_v20 = vld [vmem:[#allocation3 + $0x168] sm:$0xff] }
 0x616   : > { %v5220_v5 = vmul.f32 %v11807_v34, %v11843_v26  ;;  %v4863_v32 = vsel %vm1189_vm3, %v4860_v47, %v4862_v45  ;;  %v5108_v18 = vrot.slane %v4987_v25, 2  ;;  %v5549_v28 = vmul.f32 %v11822_v39, %v11874_v43 }
 0x617   : > { %7264 = vmatmul.mubr.msk.f32.gmra.mxu1 %vm3074_vm7, %v5942_v14  ;;  %v4180_v9 = vmul.f32 %v11652_v6, %v11722_v1  ;;  %v5743_v41 = vadd.f32 %v5669_v19, %v5497_v16  ;;  %v4620_v50 = vadd.f32 %v4547_v10, %v4374_v54  ;;  %v5424_v22 = vrot.slane %v5303_v46, 1 }
 0x618   : > { %v11911_v17 = vmul.f32 %v11652_v6, %v11724_v23  ;;  %v5109_v21 = vsel %vm1436_vm4, %v5106_v57, %v5108_v18  ;;  %v4426_v12 = vmul.f32 %v11659_v8, %v11722_v1  ;;  %v11918_v36 = vmul.f32 %v11659_v8, %v11724_v23 }
 0x619   : > { %v4302_v47 = vrot.slane %v4180_v9, 1  ;;  %v5782_v11 = vadd.f32 %v11923_v2, %v5743_v41  ;;  %v4690_v60 = vadd.f32 %v4658_v7, %v4620_v50  ;;  %v4097_v3 = vmul.f32 %v11668_v42, %v11722_v1 }
 0x61a   : > { %v4303_v57 = vrot.slane %v11911_v17, 1  ;;  %v5670_v55 = vrot.slane %v5549_v28, 2  ;;  %v4548_v38 = vrot.slane %v4426_v12, 2  ;;  %v4549_v31 = vrot.slane %v11918_v36, 2  ;;  %v5874_v12 = vpop.permute.xlu0 %5873 }
 0x61b   : > { %v4742_v51 = vmul.f32 %v11718_v48, %v11841_v4  ;;  %v5943_v27 = vadd.f32 %v5872_v52, %v5782_v11  ;;  %v4936_v29 = vadd.f32 %v4863_v32, %v4690_v60  ;;  %v4743_v1 = vmul.f32 %v11718_v48, %v11843_v26  ;;  %v11970_v52 = vld [vmem:[#allocation3 + $0x178] sm:$0x3] }
 0x61c   : > { %v4304_v0 = vsel %vm1189_vm3, %v4302_v47, %v4303_v57  ;;  %v4550_v63 = vsel %vm1436_vm4, %v4548_v38, %v4549_v31  ;;  %v4659_v13 = vmul.f32 %v11735_v35, %v11841_v4  ;;  %v4988_v40 = vmul.f32 %v11742_v49, %v11841_v4 }
 0x61d   : > { %v4375_v58 = vadd.f32 %v4304_v0, %v4097_v3  ;;  %v5182_v15 = vadd.f32 %v5109_v21, %v4936_v29  ;;  %7266 = vmatprep.mubr.msk.f32.mxu1 %vm3074_vm7, %v5943_v27  ;;  %v4864_v25 = vrot.slane %v4742_v51, 1  ;;  %v4865_v30 = vrot.slane %v4743_v1, 1 }
 0x61e   : > { %v4989_v19 = vmul.f32 %v11742_v49, %v11843_v26  ;;  %v5110_v46 = vrot.slane %v4988_v40, 2  ;;  %v5304_v14 = vmul.f32 %v11793_v53, %v11932_v20  ;;  %v5305_v59 = vmul.f32 %v11793_v53, %v11934_v61 }
 0x61f   : > { %v4621_v33 = vadd.f32 %v4550_v63, %v4375_v58  ;;  %v5252_v7 = vadd.f32 %v5220_v5, %v5182_v15  ;;  %v5425_v45 = vsel %vm1189_vm3, %v5422_v24, %v5424_v22  ;;  %v5550_v54 = vmul.f32 %v11822_v39, %v11932_v20 }
 0x620   : > { %v5111_v16 = vrot.slane %v4989_v19, 2  ;;  %v5671_v10 = vsel %vm1436_vm4, %v5668_v56, %v5670_v55  ;;  %v5221_v18 = vmul.f32 %v11807_v34, %v11932_v20  ;;  %v11963_v28 = vmul.f32 %v11822_v39, %v11934_v61 }
 0x621   : > { %v4691_v32 = vadd.f32 %v4659_v13, %v4621_v33  ;;  %v5498_v5 = vadd.f32 %v5425_v45, %v5252_v7  ;;  %v4866_v62 = vsel %vm1189_vm3, %v4864_v25, %v4865_v30  ;;  %v5426_v24 = vrot.slane %v5304_v14, 1  ;;  %v5876_v45 = vpop.permute.xlu1 %5875 }
 0x622   : > { %v5427_v9 = vrot.slane %v5305_v59, 1  ;;  %v5112_v50 = vsel %vm1436_vm4, %v5110_v46, %v5111_v16  ;;  %v5672_v22 = vrot.slane %v5550_v54, 2  ;;  %v4182_v37 = vmul.f32 %v11652_v6, %v11775_v44 }
 0x623   : > { %v4937_v41 = vadd.f32 %v4866_v62, %v4691_v32  ;;  %v5744_v56 = vadd.f32 %v5671_v10, %v5498_v5  ;;  %v5673_v17 = vrot.slane %v11963_v28, 2  ;;  %v4428_v21 = vmul.f32 %v11659_v8, %v11775_v44 }
 0x624   : > { %v4744_v47 = vmul.f32 %v11718_v48, %v11874_v43  ;;  %v4098_v11 = vmul.f32 %v11668_v42, %v11724_v23  ;;  %v4305_v60 = vrot.slane %v4182_v37, 1  ;;  %v4990_v3 = vmul.f32 %v11742_v49, %v11874_v43 }
 0x625   : > { %v5183_v36 = vadd.f32 %v5112_v50, %v4937_v41  ;;  %v5783_v55 = vadd.f32 %v11923_v2, %v5744_v56  ;;  %v5428_v38 = vsel %vm1189_vm3, %v5426_v24, %v5427_v9  ;;  %v4551_v51 = vrot.slane %v4428_v21, 2  ;;  %v12021_v21 = vld [vmem:[#allocation3 + $0x180] sm:$0xff] }
 0x626   : > { %v4660_v44 = vmul.f32 %v11735_v35, %v11843_v26  ;;  %v4306_v29 = vsel %vm1189_vm3, %v4303_v57, %v4305_v60  ;;  %v4867_v0 = vrot.slane %v4744_v47, 1  ;;  %v5306_v1 = vmul.f32 %v11793_v53, %v11970_v52  ;;  %v12023_v47 = vld [vmem:[#allocation3 + $0x188] sm:$0xff] }
 0x627   : > { %v5253_v27 = vadd.f32 %v5221_v18, %v5183_v36  ;;  %v5944_v23 = vadd.f32 %v5874_v12, %v5783_v55  ;;  %v5674_v58 = vsel %vm1436_vm4, %v5672_v22, %v5673_v17  ;;  %v4376_v63 = vadd.f32 %v4306_v29, %v4098_v11  ;;  %v12038_v55 = vpop.f32.mrf.mxu0 }
 0x628   : > { %v5113_v13 = vrot.slane %v4990_v3, 2  ;;  %v4552_v15 = vsel %vm1436_vm4, %v4549_v31, %v4551_v51  ;;  %v4868_v25 = vsel %vm1189_vm3, %v4865_v30, %v4867_v0  ;;  %v5222_v19 = vmul.f32 %v11807_v34, %v11934_v61 }
 0x629   : > { %v5499_v40 = vadd.f32 %v5428_v38, %v5253_v27  ;;  %v4622_v57 = vadd.f32 %v4552_v15, %v4376_v63  ;;  %7267 = vmatmul.mubr.msk.f32.gmra.mxu1 %vm3074_vm7, %v5944_v23  ;;  %v4183_v46 = vmul.f32 %v11652_v6, %v11841_v4  ;;  %v12000_v14 = vmul.f32 %v11652_v6, %v11843_v26 }
 0x62a   : > { %v5114_v33 = vsel %vm1436_vm4, %v5111_v16, %v5113_v13  ;;  %v5429_v7 = vrot.slane %v5306_v1, 1  ;;  %v5552_v31 = vmul.f32 %v11822_v39, %v11970_v52  ;;  %v4429_v30 = vmul.f32 %v11659_v8, %v11841_v4 }
 0x62b   : > { %v5745_v59 = vadd.f32 %v5674_v58, %v5499_v40  ;;  %v4692_v54 = vadd.f32 %v4660_v44, %v4622_v57  ;;  %v4307_v16 = vrot.slane %v4183_v46, 1  ;;  %v4308_v10 = vrot.slane %v12000_v14, 1  ;;  %v12058_v57 = vpop.f32.mrf.mxu1 }
 0x62c   : > { %v12009_v32 = vmul.f32 %v11659_v8, %v11843_v26  ;;  %v5430_v5 = vsel %vm1189_vm3, %v5427_v9, %v5429_v7  ;;  %v4099_v62 = vmul.f32 %v11668_v42, %v11841_v4  ;;  %v4553_v24 = vrot.slane %v4429_v30, 2 }
 0x62d   : > { %v5784_v18 = vadd.f32 %v11923_v2, %v5745_v59  ;;  %v4938_v41 = vadd.f32 %v4868_v25, %v4692_v54  ;;  %v4309_v50 = vsel %vm1189_vm3, %v4307_v16, %v4308_v10  ;;  %v4745_v37 = vmul.f32 %v11718_v48, %v11932_v20 }
 0x62e   : > { %v4554_v22 = vrot.slane %v12009_v32, 2  ;;  %v4377_v9 = vadd.f32 %v4309_v50, %v4099_v62  ;;  %v12027_v4 = vmul.f32 %v11718_v48, %v11934_v61  ;;  %v4991_v12 = vmul.f32 %v11742_v49, %v11932_v20  ;;  %v5880_v32 = vpop.permute.xlu1 %5879 }
 0x62f   : > { %v5945_v56 = vadd.f32 %v5876_v45, %v5784_v18  ;;  %v5184_v36 = vadd.f32 %v5114_v33, %v4938_v41  ;;  %v4869_v60 = vrot.slane %v4745_v37, 1  ;;  %v12036_v3 = vmul.f32 %v11742_v49, %v11934_v61  ;;  %v12064_v45 = vld [vmem:[#allocation3 + $0x190] sm:$0x3]  ;;  %v5878_v18 = vpop.permute.xlu0 %5877 }
 0x630   : > { %v4555_v11 = vsel %vm1436_vm4, %v4553_v24, %v4554_v22  ;;  %v4661_v51 = vmul.f32 %v11735_v35, %v11932_v20  ;;  %v4870_v44 = vrot.slane %v12027_v4, 1  ;;  %v5115_v27 = vrot.slane %v4991_v12, 2 }
 0x631   : > { %7269 = vmatprep.mubr.msk.f32.mxu1 %vm3074_vm7, %v5945_v56  ;;  %v4623_v38 = vadd.f32 %v4555_v11, %v4377_v9  ;;  %v5254_v29 = vadd.f32 %v5222_v19, %v5184_v36  ;;  %v5116_v0 = vrot.slane %v12036_v3, 2  ;;  %v5307_v1 = vmul.f32 %v11793_v53, %v12021_v21  ;;  %v12056_v19 = vpop.f32.mrf.mxu0  ;;  %v12078_v56 = vpop.f32.mrf.mxu1  ;;  %v12086_v36 = vld [vmem:[#allocation3 + $0x198] sm:$0xff] }
 0x632   : > { %v5308_v23 = vmul.f32 %v11793_v53, %v12023_v47  ;;  %v5675_v58 = vrot.slane %v5552_v31, 2  ;;  %v5553_v13 = vmul.f32 %v11822_v39, %v12021_v21  ;;  %v12053_v40 = vmul.f32 %v11822_v39, %v12023_v47 }
 0x633   : > { %v4693_v63 = vadd.f32 %v4661_v51, %v4623_v38  ;;  %v5500_v15 = vadd.f32 %v5430_v5, %v5254_v29  ;;  %v4871_v25 = vsel %vm1189_vm3, %v4869_v60, %v4870_v44  ;;  %v5117_v59 = vsel %vm1436_vm4, %v5115_v27, %v5116_v0  ;;  %v12076_v37 = vpop.f32.mrf.mxu0  ;;  %v12092_v51 = vpop.f32.mrf.mxu1 }
 0x634   : > { %v5676_v33 = vsel %vm1436_vm4, %v5673_v17, %v5675_v58  ;;  %v5431_v7 = vrot.slane %v5307_v1, 1  ;;  %v5432_v30 = vrot.slane %v5308_v23, 1  ;;  %v4185_v54 = vmul.f32 %v11652_v6, %v11874_v43 }
 0x635   : > { %v4939_v46 = vadd.f32 %v4871_v25, %v4693_v63  ;;  %v5746_v31 = vadd.f32 %v5676_v33, %v5500_v15  ;;  %v4431_v16 = vmul.f32 %v11659_v8, %v11874_v43  ;;  %v5223_v28 = vmul.f32 %v11807_v34, %v12021_v21  ;;  %v12109_v63 = vpop.f32.mrf.mxu0 }
 0x636   : > { %v5677_v17 = vrot.slane %v5553_v13, 2  ;;  %v5678_v62 = vrot.slane %v12053_v40, 2  ;;  %v4310_v41 = vrot.slane %v4185_v54, 1  ;;  %v4747_v50 = vmul.f32 %v11718_v48, %v11970_v52 }
 0x637   : > { %v5185_v5 = vadd.f32 %v5117_v59, %v4939_v46  ;;  %v5785_v24 = vadd.f32 %v11923_v2, %v5746_v31  ;;  %v4100_v43 = vmul.f32 %v11668_v42, %v11843_v26  ;;  %v4993_v4 = vmul.f32 %v11742_v49, %v11970_v52  ;;  %v12111_v46 = vld [vmem:[#allocation3 + $0x1a0] sm:$0xff] }
 0x638   : > { %v5309_v12 = vmul.f32 %v11793_v53, %v12064_v45  ;;  %v5433_v60 = vsel %vm1189_vm3, %v5431_v7, %v5432_v30  ;;  %v4311_v3 = vsel %vm1189_vm3, %v4308_v10, %v4310_v41  ;;  %v4556_v38 = vrot.slane %v4431_v16, 2  ;;  %v12116_v7 = vpop.f32.mrf.mxu1 }
 0x639   : > { %v5255_v9 = vadd.f32 %v5223_v28, %v5185_v5  ;;  %v5946_v11 = vadd.f32 %v5878_v18, %v5785_v24  ;;  %v5679_v26 = vsel %vm1436_vm4, %v5677_v17, %v5678_v62  ;;  %v4378_v29 = vadd.f32 %v4311_v3, %v4100_v43  ;;  %v12128_v24 = vpop.f32.mrf.mxu0 }
 0x63a   : > { %v4662_v1 = vmul.f32 %v11735_v35, %v11934_v61  ;;  %v4557_v23 = vsel %vm1436_vm4, %v4554_v22, %v4556_v38  ;;  %v4872_v58 = vrot.slane %v4747_v50, 1  ;;  %v5555_v14 = vmul.f32 %v11822_v39, %v12064_v45 }
 0x63b   : > { %v5501_v27 = vadd.f32 %v5433_v60, %v5255_v9  ;;  %7270 = vmatmul.mubr.msk.f32.gmra.mxu1 %vm3074_vm7, %v5946_v11  ;;  %v12107_v10 = vmul.f32 %v11793_v53, %v12086_v36  ;;  %v4624_v15 = vadd.f32 %v4557_v23, %v4378_v29  ;;  %v5118_v25 = vrot.slane %v4993_v4, 2  ;;  %v12142_v11 = vpop.f32.mrf.mxu1 }
 0x63c   : > { %v5434_v33 = vrot.slane %v5309_v12, 1  ;;  %v4873_v22 = vsel %vm1189_vm3, %v4870_v44, %v4872_v58  ;;  %v5224_v59 = vmul.f32 %v11807_v34, %v12023_v47  ;;  %v5680_v5 = vrot.slane %v5555_v14, 2  ;;  %v12155_v58 = vpop.f32.mrf.mxu0 }
 0x63d   : > { %v5747_v13 = vadd.f32 %v5679_v26, %v5501_v27  ;;  %v4694_v54 = vadd.f32 %v4662_v1, %v4624_v15  ;;  %v5119_v16 = vsel %vm1436_vm4, %v5116_v0, %v5118_v25  ;;  %v12123_v28 = vmul.f32 %v11793_v53, %v12111_v46 }
 0x63e   : > { %v5435_v18 = vsel %vm1189_vm3, %v5432_v30, %v5434_v33  ;;  %v5436_v17 = vrot.slane %v12107_v10, 1  ;;  %v4186_v44 = vmul.f32 %v11652_v6, %v11932_v20  ;;  %v5556_v9 = vmul.f32 %v11822_v39, %v12086_v36 }
 0x63f   : > { %v5786_v31 = vadd.f32 %v11923_v2, %v5747_v13  ;;  %v4940_v50 = vadd.f32 %v4873_v22, %v4694_v54  ;;  %v4187_v0 = vmul.f32 %v11652_v6, %v11934_v61  ;;  %v12136_v30 = vmul.f32 %v11822_v39, %v12111_v46  ;;  %v6137_v22 = vpop.f32.mrf.mxu1 }
 0x640   : > { %v4312_v43 = vrot.slane %v4186_v44, 1  ;;  %v4432_v4 = vmul.f32 %v11659_v8, %v11932_v20  ;;  %v4433_v12 = vmul.f32 %v11659_v8, %v11934_v61  ;;  %v4101_v3 = vmul.f32 %v11668_v42, %v11932_v20 }
 0x641   : > { %v5947_v41 = vadd.f32 %v5880_v32, %v5786_v31  ;;  %v5186_v60 = vadd.f32 %v5119_v16, %v4940_v50  ;;  %v4313_v38 = vrot.slane %v4187_v0, 1  ;;  %v4748_v27 = vmul.f32 %v11718_v48, %v12021_v21 }
 0x642   : > { %v4558_v26 = vrot.slane %v4432_v4, 2  ;;  %v4559_v29 = vrot.slane %v4433_v12, 2  ;;  %v12151_v1 = vmul.f32 %v11718_v48, %v12023_v47  ;;  %v4994_v23 = vmul.f32 %v11742_v49, %v12021_v21 }
 0x643   : > { %7272 = vmatprep.mubr.msk.f32.mxu1 %vm3074_vm7, %v5947_v41  ;;  %v5256_v14 = vadd.f32 %v5224_v59, %v5186_v60  ;;  %v5437_v10 = vrot.slane %v12123_v28, 1  ;;  %v4314_v20 = vsel %vm1189_vm3, %v4312_v43, %v4313_v38  ;;  %v12161_v13 = vmul.f32 %v11742_v49, %v12023_v47  ;;  %v5882_v43 = vpop.permute.xlu0 %5881 }
 0x644   : > { %v5681_v15 = vsel %vm1436_vm4, %v5678_v62, %v5680_v5  ;;  %v5682_v25 = vrot.slane %v5556_v9, 2  ;;  %v5683_v33 = vrot.slane %v12136_v30, 2  ;;  %v4379_v32 = vadd.f32 %v4314_v20, %v4101_v3  ;;  %v4064_v62 = vld [vmem:[#allocation3 + $0x1a8] sm:$0x3]  ;;  %v7291_v5 = vpop.f32.mrf.mxu0  ;;  %v7241_v3 = vpop.f32.mrf.mxu1 }
 0x645   : > { %v5502_v31 = vadd.f32 %v5435_v18, %v5256_v14  ;;  %v4560_v59 = vsel %vm1436_vm4, %v4558_v26, %v4559_v29  ;;  %v4874_v54 = vrot.slane %v4748_v27, 1  ;;  %v4875_v16 = vrot.slane %v12151_v1, 1 }
 0x646   : > { %v4625_v44 = vadd.f32 %v4560_v59, %v4379_v32  ;;  %v4663_v41 = vmul.f32 %v11735_v35, %v12021_v21  ;;  %v5120_v50 = vrot.slane %v4994_v23, 2  ;;  %v5121_v40 = vrot.slane %v12161_v13, 2 }
 0x647   : > { %v5748_v9 = vadd.f32 %v5681_v15, %v5502_v31  ;;  %v5225_v0 = vmul.f32 %v11807_v34, %v12086_v36  ;;  %v4188_v18 = vmul.f32 %v11652_v6, %v11970_v52  ;;  %v5438_v4 = vsel %vm1189_vm3, %v5436_v17, %v5437_v10 }
 0x648   : > { %v5684_v21 = vsel %vm1436_vm4, %v5682_v25, %v5683_v33  ;;  %v4695_v12 = vadd.f32 %v4663_v41, %v4625_v44  ;;  %v4434_v60 = vmul.f32 %v11659_v8, %v11970_v52  ;;  %v4876_v36 = vsel %vm1189_vm3, %v4874_v54, %v4875_v16 }
 0x649   : > { %v5787_v27 = vadd.f32 %v11923_v2, %v5748_v9  ;;  %v5312_v6 = vmul.f32 %v11793_v53, %v4064_v62  ;;  %v4315_v26 = vrot.slane %v4188_v18, 1  ;;  %v5122_v8 = vsel %vm1436_vm4, %v5120_v50, %v5121_v40  ;;  %v6470_v53 = vpop.f32.mrf.mxu0 }
 0x64a   : > { %v4941_v17 = vadd.f32 %v4876_v36, %v4695_v12  ;;  %v4102_v52 = vmul.f32 %v11668_v42, %v11934_v61  ;;  %v4750_v1 = vmul.f32 %v11718_v48, %v12064_v45  ;;  %v4561_v20 = vrot.slane %v4434_v60, 2  ;;  %v6147_v61 = vpop.f32.mrf.mxu1 }
 0x64b   : > { %v5948_v23 = vadd.f32 %v5882_v43, %v5787_v27  ;;  %v4316_v14 = vsel %vm1189_vm3, %v4313_v38, %v4315_v26  ;;  %v6446_v15 = vadd.f32 %v12038_v55, %v12058_v57  ;;  %v5558_v32 = vmul.f32 %v11822_v39, %v4064_v62  ;;  %v5884_v62 = vpop.permute.xlu1 %5883 }
 0x64c   : > { %v5187_v25 = vadd.f32 %v5122_v8, %v4941_v17  ;;  %v4380_v31 = vadd.f32 %v4316_v14, %v4102_v52  ;;  %v4996_v42 = vmul.f32 %v11742_v49, %v12064_v45  ;;  %v4562_v48 = vsel %vm1436_vm4, %v4559_v29, %v4561_v20  ;;  %v7294_v29 = vpop.f32.mrf.mxu0 }
 0x64d   : > { %7273 = vmatmul.mubr.msk.f32.gmra.mxu1 %vm3074_vm7, %v5948_v23  ;;  %6600 = vst.msk [vmem:[%s12192_s21 + $0x8] sm:$0xff] %vm508_vm1, %v6446_v15  ;;  %v6441_v55 = vadd.f32 %v12056_v19, %v12078_v56  ;;  %v6456_v39 = vadd.f32 %v12076_v37, %v12092_v51  ;;  %v6451_v57 = vadd.f32 %v12109_v63, %v12116_v7  ;;  %v4877_v54 = vrot.slane %v4750_v1, 1 }
 0x64e   : > { %v5257_v38 = vadd.f32 %v5225_v0, %v5187_v25  ;;  %v4626_v49 = vadd.f32 %v4562_v48, %v4380_v31  ;;  %v4664_v45 = vmul.f32 %v11735_v35, %v12023_v47  ;;  %v6466_v59 = vadd.f32 %v12128_v24, %v12142_v11  ;;  %v6480_v41 = vpop.f32.mrf.mxu0 }
 0x64f   : > { %6599 = vst.msk [vmem:[%s12192_s21] sm:$0xff] %vm508_vm1, %v6441_v55  ;;  %6602 = vst.msk [vmem:[%s12192_s21 + $0x18] sm:$0xff] %vm508_vm1, %v6456_v39  ;;  %v6461_v19 = vadd.f32 %v12155_v58, %v6137_v22  ;;  %v6476_v37 = vadd.f32 %v7291_v5, %v7241_v3  ;;  %v6471_v56 = vadd.f32 %v6470_v53, %v6147_v61  ;;  %v5439_v63 = vrot.slane %v5312_v6, 1 }
 0x650   : > { %6601 = vst.msk [vmem:[%s12192_s21 + $0x10] sm:$0xff] %vm508_vm1, %v6451_v57  ;;  %v5503_v51 = vadd.f32 %v5438_v4, %v5257_v38  ;;  %v4696_v35 = vadd.f32 %v4664_v45, %v4626_v49  ;;  %6604 = vst.msk [vmem:[%s12192_s21 + $0x28] sm:$0xff] %vm508_vm1, %v6466_v59  ;;  %v4878_v7 = vsel %vm1189_vm3, %v4875_v16, %v4877_v54  ;;  %v5123_v24 = vrot.slane %v4996_v42, 2 }
 0x651   : > { %v7244_v47 = vpop.f32.mrf.mxu1  ;;  %6603 = vst.msk [vmem:[%s12192_s21 + $0x20] sm:$0xff] %vm508_vm1, %v6461_v19  ;;  %6606 = vst.msk [vmem:[%s12192_s21 + $0x38] sm:$0xff] %vm508_vm1, %v6476_v37  ;;  %v5226_v22 = vmul.f32 %v11807_v34, %v12111_v46  ;;  %v5685_v5 = vrot.slane %v5558_v32, 2  ;;  %v5440_v43 = vsel %vm1189_vm3, %v5437_v10, %v5439_v63  ;;  %v7297_v10 = vpop.f32.mrf.mxu0 }
 0x652   : > { %6605 = vst.msk [vmem:[%s12192_s21 + $0x30] sm:$0xff] %vm508_vm1, %v6471_v56  ;;  %v6486_v11 = vadd.f32 %v7294_v29, %v7244_v47  ;;  %v5749_v58 = vadd.f32 %v5684_v21, %v5503_v51  ;;  %v4942_v44 = vadd.f32 %v4878_v7, %v4696_v35  ;;  %v5124_v16 = vsel %vm1436_vm4, %v5121_v40, %v5123_v24  ;;  %v5886_v21 = vpop.permute.xlu0 %5885 }
 0x653   : > { %v6157_v50 = vpop.f32.mrf.mxu1  ;;  %v5686_v13 = vsel %vm1436_vm4, %v5683_v33, %v5685_v5  ;;  %v6490_v27 = vpop.f32.mrf.mxu0 }
 0x654   : > { %6608 = vst.msk [vmem:[%s12192_s21 + $0x48] sm:$0xff] %vm508_vm1, %v6486_v11  ;;  %v6481_v9 = vadd.f32 %v6480_v41, %v6157_v50  ;;  %v5788_v0 = vadd.f32 %v11923_v2, %v5749_v58  ;;  %v5188_v18 = vadd.f32 %v5124_v16, %v4942_v44 }
 0x655   : > { %v7300_v36 = vpop.f32.mrf.mxu0 }
 0x656   : > { %6607 = vst.msk [vmem:[%s12192_s21 + $0x40] sm:$0xff] %vm508_vm1, %v6481_v9  ;;  %v5949_v34 = vadd.f32 %v5884_v62, %v5788_v0  ;;  %v5258_v46 = vadd.f32 %v5226_v22, %v5188_v18 }
 0x657   : > { %v6500_v26 = vpop.f32.mrf.mxu0 }
 0x658   : > { %v5504_v40 = vadd.f32 %v5440_v43, %v5258_v46  ;;  %7275 = vmatprep.mubr.msk.f32.mxu1 %vm3074_vm7, %v5949_v34 }
 0x659   : > { %v7303_v52 = vpop.f32.mrf.mxu0 }
 0x65a   : > { %v5750_v4 = vadd.f32 %v5686_v13, %v5504_v40 }
 0x65b   : > { %v6510_v23 = vpop.f32.mrf.mxu0 }
 0x65c   : > { %v5789_v12 = vadd.f32 %v11923_v2, %v5750_v4 }
 0x65d   : > { %v7306_v15 = vpop.f32.mrf.mxu0 }
 0x65e   : > { %v5950_v28 = vadd.f32 %v5886_v21, %v5789_v12 }
 0x65f   : > { %v6520_v31 = vpop.f32.mrf.mxu0 }
 0x660   : > { %7276 = vmatmul.mubr.msk.f32.gmra.mxu1 %vm3074_vm7, %v5950_v28 }
 0x661   : > { %v7309_v48 = vpop.f32.mrf.mxu0 }
 0x663   : > { %v6530_v57 = vpop.f32.mrf.mxu0 }
 0x665   : > { %v7247_v60 = vpop.f32.mrf.mxu1  ;;  %v7312_v45 = vpop.f32.mrf.mxu0 }
 0x666   : > { %v6496_v3 = vadd.f32 %v7297_v10, %v7247_v60 }
 0x667   : > { %v6167_v30 = vpop.f32.mrf.mxu1  ;;  %v6540_v54 = vpop.f32.mrf.mxu0 }
 0x668   : > { %6610 = vst.msk [vmem:[%s12192_s21 + $0x58] sm:$0xff] %vm508_vm1, %v6496_v3  ;;  %v6491_v33 = vadd.f32 %v6490_v27, %v6167_v30 }
 0x669   : > { %v7315_v56 = vpop.f32.mrf.mxu0 }
 0x66a   : > { %6609 = vst.msk [vmem:[%s12192_s21 + $0x50] sm:$0xff] %vm508_vm1, %v6491_v33 }
 0x66b   : > { %v6550_v47 = vpop.f32.mrf.mxu0 }
 0x66d   : > { %v7318_v24 = vpop.f32.mrf.mxu0 }
 0x66f   : > { %v6560_v22 = vpop.f32.mrf.mxu0 }
 0x671   : > { %v7321_v50 = vpop.f32.mrf.mxu0 }
 0x673   : > { %v6570_v16 = vpop.f32.mrf.mxu0 }
 0x675   : > { %v7324_v18 = vpop.f32.mrf.mxu0 }
 0x677   : > { %v6580_v46 = vpop.f32.mrf.mxu0 }
 0x678   : > { %v7250_v6 = vpop.f32.mrf.mxu1 }
 0x679   : > { %v6506_v2 = vadd.f32 %v7300_v36, %v7250_v6 }
 0x67a   : > { %v6177_v17 = vpop.f32.mrf.mxu1 }
 0x67b   : > { %6612 = vst.msk [vmem:[%s12192_s21 + $0x68] sm:$0xff] %vm508_vm1, %v6506_v2  ;;  %v6501_v8 = vadd.f32 %v6500_v26, %v6177_v17 }
 0x67d   : > { %6611 = vst.msk [vmem:[%s12192_s21 + $0x60] sm:$0xff] %vm508_vm1, %v6501_v8 }
 0x67e   : > { %v7327_v4 = vpop.f32.mrf.mxu0 }
 0x680   : > { %v6590_v28 = vpop.f32.mrf.mxu0 }
 0x68c   : > { %v7253_v1 = vpop.f32.mrf.mxu1 }
 0x68d   : > { %v6516_v53 = vadd.f32 %v7303_v52, %v7253_v1 }
 0x68e   : > { %v6187_v14 = vpop.f32.mrf.mxu1 }
 0x68f   : > { %6614 = vst.msk [vmem:[%s12192_s21 + $0x78] sm:$0xff] %vm508_vm1, %v6516_v53  ;;  %v6511_v20 = vadd.f32 %v6510_v23, %v6187_v14 }
 0x691   : > { %6613 = vst.msk [vmem:[%s12192_s21 + $0x70] sm:$0xff] %vm508_vm1, %v6511_v20 }
 0x69f   : > { %v7256_v25 = vpop.f32.mrf.mxu1 }
 0x6a0   : > { %v6526_v32 = vadd.f32 %v7306_v15, %v7256_v25 }
 0x6a1   : > { %v6197_v42 = vpop.f32.mrf.mxu1 }
 0x6a2   : > { %6616 = vst.msk [vmem:[%s12192_s21 + $0x88] sm:$0xff] %vm508_vm1, %v6526_v32  ;;  %v6521_v61 = vadd.f32 %v6520_v31, %v6197_v42 }
 0x6a4   : > { %6615 = vst.msk [vmem:[%s12192_s21 + $0x80] sm:$0xff] %vm508_vm1, %v6521_v61 }
 0x6b1   : > { %v7259_v55 = vpop.f32.mrf.mxu1 }
 0x6b2   : > { %v6536_v39 = vadd.f32 %v7309_v48, %v7259_v55 }
 0x6b3   : > { %v6207_v38 = vpop.f32.mrf.mxu1 }
 0x6b4   : > { %6618 = vst.msk [vmem:[%s12192_s21 + $0x98] sm:$0xff] %vm508_vm1, %v6536_v39  ;;  %v6531_v49 = vadd.f32 %v6530_v57, %v6207_v38 }
 0x6b6   : > { %6617 = vst.msk [vmem:[%s12192_s21 + $0x90] sm:$0xff] %vm508_vm1, %v6531_v49 }
 0x6c4   : > { %v7262_v29 = vpop.f32.mrf.mxu1 }
 0x6c5   : > { %v6546_v59 = vadd.f32 %v7312_v45, %v7262_v29 }
 0x6c6   : > { %v6217_v19 = vpop.f32.mrf.mxu1 }
 0x6c7   : > { %6620 = vst.msk [vmem:[%s12192_s21 + $0xa8] sm:$0xff] %vm508_vm1, %v6546_v59  ;;  %v6541_v37 = vadd.f32 %v6540_v54, %v6217_v19 }
 0x6c9   : > { %6619 = vst.msk [vmem:[%s12192_s21 + $0xa0] sm:$0xff] %vm508_vm1, %v6541_v37 }
 0x6d7   : > { %v7265_v51 = vpop.f32.mrf.mxu1 }
 0x6d8   : > { %v6556_v35 = vadd.f32 %v7315_v56, %v7265_v51 }
 0x6d9   : > { %v6227_v63 = vpop.f32.mrf.mxu1 }
 0x6da   : > { %6622 = vst.msk [vmem:[%s12192_s21 + $0xb8] sm:$0xff] %vm508_vm1, %v6556_v35  ;;  %v6551_v7 = vadd.f32 %v6550_v47, %v6227_v63 }
 0x6dc   : > { %6621 = vst.msk [vmem:[%s12192_s21 + $0xb0] sm:$0xff] %vm508_vm1, %v6551_v7 }
 0x6e9   : > { %v7268_v11 = vpop.f32.mrf.mxu1 }
 0x6ea   : > { %v6566_v58 = vadd.f32 %v7318_v24, %v7268_v11 }
 0x6eb   : > { %v6237_v44 = vpop.f32.mrf.mxu1 }
 0x6ec   : > { %6624 = vst.msk [vmem:[%s12192_s21 + $0xc8] sm:$0xff] %vm508_vm1, %v6566_v58  ;;  %v6561_v41 = vadd.f32 %v6560_v22, %v6237_v44 }
 0x6ee   : > { %6623 = vst.msk [vmem:[%s12192_s21 + $0xc0] sm:$0xff] %vm508_vm1, %v6561_v41 }
 0x6fb   : > { %v7271_v62 = vpop.f32.mrf.mxu1 }
 0x6fc   : > { %v6576_v5 = vadd.f32 %v7321_v50, %v7271_v62 }
 0x6fd   : > { %v6247_v9 = vpop.f32.mrf.mxu1 }
 0x6fe   : > { %6626 = vst.msk [vmem:[%s12192_s21 + $0xd8] sm:$0xff] %vm508_vm1, %v6576_v5  ;;  %v6571_v0 = vadd.f32 %v6570_v16, %v6247_v9 }
 0x700   : > { %6625 = vst.msk [vmem:[%s12192_s21 + $0xd0] sm:$0xff] %vm508_vm1, %v6571_v0 }
 0x70d   : > { %v7274_v43 = vpop.f32.mrf.mxu1 }
 0x70e   : > { %v6586_v34 = vadd.f32 %v7324_v18, %v7274_v43 }
 0x70f   : > { %v6257_v13 = vpop.f32.mrf.mxu1 }
 0x710   : > { %6628 = vst.msk [vmem:[%s12192_s21 + $0xe8] sm:$0xff] %vm508_vm1, %v6586_v34  ;;  %v6581_v40 = vadd.f32 %v6580_v46, %v6257_v13 }
 0x712   : > { %6627 = vst.msk [vmem:[%s12192_s21 + $0xe0] sm:$0xff] %vm508_vm1, %v6581_v40 }
 0x720   : > { %v7277_v21 = vpop.f32.mrf.mxu1 }
 0x721   : > { %v6596_v12 = vadd.f32 %v7327_v4, %v7277_v21 }
 0x722   : > { %v6267_v10 = vpop.f32.mrf.mxu1 }
 0x723   : > { %6630 = vst.msk [vmem:[%s12192_s21 + $0xf8] sm:$0xff] %vm508_vm1, %v6596_v12  ;;  %v6591_v60 = vadd.f32 %v6590_v28, %v6267_v10 }
 0x725   : > { %6629 = vst.msk [vmem:[%s12192_s21 + $0xf0] sm:$0xff] %vm508_vm1, %v6591_v60 }
 0x726 PF: > { %s24_s29 = sadd.s32 1, %s7427_s29  }
 0x727   : > { %p21_p4 = scmp.ge.s32.totalorder %s24_s29, 4  }
 0x729   :  { %23 = sbr.rel (!%p21_p4) target bundleno = 1 (0x1), region = 108 }

</bundles_post_ra>
